<compile_context>
chip_gen: v6e
topology: v6e:2x2x1
jax: 0.10.0
libtpu: 0.0.40
codegen_flags: <defaults>
</compile_context>

<pallas_src>
import math

import jax
import jax.numpy as jnp
from jax import lax
from jax.experimental import pallas as pl
from jax.experimental.pallas import tpu as pltpu

# ------------------------- configuration (small) -----------------------------
INPUT_DIM   = 32                       # input_dim / d_model of transformer blocks
NUM_HEADS   = 2
D_K         = INPUT_DIM // NUM_HEADS   # 16
DFF         = 64                       # dff of the LSTM cells / classifier head
NUM_PATCHES = 2
GRID_H      = 4
GRID_W      = 4
TOTAL_GRID  = NUM_PATCHES * GRID_H * GRID_W      # 32
SEQ         = TOTAL_GRID + 1                     # +1 CLS token -> 33
NUM_CLASSES = 10
TEC_FF      = 1024                     # hardcoded dim_feedforward of the TEC layer
LN_EPS      = 1e-5

# ---------------------- packed-bias buffer layout -----------------------------
_BIAS_SEGMENTS = (
    ("t1_bqkv", 6 * INPUT_DIM), ("t1_b1", 4 * INPUT_DIM), ("t1_b2", INPUT_DIM),
    ("l1_b", 4 * DFF),
    ("t2_bqkv", 6 * INPUT_DIM), ("t2_b1", 4 * INPUT_DIM), ("t2_b2", INPUT_DIM),
    ("l2_b", 4 * DFF),
    ("b_vo", DFF), ("bff1", TEC_FF), ("bff2", DFF),
    ("bc1", DFF), ("bc2", DFF), ("bc3", NUM_CLASSES),
)


def _bias_layout():
    layout, off = {}, 0
    for name, width in _BIAS_SEGMENTS:
        layout[name] = (off, width)
        off += ((width + 127) // 128) * 128   # keep every segment 128-lane aligned
    return layout, off


BIAS_LAYOUT, BIAS_TOTAL = _bias_layout()     # total = 3200 lanes (~12.8 KB f32)


# --------------------------- shared math helpers -------------------------------
# (pure jnp; used both inside the Pallas kernel and by the plain-JAX reference)
def _layernorm(x):
    # nn.LayerNorm with default affine (gamma=1, beta=0; untouched by _init_weights).
    mu = jnp.mean(x, axis=-1, keepdims=True)
    xc = x - mu
    var = jnp.mean(xc * xc, axis=-1, keepdims=True)
    return xc * lax.rsqrt(var + LN_EPS)


def _gelu(x):
    # tanh-approximate GELU (per perf review: tanh goes to the EUP slot).
    # TODO(synk): torch's F.gelu default is the exact erf form; the tanh form
    # differs by <1e-3 over the active range — swap in an erf if bit-parity is needed.
    c = 0.7978845608028654   # sqrt(2/pi)
    return 0.5 * x * (1.0 + jnp.tanh(c * (x + 0.044715 * x * x * x)))


def _softmax(x):
    m = jnp.max(x, axis=-1, keepdims=True)
    e = jnp.exp(x - m)
    return e / jnp.sum(e, axis=-1, keepdims=True)


def _elu(x):
    return jnp.where(x > 0.0, x, jnp.exp(jnp.minimum(x, 0.0)) - 1.0)


# ------------------------------ fused kernel -----------------------------------
def _fused_vit_kernel(
    # inputs (VMEM unless noted)
    x2d_ref, pos_ref,
    c1_ref, m1_ref, h1_ref, n1_ref, c2_ref, m2_ref, h2_ref, n2_ref,
    wqkv_ref, w1_ref, w2_ref, lw_ref, head_w_ref, bias_ref,
    wff1_hbm, wff2_hbm,                 # memory_space=pl.ANY (stay in HBM)
    # outputs
    out_ref,
    # scratch
    wff1_vmem, wff2_vmem, dma_sem,
):
    D, F, S = INPUT_DIM, DFF, SEQ

    # Kick off the deferred DMA of the ~512 KB head-FFN weights so the transfer
    # overlaps the transformer/LSTM compute; waited on just before the head FFN.
    cp_ff1 = pltpu.make_async_copy(wff1_hbm, wff1_vmem, dma_sem.at[0])
    cp_ff2 = pltpu.make_async_copy(wff2_hbm, wff2_vmem, dma_sem.at[1])
    cp_ff1.start()
    cp_ff2.start()

    def bias(name):
        off, width = BIAS_LAYOUT[name]          # static python ints -> free ref slice
        return bias_ref[:, off:off + width]

    lane_d = lax.broadcasted_iota(jnp.int32, (1, D), 1)
    scale = 1.0 / math.sqrt(D_K)

    def transformer_block(state, hmem, wqkv, bqkv, w1, b1, w2, b2):
        # Merged QKV projection: [state | hmem] @ block-diagonal weight -> one push.
        zin = jnp.concatenate([state, hmem], axis=1)                       # (S, D+F)
        qkv = jnp.dot(zin, wqkv, preferred_element_type=jnp.float32) + bqkv  # (S, 6D)

        def blk(j):                                   # layernorm of one 32-wide block
            return _layernorm(qkv[:, j * D:(j + 1) * D])

        q = blk(0) * blk(3)                           # normQE(W_q e) * normQH(W_C1q h)
        k = blk(1) * blk(4)
        v = blk(2) * blk(5)

        # Per-head attention via feature masks (no concat of head outputs): masking
        # the head's d_k feature columns of k makes q @ (k*mask)^T exactly the head's
        # scores, and softmax(scores) @ (v*mask) writes the head's output into its
        # own columns (others exactly 0), so summing heads reproduces the concat.
        # The 1/sqrt(d_k) scale is folded into the key mask (free).
        attn = jnp.zeros((S, D), jnp.float32)
        for h in range(NUM_HEADS):                                         # static unroll
            inhead = jnp.logical_and(lane_d >= h * D_K, lane_d < (h + 1) * D_K)
            k_h = k * jnp.where(inhead, scale, 0.0)
            v_h = v * jnp.where(inhead, 1.0, 0.0)
            scores = lax.dot_general(q, k_h, (((1,), (1,)), ((), ())),
                                     preferred_element_type=jnp.float32)  # (S, S)
            attn = attn + jnp.dot(_softmax(scores), v_h,
                                  preferred_element_type=jnp.float32)

        z1 = state + attn                                                  # dropout1 == id
        z3 = _gelu(jnp.dot(_layernorm(z1), w1,
                           preferred_element_type=jnp.float32) + b1)       # norm1+linear1
        return z1 + jnp.dot(z3, w2, preferred_element_type=jnp.float32) + b2  # dropout2 == id

    def lstm_cell(Z, C, M, H, N, w, b):
        # Merged gates: [H | Z] @ [W ; R] -> one push.  b = bW + bR pre-folded.
        hz = jnp.concatenate([H, Z], axis=1)                               # (S, F+D)
        gates = jnp.dot(hz, w, preferred_element_type=jnp.float32) + b     # (S, 4F) [I|F|O|Z]
        i_t = gates[:, 0 * F:1 * F]
        f_t = gates[:, 1 * F:2 * F]
        o_t = gates[:, 2 * F:3 * F]
        z_t = gates[:, 3 * F:4 * F]
        m_new = jnp.maximum(f_t + M, i_t)
        i_g = jnp.exp(i_t - m_new)
        f_g = jnp.exp(f_t + M - m_new)
        n_new = f_g * N + i_g
        c_new = C * f_g + jnp.tanh(z_t) * i_g
        # C_t / M_t / N_t updates are dead in the module's forward(); only H_t
        # feeds the next transformer block / the classifier head.
        return jax.nn.sigmoid(o_t) * (c_new / n_new)

    # --- encode() glue, in-kernel -------------------------------------------------
    # Row 0 = CLS token (folded into pos_ref row 0 at init); rows 1..S-1 = x + pos.
    # The one-row shift is a tiny constant matmul (shift[i, j] = (i == j+1)),
    # which avoids an unaligned sublane concat.
    ri = lax.broadcasted_iota(jnp.int32, (S, TOTAL_GRID), 0)
    ci = lax.broadcasted_iota(jnp.int32, (S, TOTAL_GRID), 1)
    shift = (ri == ci + 1).astype(jnp.float32)                             # (S, S-1)
    x = jnp.dot(shift, x2d_ref[...], preferred_element_type=jnp.float32) + pos_ref[...]

    h1_in = h1_ref[...]
    z1 = transformer_block(x, h1_in,
                           wqkv_ref[0:D + F, :], bias("t1_bqkv"),
                           w1_ref[0:D, :], bias("t1_b1"),
                           w2_ref[0:4 * D, :], bias("t1_b2"))
    h1 = lstm_cell(z1, c1_ref[...], m1_ref[...], h1_in, n1_ref[...],
                   lw_ref[0:F + D, :], bias("l1_b"))
    z2 = transformer_block(z1, h1,
                           wqkv_ref[D + F:2 * (D + F), :], bias("t2_bqkv"),
                           w1_ref[D:2 * D, :], bias("t2_b1"),
                           w2_ref[4 * D:8 * D, :], bias("t2_b2"))
    h2 = lstm_cell(z2, c2_ref[...], m2_ref[...], h2_ref[...], n2_ref[...],
                   lw_ref[F + D:2 * (F + D), :], bias("l2_b"))

    # --- TEC encoder layer + classifier, restricted to the CLS row -----------------
    # nn.TransformerEncoderLayer (batch_first=False) sees H2 as (seq=1, batch=S, dff):
    # softmax over a length-1 key axis is identically 1, so self-attention is exactly
    # out_proj(v_proj(x)) per row (folded into w_vo/b_vo host-side), and every op in
    # the layer is row-independent — computing only row 0 (the CLS row that feeds the
    # classifier) is exact and cuts the 1024-wide FFN work by 33x.
    cls = h2[0:1, :]                                                       # (1, F)
    sa = jnp.dot(cls, head_w_ref[0:F, :],
                 preferred_element_type=jnp.float32) + bias("b_vo")
    xr = _layernorm(cls + sa)                                              # TEC norm1

    cp_ff1.wait()                                                          # DMA overlap ends here
    cp_ff2.wait()
    ffh = _gelu(jnp.dot(xr, wff1_vmem[...],
                        preferred_element_type=jnp.float32) + bias("bff1"))
    ff = jnp.dot(ffh, wff2_vmem[...],
                 preferred_element_type=jnp.float32) + bias("bff2")
    xr = _layernorm(xr + ff)                                               # TEC norm2

    cr = _elu(jnp.dot(xr, head_w_ref[F:2 * F, :],
                      preferred_element_type=jnp.float32) + bias("bc1"))
    cr = _elu(jnp.dot(cr, head_w_ref[2 * F:3 * F, :],
                      preferred_element_type=jnp.float32) + bias("bc2"))
    out_ref[...] = (jnp.dot(cr, head_w_ref[3 * F:4 * F, 0:NUM_CLASSES],
                            preferred_element_type=jnp.float32) + bias("bc3"))


# --------------------------- pallas_call wrapper --------------------------------
@jax.jit
def vit_classifier_forward(packed, x, C1, M1, H1, N1, C2, M2, H2, N2):
    # The only host-side glue left: torch's `.view` flatten of the raw input.
    x2d = x.reshape(TOTAL_GRID, INPUT_DIM)
    operands = (x2d, packed["pos_cls"],
                C1, M1, H1, N1, C2, M2, H2, N2,
                packed["wqkv"], packed["w1"], packed["w2"], packed["lw"],
                packed["head_w"], packed["biases"],
                packed["wff1"], packed["wff2"])
    n_vmem = len(operands) - 2            # last two (wff1/wff2) stay in HBM
    return pl.pallas_call(
        _fused_vit_kernel,
        in_specs=([pl.BlockSpec(memory_space=pltpu.MemorySpace.VMEM)] * n_vmem
                  + [pl.BlockSpec(memory_space=pl.ANY)] * 2),
        out_specs=pl.BlockSpec(memory_space=pltpu.MemorySpace.VMEM),
        out_shape=jax.ShapeDtypeStruct((1, NUM_CLASSES), jnp.float32),
        scratch_shapes=[pltpu.VMEM((DFF, TEC_FF), jnp.float32),
                        pltpu.VMEM((TEC_FF, DFF), jnp.float32),
                        pltpu.SemaphoreType.DMA((2,))],
        # No grid: single invocation, batch==1 (the torch module only supports
        # batch 1).  On v7x one TC is idle; a "parallel" batch grid axis would be
        # added only if batching were ever served.
    )(*operands)


# ------------------------------- parameters ------------------------------------
def init_params(key):
    """Unpacked, PyTorch-layout-equivalent parameters (weights stored (in, out))."""
    keys = iter(jax.random.split(key, 80))

    def normal(shape, std=0.02):
        return std * jax.random.normal(next(keys), shape, dtype=jnp.float32)

    def linear(fan_in, fan_out):
        # nn.Linear per _init_weights: weight ~ N(0, 0.02), bias = 0.
        return normal((fan_in, fan_out)), jnp.zeros((fan_out,), jnp.float32)

    def tblock():
        p = {}
        for n, fi in (("q_e", INPUT_DIM), ("k_e", INPUT_DIM), ("v_e", INPUT_DIM),
                      ("q_h", DFF), ("k_h", DFF), ("v_h", DFF)):
            p["w" + n], p["b" + n] = linear(fi, INPUT_DIM)
        p["w1"], p["b1"] = linear(INPUT_DIM, 4 * INPUT_DIM)
        p["w2"], p["b2"] = linear(4 * INPUT_DIM, INPUT_DIM)
        return p

    def lstm():
        p = {}
        for n in "IFOZ":
            p["W" + n], p["bW" + n] = linear(DFF, DFF)
            p["R" + n], p["bR" + n] = linear(INPUT_DIM, DFF)
        return p

    head = {}
    head["wv"], head["bv"] = linear(DFF, DFF)          # V slice of TEC in_proj
    head["wo"], head["bo"] = linear(DFF, DFF)          # TEC out_proj
    head["wff1"], head["bff1"] = linear(DFF, TEC_FF)
    head["wff2"], head["bff2"] = linear(TEC_FF, DFF)
    head["wc1"], head["bc1"] = linear(DFF, DFF)
    head["wc2"], head["bc2"] = linear(DFF, DFF)
    head["wc3"], head["bc3"] = linear(DFF, NUM_CLASSES)

    return dict(pos=normal((SEQ, INPUT_DIM)), cls=normal((1, 1, INPUT_DIM)),
                t1=tblock(), l1=lstm(), t2=tblock(), l2=lstm(), head=head)


def _pack_tblock(t):
    """Block-diagonal merged QKV weight (D+F, 6D) [qe|ke|ve|qh|kh|vh] + bias (6D,)."""
    D, F = INPUT_DIM, DFF
    w = jnp.zeros((D + F, 6 * D), jnp.float32)
    b = jnp.zeros((6 * D,), jnp.float32)
    for j, n in enumerate(("q_e", "k_e", "v_e")):
        w = w.at[0:D, j * D:(j + 1) * D].set(t["w" + n])
        b = b.at[j * D:(j + 1) * D].set(t["b" + n])
    for j, n in enumerate(("q_h", "k_h", "v_h")):
        col = (3 + j) * D
        w = w.at[D:D + F, col:col + D].set(t["w" + n])
        b = b.at[col:col + D].set(t["b" + n])
    return w, b


def _pack_lstm(l):
    """Merged gate weight (F+D, 4F) [I|F|O|Z] for [H|Z] input + folded bias (4F,)."""
    D, F = INPUT_DIM, DFF
    w = jnp.zeros((F + D, 4 * F), jnp.float32)
    b = jnp.zeros((4 * F,), jnp.float32)
    for g, n in enumerate("IFOZ"):
        col = g * F
        w = w.at[0:F, col:col + F].set(l["W" + n])
        w = w.at[F:F + D, col:col + F].set(l["R" + n])
        b = b.at[col:col + F].set(l["bW" + n] + l["bR" + n])
    return w, b


def pack_params(p):
    """Init-time packing into the few buffers the kernel consumes."""
    t1w, t1b = _pack_tblock(p["t1"])
    t2w, t2b = _pack_tblock(p["t2"])
    l1w, l1b = _pack_lstm(p["l1"])
    l2w, l2b = _pack_lstm(p["l2"])
    hd = p["head"]

    # TEC value/out projections folded (softmax over a length-1 key axis == 1).
    w_vo = hd["wv"] @ hd["wo"]
    b_vo = hd["bv"] @ hd["wo"] + hd["bo"]

    head_w = jnp.zeros((4 * DFF, DFF), jnp.float32)
    head_w = head_w.at[0:DFF, :].set(w_vo)
    head_w = head_w.at[DFF:2 * DFF, :].set(hd["wc1"])
    head_w = head_w.at[2 * DFF:3 * DFF, :].set(hd["wc2"])
    head_w = head_w.at[3 * DFF:4 * DFF, 0:NUM_CLASSES].set(hd["wc3"])

    biases = jnp.zeros((1, BIAS_TOTAL), jnp.float32)
    segs = {"t1_bqkv": t1b, "t1_b1": p["t1"]["b1"], "t1_b2": p["t1"]["b2"], "l1_b": l1b,
            "t2_bqkv": t2b, "t2_b1": p["t2"]["b1"], "t2_b2": p["t2"]["b2"], "l2_b": l2b,
            "b_vo": b_vo, "bff1": hd["bff1"], "bff2": hd["bff2"],
            "bc1": hd["bc1"], "bc2": hd["bc2"], "bc3": hd["bc3"]}
    for name, vec in segs.items():
        off, width = BIAS_LAYOUT[name]
        biases = biases.at[0, off:off + width].set(vec)

    # CLS token folded into pos-embedding row 0 (the CLS row's input is cls + pos[0]).
    pos_cls = p["pos"].at[0, :].add(p["cls"].reshape(INPUT_DIM))

    return dict(
        pos_cls=pos_cls,
        wqkv=jnp.concatenate([t1w, t2w], axis=0),                 # (192, 192)
        w1=jnp.concatenate([p["t1"]["w1"], p["t2"]["w1"]], axis=0),  # (64, 128)
        w2=jnp.concatenate([p["t1"]["w2"], p["t2"]["w2"]], axis=0),  # (256, 32)
        lw=jnp.concatenate([l1w, l2w], axis=0),                   # (192, 256)
        head_w=head_w,                                            # (256, 64)
        biases=biases,                                            # (1, 3200)
        wff1=hd["wff1"], wff2=hd["wff2"])                         # HBM-resident


# -------------------- plain-JAX reference (unfused, literal) -------------------
def _tblock_ref(p, state, H):
    def proj(wx, bx, wh, bh):
        return _layernorm(state @ wx + bx) * _layernorm(H @ wh + bh)

    q = proj(p["wq_e"], p["bq_e"], p["wq_h"], p["bq_h"])
    k = proj(p["wk_e"], p["bk_e"], p["wk_h"], p["bk_h"])
    v = proj(p["wv_e"], p["bv_e"], p["wv_h"], p["bv_h"])
    heads = []
    for h in range(NUM_HEADS):
        sl = slice(h * D_K, (h + 1) * D_K)
        scores = (q[:, sl] @ k[:, sl].T) / math.sqrt(D_K)
        heads.append(_softmax(scores) @ v[:, sl])
    z1 = state + jnp.concatenate(heads, axis=-1)
    z3 = _gelu(_layernorm(z1) @ p["w1"] + p["b1"])
    return z1 + z3 @ p["w2"] + p["b2"]


def _lstm_ref(p, Z, C, M, H, N):
    I = H @ p["WI"] + p["bWI"] + Z @ p["RI"] + p["bRI"]
    Ft = H @ p["WF"] + p["bWF"] + Z @ p["RF"] + p["bRF"]
    O = H @ p["WO"] + p["bWO"] + Z @ p["RO"] + p["bRO"]
    Zt = H @ p["WZ"] + p["bWZ"] + Z @ p["RZ"] + p["bRZ"]
    Mn = jnp.maximum(Ft + M, I)
    i_g = jnp.exp(I - Mn)
    f_g = jnp.exp(Ft + M - Mn)
    Nn = f_g * N + i_g
    Cn = C * f_g + jnp.tanh(Zt) * i_g
    return jax.nn.sigmoid(O) * (Cn / Nn)


def _head_ref(p, H2):
    # Full 33-row TEC (validates the kernel's CLS-row-only restriction + folding).
    v = H2 @ p["wv"] + p["bv"]
    sa = v @ p["wo"] + p["bo"]                  # softmax over length-1 keys == 1
    x = _layernorm(H2 + sa)
    ff = _gelu(x @ p["wff1"] + p["bff1"]) @ p["wff2"] + p["bff2"]
    x = _layernorm(x + ff)
    cls = x[0:1, :]
    cls = _elu(cls @ p["wc1"] + p["bc1"])
    cls = _elu(cls @ p["wc2"] + p["bc2"])
    return cls @ p["wc3"] + p["bc3"]


@jax.jit
def _forward_ref(params, x, C1, M1, H1, N1, C2, M2, H2, N2):
    x = x.reshape(TOTAL_GRID, INPUT_DIM)
    x = jnp.concatenate([params["cls"].reshape(1, INPUT_DIM), x], axis=0) + params["pos"]
    z1 = _tblock_ref(params["t1"], x, H1)
    h1 = _lstm_ref(params["l1"], z1, C1, M1, H1, N1)
    z2 = _tblock_ref(params["t2"], z1, h1)
    h2 = _lstm_ref(params["l2"], z2, C2, M2, H2, N2)
    return _head_ref(params["head"], h2)


# --------------------------------- main -----------------------------------------
if __name__ == "__main__":
    root = jax.random.PRNGKey(0)
    pkey, dkey = jax.random.split(root)
    params = init_params(pkey)
    packed = pack_params(params)

    dkeys = jax.random.split(dkey, 9)
    x = jax.random.normal(dkeys[0], (1, NUM_PATCHES, INPUT_DIM, GRID_H, GRID_W),
                          dtype=jnp.float32)
    C1, M1, H1, N1, C2, M2, H2, N2 = [
        jax.random.normal(k, (SEQ, DFF), dtype=jnp.float32) for k in dkeys[1:]]
    # N states divide C_t; keep them positive like a real running normalizer.
    N1 = jnp.abs(N1) + 1.0
    N2 = jnp.abs(N2) + 1.0

    logits = jax.block_until_ready(
        vit_classifier_forward(packed, x, C1, M1, H1, N1, C2, M2, H2, N2))
    assert logits.shape == (1, NUM_CLASSES)
    assert bool(jnp.all(jnp.isfinite(logits)))

    ref = jax.block_until_ready(
        _forward_ref(params, x, C1, M1, H1, N1, C2, M2, H2, N2))
    assert bool(jnp.allclose(logits, ref, rtol=1e-3, atol=1e-3)), (logits, ref)
    print("KERNEL_OK")
</pallas_src>

<mosaic_0001>
module attributes {stable_mosaic.version = 11 : i64} {
  func.func @_fused_vit_kernel(%arg0: memref<32x32xf32, #tpu.memory_space<vmem>>, %arg1: memref<33x32xf32, #tpu.memory_space<vmem>>, %arg2: memref<33x64xf32, #tpu.memory_space<vmem>>, %arg3: memref<33x64xf32, #tpu.memory_space<vmem>>, %arg4: memref<33x64xf32, #tpu.memory_space<vmem>>, %arg5: memref<33x64xf32, #tpu.memory_space<vmem>>, %arg6: memref<33x64xf32, #tpu.memory_space<vmem>>, %arg7: memref<33x64xf32, #tpu.memory_space<vmem>>, %arg8: memref<33x64xf32, #tpu.memory_space<vmem>>, %arg9: memref<33x64xf32, #tpu.memory_space<vmem>>, %arg10: memref<192x192xf32, #tpu.memory_space<vmem>>, %arg11: memref<64x128xf32, #tpu.memory_space<vmem>>, %arg12: memref<256x32xf32, #tpu.memory_space<vmem>>, %arg13: memref<192x256xf32, #tpu.memory_space<vmem>>, %arg14: memref<256x64xf32, #tpu.memory_space<vmem>>, %arg15: memref<1x3200xf32, #tpu.memory_space<vmem>>, %arg16: memref<64x1024xf32, #tpu.memory_space<any>>, %arg17: memref<1024x64xf32, #tpu.memory_space<any>>, %arg18: memref<1x10xf32, #tpu.memory_space<vmem>>, %arg19: memref<64x1024xf32, #tpu.memory_space<vmem>>, %arg20: memref<1024x64xf32, #tpu.memory_space<vmem>>, %arg21: memref<2x!tpu.dma_semaphore, #tpu.memory_space<semaphore_mem>>) attributes {dimension_semantics = [], scalar_prefetch = 0 : i64, scratch_operands = 3 : i64, tpu.core_type = #tpu.core_type<tc>} {
    %c0_i32 = arith.constant 0 : i32
    %0 = tpu.memref_slice %arg21[%c0_i32] : memref<2x!tpu.dma_semaphore, #tpu.memory_space<semaphore_mem>> -> memref<1x!tpu.dma_semaphore, #tpu.memory_space<semaphore_mem>>
    %1 = tpu.memref_squeeze %0 : memref<1x!tpu.dma_semaphore, #tpu.memory_space<semaphore_mem>> -> memref<!tpu.dma_semaphore, #tpu.memory_space<semaphore_mem>>
    tpu.enqueue_dma source(%arg16 : memref<64x1024xf32, #tpu.memory_space<any>>) target(%arg19 : memref<64x1024xf32, #tpu.memory_space<vmem>>) target_semaphore(%1 : memref<!tpu.dma_semaphore, #tpu.memory_space<semaphore_mem>>)
    %c1_i32 = arith.constant 1 : i32
    %2 = tpu.memref_slice %arg21[%c1_i32] : memref<2x!tpu.dma_semaphore, #tpu.memory_space<semaphore_mem>> -> memref<1x!tpu.dma_semaphore, #tpu.memory_space<semaphore_mem>>
    %3 = tpu.memref_squeeze %2 : memref<1x!tpu.dma_semaphore, #tpu.memory_space<semaphore_mem>> -> memref<!tpu.dma_semaphore, #tpu.memory_space<semaphore_mem>>
    tpu.enqueue_dma source(%arg17 : memref<1024x64xf32, #tpu.memory_space<any>>) target(%arg20 : memref<1024x64xf32, #tpu.memory_space<vmem>>) target_semaphore(%3 : memref<!tpu.dma_semaphore, #tpu.memory_space<semaphore_mem>>)
    %4 = tpu.iota {dimensions = array<i32: 1>} : vector<1x32xi32>
    %5 = tpu.iota {dimensions = array<i32: 0>} : vector<33x32xi32>
    %6 = tpu.iota {dimensions = array<i32: 1>} : vector<33x32xi32>
    %c1_i32_0 = arith.constant 1 : i32
    %7 = vector.broadcast %c1_i32_0 : i32 to vector<33x32xi32>
    %8 = arith.addi %6, %7 : vector<33x32xi32>
    %9 = arith.cmpi eq, %5, %8 : vector<33x32xi32>
    %10 = arith.extui %9 : vector<33x32xi1> to vector<33x32xi32>
    %11 = arith.sitofp %10 : vector<33x32xi32> to vector<33x32xf32>
    %c0 = arith.constant 0 : index
    %c0_1 = arith.constant 0 : index
    %12 = vector.load %arg0[%c0, %c0_1] : memref<32x32xf32, #tpu.memory_space<vmem>>, vector<32x32xf32>
    %cst = arith.constant dense<0.000000e+00> : vector<33x32xf32>
    %13 = tpu.matmul %11, %12, %cst {dimension_numbers = #tpu.dot_dimension_numbers<[1], [0], [0], [1], [0, 0, 1, 1], [], []>} : vector<33x32xf32>, vector<32x32xf32>, vector<33x32xf32> -> vector<33x32xf32>
    %c0_2 = arith.constant 0 : index
    %c0_3 = arith.constant 0 : index
    %14 = vector.load %arg1[%c0_2, %c0_3] : memref<33x32xf32, #tpu.memory_space<vmem>>, vector<33x32xf32>
    %15 = arith.addf %13, %14 : vector<33x32xf32>
    %c0_4 = arith.constant 0 : index
    %c0_5 = arith.constant 0 : index
    %16 = vector.load %arg4[%c0_4, %c0_5] : memref<33x64xf32, #tpu.memory_space<vmem>>, vector<33x64xf32>
    %c0_6 = arith.constant 0 : index
    %c0_7 = arith.constant 0 : index
    %17 = vector.load %arg10[%c0_6, %c0_7] : memref<192x192xf32, #tpu.memory_space<vmem>>, vector<96x192xf32>
    %c0_8 = arith.constant 0 : index
    %c0_9 = arith.constant 0 : index
    %18 = vector.load %arg15[%c0_8, %c0_9] : memref<1x3200xf32, #tpu.memory_space<vmem>>, vector<1x192xf32>
    %c0_10 = arith.constant 0 : index
    %c0_11 = arith.constant 0 : index
    %19 = vector.load %arg11[%c0_10, %c0_11] : memref<64x128xf32, #tpu.memory_space<vmem>>, vector<32x128xf32>
    %c0_12 = arith.constant 0 : index
    %c256 = arith.constant 256 : index
    %20 = vector.load %arg15[%c0_12, %c256] : memref<1x3200xf32, #tpu.memory_space<vmem>>, vector<1x128xf32>
    %c0_13 = arith.constant 0 : index
    %c0_14 = arith.constant 0 : index
    %21 = vector.load %arg12[%c0_13, %c0_14] : memref<256x32xf32, #tpu.memory_space<vmem>>, vector<128x32xf32>
    %c0_15 = arith.constant 0 : index
    %c384 = arith.constant 384 : index
    %22 = vector.load %arg15[%c0_15, %c384] : memref<1x3200xf32, #tpu.memory_space<vmem>>, vector<1x32xf32>
    %23 = tpu.concatenate %15, %16 in 1 : vector<33x32xf32>, vector<33x64xf32> -> vector<33x96xf32>
    %cst_16 = arith.constant dense<0.000000e+00> : vector<33x192xf32>
    %24 = tpu.matmul %23, %17, %cst_16 {dimension_numbers = #tpu.dot_dimension_numbers<[1], [0], [0], [1], [0, 0, 1, 1], [], []>} : vector<33x96xf32>, vector<96x192xf32>, vector<33x192xf32> -> vector<33x192xf32>
    %25 = vector.broadcast %18 : vector<1x192xf32> to vector<33x192xf32>
    %26 = arith.addf %24, %25 : vector<33x192xf32>
    %27 = vector.extract_strided_slice %26 {offsets = [0, 0], sizes = [33, 32], strides = [1, 1]} : vector<33x192xf32> to vector<33x32xf32>
    %cst_17 = arith.constant dense<0.000000e+00> : vector<33xf32>
    %28 = vector.multi_reduction <add>, %27, %cst_17 [1] : vector<33x32xf32> to vector<33xf32>
    %29 = vector.shape_cast %28 : vector<33xf32> to vector<33x1xf32>
    %cst_18 = arith.constant 3.200000e+01 : f32
    %30 = vector.broadcast %cst_18 : f32 to vector<33x1xf32>
    %31 = arith.divf %29, %30 : vector<33x1xf32>
    %32 = vector.broadcast %31 : vector<33x1xf32> to vector<33x32xf32>
    %33 = arith.subf %27, %32 : vector<33x32xf32>
    %34 = arith.mulf %33, %33 : vector<33x32xf32>
    %cst_19 = arith.constant dense<0.000000e+00> : vector<33xf32>
    %35 = vector.multi_reduction <add>, %34, %cst_19 [1] : vector<33x32xf32> to vector<33xf32>
    %36 = vector.shape_cast %35 : vector<33xf32> to vector<33x1xf32>
    %cst_20 = arith.constant 3.200000e+01 : f32
    %37 = vector.broadcast %cst_20 : f32 to vector<33x1xf32>
    %38 = arith.divf %36, %37 : vector<33x1xf32>
    %cst_21 = arith.constant 9.99999974E-6 : f32
    %39 = vector.broadcast %cst_21 : f32 to vector<33x1xf32>
    %40 = arith.addf %38, %39 : vector<33x1xf32>
    %41 = math.rsqrt %40 : vector<33x1xf32>
    %42 = vector.broadcast %41 : vector<33x1xf32> to vector<33x32xf32>
    %43 = arith.mulf %33, %42 : vector<33x32xf32>
    %44 = vector.extract_strided_slice %26 {offsets = [0, 96], sizes = [33, 32], strides = [1, 1]} : vector<33x192xf32> to vector<33x32xf32>
    %cst_22 = arith.constant dense<0.000000e+00> : vector<33xf32>
    %45 = vector.multi_reduction <add>, %44, %cst_22 [1] : vector<33x32xf32> to vector<33xf32>
    %46 = vector.shape_cast %45 : vector<33xf32> to vector<33x1xf32>
    %cst_23 = arith.constant 3.200000e+01 : f32
    %47 = vector.broadcast %cst_23 : f32 to vector<33x1xf32>
    %48 = arith.divf %46, %47 : vector<33x1xf32>
    %49 = vector.broadcast %48 : vector<33x1xf32> to vector<33x32xf32>
    %50 = arith.subf %44, %49 : vector<33x32xf32>
    %51 = arith.mulf %50, %50 : vector<33x32xf32>
    %cst_24 = arith.constant dense<0.000000e+00> : vector<33xf32>
    %52 = vector.multi_reduction <add>, %51, %cst_24 [1] : vector<33x32xf32> to vector<33xf32>
    %53 = vector.shape_cast %52 : vector<33xf32> to vector<33x1xf32>
    %cst_25 = arith.constant 3.200000e+01 : f32
    %54 = vector.broadcast %cst_25 : f32 to vector<33x1xf32>
    %55 = arith.divf %53, %54 : vector<33x1xf32>
    %cst_26 = arith.constant 9.99999974E-6 : f32
    %56 = vector.broadcast %cst_26 : f32 to vector<33x1xf32>
    %57 = arith.addf %55, %56 : vector<33x1xf32>
    %58 = math.rsqrt %57 : vector<33x1xf32>
    %59 = vector.broadcast %58 : vector<33x1xf32> to vector<33x32xf32>
    %60 = arith.mulf %50, %59 : vector<33x32xf32>
    %61 = arith.mulf %43, %60 : vector<33x32xf32>
    %62 = vector.extract_strided_slice %26 {offsets = [0, 32], sizes = [33, 32], strides = [1, 1]} : vector<33x192xf32> to vector<33x32xf32>
    %cst_27 = arith.constant dense<0.000000e+00> : vector<33xf32>
    %63 = vector.multi_reduction <add>, %62, %cst_27 [1] : vector<33x32xf32> to vector<33xf32>
    %64 = vector.shape_cast %63 : vector<33xf32> to vector<33x1xf32>
    %cst_28 = arith.constant 3.200000e+01 : f32
    %65 = vector.broadcast %cst_28 : f32 to vector<33x1xf32>
    %66 = arith.divf %64, %65 : vector<33x1xf32>
    %67 = vector.broadcast %66 : vector<33x1xf32> to vector<33x32xf32>
    %68 = arith.subf %62, %67 : vector<33x32xf32>
    %69 = arith.mulf %68, %68 : vector<33x32xf32>
    %cst_29 = arith.constant dense<0.000000e+00> : vector<33xf32>
    %70 = vector.multi_reduction <add>, %69, %cst_29 [1] : vector<33x32xf32> to vector<33xf32>
    %71 = vector.shape_cast %70 : vector<33xf32> to vector<33x1xf32>
    %cst_30 = arith.constant 3.200000e+01 : f32
    %72 = vector.broadcast %cst_30 : f32 to vector<33x1xf32>
    %73 = arith.divf %71, %72 : vector<33x1xf32>
    %cst_31 = arith.constant 9.99999974E-6 : f32
    %74 = vector.broadcast %cst_31 : f32 to vector<33x1xf32>
    %75 = arith.addf %73, %74 : vector<33x1xf32>
    %76 = math.rsqrt %75 : vector<33x1xf32>
    %77 = vector.broadcast %76 : vector<33x1xf32> to vector<33x32xf32>
    %78 = arith.mulf %68, %77 : vector<33x32xf32>
    %79 = vector.extract_strided_slice %26 {offsets = [0, 128], sizes = [33, 32], strides = [1, 1]} : vector<33x192xf32> to vector<33x32xf32>
    %cst_32 = arith.constant dense<0.000000e+00> : vector<33xf32>
    %80 = vector.multi_reduction <add>, %79, %cst_32 [1] : vector<33x32xf32> to vector<33xf32>
    %81 = vector.shape_cast %80 : vector<33xf32> to vector<33x1xf32>
    %cst_33 = arith.constant 3.200000e+01 : f32
    %82 = vector.broadcast %cst_33 : f32 to vector<33x1xf32>
    %83 = arith.divf %81, %82 : vector<33x1xf32>
    %84 = vector.broadcast %83 : vector<33x1xf32> to vector<33x32xf32>
    %85 = arith.subf %79, %84 : vector<33x32xf32>
    %86 = arith.mulf %85, %85 : vector<33x32xf32>
    %cst_34 = arith.constant dense<0.000000e+00> : vector<33xf32>
    %87 = vector.multi_reduction <add>, %86, %cst_34 [1] : vector<33x32xf32> to vector<33xf32>
    %88 = vector.shape_cast %87 : vector<33xf32> to vector<33x1xf32>
    %cst_35 = arith.constant 3.200000e+01 : f32
    %89 = vector.broadcast %cst_35 : f32 to vector<33x1xf32>
    %90 = arith.divf %88, %89 : vector<33x1xf32>
    %cst_36 = arith.constant 9.99999974E-6 : f32
    %91 = vector.broadcast %cst_36 : f32 to vector<33x1xf32>
    %92 = arith.addf %90, %91 : vector<33x1xf32>
    %93 = math.rsqrt %92 : vector<33x1xf32>
    %94 = vector.broadcast %93 : vector<33x1xf32> to vector<33x32xf32>
    %95 = arith.mulf %85, %94 : vector<33x32xf32>
    %96 = arith.mulf %78, %95 : vector<33x32xf32>
    %97 = vector.extract_strided_slice %26 {offsets = [0, 64], sizes = [33, 32], strides = [1, 1]} : vector<33x192xf32> to vector<33x32xf32>
    %cst_37 = arith.constant dense<0.000000e+00> : vector<33xf32>
    %98 = vector.multi_reduction <add>, %97, %cst_37 [1] : vector<33x32xf32> to vector<33xf32>
    %99 = vector.shape_cast %98 : vector<33xf32> to vector<33x1xf32>
    %cst_38 = arith.constant 3.200000e+01 : f32
    %100 = vector.broadcast %cst_38 : f32 to vector<33x1xf32>
    %101 = arith.divf %99, %100 : vector<33x1xf32>
    %102 = vector.broadcast %101 : vector<33x1xf32> to vector<33x32xf32>
    %103 = arith.subf %97, %102 : vector<33x32xf32>
    %104 = arith.mulf %103, %103 : vector<33x32xf32>
    %cst_39 = arith.constant dense<0.000000e+00> : vector<33xf32>
    %105 = vector.multi_reduction <add>, %104, %cst_39 [1] : vector<33x32xf32> to vector<33xf32>
    %106 = vector.shape_cast %105 : vector<33xf32> to vector<33x1xf32>
    %cst_40 = arith.constant 3.200000e+01 : f32
    %107 = vector.broadcast %cst_40 : f32 to vector<33x1xf32>
    %108 = arith.divf %106, %107 : vector<33x1xf32>
    %cst_41 = arith.constant 9.99999974E-6 : f32
    %109 = vector.broadcast %cst_41 : f32 to vector<33x1xf32>
    %110 = arith.addf %108, %109 : vector<33x1xf32>
    %111 = math.rsqrt %110 : vector<33x1xf32>
    %112 = vector.broadcast %111 : vector<33x1xf32> to vector<33x32xf32>
    %113 = arith.mulf %103, %112 : vector<33x32xf32>
    %114 = vector.extract_strided_slice %26 {offsets = [0, 160], sizes = [33, 32], strides = [1, 1]} : vector<33x192xf32> to vector<33x32xf32>
    %cst_42 = arith.constant dense<0.000000e+00> : vector<33xf32>
    %115 = vector.multi_reduction <add>, %114, %cst_42 [1] : vector<33x32xf32> to vector<33xf32>
    %116 = vector.shape_cast %115 : vector<33xf32> to vector<33x1xf32>
    %cst_43 = arith.constant 3.200000e+01 : f32
    %117 = vector.broadcast %cst_43 : f32 to vector<33x1xf32>
    %118 = arith.divf %116, %117 : vector<33x1xf32>
    %119 = vector.broadcast %118 : vector<33x1xf32> to vector<33x32xf32>
    %120 = arith.subf %114, %119 : vector<33x32xf32>
    %121 = arith.mulf %120, %120 : vector<33x32xf32>
    %cst_44 = arith.constant dense<0.000000e+00> : vector<33xf32>
    %122 = vector.multi_reduction <add>, %121, %cst_44 [1] : vector<33x32xf32> to vector<33xf32>
    %123 = vector.shape_cast %122 : vector<33xf32> to vector<33x1xf32>
    %cst_45 = arith.constant 3.200000e+01 : f32
    %124 = vector.broadcast %cst_45 : f32 to vector<33x1xf32>
    %125 = arith.divf %123, %124 : vector<33x1xf32>
    %cst_46 = arith.constant 9.99999974E-6 : f32
    %126 = vector.broadcast %cst_46 : f32 to vector<33x1xf32>
    %127 = arith.addf %125, %126 : vector<33x1xf32>
    %128 = math.rsqrt %127 : vector<33x1xf32>
    %129 = vector.broadcast %128 : vector<33x1xf32> to vector<33x32xf32>
    %130 = arith.mulf %120, %129 : vector<33x32xf32>
    %131 = arith.mulf %113, %130 : vector<33x32xf32>
    %cst_47 = arith.constant 0.000000e+00 : f32
    %132 = vector.broadcast %cst_47 : f32 to vector<33x32xf32>
    %c0_i32_48 = arith.constant 0 : i32
    %133 = vector.broadcast %c0_i32_48 : i32 to vector<1x32xi32>
    %134 = arith.cmpi sge, %4, %133 : vector<1x32xi32>
    %c16_i32 = arith.constant 16 : i32
    %135 = vector.broadcast %c16_i32 : i32 to vector<1x32xi32>
    %136 = arith.cmpi slt, %4, %135 : vector<1x32xi32>
    %137 = arith.andi %134, %136 : vector<1x32xi1>
    %cst_49 = arith.constant 2.500000e-01 : f32
    %cst_50 = arith.constant 0.000000e+00 : f32
    %138 = vector.broadcast %cst_49 : f32 to vector<1x32xf32>
    %139 = vector.broadcast %cst_50 : f32 to vector<1x32xf32>
    %140 = arith.select %137, %138, %139 : vector<1x32xi1>, vector<1x32xf32>
    %141 = vector.broadcast %140 : vector<1x32xf32> to vector<33x32xf32>
    %142 = arith.mulf %96, %141 : vector<33x32xf32>
    %cst_51 = arith.constant 1.000000e+00 : f32
    %cst_52 = arith.constant 0.000000e+00 : f32
    %143 = vector.broadcast %cst_51 : f32 to vector<1x32xf32>
    %144 = vector.broadcast %cst_52 : f32 to vector<1x32xf32>
    %145 = arith.select %137, %143, %144 : vector<1x32xi1>, vector<1x32xf32>
    %146 = vector.broadcast %145 : vector<1x32xf32> to vector<33x32xf32>
    %147 = arith.mulf %131, %146 : vector<33x32xf32>
    %cst_53 = arith.constant dense<0.000000e+00> : vector<33x33xf32>
    %148 = tpu.matmul %61, %142, %cst_53 {dimension_numbers = #tpu.dot_dimension_numbers<[1], [1], [0], [0], [0, 0, 1, 0], [], []>} : vector<33x32xf32>, vector<33x32xf32>, vector<33x33xf32> -> vector<33x33xf32>
    %cst_54 = arith.constant dense<0xFF800000> : vector<33xf32>
    %149 = vector.multi_reduction <maximumf>, %148, %cst_54 [1] : vector<33x33xf32> to vector<33xf32>
    %150 = vector.shape_cast %149 : vector<33xf32> to vector<33x1xf32>
    %151 = vector.broadcast %150 : vector<33x1xf32> to vector<33x33xf32>
    %152 = arith.subf %148, %151 : vector<33x33xf32>
    %153 = math.exp %152 : vector<33x33xf32>
    %cst_55 = arith.constant dense<0.000000e+00> : vector<33xf32>
    %154 = vector.multi_reduction <add>, %153, %cst_55 [1] : vector<33x33xf32> to vector<33xf32>
    %155 = vector.shape_cast %154 : vector<33xf32> to vector<33x1xf32>
    %156 = vector.broadcast %155 : vector<33x1xf32> to vector<33x33xf32>
    %157 = arith.divf %153, %156 : vector<33x33xf32>
    %cst_56 = arith.constant dense<0.000000e+00> : vector<33x32xf32>
    %158 = tpu.matmul %157, %147, %cst_56 {dimension_numbers = #tpu.dot_dimension_numbers<[1], [0], [0], [1], [0, 0, 1, 1], [], []>} : vector<33x33xf32>, vector<33x32xf32>, vector<33x32xf32> -> vector<33x32xf32>
    %159 = arith.addf %132, %158 : vector<33x32xf32>
    %c16_i32_57 = arith.constant 16 : i32
    %160 = vector.broadcast %c16_i32_57 : i32 to vector<1x32xi32>
    %161 = arith.cmpi sge, %4, %160 : vector<1x32xi32>
    %c32_i32 = arith.constant 32 : i32
    %162 = vector.broadcast %c32_i32 : i32 to vector<1x32xi32>
    %163 = arith.cmpi slt, %4, %162 : vector<1x32xi32>
    %164 = arith.andi %161, %163 : vector<1x32xi1>
    %cst_58 = arith.constant 2.500000e-01 : f32
    %cst_59 = arith.constant 0.000000e+00 : f32
    %165 = vector.broadcast %cst_58 : f32 to vector<1x32xf32>
    %166 = vector.broadcast %cst_59 : f32 to vector<1x32xf32>
    %167 = arith.select %164, %165, %166 : vector<1x32xi1>, vector<1x32xf32>
    %168 = vector.broadcast %167 : vector<1x32xf32> to vector<33x32xf32>
    %169 = arith.mulf %96, %168 : vector<33x32xf32>
    %cst_60 = arith.constant 1.000000e+00 : f32
    %cst_61 = arith.constant 0.000000e+00 : f32
    %170 = vector.broadcast %cst_60 : f32 to vector<1x32xf32>
    %171 = vector.broadcast %cst_61 : f32 to vector<1x32xf32>
    %172 = arith.select %164, %170, %171 : vector<1x32xi1>, vector<1x32xf32>
    %173 = vector.broadcast %172 : vector<1x32xf32> to vector<33x32xf32>
    %174 = arith.mulf %131, %173 : vector<33x32xf32>
    %cst_62 = arith.constant dense<0.000000e+00> : vector<33x33xf32>
    %175 = tpu.matmul %61, %169, %cst_62 {dimension_numbers = #tpu.dot_dimension_numbers<[1], [1], [0], [0], [0, 0, 1, 0], [], []>} : vector<33x32xf32>, vector<33x32xf32>, vector<33x33xf32> -> vector<33x33xf32>
    %cst_63 = arith.constant dense<0xFF800000> : vector<33xf32>
    %176 = vector.multi_reduction <maximumf>, %175, %cst_63 [1] : vector<33x33xf32> to vector<33xf32>
    %177 = vector.shape_cast %176 : vector<33xf32> to vector<33x1xf32>
    %178 = vector.broadcast %177 : vector<33x1xf32> to vector<33x33xf32>
    %179 = arith.subf %175, %178 : vector<33x33xf32>
    %180 = math.exp %179 : vector<33x33xf32>
    %cst_64 = arith.constant dense<0.000000e+00> : vector<33xf32>
    %181 = vector.multi_reduction <add>, %180, %cst_64 [1] : vector<33x33xf32> to vector<33xf32>
    %182 = vector.shape_cast %181 : vector<33xf32> to vector<33x1xf32>
    %183 = vector.broadcast %182 : vector<33x1xf32> to vector<33x33xf32>
    %184 = arith.divf %180, %183 : vector<33x33xf32>
    %cst_65 = arith.constant dense<0.000000e+00> : vector<33x32xf32>
    %185 = tpu.matmul %184, %174, %cst_65 {dimension_numbers = #tpu.dot_dimension_numbers<[1], [0], [0], [1], [0, 0, 1, 1], [], []>} : vector<33x33xf32>, vector<33x32xf32>, vector<33x32xf32> -> vector<33x32xf32>
    %186 = arith.addf %159, %185 : vector<33x32xf32>
    %187 = arith.addf %15, %186 : vector<33x32xf32>
    %cst_66 = arith.constant dense<0.000000e+00> : vector<33xf32>
    %188 = vector.multi_reduction <add>, %187, %cst_66 [1] : vector<33x32xf32> to vector<33xf32>
    %189 = vector.shape_cast %188 : vector<33xf32> to vector<33x1xf32>
    %cst_67 = arith.constant 3.200000e+01 : f32
    %190 = vector.broadcast %cst_67 : f32 to vector<33x1xf32>
    %191 = arith.divf %189, %190 : vector<33x1xf32>
    %192 = vector.broadcast %191 : vector<33x1xf32> to vector<33x32xf32>
    %193 = arith.subf %187, %192 : vector<33x32xf32>
    %194 = arith.mulf %193, %193 : vector<33x32xf32>
    %cst_68 = arith.constant dense<0.000000e+00> : vector<33xf32>
    %195 = vector.multi_reduction <add>, %194, %cst_68 [1] : vector<33x32xf32> to vector<33xf32>
    %196 = vector.shape_cast %195 : vector<33xf32> to vector<33x1xf32>
    %cst_69 = arith.constant 3.200000e+01 : f32
    %197 = vector.broadcast %cst_69 : f32 to vector<33x1xf32>
    %198 = arith.divf %196, %197 : vector<33x1xf32>
    %cst_70 = arith.constant 9.99999974E-6 : f32
    %199 = vector.broadcast %cst_70 : f32 to vector<33x1xf32>
    %200 = arith.addf %198, %199 : vector<33x1xf32>
    %201 = math.rsqrt %200 : vector<33x1xf32>
    %202 = vector.broadcast %201 : vector<33x1xf32> to vector<33x32xf32>
    %203 = arith.mulf %193, %202 : vector<33x32xf32>
    %cst_71 = arith.constant dense<0.000000e+00> : vector<33x128xf32>
    %204 = tpu.matmul %203, %19, %cst_71 {dimension_numbers = #tpu.dot_dimension_numbers<[1], [0], [0], [1], [0, 0, 1, 1], [], []>} : vector<33x32xf32>, vector<32x128xf32>, vector<33x128xf32> -> vector<33x128xf32>
    %205 = vector.broadcast %20 : vector<1x128xf32> to vector<33x128xf32>
    %206 = arith.addf %204, %205 : vector<33x128xf32>
    %cst_72 = arith.constant 5.000000e-01 : f32
    %207 = vector.broadcast %cst_72 : f32 to vector<33x128xf32>
    %208 = arith.mulf %207, %206 : vector<33x128xf32>
    %cst_73 = arith.constant 4.471500e-02 : f32
    %209 = vector.broadcast %cst_73 : f32 to vector<33x128xf32>
    %210 = arith.mulf %209, %206 : vector<33x128xf32>
    %211 = arith.mulf %210, %206 : vector<33x128xf32>
    %212 = arith.mulf %211, %206 : vector<33x128xf32>
    %213 = arith.addf %206, %212 : vector<33x128xf32>
    %cst_74 = arith.constant 0.797884583 : f32
    %214 = vector.broadcast %cst_74 : f32 to vector<33x128xf32>
    %215 = arith.mulf %214, %213 : vector<33x128xf32>
    %216 = math.tanh %215 : vector<33x128xf32>
    %cst_75 = arith.constant 1.000000e+00 : f32
    %217 = vector.broadcast %cst_75 : f32 to vector<33x128xf32>
    %218 = arith.addf %217, %216 : vector<33x128xf32>
    %219 = arith.mulf %208, %218 : vector<33x128xf32>
    %cst_76 = arith.constant dense<0.000000e+00> : vector<33x32xf32>
    %220 = tpu.matmul %219, %21, %cst_76 {dimension_numbers = #tpu.dot_dimension_numbers<[1], [0], [0], [1], [0, 0, 1, 1], [], []>} : vector<33x128xf32>, vector<128x32xf32>, vector<33x32xf32> -> vector<33x32xf32>
    %221 = arith.addf %187, %220 : vector<33x32xf32>
    %222 = vector.broadcast %22 : vector<1x32xf32> to vector<33x32xf32>
    %223 = arith.addf %221, %222 : vector<33x32xf32>
    %c0_77 = arith.constant 0 : index
    %c0_78 = arith.constant 0 : index
    %224 = vector.load %arg2[%c0_77, %c0_78] : memref<33x64xf32, #tpu.memory_space<vmem>>, vector<33x64xf32>
    %c0_79 = arith.constant 0 : index
    %c0_80 = arith.constant 0 : index
    %225 = vector.load %arg3[%c0_79, %c0_80] : memref<33x64xf32, #tpu.memory_space<vmem>>, vector<33x64xf32>
    %c0_81 = arith.constant 0 : index
    %c0_82 = arith.constant 0 : index
    %226 = vector.load %arg5[%c0_81, %c0_82] : memref<33x64xf32, #tpu.memory_space<vmem>>, vector<33x64xf32>
    %c0_83 = arith.constant 0 : index
    %c0_84 = arith.constant 0 : index
    %227 = vector.load %arg13[%c0_83, %c0_84] : memref<192x256xf32, #tpu.memory_space<vmem>>, vector<96x256xf32>
    %c0_85 = arith.constant 0 : index
    %c512 = arith.constant 512 : index
    %228 = vector.load %arg15[%c0_85, %c512] : memref<1x3200xf32, #tpu.memory_space<vmem>>, vector<1x256xf32>
    %229 = tpu.concatenate %16, %223 in 1 : vector<33x64xf32>, vector<33x32xf32> -> vector<33x96xf32>
    %cst_86 = arith.constant dense<0.000000e+00> : vector<33x256xf32>
    %230 = tpu.matmul %229, %227, %cst_86 {dimension_numbers = #tpu.dot_dimension_numbers<[1], [0], [0], [1], [0, 0, 1, 1], [], []>} : vector<33x96xf32>, vector<96x256xf32>, vector<33x256xf32> -> vector<33x256xf32>
    %231 = vector.broadcast %228 : vector<1x256xf32> to vector<33x256xf32>
    %232 = arith.addf %230, %231 : vector<33x256xf32>
    %233 = vector.extract_strided_slice %232 {offsets = [0, 0], sizes = [33, 64], strides = [1, 1]} : vector<33x256xf32> to vector<33x64xf32>
    %234 = vector.extract_strided_slice %232 {offsets = [0, 64], sizes = [33, 64], strides = [1, 1]} : vector<33x256xf32> to vector<33x64xf32>
    %235 = vector.extract_strided_slice %232 {offsets = [0, 128], sizes = [33, 64], strides = [1, 1]} : vector<33x256xf32> to vector<33x64xf32>
    %236 = vector.extract_strided_slice %232 {offsets = [0, 192], sizes = [33, 64], strides = [1, 1]} : vector<33x256xf32> to vector<33x64xf32>
    %237 = arith.addf %234, %225 : vector<33x64xf32>
    %238 = arith.maximumf %237, %233 : vector<33x64xf32>
    %239 = arith.subf %233, %238 : vector<33x64xf32>
    %240 = math.exp %239 : vector<33x64xf32>
    %241 = arith.addf %234, %225 : vector<33x64xf32>
    %242 = arith.subf %241, %238 : vector<33x64xf32>
    %243 = math.exp %242 : vector<33x64xf32>
    %244 = arith.mulf %243, %226 : vector<33x64xf32>
    %245 = arith.addf %244, %240 : vector<33x64xf32>
    %246 = arith.mulf %224, %243 : vector<33x64xf32>
    %247 = math.tanh %236 : vector<33x64xf32>
    %248 = arith.mulf %247, %240 : vector<33x64xf32>
    %249 = arith.addf %246, %248 : vector<33x64xf32>
    %250 = arith.negf %235 : vector<33x64xf32>
    %251 = math.exp %250 : vector<33x64xf32>
    %cst_87 = arith.constant 1.000000e+00 : f32
    %252 = vector.broadcast %cst_87 : f32 to vector<33x64xf32>
    %253 = arith.addf %252, %251 : vector<33x64xf32>
    %254 = arith.divf %252, %253 : vector<33x64xf32>
    %255 = arith.divf %249, %245 : vector<33x64xf32>
    %256 = arith.mulf %254, %255 : vector<33x64xf32>
    %c96 = arith.constant 96 : index
    %c0_88 = arith.constant 0 : index
    %257 = vector.load %arg10[%c96, %c0_88] : memref<192x192xf32, #tpu.memory_space<vmem>>, vector<96x192xf32>
    %c0_89 = arith.constant 0 : index
    %c768 = arith.constant 768 : index
    %258 = vector.load %arg15[%c0_89, %c768] : memref<1x3200xf32, #tpu.memory_space<vmem>>, vector<1x192xf32>
    %c32 = arith.constant 32 : index
    %c0_90 = arith.constant 0 : index
    %259 = vector.load %arg11[%c32, %c0_90] : memref<64x128xf32, #tpu.memory_space<vmem>>, vector<32x128xf32>
    %c0_91 = arith.constant 0 : index
    %c1024 = arith.constant 1024 : index
    %260 = vector.load %arg15[%c0_91, %c1024] : memref<1x3200xf32, #tpu.memory_space<vmem>>, vector<1x128xf32>
    %c128 = arith.constant 128 : index
    %c0_92 = arith.constant 0 : index
    %261 = vector.load %arg12[%c128, %c0_92] : memref<256x32xf32, #tpu.memory_space<vmem>>, vector<128x32xf32>
    %c0_93 = arith.constant 0 : index
    %c1152 = arith.constant 1152 : index
    %262 = vector.load %arg15[%c0_93, %c1152] : memref<1x3200xf32, #tpu.memory_space<vmem>>, vector<1x32xf32>
    %263 = tpu.concatenate %223, %256 in 1 : vector<33x32xf32>, vector<33x64xf32> -> vector<33x96xf32>
    %cst_94 = arith.constant dense<0.000000e+00> : vector<33x192xf32>
    %264 = tpu.matmul %263, %257, %cst_94 {dimension_numbers = #tpu.dot_dimension_numbers<[1], [0], [0], [1], [0, 0, 1, 1], [], []>} : vector<33x96xf32>, vector<96x192xf32>, vector<33x192xf32> -> vector<33x192xf32>
    %265 = vector.broadcast %258 : vector<1x192xf32> to vector<33x192xf32>
    %266 = arith.addf %264, %265 : vector<33x192xf32>
    %267 = vector.extract_strided_slice %266 {offsets = [0, 0], sizes = [33, 32], strides = [1, 1]} : vector<33x192xf32> to vector<33x32xf32>
    %cst_95 = arith.constant dense<0.000000e+00> : vector<33xf32>
    %268 = vector.multi_reduction <add>, %267, %cst_95 [1] : vector<33x32xf32> to vector<33xf32>
    %269 = vector.shape_cast %268 : vector<33xf32> to vector<33x1xf32>
    %cst_96 = arith.constant 3.200000e+01 : f32
    %270 = vector.broadcast %cst_96 : f32 to vector<33x1xf32>
    %271 = arith.divf %269, %270 : vector<33x1xf32>
    %272 = vector.broadcast %271 : vector<33x1xf32> to vector<33x32xf32>
    %273 = arith.subf %267, %272 : vector<33x32xf32>
    %274 = arith.mulf %273, %273 : vector<33x32xf32>
    %cst_97 = arith.constant dense<0.000000e+00> : vector<33xf32>
    %275 = vector.multi_reduction <add>, %274, %cst_97 [1] : vector<33x32xf32> to vector<33xf32>
    %276 = vector.shape_cast %275 : vector<33xf32> to vector<33x1xf32>
    %cst_98 = arith.constant 3.200000e+01 : f32
    %277 = vector.broadcast %cst_98 : f32 to vector<33x1xf32>
    %278 = arith.divf %276, %277 : vector<33x1xf32>
    %cst_99 = arith.constant 9.99999974E-6 : f32
    %279 = vector.broadcast %cst_99 : f32 to vector<33x1xf32>
    %280 = arith.addf %278, %279 : vector<33x1xf32>
    %281 = math.rsqrt %280 : vector<33x1xf32>
    %282 = vector.broadcast %281 : vector<33x1xf32> to vector<33x32xf32>
    %283 = arith.mulf %273, %282 : vector<33x32xf32>
    %284 = vector.extract_strided_slice %266 {offsets = [0, 96], sizes = [33, 32], strides = [1, 1]} : vector<33x192xf32> to vector<33x32xf32>
    %cst_100 = arith.constant dense<0.000000e+00> : vector<33xf32>
    %285 = vector.multi_reduction <add>, %284, %cst_100 [1] : vector<33x32xf32> to vector<33xf32>
    %286 = vector.shape_cast %285 : vector<33xf32> to vector<33x1xf32>
    %cst_101 = arith.constant 3.200000e+01 : f32
    %287 = vector.broadcast %cst_101 : f32 to vector<33x1xf32>
    %288 = arith.divf %286, %287 : vector<33x1xf32>
    %289 = vector.broadcast %288 : vector<33x1xf32> to vector<33x32xf32>
    %290 = arith.subf %284, %289 : vector<33x32xf32>
    %291 = arith.mulf %290, %290 : vector<33x32xf32>
    %cst_102 = arith.constant dense<0.000000e+00> : vector<33xf32>
    %292 = vector.multi_reduction <add>, %291, %cst_102 [1] : vector<33x32xf32> to vector<33xf32>
    %293 = vector.shape_cast %292 : vector<33xf32> to vector<33x1xf32>
    %cst_103 = arith.constant 3.200000e+01 : f32
    %294 = vector.broadcast %cst_103 : f32 to vector<33x1xf32>
    %295 = arith.divf %293, %294 : vector<33x1xf32>
    %cst_104 = arith.constant 9.99999974E-6 : f32
    %296 = vector.broadcast %cst_104 : f32 to vector<33x1xf32>
    %297 = arith.addf %295, %296 : vector<33x1xf32>
    %298 = math.rsqrt %297 : vector<33x1xf32>
    %299 = vector.broadcast %298 : vector<33x1xf32> to vector<33x32xf32>
    %300 = arith.mulf %290, %299 : vector<33x32xf32>
    %301 = arith.mulf %283, %300 : vector<33x32xf32>
    %302 = vector.extract_strided_slice %266 {offsets = [0, 32], sizes = [33, 32], strides = [1, 1]} : vector<33x192xf32> to vector<33x32xf32>
    %cst_105 = arith.constant dense<0.000000e+00> : vector<33xf32>
    %303 = vector.multi_reduction <add>, %302, %cst_105 [1] : vector<33x32xf32> to vector<33xf32>
    %304 = vector.shape_cast %303 : vector<33xf32> to vector<33x1xf32>
    %cst_106 = arith.constant 3.200000e+01 : f32
    %305 = vector.broadcast %cst_106 : f32 to vector<33x1xf32>
    %306 = arith.divf %304, %305 : vector<33x1xf32>
    %307 = vector.broadcast %306 : vector<33x1xf32> to vector<33x32xf32>
    %308 = arith.subf %302, %307 : vector<33x32xf32>
    %309 = arith.mulf %308, %308 : vector<33x32xf32>
    %cst_107 = arith.constant dense<0.000000e+00> : vector<33xf32>
    %310 = vector.multi_reduction <add>, %309, %cst_107 [1] : vector<33x32xf32> to vector<33xf32>
    %311 = vector.shape_cast %310 : vector<33xf32> to vector<33x1xf32>
    %cst_108 = arith.constant 3.200000e+01 : f32
    %312 = vector.broadcast %cst_108 : f32 to vector<33x1xf32>
    %313 = arith.divf %311, %312 : vector<33x1xf32>
    %cst_109 = arith.constant 9.99999974E-6 : f32
    %314 = vector.broadcast %cst_109 : f32 to vector<33x1xf32>
    %315 = arith.addf %313, %314 : vector<33x1xf32>
    %316 = math.rsqrt %315 : vector<33x1xf32>
    %317 = vector.broadcast %316 : vector<33x1xf32> to vector<33x32xf32>
    %318 = arith.mulf %308, %317 : vector<33x32xf32>
    %319 = vector.extract_strided_slice %266 {offsets = [0, 128], sizes = [33, 32], strides = [1, 1]} : vector<33x192xf32> to vector<33x32xf32>
    %cst_110 = arith.constant dense<0.000000e+00> : vector<33xf32>
    %320 = vector.multi_reduction <add>, %319, %cst_110 [1] : vector<33x32xf32> to vector<33xf32>
    %321 = vector.shape_cast %320 : vector<33xf32> to vector<33x1xf32>
    %cst_111 = arith.constant 3.200000e+01 : f32
    %322 = vector.broadcast %cst_111 : f32 to vector<33x1xf32>
    %323 = arith.divf %321, %322 : vector<33x1xf32>
    %324 = vector.broadcast %323 : vector<33x1xf32> to vector<33x32xf32>
    %325 = arith.subf %319, %324 : vector<33x32xf32>
    %326 = arith.mulf %325, %325 : vector<33x32xf32>
    %cst_112 = arith.constant dense<0.000000e+00> : vector<33xf32>
    %327 = vector.multi_reduction <add>, %326, %cst_112 [1] : vector<33x32xf32> to vector<33xf32>
    %328 = vector.shape_cast %327 : vector<33xf32> to vector<33x1xf32>
    %cst_113 = arith.constant 3.200000e+01 : f32
    %329 = vector.broadcast %cst_113 : f32 to vector<33x1xf32>
    %330 = arith.divf %328, %329 : vector<33x1xf32>
    %cst_114 = arith.constant 9.99999974E-6 : f32
    %331 = vector.broadcast %cst_114 : f32 to vector<33x1xf32>
    %332 = arith.addf %330, %331 : vector<33x1xf32>
    %333 = math.rsqrt %332 : vector<33x1xf32>
    %334 = vector.broadcast %333 : vector<33x1xf32> to vector<33x32xf32>
    %335 = arith.mulf %325, %334 : vector<33x32xf32>
    %336 = arith.mulf %318, %335 : vector<33x32xf32>
    %337 = vector.extract_strided_slice %266 {offsets = [0, 64], sizes = [33, 32], strides = [1, 1]} : vector<33x192xf32> to vector<33x32xf32>
    %cst_115 = arith.constant dense<0.000000e+00> : vector<33xf32>
    %338 = vector.multi_reduction <add>, %337, %cst_115 [1] : vector<33x32xf32> to vector<33xf32>
    %339 = vector.shape_cast %338 : vector<33xf32> to vector<33x1xf32>
    %cst_116 = arith.constant 3.200000e+01 : f32
    %340 = vector.broadcast %cst_116 : f32 to vector<33x1xf32>
    %341 = arith.divf %339, %340 : vector<33x1xf32>
    %342 = vector.broadcast %341 : vector<33x1xf32> to vector<33x32xf32>
    %343 = arith.subf %337, %342 : vector<33x32xf32>
    %344 = arith.mulf %343, %343 : vector<33x32xf32>
    %cst_117 = arith.constant dense<0.000000e+00> : vector<33xf32>
    %345 = vector.multi_reduction <add>, %344, %cst_117 [1] : vector<33x32xf32> to vector<33xf32>
    %346 = vector.shape_cast %345 : vector<33xf32> to vector<33x1xf32>
    %cst_118 = arith.constant 3.200000e+01 : f32
    %347 = vector.broadcast %cst_118 : f32 to vector<33x1xf32>
    %348 = arith.divf %346, %347 : vector<33x1xf32>
    %cst_119 = arith.constant 9.99999974E-6 : f32
    %349 = vector.broadcast %cst_119 : f32 to vector<33x1xf32>
    %350 = arith.addf %348, %349 : vector<33x1xf32>
    %351 = math.rsqrt %350 : vector<33x1xf32>
    %352 = vector.broadcast %351 : vector<33x1xf32> to vector<33x32xf32>
    %353 = arith.mulf %343, %352 : vector<33x32xf32>
    %354 = vector.extract_strided_slice %266 {offsets = [0, 160], sizes = [33, 32], strides = [1, 1]} : vector<33x192xf32> to vector<33x32xf32>
    %cst_120 = arith.constant dense<0.000000e+00> : vector<33xf32>
    %355 = vector.multi_reduction <add>, %354, %cst_120 [1] : vector<33x32xf32> to vector<33xf32>
    %356 = vector.shape_cast %355 : vector<33xf32> to vector<33x1xf32>
    %cst_121 = arith.constant 3.200000e+01 : f32
    %357 = vector.broadcast %cst_121 : f32 to vector<33x1xf32>
    %358 = arith.divf %356, %357 : vector<33x1xf32>
    %359 = vector.broadcast %358 : vector<33x1xf32> to vector<33x32xf32>
    %360 = arith.subf %354, %359 : vector<33x32xf32>
    %361 = arith.mulf %360, %360 : vector<33x32xf32>
    %cst_122 = arith.constant dense<0.000000e+00> : vector<33xf32>
    %362 = vector.multi_reduction <add>, %361, %cst_122 [1] : vector<33x32xf32> to vector<33xf32>
    %363 = vector.shape_cast %362 : vector<33xf32> to vector<33x1xf32>
    %cst_123 = arith.constant 3.200000e+01 : f32
    %364 = vector.broadcast %cst_123 : f32 to vector<33x1xf32>
    %365 = arith.divf %363, %364 : vector<33x1xf32>
    %cst_124 = arith.constant 9.99999974E-6 : f32
    %366 = vector.broadcast %cst_124 : f32 to vector<33x1xf32>
    %367 = arith.addf %365, %366 : vector<33x1xf32>
    %368 = math.rsqrt %367 : vector<33x1xf32>
    %369 = vector.broadcast %368 : vector<33x1xf32> to vector<33x32xf32>
    %370 = arith.mulf %360, %369 : vector<33x32xf32>
    %371 = arith.mulf %353, %370 : vector<33x32xf32>
    %cst_125 = arith.constant 0.000000e+00 : f32
    %372 = vector.broadcast %cst_125 : f32 to vector<33x32xf32>
    %c0_i32_126 = arith.constant 0 : i32
    %373 = vector.broadcast %c0_i32_126 : i32 to vector<1x32xi32>
    %374 = arith.cmpi sge, %4, %373 : vector<1x32xi32>
    %c16_i32_127 = arith.constant 16 : i32
    %375 = vector.broadcast %c16_i32_127 : i32 to vector<1x32xi32>
    %376 = arith.cmpi slt, %4, %375 : vector<1x32xi32>
    %377 = arith.andi %374, %376 : vector<1x32xi1>
    %cst_128 = arith.constant 2.500000e-01 : f32
    %cst_129 = arith.constant 0.000000e+00 : f32
    %378 = vector.broadcast %cst_128 : f32 to vector<1x32xf32>
    %379 = vector.broadcast %cst_129 : f32 to vector<1x32xf32>
    %380 = arith.select %377, %378, %379 : vector<1x32xi1>, vector<1x32xf32>
    %381 = vector.broadcast %380 : vector<1x32xf32> to vector<33x32xf32>
    %382 = arith.mulf %336, %381 : vector<33x32xf32>
    %cst_130 = arith.constant 1.000000e+00 : f32
    %cst_131 = arith.constant 0.000000e+00 : f32
    %383 = vector.broadcast %cst_130 : f32 to vector<1x32xf32>
    %384 = vector.broadcast %cst_131 : f32 to vector<1x32xf32>
    %385 = arith.select %377, %383, %384 : vector<1x32xi1>, vector<1x32xf32>
    %386 = vector.broadcast %385 : vector<1x32xf32> to vector<33x32xf32>
    %387 = arith.mulf %371, %386 : vector<33x32xf32>
    %cst_132 = arith.constant dense<0.000000e+00> : vector<33x33xf32>
    %388 = tpu.matmul %301, %382, %cst_132 {dimension_numbers = #tpu.dot_dimension_numbers<[1], [1], [0], [0], [0, 0, 1, 0], [], []>} : vector<33x32xf32>, vector<33x32xf32>, vector<33x33xf32> -> vector<33x33xf32>
    %cst_133 = arith.constant dense<0xFF800000> : vector<33xf32>
    %389 = vector.multi_reduction <maximumf>, %388, %cst_133 [1] : vector<33x33xf32> to vector<33xf32>
    %390 = vector.shape_cast %389 : vector<33xf32> to vector<33x1xf32>
    %391 = vector.broadcast %390 : vector<33x1xf32> to vector<33x33xf32>
    %392 = arith.subf %388, %391 : vector<33x33xf32>
    %393 = math.exp %392 : vector<33x33xf32>
    %cst_134 = arith.constant dense<0.000000e+00> : vector<33xf32>
    %394 = vector.multi_reduction <add>, %393, %cst_134 [1] : vector<33x33xf32> to vector<33xf32>
    %395 = vector.shape_cast %394 : vector<33xf32> to vector<33x1xf32>
    %396 = vector.broadcast %395 : vector<33x1xf32> to vector<33x33xf32>
    %397 = arith.divf %393, %396 : vector<33x33xf32>
    %cst_135 = arith.constant dense<0.000000e+00> : vector<33x32xf32>
    %398 = tpu.matmul %397, %387, %cst_135 {dimension_numbers = #tpu.dot_dimension_numbers<[1], [0], [0], [1], [0, 0, 1, 1], [], []>} : vector<33x33xf32>, vector<33x32xf32>, vector<33x32xf32> -> vector<33x32xf32>
    %399 = arith.addf %372, %398 : vector<33x32xf32>
    %c16_i32_136 = arith.constant 16 : i32
    %400 = vector.broadcast %c16_i32_136 : i32 to vector<1x32xi32>
    %401 = arith.cmpi sge, %4, %400 : vector<1x32xi32>
    %c32_i32_137 = arith.constant 32 : i32
    %402 = vector.broadcast %c32_i32_137 : i32 to vector<1x32xi32>
    %403 = arith.cmpi slt, %4, %402 : vector<1x32xi32>
    %404 = arith.andi %401, %403 : vector<1x32xi1>
    %cst_138 = arith.constant 2.500000e-01 : f32
    %cst_139 = arith.constant 0.000000e+00 : f32
    %405 = vector.broadcast %cst_138 : f32 to vector<1x32xf32>
    %406 = vector.broadcast %cst_139 : f32 to vector<1x32xf32>
    %407 = arith.select %404, %405, %406 : vector<1x32xi1>, vector<1x32xf32>
    %408 = vector.broadcast %407 : vector<1x32xf32> to vector<33x32xf32>
    %409 = arith.mulf %336, %408 : vector<33x32xf32>
    %cst_140 = arith.constant 1.000000e+00 : f32
    %cst_141 = arith.constant 0.000000e+00 : f32
    %410 = vector.broadcast %cst_140 : f32 to vector<1x32xf32>
    %411 = vector.broadcast %cst_141 : f32 to vector<1x32xf32>
    %412 = arith.select %404, %410, %411 : vector<1x32xi1>, vector<1x32xf32>
    %413 = vector.broadcast %412 : vector<1x32xf32> to vector<33x32xf32>
    %414 = arith.mulf %371, %413 : vector<33x32xf32>
    %cst_142 = arith.constant dense<0.000000e+00> : vector<33x33xf32>
    %415 = tpu.matmul %301, %409, %cst_142 {dimension_numbers = #tpu.dot_dimension_numbers<[1], [1], [0], [0], [0, 0, 1, 0], [], []>} : vector<33x32xf32>, vector<33x32xf32>, vector<33x33xf32> -> vector<33x33xf32>
    %cst_143 = arith.constant dense<0xFF800000> : vector<33xf32>
    %416 = vector.multi_reduction <maximumf>, %415, %cst_143 [1] : vector<33x33xf32> to vector<33xf32>
    %417 = vector.shape_cast %416 : vector<33xf32> to vector<33x1xf32>
    %418 = vector.broadcast %417 : vector<33x1xf32> to vector<33x33xf32>
    %419 = arith.subf %415, %418 : vector<33x33xf32>
    %420 = math.exp %419 : vector<33x33xf32>
    %cst_144 = arith.constant dense<0.000000e+00> : vector<33xf32>
    %421 = vector.multi_reduction <add>, %420, %cst_144 [1] : vector<33x33xf32> to vector<33xf32>
    %422 = vector.shape_cast %421 : vector<33xf32> to vector<33x1xf32>
    %423 = vector.broadcast %422 : vector<33x1xf32> to vector<33x33xf32>
    %424 = arith.divf %420, %423 : vector<33x33xf32>
    %cst_145 = arith.constant dense<0.000000e+00> : vector<33x32xf32>
    %425 = tpu.matmul %424, %414, %cst_145 {dimension_numbers = #tpu.dot_dimension_numbers<[1], [0], [0], [1], [0, 0, 1, 1], [], []>} : vector<33x33xf32>, vector<33x32xf32>, vector<33x32xf32> -> vector<33x32xf32>
    %426 = arith.addf %399, %425 : vector<33x32xf32>
    %427 = arith.addf %223, %426 : vector<33x32xf32>
    %cst_146 = arith.constant dense<0.000000e+00> : vector<33xf32>
    %428 = vector.multi_reduction <add>, %427, %cst_146 [1] : vector<33x32xf32> to vector<33xf32>
    %429 = vector.shape_cast %428 : vector<33xf32> to vector<33x1xf32>
    %cst_147 = arith.constant 3.200000e+01 : f32
    %430 = vector.broadcast %cst_147 : f32 to vector<33x1xf32>
    %431 = arith.divf %429, %430 : vector<33x1xf32>
    %432 = vector.broadcast %431 : vector<33x1xf32> to vector<33x32xf32>
    %433 = arith.subf %427, %432 : vector<33x32xf32>
    %434 = arith.mulf %433, %433 : vector<33x32xf32>
    %cst_148 = arith.constant dense<0.000000e+00> : vector<33xf32>
    %435 = vector.multi_reduction <add>, %434, %cst_148 [1] : vector<33x32xf32> to vector<33xf32>
    %436 = vector.shape_cast %435 : vector<33xf32> to vector<33x1xf32>
    %cst_149 = arith.constant 3.200000e+01 : f32
    %437 = vector.broadcast %cst_149 : f32 to vector<33x1xf32>
    %438 = arith.divf %436, %437 : vector<33x1xf32>
    %cst_150 = arith.constant 9.99999974E-6 : f32
    %439 = vector.broadcast %cst_150 : f32 to vector<33x1xf32>
    %440 = arith.addf %438, %439 : vector<33x1xf32>
    %441 = math.rsqrt %440 : vector<33x1xf32>
    %442 = vector.broadcast %441 : vector<33x1xf32> to vector<33x32xf32>
    %443 = arith.mulf %433, %442 : vector<33x32xf32>
    %cst_151 = arith.constant dense<0.000000e+00> : vector<33x128xf32>
    %444 = tpu.matmul %443, %259, %cst_151 {dimension_numbers = #tpu.dot_dimension_numbers<[1], [0], [0], [1], [0, 0, 1, 1], [], []>} : vector<33x32xf32>, vector<32x128xf32>, vector<33x128xf32> -> vector<33x128xf32>
    %445 = vector.broadcast %260 : vector<1x128xf32> to vector<33x128xf32>
    %446 = arith.addf %444, %445 : vector<33x128xf32>
    %cst_152 = arith.constant 5.000000e-01 : f32
    %447 = vector.broadcast %cst_152 : f32 to vector<33x128xf32>
    %448 = arith.mulf %447, %446 : vector<33x128xf32>
    %cst_153 = arith.constant 4.471500e-02 : f32
    %449 = vector.broadcast %cst_153 : f32 to vector<33x128xf32>
    %450 = arith.mulf %449, %446 : vector<33x128xf32>
    %451 = arith.mulf %450, %446 : vector<33x128xf32>
    %452 = arith.mulf %451, %446 : vector<33x128xf32>
    %453 = arith.addf %446, %452 : vector<33x128xf32>
    %cst_154 = arith.constant 0.797884583 : f32
    %454 = vector.broadcast %cst_154 : f32 to vector<33x128xf32>
    %455 = arith.mulf %454, %453 : vector<33x128xf32>
    %456 = math.tanh %455 : vector<33x128xf32>
    %cst_155 = arith.constant 1.000000e+00 : f32
    %457 = vector.broadcast %cst_155 : f32 to vector<33x128xf32>
    %458 = arith.addf %457, %456 : vector<33x128xf32>
    %459 = arith.mulf %448, %458 : vector<33x128xf32>
    %cst_156 = arith.constant dense<0.000000e+00> : vector<33x32xf32>
    %460 = tpu.matmul %459, %261, %cst_156 {dimension_numbers = #tpu.dot_dimension_numbers<[1], [0], [0], [1], [0, 0, 1, 1], [], []>} : vector<33x128xf32>, vector<128x32xf32>, vector<33x32xf32> -> vector<33x32xf32>
    %461 = arith.addf %427, %460 : vector<33x32xf32>
    %462 = vector.broadcast %262 : vector<1x32xf32> to vector<33x32xf32>
    %463 = arith.addf %461, %462 : vector<33x32xf32>
    %c0_157 = arith.constant 0 : index
    %c0_158 = arith.constant 0 : index
    %464 = vector.load %arg6[%c0_157, %c0_158] : memref<33x64xf32, #tpu.memory_space<vmem>>, vector<33x64xf32>
    %c0_159 = arith.constant 0 : index
    %c0_160 = arith.constant 0 : index
    %465 = vector.load %arg7[%c0_159, %c0_160] : memref<33x64xf32, #tpu.memory_space<vmem>>, vector<33x64xf32>
    %c0_161 = arith.constant 0 : index
    %c0_162 = arith.constant 0 : index
    %466 = vector.load %arg8[%c0_161, %c0_162] : memref<33x64xf32, #tpu.memory_space<vmem>>, vector<33x64xf32>
    %c0_163 = arith.constant 0 : index
    %c0_164 = arith.constant 0 : index
    %467 = vector.load %arg9[%c0_163, %c0_164] : memref<33x64xf32, #tpu.memory_space<vmem>>, vector<33x64xf32>
    %c96_165 = arith.constant 96 : index
    %c0_166 = arith.constant 0 : index
    %468 = vector.load %arg13[%c96_165, %c0_166] : memref<192x256xf32, #tpu.memory_space<vmem>>, vector<96x256xf32>
    %c0_167 = arith.constant 0 : index
    %c1280 = arith.constant 1280 : index
    %469 = vector.load %arg15[%c0_167, %c1280] : memref<1x3200xf32, #tpu.memory_space<vmem>>, vector<1x256xf32>
    %470 = tpu.concatenate %466, %463 in 1 : vector<33x64xf32>, vector<33x32xf32> -> vector<33x96xf32>
    %cst_168 = arith.constant dense<0.000000e+00> : vector<33x256xf32>
    %471 = tpu.matmul %470, %468, %cst_168 {dimension_numbers = #tpu.dot_dimension_numbers<[1], [0], [0], [1], [0, 0, 1, 1], [], []>} : vector<33x96xf32>, vector<96x256xf32>, vector<33x256xf32> -> vector<33x256xf32>
    %472 = vector.broadcast %469 : vector<1x256xf32> to vector<33x256xf32>
    %473 = arith.addf %471, %472 : vector<33x256xf32>
    %474 = vector.extract_strided_slice %473 {offsets = [0, 0], sizes = [33, 64], strides = [1, 1]} : vector<33x256xf32> to vector<33x64xf32>
    %475 = vector.extract_strided_slice %473 {offsets = [0, 64], sizes = [33, 64], strides = [1, 1]} : vector<33x256xf32> to vector<33x64xf32>
    %476 = vector.extract_strided_slice %473 {offsets = [0, 128], sizes = [33, 64], strides = [1, 1]} : vector<33x256xf32> to vector<33x64xf32>
    %477 = vector.extract_strided_slice %473 {offsets = [0, 192], sizes = [33, 64], strides = [1, 1]} : vector<33x256xf32> to vector<33x64xf32>
    %478 = arith.addf %475, %465 : vector<33x64xf32>
    %479 = arith.maximumf %478, %474 : vector<33x64xf32>
    %480 = arith.subf %474, %479 : vector<33x64xf32>
    %481 = math.exp %480 : vector<33x64xf32>
    %482 = arith.addf %475, %465 : vector<33x64xf32>
    %483 = arith.subf %482, %479 : vector<33x64xf32>
    %484 = math.exp %483 : vector<33x64xf32>
    %485 = arith.mulf %484, %467 : vector<33x64xf32>
    %486 = arith.addf %485, %481 : vector<33x64xf32>
    %487 = arith.mulf %464, %484 : vector<33x64xf32>
    %488 = math.tanh %477 : vector<33x64xf32>
    %489 = arith.mulf %488, %481 : vector<33x64xf32>
    %490 = arith.addf %487, %489 : vector<33x64xf32>
    %491 = arith.negf %476 : vector<33x64xf32>
    %492 = math.exp %491 : vector<33x64xf32>
    %cst_169 = arith.constant 1.000000e+00 : f32
    %493 = vector.broadcast %cst_169 : f32 to vector<33x64xf32>
    %494 = arith.addf %493, %492 : vector<33x64xf32>
    %495 = arith.divf %493, %494 : vector<33x64xf32>
    %496 = arith.divf %490, %486 : vector<33x64xf32>
    %497 = arith.mulf %495, %496 : vector<33x64xf32>
    %498 = vector.extract_strided_slice %497 {offsets = [0, 0], sizes = [1, 64], strides = [1, 1]} : vector<33x64xf32> to vector<1x64xf32>
    %c0_170 = arith.constant 0 : index
    %c0_171 = arith.constant 0 : index
    %499 = vector.load %arg14[%c0_170, %c0_171] : memref<256x64xf32, #tpu.memory_space<vmem>>, vector<64x64xf32>
    %cst_172 = arith.constant dense<0.000000e+00> : vector<1x64xf32>
    %500 = tpu.matmul %498, %499, %cst_172 {dimension_numbers = #tpu.dot_dimension_numbers<[1], [0], [0], [1], [0, 0, 1, 1], [], []>} : vector<1x64xf32>, vector<64x64xf32>, vector<1x64xf32> -> vector<1x64xf32>
    %c0_173 = arith.constant 0 : index
    %c1536 = arith.constant 1536 : index
    %501 = vector.load %arg15[%c0_173, %c1536] : memref<1x3200xf32, #tpu.memory_space<vmem>>, vector<1x64xf32>
    %502 = arith.addf %500, %501 : vector<1x64xf32>
    %503 = arith.addf %498, %502 : vector<1x64xf32>
    %cst_174 = arith.constant dense<0.000000e+00> : vector<1xf32>
    %504 = vector.multi_reduction <add>, %503, %cst_174 [1] : vector<1x64xf32> to vector<1xf32>
    %505 = vector.shape_cast %504 : vector<1xf32> to vector<1x1xf32>
    %cst_175 = arith.constant 6.400000e+01 : f32
    %506 = vector.broadcast %cst_175 : f32 to vector<1x1xf32>
    %507 = arith.divf %505, %506 : vector<1x1xf32>
    %508 = vector.broadcast %507 : vector<1x1xf32> to vector<1x64xf32>
    %509 = arith.subf %503, %508 : vector<1x64xf32>
    %510 = arith.mulf %509, %509 : vector<1x64xf32>
    %cst_176 = arith.constant dense<0.000000e+00> : vector<1xf32>
    %511 = vector.multi_reduction <add>, %510, %cst_176 [1] : vector<1x64xf32> to vector<1xf32>
    %512 = vector.shape_cast %511 : vector<1xf32> to vector<1x1xf32>
    %cst_177 = arith.constant 6.400000e+01 : f32
    %513 = vector.broadcast %cst_177 : f32 to vector<1x1xf32>
    %514 = arith.divf %512, %513 : vector<1x1xf32>
    %cst_178 = arith.constant 9.99999974E-6 : f32
    %515 = vector.broadcast %cst_178 : f32 to vector<1x1xf32>
    %516 = arith.addf %514, %515 : vector<1x1xf32>
    %517 = math.rsqrt %516 : vector<1x1xf32>
    %518 = vector.broadcast %517 : vector<1x1xf32> to vector<1x64xf32>
    %519 = arith.mulf %509, %518 : vector<1x64xf32>
    %c0_i32_179 = arith.constant 0 : i32
    %520 = tpu.memref_slice %arg21[%c0_i32_179] : memref<2x!tpu.dma_semaphore, #tpu.memory_space<semaphore_mem>> -> memref<1x!tpu.dma_semaphore, #tpu.memory_space<semaphore_mem>>
    %521 = tpu.memref_squeeze %520 : memref<1x!tpu.dma_semaphore, #tpu.memory_space<semaphore_mem>> -> memref<!tpu.dma_semaphore, #tpu.memory_space<semaphore_mem>>
    tpu.wait_dma2 semaphore(%521 : memref<!tpu.dma_semaphore, #tpu.memory_space<semaphore_mem>>) src(%arg16 : memref<64x1024xf32, #tpu.memory_space<any>>) dst(%arg19 : memref<64x1024xf32, #tpu.memory_space<vmem>>)
    %c1_i32_180 = arith.constant 1 : i32
    %522 = tpu.memref_slice %arg21[%c1_i32_180] : memref<2x!tpu.dma_semaphore, #tpu.memory_space<semaphore_mem>> -> memref<1x!tpu.dma_semaphore, #tpu.memory_space<semaphore_mem>>
    %523 = tpu.memref_squeeze %522 : memref<1x!tpu.dma_semaphore, #tpu.memory_space<semaphore_mem>> -> memref<!tpu.dma_semaphore, #tpu.memory_space<semaphore_mem>>
    tpu.wait_dma2 semaphore(%523 : memref<!tpu.dma_semaphore, #tpu.memory_space<semaphore_mem>>) src(%arg17 : memref<1024x64xf32, #tpu.memory_space<any>>) dst(%arg20 : memref<1024x64xf32, #tpu.memory_space<vmem>>)
    %c0_181 = arith.constant 0 : index
    %c0_182 = arith.constant 0 : index
    %524 = vector.load %arg19[%c0_181, %c0_182] : memref<64x1024xf32, #tpu.memory_space<vmem>>, vector<64x1024xf32>
    %cst_183 = arith.constant dense<0.000000e+00> : vector<1x1024xf32>
    %525 = tpu.matmul %519, %524, %cst_183 {dimension_numbers = #tpu.dot_dimension_numbers<[1], [0], [0], [1], [0, 0, 1, 1], [], []>} : vector<1x64xf32>, vector<64x1024xf32>, vector<1x1024xf32> -> vector<1x1024xf32>
    %c0_184 = arith.constant 0 : index
    %c1664 = arith.constant 1664 : index
    %526 = vector.load %arg15[%c0_184, %c1664] : memref<1x3200xf32, #tpu.memory_space<vmem>>, vector<1x1024xf32>
    %527 = arith.addf %525, %526 : vector<1x1024xf32>
    %cst_185 = arith.constant 5.000000e-01 : f32
    %528 = vector.broadcast %cst_185 : f32 to vector<1x1024xf32>
    %529 = arith.mulf %528, %527 : vector<1x1024xf32>
    %cst_186 = arith.constant 4.471500e-02 : f32
    %530 = vector.broadcast %cst_186 : f32 to vector<1x1024xf32>
    %531 = arith.mulf %530, %527 : vector<1x1024xf32>
    %532 = arith.mulf %531, %527 : vector<1x1024xf32>
    %533 = arith.mulf %532, %527 : vector<1x1024xf32>
    %534 = arith.addf %527, %533 : vector<1x1024xf32>
    %cst_187 = arith.constant 0.797884583 : f32
    %535 = vector.broadcast %cst_187 : f32 to vector<1x1024xf32>
    %536 = arith.mulf %535, %534 : vector<1x1024xf32>
    %537 = math.tanh %536 : vector<1x1024xf32>
    %cst_188 = arith.constant 1.000000e+00 : f32
    %538 = vector.broadcast %cst_188 : f32 to vector<1x1024xf32>
    %539 = arith.addf %538, %537 : vector<1x1024xf32>
    %540 = arith.mulf %529, %539 : vector<1x1024xf32>
    %c0_189 = arith.constant 0 : index
    %c0_190 = arith.constant 0 : index
    %541 = vector.load %arg20[%c0_189, %c0_190] : memref<1024x64xf32, #tpu.memory_space<vmem>>, vector<1024x64xf32>
    %cst_191 = arith.constant dense<0.000000e+00> : vector<1x64xf32>
    %542 = tpu.matmul %540, %541, %cst_191 {dimension_numbers = #tpu.dot_dimension_numbers<[1], [0], [0], [1], [0, 0, 1, 1], [], []>} : vector<1x1024xf32>, vector<1024x64xf32>, vector<1x64xf32> -> vector<1x64xf32>
    %c0_192 = arith.constant 0 : index
    %c2688 = arith.constant 2688 : index
    %543 = vector.load %arg15[%c0_192, %c2688] : memref<1x3200xf32, #tpu.memory_space<vmem>>, vector<1x64xf32>
    %544 = arith.addf %542, %543 : vector<1x64xf32>
    %545 = arith.addf %519, %544 : vector<1x64xf32>
    %cst_193 = arith.constant dense<0.000000e+00> : vector<1xf32>
    %546 = vector.multi_reduction <add>, %545, %cst_193 [1] : vector<1x64xf32> to vector<1xf32>
    %547 = vector.shape_cast %546 : vector<1xf32> to vector<1x1xf32>
    %cst_194 = arith.constant 6.400000e+01 : f32
    %548 = vector.broadcast %cst_194 : f32 to vector<1x1xf32>
    %549 = arith.divf %547, %548 : vector<1x1xf32>
    %550 = vector.broadcast %549 : vector<1x1xf32> to vector<1x64xf32>
    %551 = arith.subf %545, %550 : vector<1x64xf32>
    %552 = arith.mulf %551, %551 : vector<1x64xf32>
    %cst_195 = arith.constant dense<0.000000e+00> : vector<1xf32>
    %553 = vector.multi_reduction <add>, %552, %cst_195 [1] : vector<1x64xf32> to vector<1xf32>
    %554 = vector.shape_cast %553 : vector<1xf32> to vector<1x1xf32>
    %cst_196 = arith.constant 6.400000e+01 : f32
    %555 = vector.broadcast %cst_196 : f32 to vector<1x1xf32>
    %556 = arith.divf %554, %555 : vector<1x1xf32>
    %cst_197 = arith.constant 9.99999974E-6 : f32
    %557 = vector.broadcast %cst_197 : f32 to vector<1x1xf32>
    %558 = arith.addf %556, %557 : vector<1x1xf32>
    %559 = math.rsqrt %558 : vector<1x1xf32>
    %560 = vector.broadcast %559 : vector<1x1xf32> to vector<1x64xf32>
    %561 = arith.mulf %551, %560 : vector<1x64xf32>
    %c64 = arith.constant 64 : index
    %c0_198 = arith.constant 0 : index
    %562 = vector.load %arg14[%c64, %c0_198] : memref<256x64xf32, #tpu.memory_space<vmem>>, vector<64x64xf32>
    %cst_199 = arith.constant dense<0.000000e+00> : vector<1x64xf32>
    %563 = tpu.matmul %561, %562, %cst_199 {dimension_numbers = #tpu.dot_dimension_numbers<[1], [0], [0], [1], [0, 0, 1, 1], [], []>} : vector<1x64xf32>, vector<64x64xf32>, vector<1x64xf32> -> vector<1x64xf32>
    %c0_200 = arith.constant 0 : index
    %c2816 = arith.constant 2816 : index
    %564 = vector.load %arg15[%c0_200, %c2816] : memref<1x3200xf32, #tpu.memory_space<vmem>>, vector<1x64xf32>
    %565 = arith.addf %563, %564 : vector<1x64xf32>
    %cst_201 = arith.constant 0.000000e+00 : f32
    %566 = vector.broadcast %cst_201 : f32 to vector<1x64xf32>
    %567 = arith.cmpf ogt, %565, %566 : vector<1x64xf32>
    %cst_202 = arith.constant 0.000000e+00 : f32
    %568 = vector.broadcast %cst_202 : f32 to vector<1x64xf32>
    %569 = arith.minimumf %565, %568 : vector<1x64xf32>
    %570 = math.exp %569 : vector<1x64xf32>
    %cst_203 = arith.constant 1.000000e+00 : f32
    %571 = vector.broadcast %cst_203 : f32 to vector<1x64xf32>
    %572 = arith.subf %570, %571 : vector<1x64xf32>
    %573 = arith.select %567, %565, %572 : vector<1x64xi1>, vector<1x64xf32>
    %c128_204 = arith.constant 128 : index
    %c0_205 = arith.constant 0 : index
    %574 = vector.load %arg14[%c128_204, %c0_205] : memref<256x64xf32, #tpu.memory_space<vmem>>, vector<64x64xf32>
    %cst_206 = arith.constant dense<0.000000e+00> : vector<1x64xf32>
    %575 = tpu.matmul %573, %574, %cst_206 {dimension_numbers = #tpu.dot_dimension_numbers<[1], [0], [0], [1], [0, 0, 1, 1], [], []>} : vector<1x64xf32>, vector<64x64xf32>, vector<1x64xf32> -> vector<1x64xf32>
    %c0_207 = arith.constant 0 : index
    %c2944 = arith.constant 2944 : index
    %576 = vector.load %arg15[%c0_207, %c2944] : memref<1x3200xf32, #tpu.memory_space<vmem>>, vector<1x64xf32>
    %577 = arith.addf %575, %576 : vector<1x64xf32>
    %cst_208 = arith.constant 0.000000e+00 : f32
    %578 = vector.broadcast %cst_208 : f32 to vector<1x64xf32>
    %579 = arith.cmpf ogt, %577, %578 : vector<1x64xf32>
    %cst_209 = arith.constant 0.000000e+00 : f32
    %580 = vector.broadcast %cst_209 : f32 to vector<1x64xf32>
    %581 = arith.minimumf %577, %580 : vector<1x64xf32>
    %582 = math.exp %581 : vector<1x64xf32>
    %cst_210 = arith.constant 1.000000e+00 : f32
    %583 = vector.broadcast %cst_210 : f32 to vector<1x64xf32>
    %584 = arith.subf %582, %583 : vector<1x64xf32>
    %585 = arith.select %579, %577, %584 : vector<1x64xi1>, vector<1x64xf32>
    %c192 = arith.constant 192 : index
    %c0_211 = arith.constant 0 : index
    %586 = vector.load %arg14[%c192, %c0_211] : memref<256x64xf32, #tpu.memory_space<vmem>>, vector<64x10xf32>
    %cst_212 = arith.constant dense<0.000000e+00> : vector<1x10xf32>
    %587 = tpu.matmul %585, %586, %cst_212 {dimension_numbers = #tpu.dot_dimension_numbers<[1], [0], [0], [1], [0, 0, 1, 1], [], []>} : vector<1x64xf32>, vector<64x10xf32>, vector<1x10xf32> -> vector<1x10xf32>
    %c0_213 = arith.constant 0 : index
    %c3072 = arith.constant 3072 : index
    %588 = vector.load %arg15[%c0_213, %c3072] : memref<1x3200xf32, #tpu.memory_space<vmem>>, vector<1x10xf32>
    %589 = arith.addf %587, %588 : vector<1x10xf32>
    %c0_214 = arith.constant 0 : index
    %c0_215 = arith.constant 0 : index
    %590 = vector.load %arg18[%c0_214, %c0_215] : memref<1x10xf32, #tpu.memory_space<vmem>>, vector<1x10xf32>
    tpu.vector_store %arg18[%c0_214, %c0_215], %589 {strides = array<i32>} : memref<1x10xf32, #tpu.memory_space<vmem>>, vector<1x10xf32>,
    return
  }
}

</mosaic_0001>

<bundles_post_ra>
// kernel: vit_classifier_forward.1
= control target key start
LH: loop header
LB: loop body
LE: loop exit
PB: predicated region body
PF: predicated region fallthrough
CT: control target
= control target key end

     0   :  { %s11252_s0 = inlined_call_operand.vmem [shape: f32[32,32], index: 0, kind: input, shape index: {}]   ;;  %s11253_s1 = inlined_call_operand.vmem [shape: f32[33,32], index: 1, kind: input, shape index: {}]   ;;  %s11254_s2 = inlined_call_operand.vmem [shape: f32[33,64], index: 2, kind: input, shape index: {}]   ;;  %s11255_s3 = inlined_call_operand.vmem [shape: f32[33,64], index: 3, kind: input, shape index: {}]   ;;  %s11256_s4 = inlined_call_operand.vmem [shape: f32[33,64], index: 4, kind: input, shape index: {}]   ;;  %s11257_s5 = inlined_call_operand.vmem [shape: f32[33,64], index: 5, kind: input, shape index: {}]   ;;  %s11258_s6 = inlined_call_operand.vmem [shape: f32[33,64], index: 6, kind: input, shape index: {}]   ;;  %s11259_s7 = inlined_call_operand.vmem [shape: f32[33,64], index: 7, kind: input, shape index: {}]   ;;  %s11260_s8 = inlined_call_operand.vmem [shape: f32[33,64], index: 8, kind: input, shape index: {}]   ;;  %s11261_s9 = inlined_call_operand.vmem [shape: f32[33,64], index: 9, kind: input, shape index: {}]   ;;  %s11262_s10 = inlined_call_operand.vmem [shape: f32[192,192], index: 10, kind: input, shape index: {}]   ;;  %s11263_s11 = inlined_call_operand.vmem [shape: f32[64,128], index: 11, kind: input, shape index: {}]   ;;  %s11264_s12 = inlined_call_operand.vmem [shape: f32[256,32], index: 12, kind: input, shape index: {}]   ;;  %s11265_s13 = inlined_call_operand.vmem [shape: f32[192,256], index: 13, kind: input, shape index: {}]   ;;  %s11266_s14 = inlined_call_operand.vmem [shape: f32[256,64], index: 14, kind: input, shape index: {}]   ;;  %s11267_s15 = inlined_call_operand.vmem [shape: f32[1,3200], index: 15, kind: input, shape index: {}]   ;;  %s11268_s16 = inlined_call_operand.vmem [shape: f32[64,1024], index: 16, kind: input, shape index: {}]   ;;  %s11269_s17 = inlined_call_operand.vmem [shape: f32[1024,64], index: 17, kind: input, shape index: {}]   ;;  %s11270_s18 = inlined_call_operand.hbm [shape: f32[1,10], index: 18, kind: output, shape index: {}]  }
   0x1   :  { %11283 = sst [smem:[#allocation208_spill]] %s11252_s0 }
   0x2   :  { %11284 = sst [smem:[#allocation209_spill]] %s11253_s1 }
   0x3   :  { %11285 = sst [smem:[#allocation210_spill]] %s11254_s2 }
   0x4   :  { %23 = vsyncpa [#allocation6], 0  ;;  %v7594_v0 = vld [vmem:[%s11268_s16] sm:$0xff]  ;;  %v7599_v1 = vld [vmem:[%s11268_s16 + $0x8] sm:$0xff] }
   0x5   :  { %11286 = vst [vmem:[#allocation12_spill] sm:$0xff] %v7594_v0  ;;  %11287 = vst [vmem:[#allocation13_spill] sm:$0xff] %v7599_v1  ;;  %v7604_v2 = vld [vmem:[%s11268_s16 + $0x10] sm:$0xff]  ;;  %v7609_v3 = vld [vmem:[%s11268_s16 + $0x18] sm:$0xff] }
   0x6   :  { %11288 = vst [vmem:[#allocation14_spill] sm:$0xff] %v7604_v2  ;;  %11289 = vst [vmem:[#allocation15_spill] sm:$0xff] %v7609_v3  ;;  %v7614_v4 = vld [vmem:[%s11268_s16 + $0x20] sm:$0xff]  ;;  %v7619_v5 = vld [vmem:[%s11268_s16 + $0x28] sm:$0xff] }
   0x7   :  { %11290 = vst [vmem:[#allocation16_spill] sm:$0xff] %v7614_v4  ;;  %11291 = vst [vmem:[#allocation17_spill] sm:$0xff] %v7619_v5  ;;  %v7624_v6 = vld [vmem:[%s11268_s16 + $0x30] sm:$0xff]  ;;  %v7629_v7 = vld [vmem:[%s11268_s16 + $0x38] sm:$0xff] }
   0x8   :  { %11292 = vst [vmem:[#allocation18_spill] sm:$0xff] %v7624_v6  ;;  %11293 = vst [vmem:[#allocation19_spill] sm:$0xff] %v7629_v7  ;;  %v7634_v8 = vld [vmem:[%s11268_s16 + $0x40] sm:$0xff]  ;;  %v7639_v9 = vld [vmem:[%s11268_s16 + $0x48] sm:$0xff] }
   0x9   :  { %11294 = vst [vmem:[#allocation20_spill] sm:$0xff] %v7634_v8  ;;  %11295 = vst [vmem:[#allocation21_spill] sm:$0xff] %v7639_v9  ;;  %v7644_v10 = vld [vmem:[%s11268_s16 + $0x50] sm:$0xff]  ;;  %v7649_v11 = vld [vmem:[%s11268_s16 + $0x58] sm:$0xff] }
   0xa   :  { %11296 = vst [vmem:[#allocation22_spill] sm:$0xff] %v7644_v10  ;;  %11297 = vst [vmem:[#allocation23_spill] sm:$0xff] %v7649_v11  ;;  %v7654_v12 = vld [vmem:[%s11268_s16 + $0x60] sm:$0xff]  ;;  %v7659_v13 = vld [vmem:[%s11268_s16 + $0x68] sm:$0xff] }
   0xb   :  { %11298 = vst [vmem:[#allocation24_spill] sm:$0xff] %v7654_v12  ;;  %11299 = vst [vmem:[#allocation25_spill] sm:$0xff] %v7659_v13  ;;  %v7664_v14 = vld [vmem:[%s11268_s16 + $0x70] sm:$0xff]  ;;  %v7669_v15 = vld [vmem:[%s11268_s16 + $0x78] sm:$0xff] }
   0xc   :  { %11300 = vst [vmem:[#allocation26_spill] sm:$0xff] %v7664_v14  ;;  %11301 = vst [vmem:[#allocation27_spill] sm:$0xff] %v7669_v15  ;;  %v7674_v16 = vld [vmem:[%s11268_s16 + $0x80] sm:$0xff]  ;;  %v7679_v17 = vld [vmem:[%s11268_s16 + $0x88] sm:$0xff] }
   0xd   :  { %11302 = vst [vmem:[#allocation28_spill] sm:$0xff] %v7674_v16  ;;  %11303 = vst [vmem:[#allocation29_spill] sm:$0xff] %v7679_v17  ;;  %v7684_v18 = vld [vmem:[%s11268_s16 + $0x90] sm:$0xff]  ;;  %v7689_v19 = vld [vmem:[%s11268_s16 + $0x98] sm:$0xff] }
   0xe   :  { %11304 = vst [vmem:[#allocation30_spill] sm:$0xff] %v7684_v18  ;;  %11305 = vst [vmem:[#allocation31_spill] sm:$0xff] %v7689_v19  ;;  %v7694_v20 = vld [vmem:[%s11268_s16 + $0xa0] sm:$0xff]  ;;  %v7699_v21 = vld [vmem:[%s11268_s16 + $0xa8] sm:$0xff] }
   0xf   :  { %11306 = vst [vmem:[#allocation32_spill] sm:$0xff] %v7694_v20  ;;  %11307 = vst [vmem:[#allocation33_spill] sm:$0xff] %v7699_v21  ;;  %v7704_v22 = vld [vmem:[%s11268_s16 + $0xb0] sm:$0xff]  ;;  %v7709_v23 = vld [vmem:[%s11268_s16 + $0xb8] sm:$0xff] }
  0x10   :  { %11308 = vst [vmem:[#allocation34_spill] sm:$0xff] %v7704_v22  ;;  %11309 = vst [vmem:[#allocation35_spill] sm:$0xff] %v7709_v23  ;;  %v7714_v24 = vld [vmem:[%s11268_s16 + $0xc0] sm:$0xff]  ;;  %v7719_v25 = vld [vmem:[%s11268_s16 + $0xc8] sm:$0xff] }
  0x11   :  { %11310 = vst [vmem:[#allocation36_spill] sm:$0xff] %v7714_v24  ;;  %11311 = vst [vmem:[#allocation37_spill] sm:$0xff] %v7719_v25  ;;  %v7724_v26 = vld [vmem:[%s11268_s16 + $0xd0] sm:$0xff]  ;;  %v7729_v27 = vld [vmem:[%s11268_s16 + $0xd8] sm:$0xff] }
  0x12   :  { %11312 = vst [vmem:[#allocation38_spill] sm:$0xff] %v7724_v26  ;;  %11313 = vst [vmem:[#allocation39_spill] sm:$0xff] %v7729_v27  ;;  %v7734_v28 = vld [vmem:[%s11268_s16 + $0xe0] sm:$0xff]  ;;  %v7739_v29 = vld [vmem:[%s11268_s16 + $0xe8] sm:$0xff] }
  0x13   :  { %11314 = vst [vmem:[#allocation40_spill] sm:$0xff] %v7734_v28  ;;  %11315 = vst [vmem:[#allocation41_spill] sm:$0xff] %v7739_v29  ;;  %v7744_v30 = vld [vmem:[%s11268_s16 + $0xf0] sm:$0xff]  ;;  %v7749_v31 = vld [vmem:[%s11268_s16 + $0xf8] sm:$0xff] }
  0x14   :  { %11316 = vst [vmem:[#allocation42_spill] sm:$0xff] %v7744_v30  ;;  %11317 = vst [vmem:[#allocation43_spill] sm:$0xff] %v7749_v31  ;;  %v7754_v32 = vld [vmem:[%s11268_s16 + $0x100] sm:$0xff]  ;;  %v7759_v33 = vld [vmem:[%s11268_s16 + $0x108] sm:$0xff] }
  0x15   :  { %11318 = vst [vmem:[#allocation44_spill] sm:$0xff] %v7754_v32  ;;  %11319 = vst [vmem:[#allocation45_spill] sm:$0xff] %v7759_v33  ;;  %v7764_v34 = vld [vmem:[%s11268_s16 + $0x110] sm:$0xff]  ;;  %v7769_v35 = vld [vmem:[%s11268_s16 + $0x118] sm:$0xff] }
  0x16   :  { %11320 = vst [vmem:[#allocation46_spill] sm:$0xff] %v7764_v34  ;;  %11321 = vst [vmem:[#allocation47_spill] sm:$0xff] %v7769_v35  ;;  %v7774_v36 = vld [vmem:[%s11268_s16 + $0x120] sm:$0xff]  ;;  %v7779_v37 = vld [vmem:[%s11268_s16 + $0x128] sm:$0xff] }
  0x17   :  { %11322 = vst [vmem:[#allocation48_spill] sm:$0xff] %v7774_v36  ;;  %11323 = vst [vmem:[#allocation49_spill] sm:$0xff] %v7779_v37  ;;  %v7784_v38 = vld [vmem:[%s11268_s16 + $0x130] sm:$0xff]  ;;  %v7789_v39 = vld [vmem:[%s11268_s16 + $0x138] sm:$0xff] }
  0x18   :  { %11324 = vst [vmem:[#allocation50_spill] sm:$0xff] %v7784_v38  ;;  %11325 = vst [vmem:[#allocation51_spill] sm:$0xff] %v7789_v39  ;;  %v7794_v40 = vld [vmem:[%s11268_s16 + $0x140] sm:$0xff]  ;;  %v7799_v41 = vld [vmem:[%s11268_s16 + $0x148] sm:$0xff] }
  0x19   :  { %11326 = vst [vmem:[#allocation52_spill] sm:$0xff] %v7794_v40  ;;  %11327 = vst [vmem:[#allocation53_spill] sm:$0xff] %v7799_v41  ;;  %v7804_v42 = vld [vmem:[%s11268_s16 + $0x150] sm:$0xff]  ;;  %v7809_v43 = vld [vmem:[%s11268_s16 + $0x158] sm:$0xff] }
  0x1a   :  { %11328 = vst [vmem:[#allocation54_spill] sm:$0xff] %v7804_v42  ;;  %11329 = vst [vmem:[#allocation55_spill] sm:$0xff] %v7809_v43  ;;  %v7814_v44 = vld [vmem:[%s11268_s16 + $0x160] sm:$0xff]  ;;  %v7819_v45 = vld [vmem:[%s11268_s16 + $0x168] sm:$0xff] }
  0x1b   :  { %11330 = vst [vmem:[#allocation56_spill] sm:$0xff] %v7814_v44  ;;  %11331 = vst [vmem:[#allocation57_spill] sm:$0xff] %v7819_v45  ;;  %v7824_v46 = vld [vmem:[%s11268_s16 + $0x170] sm:$0xff]  ;;  %v7829_v47 = vld [vmem:[%s11268_s16 + $0x178] sm:$0xff] }
  0x1c   :  { %11332 = vst [vmem:[#allocation58_spill] sm:$0xff] %v7824_v46  ;;  %11333 = vst [vmem:[#allocation59_spill] sm:$0xff] %v7829_v47  ;;  %v7834_v48 = vld [vmem:[%s11268_s16 + $0x180] sm:$0xff]  ;;  %v7839_v49 = vld [vmem:[%s11268_s16 + $0x188] sm:$0xff] }
  0x1d   :  { %11334 = vst [vmem:[#allocation60_spill] sm:$0xff] %v7834_v48  ;;  %11335 = vst [vmem:[#allocation61_spill] sm:$0xff] %v7839_v49  ;;  %v7844_v50 = vld [vmem:[%s11268_s16 + $0x190] sm:$0xff]  ;;  %v7849_v51 = vld [vmem:[%s11268_s16 + $0x198] sm:$0xff] }
  0x1e   :  { %11336 = vst [vmem:[#allocation62_spill] sm:$0xff] %v7844_v50  ;;  %11337 = vst [vmem:[#allocation63_spill] sm:$0xff] %v7849_v51  ;;  %v7854_v52 = vld [vmem:[%s11268_s16 + $0x1a0] sm:$0xff]  ;;  %v7859_v53 = vld [vmem:[%s11268_s16 + $0x1a8] sm:$0xff] }
  0x1f   :  { %11338 = vst [vmem:[#allocation64_spill] sm:$0xff] %v7854_v52  ;;  %11339 = vst [vmem:[#allocation65_spill] sm:$0xff] %v7859_v53  ;;  %v7864_v54 = vld [vmem:[%s11268_s16 + $0x1b0] sm:$0xff]  ;;  %v7869_v55 = vld [vmem:[%s11268_s16 + $0x1b8] sm:$0xff] }
  0x20   :  { %11340 = vst [vmem:[#allocation66_spill] sm:$0xff] %v7864_v54  ;;  %11341 = vst [vmem:[#allocation67_spill] sm:$0xff] %v7869_v55  ;;  %v7874_v56 = vld [vmem:[%s11268_s16 + $0x1c0] sm:$0xff]  ;;  %v7879_v57 = vld [vmem:[%s11268_s16 + $0x1c8] sm:$0xff] }
  0x21   :  { %11342 = vst [vmem:[#allocation68_spill] sm:$0xff] %v7874_v56  ;;  %11343 = vst [vmem:[#allocation69_spill] sm:$0xff] %v7879_v57  ;;  %v7884_v58 = vld [vmem:[%s11268_s16 + $0x1d0] sm:$0xff]  ;;  %v7889_v59 = vld [vmem:[%s11268_s16 + $0x1d8] sm:$0xff] }
  0x22   :  { %11344 = vst [vmem:[#allocation70_spill] sm:$0xff] %v7884_v58  ;;  %11345 = vst [vmem:[#allocation71_spill] sm:$0xff] %v7889_v59  ;;  %v7894_v60 = vld [vmem:[%s11268_s16 + $0x1e0] sm:$0xff]  ;;  %v7899_v61 = vld [vmem:[%s11268_s16 + $0x1e8] sm:$0xff] }
  0x23   :  { %11346 = vst [vmem:[#allocation72_spill] sm:$0xff] %v7894_v60  ;;  %11347 = vst [vmem:[#allocation73_spill] sm:$0xff] %v7899_v61  ;;  %v7904_v62 = vld [vmem:[%s11268_s16 + $0x1f0] sm:$0xff]  ;;  %v7909_v63 = vld [vmem:[%s11268_s16 + $0x1f8] sm:$0xff] }
  0x24   :  { %11348 = vst [vmem:[#allocation74_spill] sm:$0xff] %v7904_v62  ;;  %11349 = vst [vmem:[#allocation75_spill] sm:$0xff] %v7909_v63 }
  0x25   :  { %224 = vsyncadd [#allocation4], 8192  ;;  %v7914_v6 = vld [vmem:[%s11269_s17] sm:$0xff]  ;;  %v7919_v4 = vld [vmem:[%s11269_s17 + $0x8] sm:$0xff] }
  0x26   :  { %11350 = vst [vmem:[#allocation76_spill] sm:$0xff] %v7914_v6  ;;  %11351 = vst [vmem:[#allocation77_spill] sm:$0xff] %v7919_v4  ;;  %v7924_v7 = vld [vmem:[%s11269_s17 + $0x10] sm:$0xff]  ;;  %v7929_v5 = vld [vmem:[%s11269_s17 + $0x18] sm:$0xff] }
  0x27   :  { %11352 = vst [vmem:[#allocation78_spill] sm:$0xff] %v7924_v7  ;;  %11353 = vst [vmem:[#allocation79_spill] sm:$0xff] %v7929_v5  ;;  %v7934_v14 = vld [vmem:[%s11269_s17 + $0x20] sm:$0xff]  ;;  %v7939_v6 = vld [vmem:[%s11269_s17 + $0x28] sm:$0xff] }
  0x28   :  { %11354 = vst [vmem:[#allocation80_spill] sm:$0xff] %v7934_v14  ;;  %11355 = vst [vmem:[#allocation81_spill] sm:$0xff] %v7939_v6  ;;  %v7944_v4 = vld [vmem:[%s11269_s17 + $0x30] sm:$0xff]  ;;  %v7949_v7 = vld [vmem:[%s11269_s17 + $0x38] sm:$0xff] }
  0x29   :  { %11356 = vst [vmem:[#allocation82_spill] sm:$0xff] %v7944_v4  ;;  %11357 = vst [vmem:[#allocation83_spill] sm:$0xff] %v7949_v7  ;;  %v7954_v5 = vld [vmem:[%s11269_s17 + $0x40] sm:$0xff]  ;;  %v7959_v14 = vld [vmem:[%s11269_s17 + $0x48] sm:$0xff] }
  0x2a   :  { %11358 = vst [vmem:[#allocation84_spill] sm:$0xff] %v7954_v5  ;;  %11359 = vst [vmem:[#allocation85_spill] sm:$0xff] %v7959_v14  ;;  %v7964_v6 = vld [vmem:[%s11269_s17 + $0x50] sm:$0xff]  ;;  %v7969_v4 = vld [vmem:[%s11269_s17 + $0x58] sm:$0xff] }
  0x2b   :  { %11360 = vst [vmem:[#allocation86_spill] sm:$0xff] %v7964_v6  ;;  %11361 = vst [vmem:[#allocation87_spill] sm:$0xff] %v7969_v4  ;;  %v7974_v7 = vld [vmem:[%s11269_s17 + $0x60] sm:$0xff]  ;;  %v7979_v5 = vld [vmem:[%s11269_s17 + $0x68] sm:$0xff] }
  0x2c   :  { %11362 = vst [vmem:[#allocation88_spill] sm:$0xff] %v7974_v7  ;;  %11363 = vst [vmem:[#allocation89_spill] sm:$0xff] %v7979_v5  ;;  %v7984_v14 = vld [vmem:[%s11269_s17 + $0x70] sm:$0xff]  ;;  %v7989_v6 = vld [vmem:[%s11269_s17 + $0x78] sm:$0xff] }
  0x2d   :  { %11364 = vst [vmem:[#allocation90_spill] sm:$0xff] %v7984_v14  ;;  %11365 = vst [vmem:[#allocation91_spill] sm:$0xff] %v7989_v6  ;;  %v7994_v4 = vld [vmem:[%s11269_s17 + $0x80] sm:$0xff]  ;;  %v7999_v7 = vld [vmem:[%s11269_s17 + $0x88] sm:$0xff] }
  0x2e   :  { %11366 = vst [vmem:[#allocation92_spill] sm:$0xff] %v7994_v4  ;;  %11367 = vst [vmem:[#allocation93_spill] sm:$0xff] %v7999_v7  ;;  %v8004_v5 = vld [vmem:[%s11269_s17 + $0x90] sm:$0xff]  ;;  %v8009_v14 = vld [vmem:[%s11269_s17 + $0x98] sm:$0xff] }
  0x2f   :  { %11368 = vst [vmem:[#allocation94_spill] sm:$0xff] %v8004_v5  ;;  %11369 = vst [vmem:[#allocation95_spill] sm:$0xff] %v8009_v14  ;;  %v8014_v6 = vld [vmem:[%s11269_s17 + $0xa0] sm:$0xff]  ;;  %v8019_v4 = vld [vmem:[%s11269_s17 + $0xa8] sm:$0xff] }
  0x30   :  { %11370 = vst [vmem:[#allocation96_spill] sm:$0xff] %v8014_v6  ;;  %11371 = vst [vmem:[#allocation97_spill] sm:$0xff] %v8019_v4  ;;  %v8024_v7 = vld [vmem:[%s11269_s17 + $0xb0] sm:$0xff]  ;;  %v8029_v5 = vld [vmem:[%s11269_s17 + $0xb8] sm:$0xff] }
  0x31   :  { %11372 = vst [vmem:[#allocation98_spill] sm:$0xff] %v8024_v7  ;;  %11373 = vst [vmem:[#allocation99_spill] sm:$0xff] %v8029_v5  ;;  %v8034_v14 = vld [vmem:[%s11269_s17 + $0xc0] sm:$0xff]  ;;  %v8039_v6 = vld [vmem:[%s11269_s17 + $0xc8] sm:$0xff] }
  0x32   :  { %11374 = vst [vmem:[#allocation100_spill] sm:$0xff] %v8034_v14  ;;  %11375 = vst [vmem:[#allocation101_spill] sm:$0xff] %v8039_v6  ;;  %v8044_v4 = vld [vmem:[%s11269_s17 + $0xd0] sm:$0xff]  ;;  %v8049_v7 = vld [vmem:[%s11269_s17 + $0xd8] sm:$0xff] }
  0x33   :  { %11376 = vst [vmem:[#allocation102_spill] sm:$0xff] %v8044_v4  ;;  %11377 = vst [vmem:[#allocation103_spill] sm:$0xff] %v8049_v7  ;;  %v8054_v5 = vld [vmem:[%s11269_s17 + $0xe0] sm:$0xff]  ;;  %v8059_v14 = vld [vmem:[%s11269_s17 + $0xe8] sm:$0xff] }
  0x34   :  { %11378 = vst [vmem:[#allocation104_spill] sm:$0xff] %v8054_v5  ;;  %11379 = vst [vmem:[#allocation105_spill] sm:$0xff] %v8059_v14  ;;  %v8064_v6 = vld [vmem:[%s11269_s17 + $0xf0] sm:$0xff]  ;;  %v8069_v4 = vld [vmem:[%s11269_s17 + $0xf8] sm:$0xff] }
  0x35   :  { %11380 = vst [vmem:[#allocation106_spill] sm:$0xff] %v8064_v6  ;;  %11381 = vst [vmem:[#allocation107_spill] sm:$0xff] %v8069_v4  ;;  %v8074_v7 = vld [vmem:[%s11269_s17 + $0x100] sm:$0xff]  ;;  %v8079_v5 = vld [vmem:[%s11269_s17 + $0x108] sm:$0xff] }
  0x36   :  { %11382 = vst [vmem:[#allocation108_spill] sm:$0xff] %v8074_v7  ;;  %11383 = vst [vmem:[#allocation109_spill] sm:$0xff] %v8079_v5  ;;  %v8084_v14 = vld [vmem:[%s11269_s17 + $0x110] sm:$0xff]  ;;  %v8089_v6 = vld [vmem:[%s11269_s17 + $0x118] sm:$0xff] }
  0x37   :  { %11384 = vst [vmem:[#allocation110_spill] sm:$0xff] %v8084_v14  ;;  %11385 = vst [vmem:[#allocation111_spill] sm:$0xff] %v8089_v6  ;;  %v8094_v4 = vld [vmem:[%s11269_s17 + $0x120] sm:$0xff]  ;;  %v8099_v7 = vld [vmem:[%s11269_s17 + $0x128] sm:$0xff] }
  0x38   :  { %11386 = vst [vmem:[#allocation112_spill] sm:$0xff] %v8094_v4  ;;  %11387 = vst [vmem:[#allocation113_spill] sm:$0xff] %v8099_v7  ;;  %v8104_v5 = vld [vmem:[%s11269_s17 + $0x130] sm:$0xff]  ;;  %v8109_v14 = vld [vmem:[%s11269_s17 + $0x138] sm:$0xff] }
  0x39   :  { %11388 = vst [vmem:[#allocation114_spill] sm:$0xff] %v8104_v5  ;;  %11389 = vst [vmem:[#allocation115_spill] sm:$0xff] %v8109_v14  ;;  %v8114_v6 = vld [vmem:[%s11269_s17 + $0x140] sm:$0xff]  ;;  %v8119_v4 = vld [vmem:[%s11269_s17 + $0x148] sm:$0xff] }
  0x3a   :  { %11390 = vst [vmem:[#allocation116_spill] sm:$0xff] %v8114_v6  ;;  %11391 = vst [vmem:[#allocation117_spill] sm:$0xff] %v8119_v4  ;;  %v8124_v7 = vld [vmem:[%s11269_s17 + $0x150] sm:$0xff]  ;;  %v8129_v5 = vld [vmem:[%s11269_s17 + $0x158] sm:$0xff] }
  0x3b   :  { %11392 = vst [vmem:[#allocation118_spill] sm:$0xff] %v8124_v7  ;;  %11393 = vst [vmem:[#allocation119_spill] sm:$0xff] %v8129_v5  ;;  %v8134_v14 = vld [vmem:[%s11269_s17 + $0x160] sm:$0xff]  ;;  %v8139_v6 = vld [vmem:[%s11269_s17 + $0x168] sm:$0xff] }
  0x3c   :  { %11394 = vst [vmem:[#allocation120_spill] sm:$0xff] %v8134_v14  ;;  %11395 = vst [vmem:[#allocation121_spill] sm:$0xff] %v8139_v6  ;;  %v8144_v4 = vld [vmem:[%s11269_s17 + $0x170] sm:$0xff]  ;;  %v8149_v7 = vld [vmem:[%s11269_s17 + $0x178] sm:$0xff] }
  0x3d   :  { %11396 = vst [vmem:[#allocation122_spill] sm:$0xff] %v8144_v4  ;;  %11397 = vst [vmem:[#allocation123_spill] sm:$0xff] %v8149_v7  ;;  %v8154_v5 = vld [vmem:[%s11269_s17 + $0x180] sm:$0xff]  ;;  %v8159_v14 = vld [vmem:[%s11269_s17 + $0x188] sm:$0xff] }
  0x3e   :  { %11398 = vst [vmem:[#allocation124_spill] sm:$0xff] %v8154_v5  ;;  %11399 = vst [vmem:[#allocation125_spill] sm:$0xff] %v8159_v14  ;;  %v8164_v6 = vld [vmem:[%s11269_s17 + $0x190] sm:$0xff]  ;;  %v8169_v4 = vld [vmem:[%s11269_s17 + $0x198] sm:$0xff] }
  0x3f   :  { %11400 = vst [vmem:[#allocation126_spill] sm:$0xff] %v8164_v6  ;;  %11401 = vst [vmem:[#allocation127_spill] sm:$0xff] %v8169_v4  ;;  %v8174_v7 = vld [vmem:[%s11269_s17 + $0x1a0] sm:$0xff]  ;;  %v8179_v5 = vld [vmem:[%s11269_s17 + $0x1a8] sm:$0xff] }
  0x40   :  { %11402 = vst [vmem:[#allocation128_spill] sm:$0xff] %v8174_v7  ;;  %11403 = vst [vmem:[#allocation129_spill] sm:$0xff] %v8179_v5  ;;  %v8184_v14 = vld [vmem:[%s11269_s17 + $0x1b0] sm:$0xff]  ;;  %v8189_v6 = vld [vmem:[%s11269_s17 + $0x1b8] sm:$0xff] }
  0x41   :  { %11404 = vst [vmem:[#allocation130_spill] sm:$0xff] %v8184_v14  ;;  %11405 = vst [vmem:[#allocation131_spill] sm:$0xff] %v8189_v6  ;;  %v8194_v4 = vld [vmem:[%s11269_s17 + $0x1c0] sm:$0xff]  ;;  %v8199_v7 = vld [vmem:[%s11269_s17 + $0x1c8] sm:$0xff] }
  0x42   :  { %11406 = vst [vmem:[#allocation132_spill] sm:$0xff] %v8194_v4  ;;  %11407 = vst [vmem:[#allocation133_spill] sm:$0xff] %v8199_v7  ;;  %v8204_v5 = vld [vmem:[%s11269_s17 + $0x1d0] sm:$0xff]  ;;  %v8209_v14 = vld [vmem:[%s11269_s17 + $0x1d8] sm:$0xff] }
  0x43   :  { %11408 = vst [vmem:[#allocation134_spill] sm:$0xff] %v8204_v5  ;;  %11409 = vst [vmem:[#allocation135_spill] sm:$0xff] %v8209_v14  ;;  %v8214_v6 = vld [vmem:[%s11269_s17 + $0x1e0] sm:$0xff]  ;;  %v8219_v4 = vld [vmem:[%s11269_s17 + $0x1e8] sm:$0xff] }
  0x44   :  { %11410 = vst [vmem:[#allocation136_spill] sm:$0xff] %v8214_v6  ;;  %11411 = vst [vmem:[#allocation137_spill] sm:$0xff] %v8219_v4  ;;  %v8224_v7 = vld [vmem:[%s11269_s17 + $0x1f0] sm:$0xff]  ;;  %v8229_v5 = vld [vmem:[%s11269_s17 + $0x1f8] sm:$0xff] }
  0x45   :  { %11412 = vst [vmem:[#allocation138_spill] sm:$0xff] %v8224_v7  ;;  %11413 = vst [vmem:[#allocation139_spill] sm:$0xff] %v8229_v5  ;;  %v8234_v14 = vld [vmem:[%s11269_s17 + $0x200] sm:$0xff]  ;;  %v8239_v6 = vld [vmem:[%s11269_s17 + $0x208] sm:$0xff] }
  0x46   :  { %11414 = vst [vmem:[#allocation140_spill] sm:$0xff] %v8234_v14  ;;  %11415 = vst [vmem:[#allocation141_spill] sm:$0xff] %v8239_v6  ;;  %v8244_v4 = vld [vmem:[%s11269_s17 + $0x210] sm:$0xff]  ;;  %v8249_v7 = vld [vmem:[%s11269_s17 + $0x218] sm:$0xff] }
  0x47   :  { %11416 = vst [vmem:[#allocation142_spill] sm:$0xff] %v8244_v4  ;;  %11417 = vst [vmem:[#allocation143_spill] sm:$0xff] %v8249_v7  ;;  %v8254_v5 = vld [vmem:[%s11269_s17 + $0x220] sm:$0xff]  ;;  %v8259_v14 = vld [vmem:[%s11269_s17 + $0x228] sm:$0xff] }
  0x48   :  { %11418 = vst [vmem:[#allocation144_spill] sm:$0xff] %v8254_v5  ;;  %11419 = vst [vmem:[#allocation145_spill] sm:$0xff] %v8259_v14  ;;  %v8264_v6 = vld [vmem:[%s11269_s17 + $0x230] sm:$0xff]  ;;  %v8269_v4 = vld [vmem:[%s11269_s17 + $0x238] sm:$0xff] }
  0x49   :  { %11420 = vst [vmem:[#allocation146_spill] sm:$0xff] %v8264_v6  ;;  %11421 = vst [vmem:[#allocation147_spill] sm:$0xff] %v8269_v4  ;;  %v8274_v7 = vld [vmem:[%s11269_s17 + $0x240] sm:$0xff]  ;;  %v8279_v5 = vld [vmem:[%s11269_s17 + $0x248] sm:$0xff] }
  0x4a   :  { %11422 = vst [vmem:[#allocation148_spill] sm:$0xff] %v8274_v7  ;;  %11423 = vst [vmem:[#allocation149_spill] sm:$0xff] %v8279_v5  ;;  %v8284_v14 = vld [vmem:[%s11269_s17 + $0x250] sm:$0xff]  ;;  %v8289_v6 = vld [vmem:[%s11269_s17 + $0x258] sm:$0xff] }
  0x4b   :  { %11424 = vst [vmem:[#allocation150_spill] sm:$0xff] %v8284_v14  ;;  %11425 = vst [vmem:[#allocation151_spill] sm:$0xff] %v8289_v6  ;;  %v8294_v4 = vld [vmem:[%s11269_s17 + $0x260] sm:$0xff]  ;;  %v8299_v7 = vld [vmem:[%s11269_s17 + $0x268] sm:$0xff] }
  0x4c   :  { %11426 = vst [vmem:[#allocation152_spill] sm:$0xff] %v8294_v4  ;;  %11427 = vst [vmem:[#allocation153_spill] sm:$0xff] %v8299_v7  ;;  %v8304_v5 = vld [vmem:[%s11269_s17 + $0x270] sm:$0xff]  ;;  %v8309_v14 = vld [vmem:[%s11269_s17 + $0x278] sm:$0xff] }
  0x4d   :  { %11428 = vst [vmem:[#allocation154_spill] sm:$0xff] %v8304_v5  ;;  %11429 = vst [vmem:[#allocation155_spill] sm:$0xff] %v8309_v14  ;;  %v8314_v6 = vld [vmem:[%s11269_s17 + $0x280] sm:$0xff]  ;;  %v8319_v4 = vld [vmem:[%s11269_s17 + $0x288] sm:$0xff] }
  0x4e   :  { %11430 = vst [vmem:[#allocation156_spill] sm:$0xff] %v8314_v6  ;;  %11431 = vst [vmem:[#allocation157_spill] sm:$0xff] %v8319_v4  ;;  %v8324_v7 = vld [vmem:[%s11269_s17 + $0x290] sm:$0xff]  ;;  %v8329_v5 = vld [vmem:[%s11269_s17 + $0x298] sm:$0xff] }
  0x4f   :  { %11432 = vst [vmem:[#allocation158_spill] sm:$0xff] %v8324_v7  ;;  %11433 = vst [vmem:[#allocation159_spill] sm:$0xff] %v8329_v5  ;;  %v8334_v14 = vld [vmem:[%s11269_s17 + $0x2a0] sm:$0xff]  ;;  %v8339_v6 = vld [vmem:[%s11269_s17 + $0x2a8] sm:$0xff] }
  0x50   :  { %11434 = vst [vmem:[#allocation160_spill] sm:$0xff] %v8334_v14  ;;  %11435 = vst [vmem:[#allocation161_spill] sm:$0xff] %v8339_v6  ;;  %v8344_v4 = vld [vmem:[%s11269_s17 + $0x2b0] sm:$0xff]  ;;  %v8349_v7 = vld [vmem:[%s11269_s17 + $0x2b8] sm:$0xff] }
  0x51   :  { %11436 = vst [vmem:[#allocation162_spill] sm:$0xff] %v8344_v4  ;;  %11437 = vst [vmem:[#allocation163_spill] sm:$0xff] %v8349_v7  ;;  %v8354_v5 = vld [vmem:[%s11269_s17 + $0x2c0] sm:$0xff]  ;;  %v8359_v14 = vld [vmem:[%s11269_s17 + $0x2c8] sm:$0xff] }
  0x52   :  { %11438 = vst [vmem:[#allocation164_spill] sm:$0xff] %v8354_v5  ;;  %11439 = vst [vmem:[#allocation165_spill] sm:$0xff] %v8359_v14  ;;  %v8364_v6 = vld [vmem:[%s11269_s17 + $0x2d0] sm:$0xff]  ;;  %v8369_v4 = vld [vmem:[%s11269_s17 + $0x2d8] sm:$0xff] }
  0x53   :  { %11440 = vst [vmem:[#allocation166_spill] sm:$0xff] %v8364_v6  ;;  %11441 = vst [vmem:[#allocation167_spill] sm:$0xff] %v8369_v4  ;;  %v8374_v7 = vld [vmem:[%s11269_s17 + $0x2e0] sm:$0xff]  ;;  %v8379_v5 = vld [vmem:[%s11269_s17 + $0x2e8] sm:$0xff] }
  0x54   :  { %11442 = vst [vmem:[#allocation168_spill] sm:$0xff] %v8374_v7  ;;  %11443 = vst [vmem:[#allocation169_spill] sm:$0xff] %v8379_v5  ;;  %v8384_v14 = vld [vmem:[%s11269_s17 + $0x2f0] sm:$0xff]  ;;  %v8389_v6 = vld [vmem:[%s11269_s17 + $0x2f8] sm:$0xff] }
  0x55   :  { %11444 = vst [vmem:[#allocation170_spill] sm:$0xff] %v8384_v14  ;;  %11445 = vst [vmem:[#allocation171_spill] sm:$0xff] %v8389_v6  ;;  %v8394_v4 = vld [vmem:[%s11269_s17 + $0x300] sm:$0xff]  ;;  %v8399_v7 = vld [vmem:[%s11269_s17 + $0x308] sm:$0xff] }
  0x56   :  { %11446 = vst [vmem:[#allocation172_spill] sm:$0xff] %v8394_v4  ;;  %11447 = vst [vmem:[#allocation173_spill] sm:$0xff] %v8399_v7  ;;  %v8404_v5 = vld [vmem:[%s11269_s17 + $0x310] sm:$0xff]  ;;  %v8409_v14 = vld [vmem:[%s11269_s17 + $0x318] sm:$0xff] }
  0x57   :  { %11448 = vst [vmem:[#allocation174_spill] sm:$0xff] %v8404_v5  ;;  %11449 = vst [vmem:[#allocation175_spill] sm:$0xff] %v8409_v14  ;;  %v8414_v6 = vld [vmem:[%s11269_s17 + $0x320] sm:$0xff]  ;;  %v8419_v4 = vld [vmem:[%s11269_s17 + $0x328] sm:$0xff] }
  0x58   :  { %11450 = vst [vmem:[#allocation176_spill] sm:$0xff] %v8414_v6  ;;  %11451 = vst [vmem:[#allocation177_spill] sm:$0xff] %v8419_v4  ;;  %v8424_v7 = vld [vmem:[%s11269_s17 + $0x330] sm:$0xff]  ;;  %v8429_v5 = vld [vmem:[%s11269_s17 + $0x338] sm:$0xff] }
  0x59   :  { %11452 = vst [vmem:[#allocation178_spill] sm:$0xff] %v8424_v7  ;;  %11453 = vst [vmem:[#allocation179_spill] sm:$0xff] %v8429_v5  ;;  %v8434_v14 = vld [vmem:[%s11269_s17 + $0x340] sm:$0xff]  ;;  %v8439_v6 = vld [vmem:[%s11269_s17 + $0x348] sm:$0xff] }
  0x5a   :  { %11454 = vst [vmem:[#allocation180_spill] sm:$0xff] %v8434_v14  ;;  %11455 = vst [vmem:[#allocation181_spill] sm:$0xff] %v8439_v6  ;;  %v8444_v4 = vld [vmem:[%s11269_s17 + $0x350] sm:$0xff]  ;;  %v8449_v7 = vld [vmem:[%s11269_s17 + $0x358] sm:$0xff] }
  0x5b   :  { %11456 = vst [vmem:[#allocation182_spill] sm:$0xff] %v8444_v4  ;;  %11457 = vst [vmem:[#allocation183_spill] sm:$0xff] %v8449_v7  ;;  %v8454_v5 = vld [vmem:[%s11269_s17 + $0x360] sm:$0xff]  ;;  %v8459_v14 = vld [vmem:[%s11269_s17 + $0x368] sm:$0xff] }
  0x5c   :  { %11458 = vst [vmem:[#allocation184_spill] sm:$0xff] %v8454_v5  ;;  %11459 = vst [vmem:[#allocation185_spill] sm:$0xff] %v8459_v14  ;;  %v8464_v6 = vld [vmem:[%s11269_s17 + $0x370] sm:$0xff]  ;;  %v8469_v4 = vld [vmem:[%s11269_s17 + $0x378] sm:$0xff] }
  0x5d   :  { %11460 = vst [vmem:[#allocation186_spill] sm:$0xff] %v8464_v6  ;;  %11461 = vst [vmem:[#allocation187_spill] sm:$0xff] %v8469_v4  ;;  %v8474_v7 = vld [vmem:[%s11269_s17 + $0x380] sm:$0xff]  ;;  %v8479_v5 = vld [vmem:[%s11269_s17 + $0x388] sm:$0xff] }
  0x5e   :  { %11462 = vst [vmem:[#allocation188_spill] sm:$0xff] %v8474_v7  ;;  %11463 = vst [vmem:[#allocation189_spill] sm:$0xff] %v8479_v5  ;;  %v8484_v14 = vld [vmem:[%s11269_s17 + $0x390] sm:$0xff]  ;;  %v8489_v6 = vld [vmem:[%s11269_s17 + $0x398] sm:$0xff] }
  0x5f   :  { %11464 = vst [vmem:[#allocation190_spill] sm:$0xff] %v8484_v14  ;;  %11465 = vst [vmem:[#allocation191_spill] sm:$0xff] %v8489_v6  ;;  %v8494_v4 = vld [vmem:[%s11269_s17 + $0x3a0] sm:$0xff]  ;;  %v8499_v7 = vld [vmem:[%s11269_s17 + $0x3a8] sm:$0xff] }
  0x60   :  { %11466 = vst [vmem:[#allocation192_spill] sm:$0xff] %v8494_v4  ;;  %11467 = vst [vmem:[#allocation193_spill] sm:$0xff] %v8499_v7  ;;  %v8504_v5 = vld [vmem:[%s11269_s17 + $0x3b0] sm:$0xff]  ;;  %v8509_v14 = vld [vmem:[%s11269_s17 + $0x3b8] sm:$0xff] }
  0x61   :  { %11468 = vst [vmem:[#allocation194_spill] sm:$0xff] %v8504_v5  ;;  %11469 = vst [vmem:[#allocation195_spill] sm:$0xff] %v8509_v14  ;;  %v8514_v6 = vld [vmem:[%s11269_s17 + $0x3c0] sm:$0xff]  ;;  %v8519_v4 = vld [vmem:[%s11269_s17 + $0x3c8] sm:$0xff] }
  0x62   :  { %11470 = vst [vmem:[#allocation196_spill] sm:$0xff] %v8514_v6  ;;  %11471 = vst [vmem:[#allocation197_spill] sm:$0xff] %v8519_v4  ;;  %v8524_v7 = vld [vmem:[%s11269_s17 + $0x3d0] sm:$0xff]  ;;  %v8529_v5 = vld [vmem:[%s11269_s17 + $0x3d8] sm:$0xff] }
  0x63   :  { %11472 = vst [vmem:[#allocation198_spill] sm:$0xff] %v8524_v7  ;;  %11473 = vst [vmem:[#allocation199_spill] sm:$0xff] %v8529_v5  ;;  %v8534_v14 = vld [vmem:[%s11269_s17 + $0x3e0] sm:$0xff]  ;;  %v8539_v6 = vld [vmem:[%s11269_s17 + $0x3e8] sm:$0xff] }
  0x64   :  { %11474 = vst [vmem:[#allocation200_spill] sm:$0xff] %v8534_v14  ;;  %11475 = vst [vmem:[#allocation201_spill] sm:$0xff] %v8539_v6  ;;  %v8544_v4 = vld [vmem:[%s11269_s17 + $0x3f0] sm:$0xff]  ;;  %v8549_v7 = vld [vmem:[%s11269_s17 + $0x3f8] sm:$0xff] }
  0x65   :  { %11476 = vst [vmem:[#allocation202_spill] sm:$0xff] %v8544_v4  ;;  %11477 = vst [vmem:[#allocation203_spill] sm:$0xff] %v8549_v7 }
  0x66   :  { %522 = vsyncadd [#allocation4 + $0x1], 16384  ;;  %s11478_s2 = sld [smem:[#allocation208_spill]]  ;;  %v523_v14 = vlaneseq  ;;  %v11274_v12 = vmov 0.0   ;;  %vm7491_vm0 = vmmov 0   ;;  %v662_v4 = vld [vmem:[%s11256_s4] sm:$0xff] }
  0x67   :  { %6668 = vmatprep.subr.mxu0 %v11274_v12  ;;  %6676 = vmatprep.mubr.msk.f32.mxu0 %vm7491_vm0, %v11274_v12  ;;  %s7492_s26 = smov 32   ;;  %v664_v13 = vld [vmem:[%s11256_s4 + $0x10] sm:$0xff]  ;;  %v663_v20 = vld [vmem:[%s11256_s4 + $0x8] sm:$0xff]  ;;  %vm556_vm2 = vcmask 261120   ;;  %v686_v28 = vld [vmem:[%s11262_s10 + $0x98] sm:$0xff]  ;;  %s11483_s17 = sld [smem:[#allocation209_spill]] }
  0x68   :  { %v8563_v7 = vand.u32 127, %v523_v14  ;;  %v8565_v15 = vshrl.u32 %v523_v14, 7  ;;  %719 = vrot.lane.b32.xlu0 %v662_v4, %s7492_s26  ;;  %723 = vrot.lane.b32.xlu1 %v664_v13, %s7492_s26  ;;  %v689_v4 = vld [vmem:[%s11262_s10 + $0xb0] sm:$0xff]  ;;  %v11480_v13 = vmov 0.0   ;;  %vm750_vm11 = vcmask 785408   ;;  %s7493_s21 = smov 96  }
  0x69   :  { %830 = vmatprep.mubr.f32.mxu1 %v11480_v13  ;;  %vm873_vm12 = vcmask 253952   ;;  %s7494_s22 = smov 64   ;;  %vm1631_vm13 = vcmask 269312   ;;  %vm1644_vm14 = vcmask 262144   ;;  %vm1915_vm15 = vcmask 1040384   ;;  %s11490_s28 = sld [smem:[#allocation210_spill]] }
  0x6a   :  { %11479 = vst [vmem:[#allocation204_spill] sm:$0xff] %v8565_v15  ;;  %v8583_v14 = vadd.s32 1, %v8563_v7  ;;  %v528_v30 = vadd.s32 16, %v8565_v15  ;;  %vm1479_vm7 = vcmp.lt.s32.totalorder %v8563_v7, 16  ;;  %vm1688_vm8 = vcmp.ge.s32.totalorder %v8563_v7, 16 }
  0x6b   :  { %vm1689_vm9 = vcmp.lt.s32.totalorder %v8563_v7, 32 }
  0x6c   :  { %v550_v5 = vld [vmem:[%s11478_s2 + $0x18] sm:$0xff]  ;;  %v549_v6 = vld [vmem:[%s11478_s2 + $0x10] sm:$0xff]  ;;  %v548_v22 = vld [vmem:[%s11478_s2 + $0x8] sm:$0xff]  ;;  %vm532_vm1 = vcmp.eq.s32.totalorder %v8565_v15, %v8583_v14  ;;  %721 = vrot.lane.b32.xlu0 %v663_v20, %s7492_s26  ;;  %vm534_vm4 = vcmp.eq.s32.totalorder %v528_v30, %v8583_v14 }
  0x6d   :  { %6669 = vmatpush3.msra.mxu0 %v550_v5  ;;  %v690_v5 = vld [vmem:[%s11262_s10 + $0xb8] sm:$0xff]  ;;  %v547_v23 = vld [vmem:[%s11478_s2] sm:$0xff]  ;;  %v6217_v21 = vsel %vm532_vm1, 1.0, %v11480_v13  ;;  %v681_v30 = vld [vmem:[%s11262_s10 + $0x70] sm:$0xff]  ;;  %vm2526_vm1 = vcmask 523264  }
  0x6e   :  { %6670 = vmatprep.subr.mxu0 %v11274_v12  ;;  %v527_v12 = vadd.s32 8, %v8565_v15  ;;  %774 = vmatprep.subr.mxu1 %v690_v5  ;;  %v688_v5 = vld [vmem:[%s11262_s10 + $0xa8] sm:$0xff]  ;;  %vm8707_vm10 = vmand %vm1688_vm8, %vm1689_vm9 }
  0x6f   :  { %6671 = vmatpush3.msra.mxu0 %v549_v6  ;;  %v665_v6 = vld [vmem:[%s11256_s4 + $0x18] sm:$0xff]  ;;  %775 = vmatpush1.msra.mxu1 %v689_v4  ;;  %v666_v4 = vld [vmem:[%s11256_s4 + $0x20] sm:$0x1] }
  0x70   :  { %6672 = vmatprep.subr.mxu0 %v11480_v13  ;;  %vm533_vm3 = vcmp.eq.s32.totalorder %v527_v12, %v8583_v14  ;;  %725 = vrot.lane.b32.xlu1 %v665_v6, %s7492_s26  ;;  %v685_v12 = vld [vmem:[%s11262_s10 + $0x90] sm:$0xff]  ;;  %v529_v6 = vadd.s32 24, %v8565_v15 }
  0x71   :  { %6673 = vmatpush3.msra.mxu0 %v548_v22  ;;  %v687_v22 = vld [vmem:[%s11262_s10 + $0xa0] sm:$0xff]  ;;  %776 = vmatprep.subr.mxu1 %v688_v5  ;;  %v6218_v20 = vsel %vm533_vm3, 1.0, %v11480_v13  ;;  %v682_v5 = vld [vmem:[%s11262_s10 + $0x78] sm:$0xff] }
  0x72   :  { %6674 = vmatprep.subr.mxu0 %v11480_v13  ;;  %777 = vmatpush1.msra.mxu1 %v687_v22  ;;  %v680_v22 = vld [vmem:[%s11262_s10 + $0x68] sm:$0xff]  ;;  %vm535_vm5 = vcmp.eq.s32.totalorder %v529_v6, %v8583_v14 }
  0x73   :  { %6675 = vmatpush3.msra.mxu0 %v547_v23  ;;  %v684_v23 = vld [vmem:[%s11262_s10 + $0x88] sm:$0xff]  ;;  %727 = vrot.lane.b32.xlu0 %v666_v4, %s7492_s26  ;;  %v530_v4 = vadd.s32 32, %v8565_v15  ;;  %v6220_v6 = vsel %vm535_vm5, 1.0, %v11480_v13 }
  0x74   :  { %6677 = vmatmul.mubr.msk.f32.vlgmr.msra.gmra.mxu0 %vm556_vm2, %v6217_v21  ;;  %778 = vmatprep.subr.mxu1 %v686_v28  ;;  %v683_v21 = vld [vmem:[%s11262_s10 + $0x80] sm:$0xff]  ;;  %v6219_v28 = vsel %vm534_vm4, 1.0, %v11480_v13 }
  0x75   :  { %6679 = vmatprep.mubr.msk.f32.mxu0 %vm7491_vm0, %v11480_v13  ;;  %779 = vmatpush1.msra.mxu1 %v685_v12  ;;  %v679_v12 = vld [vmem:[%s11262_s10 + $0x60] sm:$0xff]  ;;  %vm536_vm6 = vcmp.eq.s32.totalorder %v530_v4, %v8583_v14 }
  0x76   :  { %780 = vmatprep.subr.mxu1 %v684_v23  ;;  %6691 = vmatprep.subr.mxu0 %v11480_v13  ;;  %v677_v23 = vld [vmem:[%s11262_s10 + $0x50] sm:$0xff]  ;;  %v6221_v14 = vsel %vm536_vm6, 1.0, %v11480_v13  ;;  %v671_v4 = vld [vmem:[%s11262_s10 + $0x20] sm:$0xff] }
  0x77   :  { %781 = vmatpush1.msra.mxu1 %v683_v21  ;;  %v676_v21 = vld [vmem:[%s11262_s10 + $0x48] sm:$0xff] }
  0x78   :  { %6680 = vmatmul.mubr.msk.f32.gmra.mxu0 %vm556_vm2, %v6218_v20  ;;  %782 = vmatprep.subr.mxu1 %v682_v5  ;;  %v678_v20 = vld [vmem:[%s11262_s10 + $0x58] sm:$0xff]  ;;  %v675_v5 = vld [vmem:[%s11262_s10 + $0x40] sm:$0xff] }
  0x79   :  { %6682 = vmatprep.mubr.msk.f32.mxu0 %vm7491_vm0, %v11480_v13  ;;  %783 = vmatpush1.msra.mxu1 %v681_v30  ;;  %v674_v30 = vld [vmem:[%s11262_s10 + $0x38] sm:$0xff] }
  0x7a   :  { %784 = vmatprep.subr.mxu1 %v680_v22  ;;  %v672_v22 = vld [vmem:[%s11262_s10 + $0x28] sm:$0xff] }
  0x7b   :  { %785 = vmatpush1.msra.mxu1 %v679_v12  ;;  %v670_v12 = vld [vmem:[%s11262_s10 + $0x18] sm:$0xff] }
  0x7c   :  { %6683 = vmatmul.mubr.msk.f32.gmra.mxu0 %vm556_vm2, %v6219_v28  ;;  %786 = vmatprep.subr.mxu1 %v678_v20  ;;  %v673_v28 = vld [vmem:[%s11262_s10 + $0x30] sm:$0xff] }
  0x7d   :  { %6685 = vmatprep.mubr.msk.f32.mxu0 %vm7491_vm0, %v11480_v13  ;;  %787 = vmatpush1.msra.mxu1 %v677_v23  ;;  %v669_v20 = vld [vmem:[%s11262_s10 + $0x10] sm:$0xff]  ;;  %v668_v23 = vld [vmem:[%s11262_s10 + $0x8] sm:$0xff] }
  0x7e   :  { %788 = vmatprep.subr.mxu1 %v676_v21  ;;  %v1481_v21 = vsel %vm1479_vm7, 0.25, %v11480_v13 }
  0x7f   :  { %789 = vmatpush1.msra.mxu1 %v675_v5 }
  0x80   :  { %6686 = vmatmul.mubr.msk.f32.gmra.mxu0 %vm556_vm2, %v6220_v6  ;;  %790 = vmatprep.subr.mxu1 %v674_v30  ;;  %v667_v6 = vld [vmem:[%s11262_s10] sm:$0xff]  ;;  %v1691_v30 = vsel %vm8707_vm10, 0.25, %v11480_v13 }
  0x81   :  { %6688 = vmatprep.mubr.msk.f32.mxu0 %vm7491_vm0, %v11480_v13  ;;  %791 = vmatpush1.msra.mxu1 %v673_v28  ;;  %v7113_v28 = vpack.i.bf16 %v1691_v30, %v1481_v21 }
  0x82   :  { %792 = vmatprep.subr.mxu1 %v672_v22 }
  0x83   :  { %793 = vmatpush1.msra.mxu1 %v671_v4  ;;  %7114 = vrot.lane.b32.xlu0 %v7113_v28, %s7492_s26 }
  0x84   :  { %6689 = vmatmul.mubr.msk.f32.gmra.mxu0 %vm556_vm2, %v6221_v14  ;;  %794 = vmatprep.subr.mxu1 %v670_v12  ;;  %v551_v14 = vld [vmem:[%s11483_s17] sm:$0xff] }
  0x85   :  { %6701 = vmatprep.mubr.msk.f32.mxu0 %vm7491_vm0, %v11480_v13  ;;  %795 = vmatpush1.msra.mxu1 %v669_v20 }
  0x86   :  { %796 = vmatprep.subr.mxu1 %v668_v23  ;;  %v552_v23 = vld [vmem:[%s11483_s17 + $0x8] sm:$0xff] }
  0x87   :  { %797 = vmatpush1.msra.mxu1 %v667_v6 }
  0x88   :  { %6716 = vmatprep.subr.mxu1 %v11480_v13 }
  0xda   :  { %v720_v4 = vpop.permute.xlu0 %719 }
  0xde   :  { %v722_v30 = vpop.permute.xlu0 %721 }
 0x134   :  { %v638_v22 = vpop.f32.mrf.mxu0 }
 0x135   :  { %v8718_v12 = vadd.f32 %v638_v22, %v551_v14  ;;  %v553_v14 = vld [vmem:[%s11483_s17 + $0x10] sm:$0xff]  ;;  %v724_v22 = vpop.permute.xlu1 %723 }
 0x136   :  { %v6678_v20 = vpop.f32.mrf.mxu0 }
 0x137   :  { %v734_v6 = vsel %vm556_vm2, %v8718_v12, %v720_v4 }
 0x138   :  { %6227 = vmatmul.mubr.msk.f32.vlgmr.msra.gmra.mxu1 %vm750_vm11, %v734_v6  ;;  %v643_v21 = vpop.f32.mrf.mxu0 }
 0x139   :  { %v8726_v28 = vadd.f32 %v643_v21, %v552_v23  ;;  %836 = vmatprep.mubr.f32.mxu1 %v11480_v13  ;;  %v726_v38 = vpop.permute.xlu1 %725 }
 0x13a   :  { %v6681_v31 = vpop.f32.mrf.mxu0 }
 0x13b   :  { %v735_v20 = vsel %vm556_vm2, %v8726_v28, %v722_v30  ;;  %v554_v31 = vld [vmem:[%s11483_s17 + $0x18] sm:$0xff] }
 0x13c   :  { %6228 = vmatmul.mubr.msk.f32.gmra.mxu1 %vm750_vm11, %v735_v20  ;;  %v648_v4 = vpop.f32.mrf.mxu0  ;;  %v555_v20 = vld [vmem:[%s11483_s17 + $0x20] sm:$0x1] }
 0x13d   :  { %v8735_v29 = vadd.f32 %v648_v4, %v553_v14  ;;  %842 = vmatprep.mubr.f32.mxu1 %v11480_v13 }
 0x13e   :  { %v6684_v23 = vpop.f32.mrf.mxu0 }
 0x13f   :  { %v736_v6 = vsel %vm556_vm2, %v8735_v29, %v724_v22  ;;  %v728_v22 = vpop.permute.xlu0 %727 }
 0x140   :  { %v653_v21 = vpop.f32.mrf.mxu0  ;;  %6229 = vmatmul.mubr.msk.f32.gmra.mxu1 %vm750_vm11, %v736_v6 }
 0x141   :  { %v8744_v30 = vadd.f32 %v653_v21, %v554_v31  ;;  %848 = vmatprep.mubr.f32.mxu1 %v11480_v13  ;;  %v8762_v21 = vsub.s32 0, %v8565_v15 }
 0x142   :  { %v6687_v14 = vpop.f32.mrf.mxu0 }
 0x143   :  { %v737_v4 = vsel %vm556_vm2, %v8744_v30, %v726_v38  ;;  %11485 = vst [vmem:[#allocation206_spill] sm:$0xff] %v8762_v21  ;;  %v691_v38 = vld [vmem:[%s11267_s15] sm:$0x3] }
 0x144   :  { %6230 = vmatmul.mubr.msk.f32.gmra.mxu1 %vm750_vm11, %v737_v4  ;;  %v658_v23 = vpop.f32.mrf.mxu0  ;;  %v743_v14 = vrot.slane %v691_v38, %v8762_v21 }
 0x145   :  { %v8753_v36 = vadd.f32 %v658_v23, %v555_v20  ;;  %854 = vmatprep.mubr.f32.mxu1 %v11480_v13 }
 0x146   :  { %v6690_v31 = vpop.f32.mrf.mxu0 }
 0x147   :  { %11484 = vst [vmem:[#allocation205_spill] sm:$0xff] %v8753_v36  ;;  %v738_v6 = vsel %vm556_vm2, %v8753_v36, %v728_v22  ;;  %v8775_v31 = vsub.s32 1, %v8565_v15 }
 0x148   :  { %6231 = vmatmul.mubr.msk.f32.gmra.mxu1 %vm750_vm11, %v738_v6 }
 0x149   :  { %6726 = vmatprep.mubr.msk.f32.mxu1 %vm7491_vm0, %v11480_v13  ;;  %11486 = vst [vmem:[#allocation207_spill] sm:$0xff] %v8775_v31  ;;  %v747_v37 = vrot.slane %v691_v38, %v8775_v31 }
 0x1f8   :  { %v832_v20 = vpop.f32.mrf.mxu1 }
 0x1f9   :  { %v8768_v4 = vadd.f32 %v832_v20, %v743_v14 }
 0x1fa   :  { %v834_v23 = vpop.f32.mrf.mxu1 }
 0x1fb   :  { %933 = vrot.lane.b32.xlu0 %v8768_v4, %s7492_s26  ;;  %1058 = vrot.lane.b32.xlu1 %v8768_v4, %s7493_s21  ;;  %v861_v20 = vsel %vm556_vm2, %v8768_v4, 0.0  ;;  %v8782_v47 = vadd.f32 %v834_v23, %v747_v37 }
 0x1fc   :  { %v838_v22 = vpop.f32.mrf.mxu1 }
 0x1fd   :  { %v1158_v45 = vsel %vm556_vm2, %v8782_v47, 0.0  ;;  %v8786_v54 = vadd.f32 %v838_v22, %v743_v14 }
 0x1fe   :  { %v840_v6 = vpop.f32.mrf.mxu1 }
 0x200   :  { %v844_v39 = vpop.f32.mrf.mxu1 }
 0x202   :  { %v846_v46 = vpop.f32.mrf.mxu1 }
 0x203   :  { %v8778_v44 = vadd.f32 %v846_v46, %v747_v37  ;;  %v8792_v46 = vadd.f32 %v844_v39, %v743_v14  ;;  %v8808_v39 = vadd.f32 %v840_v6, %v747_v37 }
 0x204   :  { %v850_v38 = vpop.f32.mrf.mxu1 }
 0x205   :  { %v8796_v23 = vadd.f32 %v850_v38, %v743_v14  ;;  %v864_v38 = vsel %vm556_vm2, %v8786_v54, 0.0 }
 0x21a   :  { %862 = vadd.xlane.f32.xlu0 %v861_v20  ;;  %v852_v20 = vpop.f32.mrf.mxu1 }
 0x21c   :  { %v856_v22 = vpop.f32.mrf.mxu1 }
 0x21d   :  { %v8804_v15 = vadd.f32 %v856_v22, %v743_v14  ;;  %v8818_v22 = vpop.permute.xlu0 %7114 }
 0x21e   :  { %v858_v52 = vpop.f32.mrf.mxu1 }
 0x21f   :  { %1159 = vadd.xlane.f32.xlu1 %v1158_v45  ;;  %v8800_v45 = vadd.f32 %v852_v20, %v747_v37  ;;  %v1161_v20 = vsel %vm556_vm2, %v8808_v39, 0.0  ;;  %v8814_v55 = vadd.f32 %v858_v52, %v747_v37  ;;  %v867_v37 = vsel %vm556_vm2, %v8792_v46, 0.0 }
 0x220   :  { %v1164_v52 = vsel %vm556_vm2, %v8778_v44, 0.0  ;;  %v874_v2 = vsel %vm873_vm12, %v8804_v15, 0.0 }
 0x221   :  { %v1170_v14 = vsel %vm873_vm12, %v8814_v55, 0.0 }
 0x230   :  { %935 = vrot.lane.b32.xlu1 %v8786_v54, %s7492_s26  ;;  %1060 = vrot.lane.b32.xlu0 %v8786_v54, %s7493_s21 }
 0x234   :  { %937 = vrot.lane.b32.xlu0 %v8792_v46, %s7492_s26 }
 0x238   :  { %1064 = vrot.lane.b32.xlu0 %v8796_v23, %s7493_s21 }
 0x23c   :  { %1359 = vrot.lane.b32.xlu0 %v8800_v45, %s7493_s21 }
 0x240   :  { %941 = vrot.lane.b32.xlu0 %v8804_v15, %s7492_s26 }
 0x254   :  { %865 = vadd.xlane.f32.xlu1 %v864_v38 }
 0x258   :  { %1162 = vadd.xlane.f32.xlu1 %v1161_v20 }
 0x25f   :  { %1171 = vadd.xlane.f32.xlu0 %v1170_v14 }
 0x269   :  { %1062 = vrot.lane.b32.xlu1 %v8792_v46, %s7493_s21 }
 0x26d   :  { %v1059_v6 = vpop.permute.xlu1 %1058  ;;  %v934_v53 = vpop.permute.xlu0 %933 }
 0x26e   :  { %v1073_v38 = vsel %vm556_vm2, %v1059_v6, 0.0  ;;  %v948_v62 = vsel %vm556_vm2, %v934_v53, 0.0  ;;  %v870_v53 = vsel %vm556_vm2, %v8796_v23, 0.0 }
 0x26f   :  { %1074 = vadd.xlane.f32.xlu0 %v1073_v38 }
 0x273   :  { %949 = vadd.xlane.f32.xlu0 %v948_v62  ;;  %v1167_v62 = vsel %vm556_vm2, %v8800_v45, 0.0 }
 0x28d   :  { %868 = vadd.xlane.f32.xlu1 %v867_v37 }
 0x291   :  { %1165 = vadd.xlane.f32.xlu1 %v1164_v52 }
 0x2a2   :  { %939 = vrot.lane.b32.xlu1 %v8796_v23, %s7492_s26 }
 0x2a3   :  { %v863_v20 = vpop.xlane.xlu0 %862 }
 0x2a7   :  { %v1061_v14 = vpop.permute.xlu0 %1060 }
 0x2a8   :  { %v1076_v6 = vsel %vm556_vm2, %v1061_v14, 0.0  ;;  %v8835_v38 = vpop.xlane.xlu1 %1159 }
 0x2a9   :  { %1077 = vadd.xlane.f32.xlu0 %v1076_v6 }
 0x2ab   :  { %v938_v63 = vpop.permute.xlu0 %937 }
 0x2ac   :  { %v936_v37 = vpop.permute.xlu1 %935 }
 0x2af   :  { %v1065_v61 = vpop.permute.xlu0 %1064 }
 0x2b3   :  { %v8850_v0 = vpop.permute.xlu0 %1359 }
 0x2c6   :  { %871 = vadd.xlane.f32.xlu1 %v870_v53  ;;  %v954_v53 = vsel %vm556_vm2, %v938_v63, 0.0  ;;  %v942_v63 = vpop.permute.xlu0 %941 }
 0x2c7   :  { %v960_v3 = vsel %vm873_vm12, %v942_v63, 0.0 }
 0x2ca   :  { %1168 = vadd.xlane.f32.xlu1 %v1167_v62  ;;  %v1082_v62 = vsel %vm556_vm2, %v1065_v61, 0.0 }
 0x2db   :  { %1066 = vrot.lane.b32.xlu1 %v8804_v15, %s7493_s21 }
 0x2dd   :  { %v8839_v52 = vpop.xlane.xlu1 %865 }
 0x2e1   :  { %v1163_v60 = vpop.xlane.xlu1 %1162 }
 0x2e2   :  { %v1174_v61 = vmul.f32 0.03125, %v1163_v60 }
 0x2e5   :  { %v1063_v14 = vpop.permute.xlu1 %1062 }
 0x2e6   :  { %v1079_v6 = vsel %vm556_vm2, %v1063_v14, 0.0 }
 0x2e7   :  { %1080 = vadd.xlane.f32.xlu0 %v1079_v6  ;;  %v878_v6 = vmul.f32 0.03125, %v863_v20 }
 0x2e8   :  { %v1172_v8 = vpop.xlane.xlu0 %1171 }
 0x2e9   :  { %v1177_v11 = vmul.f32 0.03125, %v1172_v8 }
 0x2eb   :  { %955 = vadd.xlane.f32.xlu0 %v954_v53  ;;  %v8853_v53 = vsub.f32 %v8768_v4, %v878_v6  ;;  %v8868_v63 = vsub.f32 %v8814_v55, %v1177_v11 }
 0x2ed   :  { %v888_v10 = vmul.f32 %v8853_v53, %v8853_v53 }
 0x2ef   :  { %1083 = vadd.xlane.f32.xlu0 %v1082_v62  ;;  %v893_v6 = vsel %vm556_vm2, %v888_v10, 0.0  ;;  %v951_v10 = vsel %vm556_vm2, %v936_v37, 0.0 }
 0x2ff   :  { %875 = vadd.xlane.f32.xlu1 %v874_v2  ;;  %v8857_v2 = vsub.f32 %v8808_v39, %v1174_v61 }
 0x301   :  { %v1184_v60 = vmul.f32 %v8857_v2, %v8857_v2 }
 0x303   :  { %v1191_v61 = vsel %vm556_vm2, %v1184_v60, 0.0  ;;  %v1075_v60 = vpop.xlane.xlu0 %1074 }
 0x304   :  { %v1088_v9 = vmul.f32 0.03125, %v1075_v60 }
 0x305   :  { %1355 = vrot.lane.b32.xlu0 %v8808_v39, %s7493_s21 }
 0x307   :  { %v950_v18 = vpop.xlane.xlu0 %949 }
 0x310   :  { %1361 = vrot.lane.b32.xlu1 %v8814_v55, %s7493_s21 }
 0x316   :  { %v869_v14 = vpop.xlane.xlu1 %868 }
 0x31a   :  { %v1166_v62 = vpop.xlane.xlu1 %1165 }
 0x31b   :  { %v1175_v1 = vmul.f32 0.03125, %v1166_v62 }
 0x31d   :  { %v8862_v20 = vsub.f32 %v8778_v44, %v1175_v1  ;;  %v1187_v1 = vmul.f32 %v8868_v63, %v8868_v63 }
 0x31f   :  { %v1185_v62 = vmul.f32 %v8862_v20, %v8862_v20  ;;  %v1200_v8 = vsel %vm873_vm12, %v1187_v1, 0.0 }
 0x324   :  { %961 = vadd.xlane.f32.xlu0 %v960_v3  ;;  %v1194_v3 = vsel %vm556_vm2, %v1185_v62, 0.0  ;;  %v963_v62 = vmul.f32 0.03125, %v950_v18  ;;  %v1173_v18 = vmul.f32 0.03125, %v8835_v38 }
 0x326   :  { %v8883_v16 = vsub.f32 %v8768_v4, %v963_v62  ;;  %v880_v62 = vmul.f32 0.03125, %v869_v14 }
 0x328   :  { %894 = vadd.xlane.f32.xlu0 %v893_v6  ;;  %v940_v6 = vpop.permute.xlu1 %939  ;;  %v973_v37 = vmul.f32 %v8883_v16, %v8883_v16 }
 0x329   :  { %v957_v11 = vsel %vm556_vm2, %v940_v6, 0.0  ;;  %v8896_v6 = vsub.f32 %v8782_v47, %v1173_v18 }
 0x32c   :  { %1192 = vadd.xlane.f32.xlu0 %v1191_v61  ;;  %v8880_v61 = vsub.f32 %v8768_v4, %v1088_v9 }
 0x330   :  { %1195 = vadd.xlane.f32.xlu0 %v1194_v3  ;;  %v1098_v3 = vmul.f32 %v8880_v61, %v8880_v61 }
 0x334   :  { %1201 = vadd.xlane.f32.xlu0 %v1200_v8  ;;  %952 = vadd.xlane.f32.xlu1 %v951_v10 }
 0x338   :  { %958 = vadd.xlane.f32.xlu1 %v957_v11  ;;  %v879_v11 = vmul.f32 0.03125, %v8839_v52 }
 0x33a   :  { %v8900_v60 = vsub.f32 %v8786_v54, %v879_v11 }
 0x33c   :  { %v889_v38 = vmul.f32 %v8900_v60, %v8900_v60 }
 0x33e   :  { %v896_v11 = vsel %vm556_vm2, %v889_v38, 0.0 }
 0x34a   :  { %1108 = vrot.lane.b32.xlu0 %v1098_v3, %s7493_s21  ;;  %v1183_v3 = vmul.f32 %v8896_v6, %v8896_v6 }
 0x34e   :  { %983 = vrot.lane.b32.xlu0 %v973_v37, %s7492_s26  ;;  %v8905_v37 = vsub.f32 %v8792_v46, %v880_v62 }
 0x34f   :  { %v872_v1 = vpop.xlane.xlu1 %871 }
 0x350   :  { %v890_v14 = vmul.f32 %v8905_v37, %v8905_v37 }
 0x353   :  { %v1169_v8 = vpop.xlane.xlu1 %1168 }
 0x354   :  { %v1176_v52 = vmul.f32 0.03125, %v1169_v8 }
 0x356   :  { %v8917_v62 = vsub.f32 %v8800_v45, %v1176_v52 }
 0x357   :  { %v1067_v10 = vpop.permute.xlu1 %1066 }
 0x358   :  { %v1085_v9 = vsel %vm873_vm12, %v1067_v10, 0.0  ;;  %v881_v10 = vmul.f32 0.03125, %v872_v1  ;;  %v1186_v38 = vmul.f32 %v8917_v62, %v8917_v62 }
 0x359   :  { %1086 = vadd.xlane.f32.xlu1 %v1085_v9  ;;  %v1188_v9 = vsel %vm556_vm2, %v1183_v3, 0.0  ;;  %v899_v3 = vsel %vm556_vm2, %v890_v14, 0.0  ;;  %v1078_v14 = vpop.xlane.xlu0 %1077 }
 0x35a   :  { %v8911_v18 = vsub.f32 %v8796_v23, %v881_v10 }
 0x36a   :  { %1357 = vrot.lane.b32.xlu1 %v8778_v44, %s7493_s21 }
 0x388   :  { %v876_v19 = vpop.xlane.xlu1 %875 }
 0x389   :  { %v882_v1 = vmul.f32 0.03125, %v876_v19 }
 0x38b   :  { %v8923_v10 = vsub.f32 %v8804_v15, %v882_v1 }
 0x38c   :  { %v8938_v17 = vpop.permute.xlu1 %1361 }
 0x38d   :  { %v892_v19 = vmul.f32 %v8923_v10, %v8923_v10 }
 0x38e   :  { %1189 = vadd.xlane.f32.xlu1 %v1188_v9  ;;  %v891_v9 = vmul.f32 %v8911_v18, %v8911_v18 }
 0x38f   :  { %v905_v52 = vsel %vm873_vm12, %v892_v19, 0.0 }
 0x390   :  { %v902_v8 = vsel %vm556_vm2, %v891_v9, 0.0 }
 0x392   :  { %897 = vadd.xlane.f32.xlu1 %v896_v11  ;;  %v1197_v11 = vsel %vm556_vm2, %v1186_v38, 0.0 }
 0x396   :  { %900 = vadd.xlane.f32.xlu1 %v899_v3  ;;  %v1089_v3 = vmul.f32 0.03125, %v1078_v14 }
 0x398   :  { %v8933_v1 = vsub.f32 %v8786_v54, %v1089_v3 }
 0x39a   :  { %903 = vadd.xlane.f32.xlu1 %v902_v8  ;;  %v1099_v9 = vmul.f32 %v8933_v1, %v8933_v1  ;;  %v1081_v8 = vpop.xlane.xlu0 %1080 }
 0x39b   :  { %v1090_v24 = vmul.f32 0.03125, %v1081_v8 }
 0x39d   :  { %v8944_v14 = vsub.f32 %v8792_v46, %v1090_v24 }
 0x39e   :  { %1198 = vadd.xlane.f32.xlu1 %v1197_v11  ;;  %v956_v38 = vpop.xlane.xlu0 %955 }
 0x39f   :  { %v965_v3 = vmul.f32 0.03125, %v956_v38 }
 0x3a2   :  { %906 = vadd.xlane.f32.xlu1 %v905_v52  ;;  %v1084_v52 = vpop.xlane.xlu0 %1083 }
 0x3a3   :  { %v1091_v25 = vmul.f32 0.03125, %v1084_v52 }
 0x3a5   :  { %v8958_v24 = vsub.f32 %v8796_v23, %v1091_v25 }
 0x3a6   :  { %v8954_v8 = vpop.permute.xlu0 %1355 }
 0x3a7   :  { %v1101_v32 = vmul.f32 %v8958_v24, %v8958_v24 }
 0x3b3   :  { %1110 = vrot.lane.b32.xlu1 %v1099_v9, %s7493_s21  ;;  %v8950_v9 = vsub.f32 %v8792_v46, %v965_v3 }
 0x3b5   :  { %v975_v34 = vmul.f32 %v8950_v9, %v8950_v9 }
 0x3bd   :  { %v953_v26 = vpop.xlane.xlu1 %952 }
 0x3be   :  { %v964_v11 = vmul.f32 0.03125, %v953_v26  ;;  %v1100_v26 = vmul.f32 %v8944_v14, %v8944_v14 }
 0x3c0   :  { %v8941_v19 = vsub.f32 %v8786_v54, %v964_v11 }
 0x3c1   :  { %v959_v11 = vpop.xlane.xlu1 %958 }
 0x3c2   :  { %v974_v27 = vmul.f32 %v8941_v19, %v8941_v19  ;;  %v966_v38 = vmul.f32 0.03125, %v959_v11 }
 0x3c4   :  { %985 = vrot.lane.b32.xlu0 %v974_v27, %s7492_s26  ;;  %v962_v27 = vpop.xlane.xlu0 %961  ;;  %v8964_v52 = vsub.f32 %v8796_v23, %v966_v38 }
 0x3c5   :  { %v967_v3 = vmul.f32 0.03125, %v962_v27 }
 0x3c6   :  { %v976_v25 = vmul.f32 %v8964_v52, %v8964_v52 }
 0x3c8   :  { %1112 = vrot.lane.b32.xlu0 %v1100_v26, %s7493_s21  ;;  %v8970_v26 = vsub.f32 %v8804_v15, %v967_v3  ;;  %v8984_v3 = vpop.xlane.xlu0 %894 }
 0x3cc   :  { %987 = vrot.lane.b32.xlu0 %v975_v34, %s7492_s26  ;;  %v977_v34 = vmul.f32 %v8970_v26, %v8970_v26  ;;  %v1193_v35 = vpop.xlane.xlu0 %1192 }
 0x3d0   :  { %1114 = vrot.lane.b32.xlu0 %v1101_v32, %s7493_s21  ;;  %v1196_v42 = vpop.xlane.xlu0 %1195 }
 0x3d1   :  { %v1205_v41 = vmul.f32 0.03125, %v1196_v42 }
 0x3d4   :  { %989 = vrot.lane.b32.xlu0 %v976_v25, %s7492_s26  ;;  %v1204_v25 = vmul.f32 0.03125, %v1193_v35 }
 0x3d8   :  { %991 = vrot.lane.b32.xlu0 %v977_v34, %s7492_s26  ;;  %v1209_v34 = vadd.f32 1e-05, %v1204_v25 }
 0x3e2   :  { %v1087_v11 = vpop.xlane.xlu1 %1086 }
 0x3e3   :  { %v1092_v38 = vmul.f32 0.03125, %v1087_v11 }
 0x3e5   :  { %v8979_v27 = vsub.f32 %v8804_v15, %v1092_v38  ;;  %v1210_v38 = vadd.f32 1e-05, %v1205_v41 }
 0x3e6   :  { %v8986_v33 = vpop.permute.xlu1 %1357 }
 0x3e7   :  { %v1102_v32 = vmul.f32 %v8979_v27, %v8979_v27 }
 0x3e9   :  { %1116 = vrot.lane.b32.xlu1 %v1102_v32, %s7493_s21  ;;  %v1202_v32 = vpop.xlane.xlu0 %1201 }
 0x3ea   :  { %v1207_v49 = vmul.f32 0.03125, %v1202_v32 }
 0x3ec   :  { %v1212_v59 = vadd.f32 1e-05, %v1207_v49 }
 0x417   :  { %v1190_v40 = vpop.xlane.xlu1 %1189 }
 0x418   :  { %v1203_v43 = vmul.f32 0.03125, %v1190_v40 }
 0x41a   :  { %v1208_v11 = vadd.f32 1e-05, %v1203_v43 }
 0x41b   :  { %v8988_v50 = vpop.xlane.xlu1 %897 }
 0x41c   :  { %7123 = vrsqrt.f32 %v1208_v11 }
 0x41d   :  { %7125 = vrsqrt.f32 %v1209_v34 }
 0x41e   :  { %7127 = vrsqrt.f32 %v1210_v38 }
 0x41f   :  { %v8990_v48 = vpop.xlane.xlu1 %900 }
 0x423   :  { %v8992_v51 = vpop.xlane.xlu1 %903 }
 0x427   :  { %v1199_v58 = vpop.xlane.xlu1 %1198 }
 0x428   :  { %v1206_v35 = vmul.f32 0.03125, %v1199_v58  ;;  %v1109_v58 = vpop.permute.xlu0 %1108 }
 0x429   :  { %v7124_v56 = vpop.eup %7123 }
 0x42a   :  { %v1211_v40 = vadd.f32 1e-05, %v1206_v35  ;;  %v1218_v42 = vmul.f32 %v7124_v56, %v8896_v6  ;;  %v7126_v43 = vpop.eup %7125 }
 0x42b   :  { %v1219_v41 = vmul.f32 %v7126_v43, %v8857_v2  ;;  %v7128_v25 = vpop.eup %7127  ;;  %v9007_v43 = vpop.xlane.xlu1 %906 }
 0x42c   :  { %7129 = vrsqrt.f32 %v1211_v40  ;;  %1228 = vrot.lane.b32.xlu0 %v1218_v42, %s7492_s26  ;;  %v1220_v34 = vmul.f32 %v7128_v25, %v8862_v20  ;;  %v984_v56 = vpop.permute.xlu0 %983 }
 0x42d   :  { %7131 = vrsqrt.f32 %v1212_v59  ;;  %v998_v20 = vsel %vm556_vm2, %v984_v56, 0.0 }
 0x430   :  { %1230 = vrot.lane.b32.xlu0 %v1219_v41, %s7492_s26  ;;  %v1111_v41 = vpop.permute.xlu1 %1110 }
 0x431   :  { %v1126_v25 = vsel %vm556_vm2, %v1111_v41, 0.0 }
 0x434   :  { %1232 = vrot.lane.b32.xlu0 %v1220_v34, %s7492_s26 }
 0x436   :  { %v986_v59 = vpop.permute.xlu0 %985 }
 0x437   :  { %v1001_v34 = vsel %vm556_vm2, %v986_v59, 0.0 }
 0x439   :  { %v7130_v11 = vpop.eup %7129 }
 0x43a   :  { %v1221_v49 = vmul.f32 %v7130_v11, %v8917_v62  ;;  %v7132_v38 = vpop.eup %7131  ;;  %v1113_v2 = vpop.permute.xlu0 %1112 }
 0x43b   :  { %v1222_v6 = vmul.f32 %v7132_v38, %v8868_v63  ;;  %v1123_v63 = vsel %vm556_vm2, %v1109_v58, 0.0  ;;  %v1129_v11 = vsel %vm556_vm2, %v1113_v2, 0.0 }
 0x43c   :  { %1234 = vrot.lane.b32.xlu1 %v1221_v49, %s7492_s26 }
 0x43e   :  { %v988_v32 = vpop.permute.xlu0 %987 }
 0x43f   :  { %v1004_v40 = vsel %vm556_vm2, %v988_v32, 0.0 }
 0x440   :  { %1236 = vrot.lane.b32.xlu1 %v1222_v6, %s7492_s26 }
 0x442   :  { %v1115_v35 = vpop.permute.xlu0 %1114 }
 0x443   :  { %v1132_v49 = vsel %vm556_vm2, %v1115_v35, 0.0 }
 0x446   :  { %v990_v42 = vpop.permute.xlu0 %989 }
 0x447   :  { %v1007_v62 = vsel %vm556_vm2, %v990_v42, 0.0 }
 0x44a   :  { %v992_v56 = vpop.permute.xlu0 %991 }
 0x44b   :  { %v1010_v6 = vsel %vm873_vm12, %v992_v56, 0.0 }
 0x453   :  { %999 = vadd.xlane.f32.xlu0 %v998_v20 }
 0x457   :  { %1005 = vadd.xlane.f32.xlu0 %v1004_v40 }
 0x45b   :  { %1008 = vadd.xlane.f32.xlu0 %v1007_v62  ;;  %v1117_v38 = vpop.permute.xlu1 %1116 }
 0x45c   :  { %v1135_v58 = vsel %vm873_vm12, %v1117_v38, 0.0 }
 0x464   :  { %1124 = vadd.xlane.f32.xlu1 %v1123_v63 }
 0x468   :  { %1127 = vadd.xlane.f32.xlu1 %v1126_v25 }
 0x46c   :  { %1002 = vadd.xlane.f32.xlu1 %v1001_v34 }
 0x470   :  { %1130 = vadd.xlane.f32.xlu1 %v1129_v11 }
 0x471   :  { %1256 = vrot.lane.b32.xlu0 %v8804_v15, %s7494_s22 }
 0x474   :  { %1133 = vadd.xlane.f32.xlu1 %v1132_v49 }
 0x478   :  { %1136 = vadd.xlane.f32.xlu1 %v1135_v58 }
 0x489   :  { %1353 = vrot.lane.b32.xlu1 %v8782_v47, %s7493_s21 }
 0x49e   :  { %v1229_v59 = vpop.permute.xlu0 %1228 }
 0x4a2   :  { %v1231_v2 = vpop.permute.xlu0 %1230 }
 0x4a6   :  { %v9020_v32 = vpop.permute.xlu0 %1232 }
 0x4ad   :  { %1011 = vadd.xlane.f32.xlu1 %v1010_v6 }
 0x4ae   :  { %v9022_v35 = vpop.permute.xlu1 %1234 }
 0x4b2   :  { %v1237_v62 = vpop.permute.xlu1 %1236 }
 0x4dc   :  { %v1000_v20 = vpop.xlane.xlu0 %999 }
 0x4dd   :  { %v1013_v40 = vmul.f32 0.03125, %v1000_v20 }
 0x4df   :  { %v1018_v42 = vadd.f32 1e-05, %v1013_v40 }
 0x4e0   :  { %v1006_v57 = vpop.xlane.xlu0 %1005 }
 0x4e1   :  { %7133 = vrsqrt.f32 %v1018_v42 }
 0x4ed   :  { %v1125_v63 = vpop.xlane.xlu1 %1124 }
 0x4ee   :  { %v7134_v41 = vpop.eup %7133  ;;  %v1138_v25 = vmul.f32 0.03125, %v1125_v63  ;;  %v1015_v63 = vmul.f32 0.03125, %v1006_v57 }
 0x4ef   :  { %v1028_v34 = vmul.f32 %v7134_v41, %v8883_v16 }
 0x4f0   :  { %v1143_v11 = vadd.f32 1e-05, %v1138_v25  ;;  %v9028_v25 = vunpack.i.l.bf16 %v8818_v22 }
 0x4f1   :  { %1038 = vrot.lane.b32.xlu1 %v1028_v34, %s7492_s26  ;;  %v1128_v49 = vpop.xlane.xlu1 %1127 }
 0x4f2   :  { %7135 = vrsqrt.f32 %v1143_v11  ;;  %v1139_v38 = vmul.f32 0.03125, %v1128_v49  ;;  %v1020_v49 = vadd.f32 1e-05, %v1015_v63 }
 0x4f4   :  { %v1144_v58 = vadd.f32 1e-05, %v1139_v38 }
 0x4f5   :  { %v1003_v56 = vpop.xlane.xlu1 %1002 }
 0x4f6   :  { %v1014_v6 = vmul.f32 0.03125, %v1003_v56  ;;  %7137 = vrsqrt.f32 %v1144_v58 }
 0x4f8   :  { %v1019_v20 = vadd.f32 1e-05, %v1014_v6  ;;  %v9032_v6 = vunpack.i.h.bf16 %v8818_v22 }
 0x4f9   :  { %v1131_v40 = vpop.xlane.xlu1 %1130 }
 0x4fa   :  { %7139 = vrsqrt.f32 %v1019_v20  ;;  %v1140_v42 = vmul.f32 0.03125, %v1131_v40 }
 0x4fc   :  { %v1145_v36 = vadd.f32 1e-05, %v1140_v42 }
 0x4fd   :  { %v1134_v31 = vpop.xlane.xlu1 %1133 }
 0x4fe   :  { %7141 = vrsqrt.f32 %v1145_v36  ;;  %v1141_v57 = vmul.f32 0.03125, %v1134_v31 }
 0x4ff   :  { %v7136_v21 = vpop.eup %7135 }
 0x500   :  { %v1153_v16 = vmul.f32 %v7136_v21, %v8880_v61  ;;  %v1146_v40 = vadd.f32 1e-05, %v1141_v57 }
 0x501   :  { %v1137_v41 = vpop.xlane.xlu1 %1136 }
 0x502   :  { %v1142_v34 = vmul.f32 0.03125, %v1137_v41  ;;  %v1243_v11 = vmul.f32 %v1229_v59, %v1153_v16  ;;  %v1009_v59 = vpop.xlane.xlu0 %1008 }
 0x503   :  { %v7138_v56 = vpop.eup %7137  ;;  %v1016_v36 = vmul.f32 0.03125, %v1009_v59 }
 0x504   :  { %v1147_v38 = vadd.f32 1e-05, %v1142_v34  ;;  %v1486_v58 = vmul.f32 %v9028_v25, %v1243_v11  ;;  %v1696_v21 = vmul.f32 %v9032_v6, %v1243_v11  ;;  %v1154_v61 = vmul.f32 %v7138_v56, %v8933_v1 }
 0x505   :  { %v1021_v22 = vadd.f32 1e-05, %v1016_v36 }
 0x506   :  { %7143 = vrsqrt.f32 %v1147_v38  ;;  %1506 = vrot.lane.b32.xlu0 %v1486_v58, %s7493_s21  ;;  %v1244_v63 = vmul.f32 %v1231_v2, %v1154_v61 }
 0x507   :  { %7145 = vrsqrt.f32 %v1020_v49  ;;  %v7140_v20 = vpop.eup %7139 }
 0x508   :  { %v1029_v42 = vmul.f32 %v7140_v20, %v8941_v19  ;;  %7147 = vrsqrt.f32 %v1146_v40  ;;  %v1487_v16 = vmul.f32 %v9028_v25, %v1244_v63  ;;  %v1697_v1 = vmul.f32 %v9032_v6, %v1244_v63  ;;  %v9063_v20 = vpop.permute.xlu1 %1353 }
 0x509   :  { %7149 = vrsqrt.f32 %v1021_v22  ;;  %v1371_v63 = vsel %vm556_vm2, %v8954_v8, 0.0  ;;  %v908_v8 = vmul.f32 0.03125, %v8984_v3 }
 0x50a   :  { %1716 = vrot.lane.b32.xlu0 %v1696_v21, %s7493_s21 }
 0x50b   :  { %v7142_v31 = vpop.eup %7141 }
 0x50c   :  { %v1155_v11 = vmul.f32 %v7142_v31, %v8944_v14 }
 0x50e   :  { %1040 = vrot.lane.b32.xlu0 %v1029_v42, %s7492_s26  ;;  %v1245_v58 = vmul.f32 %v9020_v32, %v1155_v11  ;;  %v1377_v42 = vsel %vm556_vm2, %v8850_v0, 0.0 }
 0x510   :  { %v1488_v56 = vmul.f32 %v9028_v25, %v1245_v58  ;;  %v1698_v14 = vmul.f32 %v9032_v6, %v1245_v58  ;;  %v909_v58 = vmul.f32 0.03125, %v8988_v50  ;;  %v1374_v50 = vsel %vm556_vm2, %v8986_v33, 0.0 }
 0x512   :  { %1508 = vrot.lane.b32.xlu0 %v1487_v16, %s7493_s21 }
 0x513   :  { %v7144_v41 = vpop.eup %7143 }
 0x514   :  { %v1157_v34 = vmul.f32 %v7144_v41, %v8979_v27  ;;  %v7146_v49 = vpop.eup %7145 }
 0x515   :  { %v1030_v2 = vmul.f32 %v7146_v49, %v8950_v9  ;;  %v7148_v57 = vpop.eup %7147 }
 0x516   :  { %1718 = vrot.lane.b32.xlu0 %v1697_v1, %s7493_s21  ;;  %v1247_v19 = vmul.f32 %v1237_v62, %v1157_v34  ;;  %v1156_v27 = vmul.f32 %v7148_v57, %v8958_v24  ;;  %v7150_v62 = vpop.eup %7149  ;;  %v910_v57 = vmul.f32 0.03125, %v8990_v48  ;;  %v912_v48 = vmul.f32 0.03125, %v9007_v43 }
 0x517   :  { %v1031_v9 = vmul.f32 %v7150_v62, %v8964_v52  ;;  %v1380_v52 = vsel %vm873_vm12, %v8938_v17, 0.0  ;;  %v1257_v17 = vpop.permute.xlu0 %1256  ;;  %v911_v62 = vmul.f32 0.03125, %v8992_v51 }
 0x518   :  { %v1490_v38 = vmul.f32 %v9028_v25, %v1247_v19  ;;  %v1246_v32 = vmul.f32 %v9022_v35, %v1156_v27  ;;  %v1275_v22 = vsel %vm873_vm12, %v1257_v17, 0.0  ;;  %v1700_v41 = vmul.f32 %v9032_v6, %v1247_v19 }
 0x519   :  { %v914_v19 = vadd.f32 1e-05, %v909_v58  ;;  %v915_v27 = vadd.f32 1e-05, %v910_v57  ;;  %v916_v3 = vadd.f32 1e-05, %v911_v62 }
 0x51a   :  { %1042 = vrot.lane.b32.xlu0 %v1030_v2, %s7492_s26  ;;  %1514 = vrot.lane.b32.xlu1 %v1490_v38, %s7493_s21  ;;  %v1489_v21 = vmul.f32 %v9028_v25, %v1246_v32  ;;  %v1699_v61 = vmul.f32 %v9032_v6, %v1246_v32  ;;  %v913_v38 = vadd.f32 1e-05, %v908_v8  ;;  %v917_v51 = vadd.f32 1e-05, %v912_v48 }
 0x51e   :  { %1510 = vrot.lane.b32.xlu0 %v1488_v56, %s7493_s21 }
 0x522   :  { %1720 = vrot.lane.b32.xlu0 %v1698_v14, %s7493_s21 }
 0x526   :  { %1044 = vrot.lane.b32.xlu0 %v1031_v9, %s7492_s26 }
 0x52a   :  { %1512 = vrot.lane.b32.xlu0 %v1489_v21, %s7493_s21 }
 0x52e   :  { %1722 = vrot.lane.b32.xlu0 %v1699_v61, %s7493_s21 }
 0x536   :  { %v1012_v24 = vpop.xlane.xlu1 %1011 }
 0x537   :  { %v1017_v59 = vmul.f32 0.03125, %v1012_v24 }
 0x539   :  { %v1022_v36 = vadd.f32 1e-05, %v1017_v59 }
 0x53b   :  { %7151 = vrsqrt.f32 %v1022_v36 }
 0x53c   :  { %7153 = vrsqrt.f32 %v913_v38 }
 0x53d   :  { %7155 = vrsqrt.f32 %v914_v19 }
 0x53e   :  { %1381 = vadd.xlane.f32.xlu1 %v1380_v52  ;;  %7157 = vrsqrt.f32 %v915_v27 }
 0x53f   :  { %7159 = vrsqrt.f32 %v916_v3 }
 0x540   :  { %7161 = vrsqrt.f32 %v917_v51 }
 0x548   :  { %v7152_v35 = vpop.eup %7151 }
 0x549   :  { %v1032_v40 = vmul.f32 %v7152_v35, %v8970_v26  ;;  %v7154_v32 = vpop.eup %7153 }
 0x54a   :  { %v923_v21 = vmul.f32 %v7154_v32, %v8853_v53  ;;  %v7156_v61 = vpop.eup %7155 }
 0x54b   :  { %1046 = vrot.lane.b32.xlu0 %v1032_v40, %s7492_s26  ;;  %v924_v33 = vmul.f32 %v7156_v61, %v8900_v60  ;;  %v7158_v43 = vpop.eup %7157 }
 0x54c   :  { %v925_v36 = vmul.f32 %v7158_v43, %v8905_v37  ;;  %v7160_v53 = vpop.eup %7159 }
 0x54d   :  { %v926_v35 = vmul.f32 %v7160_v53, %v8911_v18  ;;  %v7162_v40 = vpop.eup %7161 }
 0x54e   :  { %v927_v37 = vmul.f32 %v7162_v40, %v8923_v10  ;;  %v1368_v10 = vsel %vm556_vm2, %v9063_v20, 0.0 }
 0x54f   :  { %1252 = vrot.lane.b32.xlu1 %v8792_v46, %s7494_s22  ;;  %1254 = vrot.lane.b32.xlu0 %v8796_v23, %s7494_s22 }
 0x563   :  { %v1039_v34 = vpop.permute.xlu1 %1038 }
 0x564   :  { %v1053_v24 = vmul.f32 %v1039_v34, %v923_v21 }
 0x56e   :  { %1378 = vadd.xlane.f32.xlu0 %v1377_v42 }
 0x573   :  { %1372 = vadd.xlane.f32.xlu1 %v1371_v63 }
 0x577   :  { %1276 = vadd.xlane.f32.xlu1 %v1275_v22 }
 0x578   :  { %v1507_v26 = vpop.permute.xlu0 %1506 }
 0x57c   :  { %v9078_v16 = vpop.permute.xlu0 %1716 }
 0x580   :  { %v1041_v31 = vpop.permute.xlu0 %1040 }
 0x581   :  { %v1054_v59 = vmul.f32 %v1041_v31, %v924_v33 }
 0x584   :  { %v1509_v1 = vpop.permute.xlu0 %1508  ;;  %1724 = vrot.lane.b32.xlu0 %v1700_v41, %s7493_s21 }
 0x588   :  { %v9082_v0 = vpop.permute.xlu0 %1718 }
 0x58c   :  { %v1043_v11 = vpop.permute.xlu0 %1042  ;;  %v1515_v49 = vpop.permute.xlu1 %1514 }
 0x58d   :  { %6692 = vmatpush3.xpose.msk.msra.mxu0 %vm556_vm2, %v1515_v49  ;;  %v1055_v52 = vmul.f32 %v1043_v11, %v925_v36 }
 0x58e   :  { %6693 = vmatprep.subr.mxu0 %v11480_v13 }
 0x590   :  { %v1511_v2 = vpop.permute.xlu0 %1510 }
 0x594   :  { %v9088_v56 = vpop.permute.xlu0 %1720 }
 0x598   :  { %v1045_v14 = vpop.permute.xlu0 %1044 }
 0x599   :  { %v1056_v60 = vmul.f32 %v1045_v14, %v926_v35 }
 0x59c   :  { %v1513_v9 = vpop.permute.xlu0 %1512 }
 0x59d   :  { %6694 = vmatpush3.xpose.msk.msra.mxu0 %vm556_vm2, %v1513_v9 }
 0x59e   :  { %6695 = vmatprep.subr.mxu0 %v11480_v13 }
 0x5a0   :  { %v1723_v42 = vpop.permute.xlu0 %1722 }
 0x5a1   :  { %6696 = vmatpush3.xpose.msk.msra.mxu0 %vm556_vm2, %v1511_v2 }
 0x5a2   :  { %6697 = vmatprep.subr.mxu0 %v11480_v13 }
 0x5a3   :  { %1375 = vadd.xlane.f32.xlu0 %v1374_v50 }
 0x5a5   :  { %6698 = vmatpush3.xpose.msk.msra.mxu0 %vm556_vm2, %v1509_v1 }
 0x5a6   :  { %6699 = vmatprep.subr.mxu0 %v11480_v13 }
 0x5a9   :  { %6700 = vmatpush3.xpose.msk.msra.mxu0 %vm556_vm2, %v1507_v26 }
 0x5aa   :  { %6741 = vmatprep.subr.mxu0 %v11480_v13 }
 0x5ac   :  { %6702 = vmatmul.mubr.msk.f32.vlgmr.msra.gmra.mxu0 %vm556_vm2, %v1053_v24 }
 0x5ad   :  { %6704 = vmatprep.mubr.msk.f32.mxu0 %vm7491_vm0, %v11480_v13 }
 0x5b0   :  { %6705 = vmatmul.mubr.msk.f32.gmra.mxu0 %vm556_vm2, %v1054_v59 }
 0x5b1   :  { %6707 = vmatprep.mubr.msk.f32.mxu0 %vm7491_vm0, %v11480_v13 }
 0x5b4   :  { %6708 = vmatmul.mubr.msk.f32.gmra.mxu0 %vm556_vm2, %v1055_v52 }
 0x5b5   :  { %6710 = vmatprep.mubr.msk.f32.mxu0 %vm7491_vm0, %v11480_v13 }
 0x5b8   :  { %6711 = vmatmul.mubr.msk.f32.gmra.mxu0 %vm556_vm2, %v1056_v60 }
 0x5b9   :  { %1250 = vrot.lane.b32.xlu0 %v8786_v54, %s7494_s22  ;;  %6713 = vmatprep.mubr.msk.f32.mxu0 %vm7491_vm0, %v11480_v13 }
 0x5bd   :  { %1248 = vrot.lane.b32.xlu0 %v8768_v4, %s7494_s22  ;;  %v1047_v18 = vpop.permute.xlu0 %1046 }
 0x5be   :  { %v1057_v63 = vmul.f32 %v1047_v18, %v927_v37 }
 0x5c0   :  { %6714 = vmatmul.mubr.msk.f32.gmra.mxu0 %vm556_vm2, %v1057_v63 }
 0x5c1   :  { %v1255_v17 = vpop.permute.xlu0 %1254  ;;  %6751 = vmatprep.mubr.msk.f32.mxu0 %vm7491_vm0, %v11480_v13 }
 0x5c2   :  { %v1272_v22 = vsel %vm556_vm2, %v1255_v17, 0.0 }
 0x5c3   :  { %1273 = vadd.xlane.f32.xlu1 %v1272_v22 }
 0x5c7   :  { %v1382_v26 = vpop.xlane.xlu1 %1381 }
 0x5c8   :  { %v1387_v38 = vmul.f32 0.03125, %v1382_v26 }
 0x5ca   :  { %v9165_v19 = vsub.f32 %v8814_v55, %v1387_v38 }
 0x5cb   :  { %v1253_v31 = vpop.permute.xlu1 %1252 }
 0x5cc   :  { %v1269_v41 = vsel %vm556_vm2, %v1253_v31, 0.0  ;;  %v1397_v9 = vmul.f32 %v9165_v19, %v9165_v19 }
 0x5cd   :  { %1270 = vadd.xlane.f32.xlu1 %v1269_v41 }
 0x5dc   :  { %1369 = vadd.xlane.f32.xlu0 %v1368_v10 }
 0x5f7   :  { %v1379_v1 = vpop.xlane.xlu0 %1378 }
 0x5f8   :  { %v1386_v8 = vmul.f32 0.03125, %v1379_v1 }
 0x5fa   :  { %v9162_v58 = vsub.f32 %v8800_v45, %v1386_v8 }
 0x5fb   :  { %v1725_v34 = vpop.permute.xlu0 %1724 }
 0x5fc   :  { %6717 = vmatpush3.xpose.msk.msra.mxu1 %vm556_vm2, %v1725_v34  ;;  %v1373_v2 = vpop.xlane.xlu1 %1372  ;;  %v1396_v62 = vmul.f32 %v9162_v58, %v9162_v58 }
 0x5fd   :  { %6718 = vmatprep.subr.mxu1 %v11480_v13  ;;  %v1384_v57 = vmul.f32 0.03125, %v1373_v2 }
 0x5ff   :  { %v9175_v3 = vsub.f32 %v8808_v39, %v1384_v57 }
 0x600   :  { %6719 = vmatpush3.xpose.msk.msra.mxu1 %vm556_vm2, %v1723_v42  ;;  %v1277_v14 = vpop.xlane.xlu1 %1276 }
 0x601   :  { %6720 = vmatprep.subr.mxu1 %v11480_v13  ;;  %v1282_v45 = vmul.f32 0.03125, %v1277_v14 }
 0x603   :  { %v9184_v50 = vsub.f32 %v8804_v15, %v1282_v45 }
 0x604   :  { %6721 = vmatpush3.xpose.msk.msra.mxu1 %vm556_vm2, %v9088_v56 }
 0x605   :  { %6722 = vmatprep.subr.mxu1 %v11480_v13  ;;  %v1292_v32 = vmul.f32 %v9184_v50, %v9184_v50 }
 0x608   :  { %6723 = vmatpush3.xpose.msk.msra.mxu1 %vm556_vm2, %v9082_v0 }
 0x609   :  { %6724 = vmatprep.subr.mxu1 %v11480_v13 }
 0x60c   :  { %6725 = vmatpush3.xpose.msk.msra.mxu1 %vm556_vm2, %v9078_v16 }
 0x60d   :  { %6766 = vmatprep.subr.mxu1 %v11480_v13 }
 0x60f   :  { %6727 = vmatmul.mubr.msk.f32.vlgmr.msra.gmra.mxu1 %vm556_vm2, %v1053_v24 }
 0x610   :  { %6729 = vmatprep.mubr.msk.f32.mxu1 %vm7491_vm0, %v11480_v13 }
 0x613   :  { %6730 = vmatmul.mubr.msk.f32.gmra.mxu1 %vm556_vm2, %v1054_v59 }
 0x614   :  { %6732 = vmatprep.mubr.msk.f32.mxu1 %vm7491_vm0, %v11480_v13 }
 0x617   :  { %6733 = vmatmul.mubr.msk.f32.gmra.mxu1 %vm556_vm2, %v1055_v52 }
 0x618   :  { %6735 = vmatprep.mubr.msk.f32.mxu1 %vm7491_vm0, %v11480_v13 }
 0x61b   :  { %6736 = vmatmul.mubr.msk.f32.gmra.mxu1 %vm556_vm2, %v1056_v60 }
 0x61c   :  { %6738 = vmatprep.mubr.msk.f32.mxu1 %vm7491_vm0, %v11480_v13 }
 0x61f   :  { %6739 = vmatmul.mubr.msk.f32.gmra.mxu1 %vm556_vm2, %v1057_v63 }
 0x620   :  { %6776 = vmatprep.mubr.msk.f32.mxu1 %vm7491_vm0, %v11480_v13 }
 0x62c   :  { %v1376_v20 = vpop.xlane.xlu0 %1375 }
 0x62d   :  { %v1385_v56 = vmul.f32 0.03125, %v1376_v20 }
 0x62f   :  { %v9168_v27 = vsub.f32 %v8778_v44, %v1385_v56  ;;  %v1394_v44 = vmul.f32 %v9175_v3, %v9175_v3 }
 0x630   :  { %v1251_v16 = vpop.permute.xlu0 %1250 }
 0x631   :  { %v1266_v0 = vsel %vm556_vm2, %v1251_v16, 0.0  ;;  %v1395_v55 = vmul.f32 %v9168_v27, %v9168_v27 }
 0x632   :  { %1267 = vadd.xlane.f32.xlu0 %v1266_v0 }
 0x634   :  { %v1249_v11 = vpop.permute.xlu0 %1248 }
 0x635   :  { %v1263_v49 = vsel %vm556_vm2, %v1249_v11, 0.0 }
 0x636   :  { %1264 = vadd.xlane.f32.xlu1 %v1263_v49 }
 0x647   :  { %1409 = vrot.lane.b32.xlu1 %v1396_v62, %s7493_s21 }
 0x648   :  { %1411 = vrot.lane.b32.xlu0 %v1397_v9, %s7493_s21 }
 0x64b   :  { %1407 = vrot.lane.b32.xlu1 %v1395_v55, %s7493_s21  ;;  %v1491_v55 = vsel %vm1479_vm7, 1.0, %v11480_v13 }
 0x64c   :  { %1405 = vrot.lane.b32.xlu0 %v1394_v44, %s7493_s21  ;;  %v1274_v39 = vpop.xlane.xlu1 %1273 }
 0x64d   :  { %v1281_v48 = vmul.f32 0.03125, %v1274_v39 }
 0x64f   :  { %v9191_v51 = vsub.f32 %v8796_v23, %v1281_v48 }
 0x650   :  { %1306 = vrot.lane.b32.xlu0 %v1292_v32, %s7494_s22 }
 0x651   :  { %v1291_v21 = vmul.f32 %v9191_v51, %v9191_v51 }
 0x654   :  { %1304 = vrot.lane.b32.xlu0 %v1291_v21, %s7494_s22 }
 0x656   :  { %v1271_v42 = vpop.xlane.xlu1 %1270 }
 0x657   :  { %v1280_v41 = vmul.f32 0.03125, %v1271_v42 }
 0x659   :  { %v9217_v1 = vsub.f32 %v8792_v46, %v1280_v41 }
 0x65b   :  { %v1290_v20 = vmul.f32 %v9217_v1, %v9217_v1 }
 0x665   :  { %v1370_v15 = vpop.xlane.xlu0 %1369 }
 0x666   :  { %v1383_v61 = vmul.f32 0.03125, %v1370_v15 }
 0x668   :  { %v9198_v24 = vsub.f32 %v8782_v47, %v1383_v61 }
 0x66a   :  { %v1393_v33 = vmul.f32 %v9198_v24, %v9198_v24 }
 0x66c   :  { %1403 = vrot.lane.b32.xlu1 %v1393_v33, %s7493_s21  ;;  %v9203_v43 = vpop.f32.mrf.mxu0 }
 0x66e   :  { %v6703_v23 = vpop.f32.mrf.mxu0 }
 0x670   :  { %v9205_v59 = vpop.f32.mrf.mxu0 }
 0x672   :  { %v6706_v36 = vpop.f32.mrf.mxu0 }
 0x674   :  { %v9207_v53 = vpop.f32.mrf.mxu0 }
 0x676   :  { %v6709_v52 = vpop.f32.mrf.mxu0 }
 0x678   :  { %v9209_v35 = vpop.f32.mrf.mxu0 }
 0x67a   :  { %v6712_v60 = vpop.f32.mrf.mxu0 }
 0x680   :  { %v9211_v40 = vpop.f32.mrf.mxu0 }
 0x682   :  { %v6715_v47 = vpop.f32.mrf.mxu0 }
 0x6bb   :  { %v1268_v37 = vpop.xlane.xlu0 %1267 }
 0x6bc   :  { %v1279_v11 = vmul.f32 0.03125, %v1268_v37 }
 0x6be   :  { %v9229_v2 = vsub.f32 %v8786_v54, %v1279_v11 }
 0x6bf   :  { %v1412_v18 = vpop.permute.xlu0 %1411  ;;  %v1265_v63 = vpop.xlane.xlu1 %1264 }
 0x6c0   :  { %v1430_v17 = vsel %vm873_vm12, %v1412_v18, 0.0  ;;  %v1278_v38 = vmul.f32 0.03125, %v1265_v63  ;;  %v1289_v57 = vmul.f32 %v9229_v2, %v9229_v2 }
 0x6c1   :  { %1431 = vadd.xlane.f32.xlu1 %v1430_v17 }
 0x6c2   :  { %v9236_v14 = vsub.f32 %v8768_v4, %v1278_v38  ;;  %v1701_v4 = vsel %vm8707_vm10, 1.0, %v11480_v13 }
 0x6c3   :  { %v1410_v22 = vpop.permute.xlu1 %1409  ;;  %v1406_v44 = vpop.permute.xlu0 %1405  ;;  %v7118_v39 = vpack.i.bf16 %v1701_v4, %v1491_v55 }
 0x6c4   :  { %v1427_v26 = vsel %vm556_vm2, %v1410_v22, 0.0  ;;  %v1288_v45 = vmul.f32 %v9236_v14, %v9236_v14  ;;  %v1421_v48 = vsel %vm556_vm2, %v1406_v44, 0.0 }
 0x6c5   :  { %1428 = vadd.xlane.f32.xlu0 %v1427_v26 }
 0x6c7   :  { %v1408_v31 = vpop.permute.xlu1 %1407  ;;  %v1307_v32 = vpop.permute.xlu0 %1306 }
 0x6c8   :  { %v1424_v10 = vsel %vm556_vm2, %v1408_v31, 0.0  ;;  %v1325_v21 = vsel %vm873_vm12, %v1307_v32, 0.0 }
 0x6c9   :  { %1425 = vadd.xlane.f32.xlu0 %v1424_v10 }
 0x6cb   :  { %v1305_v33 = vpop.permute.xlu0 %1304 }
 0x6cc   :  { %v1322_v7 = vsel %vm556_vm2, %v1305_v33, 0.0 }
 0x6cf   :  { %v9219_v34 = vpop.f32.mrf.mxu1 }
 0x6d1   :  { %v6728_v16 = vpop.f32.mrf.mxu1 }
 0x6d2   :  { %1302 = vrot.lane.b32.xlu1 %v1290_v20, %s7494_s22 }
 0x6d3   :  { %v9224_v0 = vpop.f32.mrf.mxu1 }
 0x6d5   :  { %v6731_v49 = vpop.f32.mrf.mxu1 }
 0x6d7   :  { %v9226_v8 = vpop.f32.mrf.mxu1 }
 0x6d9   :  { %v6734_v46 = vpop.f32.mrf.mxu1 }
 0x6db   :  { %v9231_v56 = vpop.f32.mrf.mxu1 }
 0x6dd   :  { %v6737_v62 = vpop.f32.mrf.mxu1 }
 0x6de   :  { %v1404_v15 = vpop.permute.xlu1 %1403 }
 0x6df   :  { %v9238_v9 = vpop.f32.mrf.mxu1  ;;  %1300 = vrot.lane.b32.xlu0 %v1289_v57, %s7494_s22  ;;  %v1418_v61 = vsel %vm556_vm2, %v1404_v15, 0.0 }
 0x6e1   :  { %v6740_v54 = vpop.f32.mrf.mxu1 }
 0x6e3   :  { %1298 = vrot.lane.b32.xlu0 %v1288_v45, %s7494_s22 }
 0x6f6   :  { %1422 = vadd.xlane.f32.xlu1 %v1421_v48 }
 0x6fa   :  { %1326 = vadd.xlane.f32.xlu1 %v1325_v21 }
 0x702   :  { %1419 = vadd.xlane.f32.xlu0 %v1418_v61 }
 0x706   :  { %1323 = vadd.xlane.f32.xlu0 %v1322_v7 }
 0x74a   :  { %v1432_v23 = vpop.xlane.xlu1 %1431 }
 0x74b   :  { %v1437_v42 = vmul.f32 0.03125, %v1432_v23 }
 0x74d   :  { %v1442_v17 = vadd.f32 1e-05, %v1437_v42 }
 0x74e   :  { %v1429_v5 = vpop.xlane.xlu0 %1428  ;;  %v1303_v36 = vpop.permute.xlu1 %1302 }
 0x74f   :  { %v1319_v52 = vsel %vm556_vm2, %v1303_v36, 0.0  ;;  %v1436_v47 = vmul.f32 0.03125, %v1429_v5 }
 0x750   :  { %1320 = vadd.xlane.f32.xlu1 %v1319_v52 }
 0x751   :  { %v1441_v18 = vadd.f32 1e-05, %v1436_v47 }
 0x752   :  { %v1426_v60 = vpop.xlane.xlu0 %1425 }
 0x753   :  { %v1435_v22 = vmul.f32 0.03125, %v1426_v60  ;;  %7163 = vrsqrt.f32 %v1441_v18 }
 0x754   :  { %7165 = vrsqrt.f32 %v1442_v17 }
 0x755   :  { %v1440_v41 = vadd.f32 1e-05, %v1435_v22 }
 0x756   :  { %v1301_v37 = vpop.permute.xlu0 %1300 }
 0x757   :  { %v1316_v63 = vsel %vm556_vm2, %v1301_v37, 0.0  ;;  %7167 = vrsqrt.f32 %v1440_v41 }
 0x758   :  { %1317 = vadd.xlane.f32.xlu0 %v1316_v63 }
 0x75a   :  { %v1299_v26 = vpop.permute.xlu0 %1298 }
 0x75b   :  { %v1313_v31 = vsel %vm556_vm2, %v1299_v26, 0.0 }
 0x75c   :  { %1314 = vadd.xlane.f32.xlu1 %v1313_v31 }
 0x760   :  { %v7164_v10 = vpop.eup %7163 }
 0x761   :  { %v7166_v20 = vpop.eup %7165  ;;  %v1451_v16 = vmul.f32 %v7164_v10, %v9162_v58 }
 0x762   :  { %v1452_v11 = vmul.f32 %v7166_v20, %v9165_v19 }
 0x764   :  { %v7168_v49 = vpop.eup %7167 }
 0x765   :  { %v1450_v38 = vmul.f32 %v7168_v49, %v9168_v27 }
 0x76d   :  { %1464 = vrot.lane.b32.xlu1 %v1451_v16, %s7492_s26 }
 0x76e   :  { %1466 = vrot.lane.b32.xlu0 %v1452_v11, %s7492_s26 }
 0x771   :  { %7119 = vrot.lane.b32.xlu1 %v7118_v39, %s7494_s22 }
 0x772   :  { %1462 = vrot.lane.b32.xlu0 %v1450_v38, %s7492_s26  ;;  %v1832_v38 = vsel %vm1631_vm13, %v9226_v8, -inf }
 0x77f   :  { %v1423_v46 = vpop.xlane.xlu1 %1422 }
 0x780   :  { %v1434_v57 = vmul.f32 0.03125, %v1423_v46  ;;  %v1632_v46 = vsel %vm1631_vm13, %v9203_v43, -inf }
 0x782   :  { %v1439_v62 = vadd.f32 1e-05, %v1434_v57 }
 0x783   :  { %v1327_v44 = vpop.xlane.xlu1 %1326 }
 0x784   :  { %7169 = vrsqrt.f32 %v1439_v62  ;;  %v1332_v15 = vmul.f32 0.03125, %v1327_v44  ;;  %v1835_v62 = vsel %vm1631_vm13, %v9231_v56, -inf }
 0x786   :  { %v1337_v7 = vadd.f32 1e-05, %v1332_v15 }
 0x78b   :  { %v1420_v45 = vpop.xlane.xlu0 %1419 }
 0x78c   :  { %v1433_v54 = vmul.f32 0.03125, %v1420_v45  ;;  %v1826_v45 = vsel %vm1631_vm13, %v9219_v34, -inf }
 0x78e   :  { %v1438_v58 = vadd.f32 1e-05, %v1433_v54  ;;  %v1838_v54 = vsel %vm1644_vm14, %v9238_v9, -inf }
 0x78f   :  { %v1324_v39 = vpop.xlane.xlu0 %1323 }
 0x790   :  { %7171 = vrsqrt.f32 %v1438_v58  ;;  %v1331_v48 = vmul.f32 0.03125, %v1324_v39  ;;  %v1635_v58 = vsel %vm1631_vm13, %v9205_v59, -inf }
 0x791   :  { %v7170_v19 = vpop.eup %7169 }
 0x792   :  { %v1449_v55 = vmul.f32 %v7170_v19, %v9175_v3  ;;  %v1336_v61 = vadd.f32 1e-05, %v1331_v48  ;;  %v1638_v19 = vsel %vm1631_vm13, %v9207_v53, -inf }
 0x794   :  { %1460 = vrot.lane.b32.xlu1 %v1449_v55, %s7492_s26  ;;  %v1641_v55 = vsel %vm1631_vm13, %v9209_v35, -inf }
 0x79d   :  { %v7172_v4 = vpop.eup %7171 }
 0x79e   :  { %v1448_v27 = vmul.f32 %v7172_v4, %v9198_v24 }
 0x7a0   :  { %1458 = vrot.lane.b32.xlu0 %v1448_v27, %s7492_s26  ;;  %v1645_v27 = vsel %vm1644_vm14, %v9211_v40, -inf }
 0x7d9   :  { %v1321_v32 = vpop.xlane.xlu1 %1320 }
 0x7da   :  { %v1330_v21 = vmul.f32 0.03125, %v1321_v32 }
 0x7dc   :  { %v1335_v33 = vadd.f32 1e-05, %v1330_v21 }
 0x7de   :  { %7173 = vrsqrt.f32 %v1335_v33 }
 0x7df   :  { %7175 = vrsqrt.f32 %v1336_v61 }
 0x7e0   :  { %7177 = vrsqrt.f32 %v1337_v7 }
 0x7e1   :  { %v1318_v23 = vpop.xlane.xlu0 %1317 }
 0x7e2   :  { %v1329_v49 = vmul.f32 0.03125, %v1318_v23 }
 0x7e4   :  { %v1334_v57 = vadd.f32 1e-05, %v1329_v49 }
 0x7e5   :  { %v9268_v3 = vpop.xlane.xlu1 %1314  ;;  %v1467_v5 = vpop.permute.xlu0 %1466 }
 0x7e6   :  { %7179 = vrsqrt.f32 %v1334_v57 }
 0x7e9   :  { %v1465_v36 = vpop.permute.xlu1 %1464  ;;  %v1463_v47 = vpop.permute.xlu0 %1462 }
 0x7eb   :  { %v7174_v24 = vpop.eup %7173 }
 0x7ec   :  { %v1345_v52 = vmul.f32 %v7174_v24, %v9217_v1  ;;  %v7176_v60 = vpop.eup %7175 }
 0x7ed   :  { %v7120_v42 = vpop.permute.xlu1 %7119  ;;  %v1346_v17 = vmul.f32 %v7176_v60, %v9191_v51  ;;  %v7178_v31 = vpop.eup %7177 }
 0x7ee   :  { %v1475_v37 = vmul.f32 %v1463_v47, %v1345_v52  ;;  %v9271_v18 = vunpack.i.h.bf16 %v7120_v42  ;;  %v9273_v63 = vunpack.i.l.bf16 %v7120_v42  ;;  %v1347_v1 = vmul.f32 %v7178_v31, %v9184_v50 }
 0x7ef   :  { %v1476_v41 = vmul.f32 %v1465_v36, %v1346_v17  ;;  %v1829_v50 = vsel %vm1631_vm13, %v9224_v0, -inf }
 0x7f0   :  { %v1708_v22 = vmul.f32 %v9271_v18, %v1475_v37  ;;  %v1498_v26 = vmul.f32 %v9273_v63, %v1475_v37  ;;  %v1477_v16 = vmul.f32 %v1467_v5, %v1347_v1 }
 0x7f1   :  { %v1709_v10 = vmul.f32 %v9271_v18, %v1476_v41  ;;  %v1499_v20 = vmul.f32 %v9273_v63, %v1476_v41 }
 0x7f2   :  { %1890 = vrot.lane.b32.xlu1 %v1708_v22, %s7494_s22  ;;  %2017 = vrot.lane.b32.xlu0 %v1498_v26, %s7494_s22  ;;  %v1500_v51 = vmul.f32 %v9273_v63, %v1477_v16  ;;  %v1710_v11 = vmul.f32 %v9271_v18, %v1477_v16 }
 0x7f3   :  { %v7180_v4 = vpop.eup %7179 }
 0x7f4   :  { %v1344_v39 = vmul.f32 %v7180_v4, %v9229_v2 }
 0x7f6   :  { %1892 = vrot.lane.b32.xlu1 %v1709_v10, %s7494_s22  ;;  %2019 = vrot.lane.b32.xlu0 %v1499_v20, %s7494_s22 }
 0x7fa   :  { %2021 = vrot.lane.b32.xlu1 %v1500_v51, %s7494_s22  ;;  %1894 = vrot.lane.b32.xlu0 %v1710_v11, %s7494_s22 }
 0x806   :  { %v1461_v44 = vpop.permute.xlu1 %1460 }
 0x807   :  { %v1474_v48 = vmul.f32 %v1461_v44, %v1344_v39 }
 0x809   :  { %v1497_v32 = vmul.f32 %v9273_v63, %v1474_v48  ;;  %v1707_v21 = vmul.f32 %v9271_v18, %v1474_v48 }
 0x812   :  { %v9314_v15 = vpop.permute.xlu0 %1458 }
 0x819   :  { %1830 = vmax.xlane.f32.xlu0 %v1829_v50 }
 0x81d   :  { %1833 = vmax.xlane.f32.xlu0 %v1832_v38 }
 0x81e   :  { %1633 = vmax.xlane.f32.xlu1 %v1632_v46 }
 0x821   :  { %1836 = vmax.xlane.f32.xlu0 %v1835_v62 }
 0x822   :  { %1827 = vmax.xlane.f32.xlu1 %v1826_v45  ;;  %v1328_v45 = vmul.f32 0.03125, %v9268_v3 }
 0x824   :  { %v1333_v44 = vadd.f32 1e-05, %v1328_v45 }
 0x825   :  { %1839 = vmax.xlane.f32.xlu0 %v1838_v54 }
 0x826   :  { %1636 = vmax.xlane.f32.xlu1 %v1635_v58 }
 0x82a   :  { %1639 = vmax.xlane.f32.xlu1 %v1638_v19 }
 0x82e   :  { %1642 = vmax.xlane.f32.xlu1 %v1641_v55 }
 0x832   :  { %1646 = vmax.xlane.f32.xlu1 %v1645_v27 }
 0x83b   :  { %2015 = vrot.lane.b32.xlu0 %v1497_v32, %s7494_s22 }
 0x843   :  { %1888 = vrot.lane.b32.xlu1 %v1707_v21, %s7494_s22 }
 0x864   :  { %v1891_v61 = vpop.permute.xlu1 %1890  ;;  %v2018_v33 = vpop.permute.xlu0 %2017 }
 0x868   :  { %v1893_v7 = vpop.permute.xlu1 %1892  ;;  %v2020_v23 = vpop.permute.xlu0 %2019 }
 0x86c   :  { %v2022_v5 = vpop.permute.xlu1 %2021  ;;  %v1895_v36 = vpop.permute.xlu0 %1894 }
 0x86d   :  { %6742 = vmatpush3.msk.msra.mxu0 %vm1915_vm15, %v1895_v36  ;;  %6767 = vmatpush3.msk.msra.mxu1 %vm1915_vm15, %v2022_v5 }
 0x86e   :  { %6743 = vmatprep.subr.mxu0 %v11480_v13  ;;  %6768 = vmatprep.subr.mxu1 %v11480_v13 }
 0x86f   :  { %6744 = vmatpush3.msra.mxu0 %v1893_v7  ;;  %6769 = vmatpush3.msra.mxu1 %v2020_v23 }
 0x870   :  { %6745 = vmatprep.subr.mxu0 %v11480_v13  ;;  %6770 = vmatprep.subr.mxu1 %v11480_v13 }
 0x871   :  { %6746 = vmatpush3.msra.mxu0 %v1891_v61  ;;  %6771 = vmatpush3.msra.mxu1 %v2018_v33 }
 0x872   :  { %6772 = vmatprep.subr.mxu1 %v11480_v13  ;;  %6747 = vmatprep.subr.mxu0 %v11480_v13 }
 0x8a2   :  { %v1831_v2 = vpop.xlane.xlu0 %1830 }
 0x8a3   :  { %v1842_v24 = vsub.f32 %v9224_v0, %v1831_v2 }
 0x8a5   :  { %v1848_v42 = vmul.f32 1.442695, %v1842_v24 }
 0x8a6   :  { %v1834_v52 = vpop.xlane.xlu0 %1833 }
 0x8a7   :  { %v1634_v60 = vpop.xlane.xlu1 %1633  ;;  %v1843_v37 = vsub.f32 %v9226_v8, %v1834_v52 }
 0x8a8   :  { %v1648_v47 = vsub.f32 %v9203_v43, %v1634_v60 }
 0x8a9   :  { %v1850_v41 = vmul.f32 1.442695, %v1843_v37 }
 0x8aa   :  { %v1653_v17 = vmul.f32 1.442695, %v1648_v47  ;;  %v1837_v22 = vpop.xlane.xlu0 %1836 }
 0x8ab   :  { %v1828_v26 = vpop.xlane.xlu1 %1827  ;;  %v1844_v1 = vsub.f32 %v9231_v56, %v1837_v22 }
 0x8ac   :  { %7181 = vpow2.f32 %v1653_v17  ;;  %v1841_v31 = vsub.f32 %v9219_v34, %v1828_v26 }
 0x8ad   :  { %7183 = vpow2.f32 %v1848_v42  ;;  %v1852_v43 = vmul.f32 1.442695, %v1844_v1 }
 0x8ae   :  { %v1846_v10 = vmul.f32 1.442695, %v1841_v31  ;;  %v1840_v20 = vpop.xlane.xlu0 %1839 }
 0x8af   :  { %v1637_v0 = vpop.xlane.xlu1 %1636  ;;  %v1845_v8 = vsub.f32 %v9238_v9, %v1840_v20 }
 0x8b0   :  { %7185 = vpow2.f32 %v1846_v10  ;;  %v1649_v16 = vsub.f32 %v9205_v59, %v1637_v0 }
 0x8b1   :  { %7187 = vpow2.f32 %v1850_v41  ;;  %v1854_v56 = vmul.f32 1.442695, %v1845_v8 }
 0x8b2   :  { %v1655_v51 = vmul.f32 1.442695, %v1649_v16  ;;  %v2016_v11 = vpop.permute.xlu0 %2015 }
 0x8b3   :  { %6773 = vmatpush3.msra.mxu1 %v2016_v11  ;;  %v1640_v50 = vpop.xlane.xlu1 %1639 }
 0x8b4   :  { %7189 = vpow2.f32 %v1655_v51  ;;  %v1650_v34 = vsub.f32 %v9207_v53, %v1640_v50  ;;  %6774 = vmatprep.subr.mxu1 %v11480_v13 }
 0x8b5   :  { %7191 = vpow2.f32 %v1852_v43 }
 0x8b6   :  { %v1657_v49 = vmul.f32 1.442695, %v1650_v34 }
 0x8b7   :  { %v1643_v38 = vpop.xlane.xlu1 %1642 }
 0x8b8   :  { %7193 = vpow2.f32 %v1657_v49  ;;  %v1651_v59 = vsub.f32 %v9209_v35, %v1643_v38 }
 0x8b9   :  { %v9334_v46 = vpop.eup %7181  ;;  %7195 = vpow2.f32 %v1854_v56 }
 0x8ba   :  { %v1659_v9 = vmul.f32 1.442695, %v1651_v59  ;;  %v1663_v57 = vsel %vm1631_vm13, %v9334_v46, 0.0  ;;  %v9338_v62 = vpop.eup %7183 }
 0x8bb   :  { %1664 = vadd.xlane.f32.xlu1 %v1663_v57  ;;  %v1647_v53 = vpop.xlane.xlu1 %1646  ;;  %v1859_v55 = vsel %vm1631_vm13, %v9338_v62, 0.0 }
 0x8bc   :  { %7197 = vpow2.f32 %v1659_v9  ;;  %v1652_v54 = vsub.f32 %v9211_v40, %v1647_v53 }
 0x8bd   :  { %v7186_v58 = vpop.eup %7185 }
 0x8be   :  { %v1661_v19 = vmul.f32 1.442695, %v1652_v54  ;;  %v1856_v35 = vsel %vm1631_vm13, %v7186_v58, 0.0  ;;  %v9345_v4 = vpop.eup %7187 }
 0x8bf   :  { %1857 = vadd.xlane.f32.xlu0 %v1856_v35  ;;  %1860 = vadd.xlane.f32.xlu1 %v1859_v55  ;;  %v1889_v27 = vpop.permute.xlu1 %1888  ;;  %v1862_v3 = vsel %vm1631_vm13, %v9345_v4, 0.0 }
 0x8c0   :  { %7199 = vpow2.f32 %v1661_v19  ;;  %6748 = vmatpush3.msra.mxu0 %v1889_v27 }
 0x8c1   :  { %v9347_v39 = vpop.eup %7189  ;;  %6749 = vmatprep.subr.mxu0 %v11480_v13  ;;  %7201 = vrsqrt.f32 %v1333_v44 }
 0x8c2   :  { %v1666_v40 = vsel %vm1631_vm13, %v9347_v39, 0.0  ;;  %v9354_v48 = vpop.eup %7191 }
 0x8c3   :  { %1667 = vadd.xlane.f32.xlu0 %v1666_v40  ;;  %1863 = vadd.xlane.f32.xlu1 %v1862_v3  ;;  %v1865_v61 = vsel %vm1631_vm13, %v9354_v48, 0.0 }
 0x8c5   :  { %v9356_v32 = vpop.eup %7193 }
 0x8c6   :  { %v1669_v21 = vsel %vm1631_vm13, %v9356_v32, 0.0  ;;  %v9362_v33 = vpop.eup %7195 }
 0x8c7   :  { %1670 = vadd.xlane.f32.xlu0 %v1669_v21  ;;  %1866 = vadd.xlane.f32.xlu1 %v1865_v61  ;;  %v1868_v5 = vsel %vm1644_vm14, %v9362_v33, 0.0 }
 0x8c9   :  { %v9364_v7 = vpop.eup %7197 }
 0x8ca   :  { %v1672_v23 = vsel %vm1631_vm13, %v9364_v7, 0.0 }
 0x8cb   :  { %1673 = vadd.xlane.f32.xlu0 %v1672_v23  ;;  %1869 = vadd.xlane.f32.xlu1 %v1868_v5 }
 0x8cd   :  { %v9370_v36 = vpop.eup %7199 }
 0x8ce   :  { %v1675_v2 = vsel %vm1644_vm14, %v9370_v36, 0.0  ;;  %v7202_v24 = vpop.eup %7201 }
 0x8cf   :  { %1676 = vadd.xlane.f32.xlu0 %v1675_v2  ;;  %v1343_v52 = vmul.f32 %v7202_v24, %v9236_v14 }
 0x8d1   :  { %v1473_v60 = vmul.f32 %v9314_v15, %v1343_v52 }
 0x8d3   :  { %v1706_v47 = vmul.f32 %v9271_v18, %v1473_v60  ;;  %v1496_v42 = vmul.f32 %v9273_v63, %v1473_v60 }
 0x8dc   :  { %1886 = vrot.lane.b32.xlu1 %v1706_v47, %s7494_s22 }
 0x8e5   :  { %2013 = vrot.lane.b32.xlu0 %v1496_v42, %s7494_s22 }
 0x944   :  { %v1665_v37 = vpop.xlane.xlu1 %1664 }
 0x948   :  { %v1858_v17 = vpop.xlane.xlu0 %1857  ;;  %v1861_v22 = vpop.xlane.xlu1 %1860 }
 0x949   :  { %7203 = vrcp.f32 %v1858_v17 }
 0x94a   :  { %7205 = vrcp.f32 %v1665_v37 }
 0x94b   :  { %7207 = vrcp.f32 %v1861_v22 }
 0x94c   :  { %v1668_v26 = vpop.xlane.xlu0 %1667  ;;  %v1864_v31 = vpop.xlane.xlu1 %1863 }
 0x94d   :  { %7209 = vrcp.f32 %v1668_v26 }
 0x94e   :  { %7211 = vrcp.f32 %v1864_v31 }
 0x950   :  { %v1671_v14 = vpop.xlane.xlu0 %1670  ;;  %v1867_v15 = vpop.xlane.xlu1 %1866 }
 0x951   :  { %7213 = vrcp.f32 %v1671_v14 }
 0x952   :  { %7215 = vrcp.f32 %v1867_v15 }
 0x954   :  { %v1674_v41 = vpop.xlane.xlu0 %1673  ;;  %v1870_v1 = vpop.xlane.xlu1 %1869 }
 0x955   :  { %7217 = vrcp.f32 %v1674_v41 }
 0x956   :  { %v7204_v10 = vpop.eup %7203  ;;  %7219 = vrcp.f32 %v1870_v1 }
 0x957   :  { %v1872_v20 = vmul.f32 %v7204_v10, %v7186_v58  ;;  %v7206_v0 = vpop.eup %7205 }
 0x958   :  { %v1677_v16 = vpop.xlane.xlu0 %1676  ;;  %v1887_v43 = vpop.permute.xlu1 %1886  ;;  %v1679_v11 = vmul.f32 %v7206_v0, %v9334_v46 }
 0x959   :  { %v7208_v8 = vpop.eup %7207  ;;  %6750 = vmatpush3.msra.mxu0 %v1887_v43  ;;  %7221 = vrcp.f32 %v1677_v16 }
 0x95a   :  { %6752 = vmatmul.mubr.msk.f32.vlgmr.msra.gmra.mxu0 %vm1631_vm13, %v1872_v20  ;;  %6791 = vmatprep.subr.mxu0 %v11480_v13  ;;  %v7210_v51 = vpop.eup %7209  ;;  %v1874_v34 = vmul.f32 %v7208_v8, %v9338_v62 }
 0x95b   :  { %6754 = vmatprep.mubr.msk.f32.mxu0 %vm7491_vm0, %v11480_v13  ;;  %v7212_v56 = vpop.eup %7211  ;;  %v1681_v59 = vmul.f32 %v7210_v51, %v9347_v39 }
 0x95c   :  { %v2014_v50 = vpop.permute.xlu0 %2013  ;;  %v1876_v38 = vmul.f32 %v7212_v56, %v9345_v4 }
 0x95d   :  { %6775 = vmatpush3.msra.mxu1 %v2014_v50 }
 0x95e   :  { %6755 = vmatmul.mubr.msk.f32.gmra.mxu0 %vm1631_vm13, %v1874_v34  ;;  %6777 = vmatmul.mubr.msk.f32.vlgmr.msra.gmra.mxu1 %vm1631_vm13, %v1679_v11  ;;  %v7214_v49 = vpop.eup %7213 }
 0x95f   :  { %6757 = vmatprep.mubr.msk.f32.mxu0 %vm7491_vm0, %v11480_v13  ;;  %6779 = vmatprep.mubr.msk.f32.mxu1 %vm7491_vm0, %v11480_v13  ;;  %v7216_v46 = vpop.eup %7215  ;;  %v1683_v62 = vmul.f32 %v7214_v49, %v9356_v32 }
 0x960   :  { %6814 = vmatprep.subr.mxu1 %v11480_v13  ;;  %v1878_v57 = vmul.f32 %v7216_v46, %v9354_v48 }
 0x962   :  { %6758 = vmatmul.mubr.msk.f32.gmra.mxu0 %vm1631_vm13, %v1876_v38  ;;  %6780 = vmatmul.mubr.msk.f32.gmra.mxu1 %vm1631_vm13, %v1681_v59  ;;  %v7218_v9 = vpop.eup %7217 }
 0x963   :  { %6760 = vmatprep.mubr.msk.f32.mxu0 %vm7491_vm0, %v11480_v13  ;;  %6782 = vmatprep.mubr.msk.f32.mxu1 %vm7491_vm0, %v11480_v13  ;;  %v7220_v53 = vpop.eup %7219  ;;  %v1685_v54 = vmul.f32 %v7218_v9, %v9364_v7 }
 0x964   :  { %v1880_v45 = vmul.f32 %v7220_v53, %v9362_v33 }
 0x966   :  { %6761 = vmatmul.mubr.msk.f32.gmra.mxu0 %vm1631_vm13, %v1878_v57  ;;  %6783 = vmatmul.mubr.msk.f32.gmra.mxu1 %vm1631_vm13, %v1683_v62  ;;  %v7222_v58 = vpop.eup %7221 }
 0x967   :  { %6763 = vmatprep.mubr.msk.f32.mxu0 %vm7491_vm0, %v11480_v13  ;;  %6785 = vmatprep.mubr.msk.f32.mxu1 %vm7491_vm0, %v11480_v13  ;;  %v1687_v19 = vmul.f32 %v7222_v58, %v9370_v36 }
 0x96a   :  { %6764 = vmatmul.mubr.msk.f32.gmra.mxu0 %vm1631_vm13, %v1880_v45  ;;  %6786 = vmatmul.mubr.msk.f32.gmra.mxu1 %vm1631_vm13, %v1685_v54 }
 0x96b   :  { %6788 = vmatprep.mubr.msk.f32.mxu1 %vm7491_vm0, %v11480_v13  ;;  %6799 = vmatprep.mubr.msk.f32.mxu0 %vm7491_vm0, %v11480_v13 }
 0x96e   :  { %6789 = vmatmul.mubr.msk.f32.gmra.mxu1 %vm1631_vm13, %v1687_v19 }
 0x96f   :  { %6846 = vmatprep.mubr.msk.f32.mxu1 %vm7491_vm0, %v11480_v13 }
 0xa1a   :  { %v1984_v35 = vpop.f32.mrf.mxu0 }
 0xa1c   :  { %v6753_v55 = vpop.f32.mrf.mxu0 }
 0xa1e   :  { %v1989_v4 = vpop.f32.mrf.mxu0  ;;  %v2110_v27 = vpop.f32.mrf.mxu1 }
 0xa1f   :  { %v2111_v44 = vadd.f32 %v2110_v27, %v1984_v35  ;;  %v694_v27 = vld [vmem:[%s11263_s11 + $0x10] sm:$0xff] }
 0xa20   :  { %v6756_v39 = vpop.f32.mrf.mxu0  ;;  %v6778_v40 = vpop.f32.mrf.mxu1 }
 0xa21   :  { %v9422_v3 = vadd.f32 %v2111_v44, %v8718_v12  ;;  %v693_v44 = vld [vmem:[%s11263_s11 + $0x8] sm:$0xff]  ;;  %v692_v39 = vld [vmem:[%s11263_s11] sm:$0xff] }
 0xa22   :  { %v1994_v48 = vpop.f32.mrf.mxu0  ;;  %v2115_v32 = vpop.f32.mrf.mxu1 }
 0xa23   :  { %v2116_v21 = vadd.f32 %v2115_v32, %v1989_v4  ;;  %v2139_v61 = vsel %vm556_vm2, %v9422_v3, 0.0  ;;  %v695_v4 = vld [vmem:[%s11263_s11 + $0x18] sm:$0xff] }
 0xa24   :  { %v6781_v33 = vpop.f32.mrf.mxu1  ;;  %2140 = vadd.xlane.f32.xlu1 %v2139_v61  ;;  %v6759_v7 = vpop.f32.mrf.mxu0  ;;  %6792 = vmatpush3.msra.mxu0 %v695_v4 }
 0xa25   :  { %v9427_v23 = vadd.f32 %v2116_v21, %v8726_v28  ;;  %6793 = vmatprep.subr.mxu0 %v11480_v13 }
 0xa26   :  { %v1999_v5 = vpop.f32.mrf.mxu0  ;;  %v2120_v36 = vpop.f32.mrf.mxu1  ;;  %6794 = vmatpush3.msra.mxu0 %v694_v27 }
 0xa27   :  { %v2121_v2 = vadd.f32 %v2120_v36, %v1994_v48  ;;  %v2142_v24 = vsel %vm556_vm2, %v9427_v23, 0.0  ;;  %6795 = vmatprep.subr.mxu0 %v11480_v13 }
 0xa28   :  { %v6784_v12 = vpop.f32.mrf.mxu1  ;;  %2143 = vadd.xlane.f32.xlu0 %v2142_v24  ;;  %v6762_v52 = vpop.f32.mrf.mxu0  ;;  %6796 = vmatpush3.msra.mxu0 %v693_v44 }
 0xa29   :  { %v9432_v60 = vadd.f32 %v2121_v2, %v8735_v29  ;;  %v11487_v29 = vld [vmem:[#allocation205_spill] sm:$0xff]  ;;  %6797 = vmatprep.subr.mxu0 %v11480_v13 }
 0xa2a   :  { %v2004_v47 = vpop.f32.mrf.mxu0  ;;  %v2125_v42 = vpop.f32.mrf.mxu1  ;;  %6798 = vmatpush3.msra.mxu0 %v692_v39 }
 0xa2b   :  { %v2126_v37 = vadd.f32 %v2125_v42, %v1999_v5  ;;  %v2145_v17 = vsel %vm556_vm2, %v9432_v60, 0.0 }
 0xa2c   :  { %v6787_v28 = vpop.f32.mrf.mxu1  ;;  %2146 = vadd.xlane.f32.xlu0 %v2145_v17  ;;  %v6765_v22 = vpop.f32.mrf.mxu0 }
 0xa2d   :  { %v9437_v26 = vadd.f32 %v2126_v37, %v8744_v30 }
 0xa2e   :  { %v2130_v31 = vpop.f32.mrf.mxu1 }
 0xa2f   :  { %v2131_v14 = vadd.f32 %v2130_v31, %v2004_v47  ;;  %v2148_v15 = vsel %vm556_vm2, %v9437_v26, 0.0 }
 0xa30   :  { %v6790_v41 = vpop.f32.mrf.mxu1  ;;  %2149 = vadd.xlane.f32.xlu1 %v2148_v15 }
 0xa31   :  { %v9442_v1 = vadd.f32 %v2131_v14, %v11487_v29 }
 0xa33   :  { %v2151_v10 = vsel %vm873_vm12, %v9442_v1, 0.0 }
 0xa34   :  { %2152 = vadd.xlane.f32.xlu0 %v2151_v10 }
 0xaad   :  { %v2141_v20 = vpop.xlane.xlu1 %2140 }
 0xaae   :  { %v2154_v0 = vmul.f32 0.03125, %v2141_v20  ;;  %v712_v20 = vld [vmem:[%s11264_s12 + $0x78] sm:$0xff] }
 0xaaf   :  { %6815 = vmatpush3.msra.mxu1 %v712_v20 }
 0xab0   :  { %v2159_v16 = vsub.f32 %v9422_v3, %v2154_v0  ;;  %6816 = vmatprep.subr.mxu1 %v11480_v13  ;;  %v711_v0 = vld [vmem:[%s11264_s12 + $0x70] sm:$0xff] }
 0xab1   :  { %v2144_v30 = vpop.xlane.xlu0 %2143  ;;  %6817 = vmatpush3.msra.mxu1 %v711_v0 }
 0xab2   :  { %v2155_v43 = vmul.f32 0.03125, %v2144_v30  ;;  %v2164_v8 = vmul.f32 %v2159_v16, %v2159_v16  ;;  %6818 = vmatprep.subr.mxu1 %v11480_v13  ;;  %v709_v30 = vld [vmem:[%s11264_s12 + $0x60] sm:$0xff] }
 0xab4   :  { %v2160_v51 = vsub.f32 %v9427_v23, %v2155_v43  ;;  %v2169_v11 = vsel %vm556_vm2, %v2164_v8, 0.0  ;;  %v708_v43 = vld [vmem:[%s11264_s12 + $0x58] sm:$0xff]  ;;  %v707_v8 = vld [vmem:[%s11264_s12 + $0x50] sm:$0xff] }
 0xab5   :  { %v2147_v50 = vpop.xlane.xlu0 %2146  ;;  %2170 = vadd.xlane.f32.xlu1 %v2169_v11  ;;  %v705_v11 = vld [vmem:[%s11264_s12 + $0x40] sm:$0xff] }
 0xab6   :  { %v2156_v34 = vmul.f32 0.03125, %v2147_v50  ;;  %v2165_v56 = vmul.f32 %v2160_v51, %v2160_v51  ;;  %v704_v50 = vld [vmem:[%s11264_s12 + $0x38] sm:$0xff] }
 0xab8   :  { %v2161_v49 = vsub.f32 %v9432_v60, %v2156_v34  ;;  %v2172_v38 = vsel %vm556_vm2, %v2165_v56, 0.0  ;;  %v703_v34 = vld [vmem:[%s11264_s12 + $0x30] sm:$0xff]  ;;  %v702_v56 = vld [vmem:[%s11264_s12 + $0x28] sm:$0xff] }
 0xab9   :  { %v2150_v59 = vpop.xlane.xlu1 %2149  ;;  %2173 = vadd.xlane.f32.xlu0 %v2172_v38  ;;  %v700_v38 = vld [vmem:[%s11264_s12 + $0x18] sm:$0xff] }
 0xaba   :  { %v2157_v46 = vmul.f32 0.03125, %v2150_v59  ;;  %v2166_v9 = vmul.f32 %v2161_v49, %v2161_v49  ;;  %v699_v59 = vld [vmem:[%s11264_s12 + $0x10] sm:$0xff] }
 0xabc   :  { %v2162_v57 = vsub.f32 %v9437_v26, %v2157_v46  ;;  %v2175_v62 = vsel %vm556_vm2, %v2166_v9, 0.0  ;;  %v698_v46 = vld [vmem:[%s11264_s12 + $0x8] sm:$0xff]  ;;  %v697_v9 = vld [vmem:[%s11264_s12] sm:$0xff] }
 0xabd   :  { %2176 = vadd.xlane.f32.xlu1 %v2175_v62  ;;  %v2153_v53 = vpop.xlane.xlu0 %2152 }
 0xabe   :  { %v2158_v45 = vmul.f32 0.03125, %v2153_v53  ;;  %v2167_v54 = vmul.f32 %v2162_v57, %v2162_v57 }
 0xac0   :  { %v2163_v58 = vsub.f32 %v9442_v1, %v2158_v45  ;;  %v2178_v19 = vsel %vm556_vm2, %v2167_v54, 0.0 }
 0xac1   :  { %2179 = vadd.xlane.f32.xlu0 %v2178_v19 }
 0xac2   :  { %v2168_v35 = vmul.f32 %v2163_v58, %v2163_v58 }
 0xac4   :  { %v2181_v55 = vsel %vm873_vm12, %v2168_v35, 0.0 }
 0xac5   :  { %2182 = vadd.xlane.f32.xlu1 %v2181_v55 }
 0xb3e   :  { %v2171_v40 = vpop.xlane.xlu1 %2170 }
 0xb3f   :  { %v2184_v48 = vmul.f32 0.03125, %v2171_v40 }
 0xb41   :  { %v2189_v32 = vadd.f32 1e-05, %v2184_v48 }
 0xb42   :  { %v2174_v21 = vpop.xlane.xlu0 %2173 }
 0xb43   :  { %7223 = vrsqrt.f32 %v2189_v32  ;;  %v2185_v61 = vmul.f32 0.03125, %v2174_v21 }
 0xb45   :  { %v2190_v33 = vadd.f32 1e-05, %v2185_v61 }
 0xb46   :  { %v2177_v7 = vpop.xlane.xlu1 %2176 }
 0xb47   :  { %7225 = vrsqrt.f32 %v2190_v33  ;;  %v2186_v5 = vmul.f32 0.03125, %v2177_v7 }
 0xb49   :  { %v2191_v36 = vadd.f32 1e-05, %v2186_v5 }
 0xb4a   :  { %v2180_v2 = vpop.xlane.xlu0 %2179 }
 0xb4b   :  { %7227 = vrsqrt.f32 %v2191_v36  ;;  %v2187_v24 = vmul.f32 0.03125, %v2180_v2 }
 0xb4d   :  { %v2192_v12 = vadd.f32 1e-05, %v2187_v24 }
 0xb4e   :  { %v2183_v52 = vpop.xlane.xlu1 %2182 }
 0xb4f   :  { %7229 = vrsqrt.f32 %v2192_v12  ;;  %v2188_v47 = vmul.f32 0.03125, %v2183_v52 }
 0xb50   :  { %v7224_v42 = vpop.eup %7223 }
 0xb51   :  { %v2199_v37 = vmul.f32 %v7224_v42, %v2159_v16  ;;  %v2193_v17 = vadd.f32 1e-05, %v2188_v47  ;;  %v710_v16 = vld [vmem:[%s11264_s12 + $0x68] sm:$0xff] }
 0xb52   :  { %6819 = vmatpush3.msra.mxu1 %v710_v16 }
 0xb53   :  { %7231 = vrsqrt.f32 %v2193_v17  ;;  %6800 = vmatmul.mubr.msk.f32.vlgmr.msra.gmra.mxu0 %vm556_vm2, %v2199_v37  ;;  %6820 = vmatprep.subr.mxu1 %v11480_v13 }
 0xb54   :  { %v7226_v28 = vpop.eup %7225  ;;  %6802 = vmatprep.mubr.msk.f32.mxu0 %vm7491_vm0, %v11480_v13  ;;  %6821 = vmatpush3.msra.mxu1 %v709_v30 }
 0xb55   :  { %v2200_v22 = vmul.f32 %v7226_v28, %v2160_v51  ;;  %6822 = vmatprep.subr.mxu1 %v11480_v13  ;;  %v706_v51 = vld [vmem:[%s11264_s12 + $0x48] sm:$0xff] }
 0xb56   :  { %6823 = vmatpush3.msra.mxu1 %v708_v43 }
 0xb57   :  { %6803 = vmatmul.mubr.msk.f32.gmra.mxu0 %vm556_vm2, %v2200_v22  ;;  %6824 = vmatprep.subr.mxu1 %v11480_v13 }
 0xb58   :  { %v7228_v31 = vpop.eup %7227  ;;  %6805 = vmatprep.mubr.msk.f32.mxu0 %vm7491_vm0, %v11480_v13  ;;  %6825 = vmatpush3.msra.mxu1 %v707_v8 }
 0xb59   :  { %v2201_v14 = vmul.f32 %v7228_v31, %v2161_v49  ;;  %6826 = vmatprep.subr.mxu1 %v11480_v13  ;;  %v701_v49 = vld [vmem:[%s11264_s12 + $0x20] sm:$0xff] }
 0xb5a   :  { %6827 = vmatpush3.msra.mxu1 %v706_v51 }
 0xb5b   :  { %6806 = vmatmul.mubr.msk.f32.gmra.mxu0 %vm556_vm2, %v2201_v14  ;;  %6828 = vmatprep.subr.mxu1 %v11480_v13 }
 0xb5c   :  { %v7230_v15 = vpop.eup %7229  ;;  %6808 = vmatprep.mubr.msk.f32.mxu0 %vm7491_vm0, %v11480_v13  ;;  %6829 = vmatpush3.msra.mxu1 %v705_v11 }
 0xb5d   :  { %v2202_v41 = vmul.f32 %v7230_v15, %v2162_v57  ;;  %6830 = vmatprep.subr.mxu1 %v11480_v13  ;;  %v6264_v57 = vld [vmem:[%s11267_s15 + $0x2] ss:$0 sm:$0xff] }
 0xb5e   :  { %6831 = vmatpush3.msra.mxu1 %v704_v50 }
 0xb5f   :  { %6809 = vmatmul.mubr.msk.f32.gmra.mxu0 %vm556_vm2, %v2202_v41  ;;  %6832 = vmatprep.subr.mxu1 %v11480_v13 }
 0xb60   :  { %v7232_v29 = vpop.eup %7231  ;;  %6811 = vmatprep.mubr.msk.f32.mxu0 %vm7491_vm0, %v11480_v13  ;;  %6833 = vmatpush3.msra.mxu1 %v703_v34 }
 0xb61   :  { %v2203_v10 = vmul.f32 %v7232_v29, %v2163_v58  ;;  %6834 = vmatprep.subr.mxu1 %v11480_v13 }
 0xb62   :  { %6835 = vmatpush3.msra.mxu1 %v702_v56 }
 0xb63   :  { %6812 = vmatmul.mubr.msk.f32.gmra.mxu0 %vm556_vm2, %v2203_v10  ;;  %6836 = vmatprep.subr.mxu1 %v11480_v13 }
 0xb64   :  { %2622 = vmatprep.mubr.f32.mxu0 %v11480_v13  ;;  %6837 = vmatpush3.msra.mxu1 %v701_v49 }
 0xb65   :  { %6838 = vmatprep.subr.mxu1 %v11480_v13 }
 0xb66   :  { %6839 = vmatpush3.msra.mxu1 %v700_v38 }
 0xb67   :  { %6840 = vmatprep.subr.mxu1 %v11480_v13 }
 0xb68   :  { %6841 = vmatpush3.msra.mxu1 %v699_v59 }
 0xb69   :  { %6842 = vmatprep.subr.mxu1 %v11480_v13 }
 0xb6a   :  { %6843 = vmatpush3.msra.mxu1 %v698_v46 }
 0xb6b   :  { %6844 = vmatprep.subr.mxu1 %v11480_v13 }
 0xb6c   :  { %6845 = vmatpush3.msra.mxu1 %v697_v9 }
 0xb6d   :  { %6861 = vmatprep.subr.mxu1 %v11480_v13 }
 0xc13   :  { %v2291_v62 = vpop.f32.mrf.mxu0 }
 0xc14   :  { %v2292_v53 = vadd.f32 %v6264_v57, %v2291_v62 }
 0xc15   :  { %v6801_v45 = vpop.f32.mrf.mxu0 }
 0xc16   :  { %v2320_v54 = vmul.f32 0.044715, %v2292_v53  ;;  %v2315_v30 = vmul.f32 0.5, %v2292_v53 }
 0xc17   :  { %v2296_v58 = vpop.f32.mrf.mxu0 }
 0xc18   :  { %v2325_v19 = vmul.f32 %v2320_v54, %v2292_v53  ;;  %v2297_v35 = vadd.f32 %v6264_v57, %v2296_v58 }
 0xc19   :  { %v6804_v55 = vpop.f32.mrf.mxu0 }
 0xc1a   :  { %v2330_v4 = vmul.f32 %v2325_v19, %v2292_v53  ;;  %v2321_v27 = vmul.f32 0.044715, %v2297_v35  ;;  %v2316_v50 = vmul.f32 0.5, %v2297_v35  ;;  %v2503_v55 = vld [vmem:[%s11265_s13 + $0xb0] sm:$0xff] }
 0xc1b   :  { %v2301_v44 = vpop.f32.mrf.mxu0 }
 0xc1c   :  { %v2335_v39 = vadd.f32 %v2330_v4, %v2292_v53  ;;  %v2326_v40 = vmul.f32 %v2321_v27, %v2297_v35  ;;  %v2302_v48 = vadd.f32 %v6264_v57, %v2301_v44  ;;  %v2502_v4 = vld [vmem:[%s11265_s13 + $0xa8] sm:$0xff]  ;;  %v2501_v27 = vld [vmem:[%s11265_s13 + $0xa0] sm:$0xff]  ;;  %v2500_v44 = vld [vmem:[%s11265_s13 + $0x98] sm:$0xff] }
 0xc1d   :  { %v6807_v32 = vpop.f32.mrf.mxu0 }
 0xc1e   :  { %v2340_v21 = vmul.f32 0.7978846, %v2335_v39  ;;  %v2322_v61 = vmul.f32 0.044715, %v2302_v48  ;;  %v2331_v33 = vmul.f32 %v2326_v40, %v2297_v35  ;;  %v2317_v38 = vmul.f32 0.5, %v2302_v48  ;;  %v2499_v39 = vld [vmem:[%s11265_s13 + $0x90] sm:$0xff] }
 0xc1f   :  { %v2306_v7 = vpop.f32.mrf.mxu0  ;;  %v2498_v40 = vld [vmem:[%s11265_s13 + $0x88] sm:$0xff]  ;;  %v2496_v32 = vld [vmem:[%s11265_s13 + $0x78] sm:$0xff] }
 0xc20   :  { %7233 = vtanh.f32 %v2340_v21  ;;  %v2327_v5 = vmul.f32 %v2322_v61, %v2302_v48  ;;  %v2307_v36 = vadd.f32 %v6264_v57, %v2306_v7  ;;  %v2336_v2 = vadd.f32 %v2331_v33, %v2297_v35  ;;  %v2504_v35 = vld [vmem:[%s11265_s13 + $0xb8] sm:$0xff]  ;;  %v2495_v21 = vld [vmem:[%s11265_s13 + $0x70] sm:$0xff]  ;;  %v2494_v61 = vld [vmem:[%s11265_s13 + $0x68] sm:$0xff] }
 0xc21   :  { %v6810_v24 = vpop.f32.mrf.mxu0  ;;  %2566 = vmatprep.subr.mxu0 %v2504_v35  ;;  %v2493_v33 = vld [vmem:[%s11265_s13 + $0x60] sm:$0xff]  ;;  %v2492_v7 = vld [vmem:[%s11265_s13 + $0x58] sm:$0xff] }
 0xc22   :  { %v2323_v12 = vmul.f32 0.044715, %v2307_v36  ;;  %v2341_v52 = vmul.f32 0.7978846, %v2336_v2  ;;  %v2332_v47 = vmul.f32 %v2327_v5, %v2302_v48  ;;  %2567 = vmatpush1.msra.mxu0 %v2503_v55  ;;  %v2491_v5 = vld [vmem:[%s11265_s13 + $0x50] sm:$0xff]  ;;  %v2489_v2 = vld [vmem:[%s11265_s13 + $0x40] sm:$0xff] }
 0xc23   :  { %v2311_v42 = vpop.f32.mrf.mxu0  ;;  %2568 = vmatprep.subr.mxu0 %v2502_v4  ;;  %v2488_v24 = vld [vmem:[%s11265_s13 + $0x38] sm:$0xff] }
 0xc24   :  { %v2328_v37 = vmul.f32 %v2323_v12, %v2307_v36  ;;  %v2312_v17 = vadd.f32 %v6264_v57, %v2311_v42  ;;  %7235 = vtanh.f32 %v2341_v52  ;;  %v2337_v28 = vadd.f32 %v2332_v47, %v2302_v48  ;;  %2569 = vmatpush1.msra.mxu0 %v2501_v27  ;;  %v2497_v48 = vld [vmem:[%s11265_s13 + $0x80] sm:$0xff]  ;;  %v2487_v12 = vld [vmem:[%s11265_s13 + $0x30] sm:$0xff]  ;;  %v2486_v52 = vld [vmem:[%s11265_s13 + $0x28] sm:$0xff] }
 0xc25   :  { %v6813_v22 = vpop.f32.mrf.mxu0  ;;  %v2318_v57 = vmul.f32 0.5, %v2307_v36  ;;  %2570 = vmatprep.subr.mxu0 %v2500_v44  ;;  %v2485_v47 = vld [vmem:[%s11265_s13 + $0x20] sm:$0xff]  ;;  %v2484_v42 = vld [vmem:[%s11265_s13 + $0x18] sm:$0xff] }
 0xc26   :  { %v2324_v31 = vmul.f32 0.044715, %v2312_v17  ;;  %v2342_v14 = vmul.f32 0.7978846, %v2337_v28  ;;  %v2333_v15 = vmul.f32 %v2328_v37, %v2307_v36  ;;  %v2319_v54 = vmul.f32 0.5, %v2312_v17  ;;  %2571 = vmatpush1.msra.mxu0 %v2499_v39  ;;  %v2483_v37 = vld [vmem:[%s11265_s13 + $0x10] sm:$0xff] }
 0xc27   :  { %2572 = vmatprep.subr.mxu0 %v2498_v40  ;;  %v2481_v28 = vld [vmem:[%s11265_s13] sm:$0xff]  ;;  %v7440_v55 = vld [vmem:[%s11256_s4 + $0x18] sm:$0xff] }
 0xc28   :  { %v2329_v41 = vmul.f32 %v2324_v31, %v2312_v17  ;;  %7237 = vtanh.f32 %v2342_v14  ;;  %v2338_v29 = vadd.f32 %v2333_v15, %v2307_v36  ;;  %2573 = vmatpush1.msra.mxu0 %v2497_v48  ;;  %v2490_v36 = vld [vmem:[%s11265_s13 + $0x48] sm:$0xff]  ;;  %v6270_v22 = vld [vmem:[%s11267_s15 + $0x3] ss:$0 sm:$0xff]  ;;  %v7441_v44 = vld [vmem:[%s11256_s4 + $0x20] sm:$0x1] }
 0xc29   :  { %2574 = vmatprep.subr.mxu0 %v2496_v32  ;;  %v9715_v40 = vld [vmem:[%s11267_s15 + $0x4] sm:$0x3]  ;;  %v11488_v48 = vld [vmem:[#allocation206_spill] sm:$0xff] }
 0xc2a   :  { %v2343_v10 = vmul.f32 0.7978846, %v2338_v29  ;;  %v2334_v20 = vmul.f32 %v2329_v41, %v2312_v17  ;;  %2575 = vmatpush1.msra.mxu0 %v2495_v21  ;;  %v2536_v32 = vrot.slane %v9715_v40, %v11488_v48 }
 0xc2b   :  { %2576 = vmatprep.subr.mxu0 %v2494_v61 }
 0xc2c   :  { %7239 = vtanh.f32 %v2343_v10  ;;  %v2339_v0 = vadd.f32 %v2334_v20, %v2312_v17  ;;  %2577 = vmatpush1.msra.mxu0 %v2493_v33  ;;  %v2482_v17 = vld [vmem:[%s11265_s13 + $0x8] sm:$0xff] }
 0xc2d   :  { %v7234_v16 = vpop.eup %7233  ;;  %2578 = vmatprep.subr.mxu0 %v2492_v7 }
 0xc2e   :  { %v2350_v43 = vadd.f32 1.0, %v7234_v16  ;;  %v2344_v8 = vmul.f32 0.7978846, %v2339_v0  ;;  %2579 = vmatpush1.msra.mxu0 %v2491_v5 }
 0xc2f   :  { %2580 = vmatprep.subr.mxu0 %v2490_v36 }
 0xc30   :  { %v2355_v51 = vmul.f32 %v2350_v43, %v2315_v30  ;;  %7241 = vtanh.f32 %v2344_v8  ;;  %2581 = vmatpush1.msra.mxu0 %v2489_v2 }
 0xc31   :  { %v7236_v11 = vpop.eup %7235  ;;  %2582 = vmatprep.subr.mxu0 %v2488_v24 }
 0xc32   :  { %6847 = vmatmul.mubr.f32.vlgmr.msra.gmra.mxu1 %v2355_v51  ;;  %v2351_v34 = vadd.f32 1.0, %v7236_v11  ;;  %2583 = vmatpush1.msra.mxu0 %v2487_v12 }
 0xc33   :  { %6849 = vmatprep.mubr.msk.f32.mxu1 %vm7491_vm0, %v11480_v13  ;;  %2584 = vmatprep.subr.mxu0 %v2486_v52 }
 0xc34   :  { %v2356_v56 = vmul.f32 %v2351_v34, %v2316_v50  ;;  %2585 = vmatpush1.msra.mxu0 %v2485_v47 }
 0xc35   :  { %v7238_v49 = vpop.eup %7237  ;;  %2586 = vmatprep.subr.mxu0 %v2484_v42 }
 0xc36   :  { %6850 = vmatmul.mubr.f32.gmra.mxu1 %v2356_v56  ;;  %v2352_v59 = vadd.f32 1.0, %v7238_v49  ;;  %2587 = vmatpush1.msra.mxu0 %v2483_v37  ;;  %v2471_v56 = vld [vmem:[%s11255_s3] sm:$0xff] }
 0xc37   :  { %6852 = vmatprep.mubr.msk.f32.mxu1 %vm7491_vm0, %v11480_v13  ;;  %2588 = vmatprep.subr.mxu0 %v2482_v17 }
 0xc38   :  { %v2357_v46 = vmul.f32 %v2352_v59, %v2317_v38  ;;  %2589 = vmatpush1.msra.mxu0 %v2481_v28  ;;  %v2474_v38 = vld [vmem:[%s11255_s3 + $0x18] sm:$0xff]  ;;  %v2475_v59 = vld [vmem:[%s11255_s3 + $0x20] sm:$0x1] }
 0xc39   :  { %v7240_v9 = vpop.eup %7239 }
 0xc3a   :  { %6853 = vmatmul.mubr.f32.gmra.mxu1 %v2357_v46  ;;  %v2353_v62 = vadd.f32 1.0, %v7240_v9  ;;  %v7437_v9 = vld [vmem:[%s11256_s4] sm:$0xff] }
 0xc3b   :  { %6855 = vmatprep.mubr.msk.f32.mxu1 %vm7491_vm0, %v11480_v13 }
 0xc3c   :  { %v2358_v53 = vmul.f32 %v2353_v62, %v2318_v57 }
 0xc3d   :  { %v7242_v45 = vpop.eup %7241 }
 0xc3e   :  { %6856 = vmatmul.mubr.f32.gmra.mxu1 %v2358_v53  ;;  %v2354_v58 = vadd.f32 1.0, %v7242_v45  ;;  %v7438_v53 = vld [vmem:[%s11256_s4 + $0x8] sm:$0xff] }
 0xc3f   :  { %6858 = vmatprep.mubr.msk.f32.mxu1 %vm7491_vm0, %v11480_v13 }
 0xc40   :  { %v2359_v19 = vmul.f32 %v2354_v58, %v2319_v54  ;;  %v7439_v58 = vld [vmem:[%s11256_s4 + $0x10] sm:$0xff] }
 0xc42   :  { %6859 = vmatmul.mubr.f32.gmra.mxu1 %v2359_v19 }
 0xc43   :  { %6871 = vmatprep.mubr.msk.f32.mxu1 %vm7491_vm0, %v11480_v13 }
 0xcf2   :  { %v2426_v31 = vpop.f32.mrf.mxu1 }
 0xcf3   :  { %v2450_v14 = vadd.f32 %v2426_v31, %v9422_v3 }
 0xcf4   :  { %v6848_v15 = vpop.f32.mrf.mxu1 }
 0xcf5   :  { %v9638_v41 = vadd.f32 %v6270_v22, %v2450_v14 }
 0xcf6   :  { %v2431_v29 = vpop.f32.mrf.mxu1 }
 0xcf7   :  { %v2451_v10 = vadd.f32 %v2431_v29, %v9427_v23  ;;  %2511 = vrot.lane.b32.xlu0 %v9638_v41, %s7494_s22 }
 0xcf8   :  { %v6851_v20 = vpop.f32.mrf.mxu1 }
 0xcf9   :  { %v9643_v0 = vadd.f32 %v6270_v22, %v2451_v10 }
 0xcfa   :  { %v2436_v16 = vpop.f32.mrf.mxu1 }
 0xcfb   :  { %v2452_v30 = vadd.f32 %v2436_v16, %v9432_v60  ;;  %2513 = vrot.lane.b32.xlu1 %v9643_v0, %s7494_s22 }
 0xcfc   :  { %v6854_v43 = vpop.f32.mrf.mxu1 }
 0xcfd   :  { %v9648_v3 = vadd.f32 %v6270_v22, %v2452_v30 }
 0xcfe   :  { %v2441_v8 = vpop.f32.mrf.mxu1 }
 0xcff   :  { %v2453_v51 = vadd.f32 %v2441_v8, %v9437_v26  ;;  %2515 = vrot.lane.b32.xlu1 %v9648_v3, %s7494_s22  ;;  %v2472_v26 = vld [vmem:[%s11255_s3 + $0x8] sm:$0xff] }
 0xd00   :  { %v6857_v23 = vpop.f32.mrf.mxu1 }
 0xd01   :  { %v9653_v11 = vadd.f32 %v6270_v22, %v2453_v51 }
 0xd02   :  { %v2446_v50 = vpop.f32.mrf.mxu1 }
 0xd03   :  { %v2454_v34 = vadd.f32 %v2446_v50, %v9442_v1  ;;  %2517 = vrot.lane.b32.xlu0 %v9653_v11, %s7494_s22  ;;  %v2473_v1 = vld [vmem:[%s11255_s3 + $0x10] sm:$0xff] }
 0xd04   :  { %v6860_v60 = vpop.f32.mrf.mxu1 }
 0xd05   :  { %v9661_v49 = vadd.f32 %v6270_v22, %v2454_v34 }
 0xd07   :  { %2519 = vrot.lane.b32.xlu1 %v9661_v49, %s7494_s22  ;;  %2658 = vrot.lane.b32.xlu0 %v2471_v56, %s7494_s22 }
 0xd0b   :  { %2660 = vrot.lane.b32.xlu0 %v2472_v26, %s7494_s22 }
 0xd0f   :  { %2662 = vrot.lane.b32.xlu0 %v2473_v1, %s7494_s22 }
 0xd13   :  { %2664 = vrot.lane.b32.xlu0 %v2474_v38, %s7494_s22 }
 0xd17   :  { %2666 = vrot.lane.b32.xlu0 %v2475_v59, %s7494_s22 }
 0xd69   :  { %v2512_v46 = vpop.permute.xlu0 %2511 }
 0xd6a   :  { %v2527_v57 = vsel %vm2526_vm1, %v7437_v9, %v2512_v46  ;;  %v2476_v9 = vld [vmem:[%s11257_s5] sm:$0xff] }
 0xd6b   :  { %6271 = vmatmul.mubr.msk.f32.vlgmr.msra.gmra.mxu0 %vm750_vm11, %v2527_v57 }
 0xd6c   :  { %2628 = vmatprep.mubr.f32.mxu0 %v11480_v13 }
 0xd6d   :  { %v2514_v62 = vpop.permute.xlu1 %2513 }
 0xd6e   :  { %v2528_v45 = vsel %vm2526_vm1, %v7438_v53, %v2514_v62  ;;  %v2477_v53 = vld [vmem:[%s11257_s5 + $0x8] sm:$0xff] }
 0xd6f   :  { %6272 = vmatmul.mubr.msk.f32.gmra.mxu0 %vm750_vm11, %v2528_v45  ;;  %v2478_v45 = vld [vmem:[%s11257_s5 + $0x10] sm:$0xff] }
 0xd70   :  { %2634 = vmatprep.mubr.f32.mxu0 %v11480_v13 }
 0xd71   :  { %v2516_v54 = vpop.permute.xlu1 %2515 }
 0xd72   :  { %v2529_v19 = vsel %vm2526_vm1, %v7439_v58, %v2516_v54  ;;  %v2479_v54 = vld [vmem:[%s11257_s5 + $0x18] sm:$0xff]  ;;  %v2480_v58 = vld [vmem:[%s11257_s5 + $0x20] sm:$0x1] }
 0xd73   :  { %6273 = vmatmul.mubr.msk.f32.gmra.mxu0 %vm750_vm11, %v2529_v19 }
 0xd74   :  { %2640 = vmatprep.mubr.f32.mxu0 %v11480_v13 }
 0xd75   :  { %v2518_v35 = vpop.permute.xlu0 %2517 }
 0xd76   :  { %v2530_v4 = vsel %vm2526_vm1, %v7440_v55, %v2518_v35 }
 0xd77   :  { %6274 = vmatmul.mubr.msk.f32.gmra.mxu0 %vm750_vm11, %v2530_v4 }
 0xd78   :  { %2646 = vmatprep.mubr.f32.mxu0 %v11480_v13 }
 0xd79   :  { %v2520_v27 = vpop.permute.xlu1 %2519  ;;  %v2659_v28 = vpop.permute.xlu0 %2658 }
 0xd7a   :  { %v2531_v39 = vsel %vm2526_vm1, %v7441_v44, %v2520_v27 }
 0xd7b   :  { %6275 = vmatmul.mubr.msk.f32.gmra.mxu0 %vm750_vm11, %v2531_v39 }
 0xd7c   :  { %3090 = vmatprep.mubr.f32.mxu0 %v11480_v13 }
 0xd7d   :  { %v2661_v22 = vpop.permute.xlu0 %2660 }
 0xd81   :  { %v2663_v14 = vpop.permute.xlu0 %2662 }
 0xd85   :  { %v2665_v43 = vpop.permute.xlu0 %2664 }
 0xd89   :  { %v2667_v56 = vpop.permute.xlu0 %2666 }
 0xe2b   :  { %v2624_v21 = vpop.f32.mrf.mxu0 }
 0xe2c   :  { %v2625_v61 = vadd.f32 %v2624_v21, %v2536_v32 }
 0xe2d   :  { %v9719_v33 = vpop.f32.mrf.mxu0 }
 0xe2e   :  { %2683 = vrot.lane.b32.xlu1 %v2625_v61, %s7494_s22  ;;  %v9732_v31 = vadd.f32 %v2659_v28, %v2625_v61 }
 0xe2f   :  { %v2630_v7 = vpop.f32.mrf.mxu0 }
 0xe30   :  { %v2631_v5 = vadd.f32 %v2630_v7, %v2536_v32 }
 0xe31   :  { %v9722_v36 = vpop.f32.mrf.mxu0 }
 0xe32   :  { %2685 = vrot.lane.b32.xlu1 %v2631_v5, %s7494_s22  ;;  %v9737_v10 = vadd.f32 %v2661_v22, %v2631_v5 }
 0xe33   :  { %v2636_v2 = vpop.f32.mrf.mxu0 }
 0xe34   :  { %v2637_v24 = vadd.f32 %v2636_v2, %v2536_v32 }
 0xe35   :  { %v9725_v12 = vpop.f32.mrf.mxu0 }
 0xe36   :  { %2687 = vrot.lane.b32.xlu1 %v2637_v24, %s7494_s22  ;;  %v9746_v8 = vadd.f32 %v2663_v14, %v2637_v24 }
 0xe37   :  { %v2642_v52 = vpop.f32.mrf.mxu0 }
 0xe38   :  { %v2643_v47 = vadd.f32 %v2642_v52, %v2536_v32 }
 0xe39   :  { %v9728_v42 = vpop.f32.mrf.mxu0 }
 0xe3a   :  { %2689 = vrot.lane.b32.xlu1 %v2643_v47, %s7494_s22  ;;  %v9753_v34 = vadd.f32 %v2665_v43, %v2643_v47 }
 0xe3b   :  { %v2648_v37 = vpop.f32.mrf.mxu0 }
 0xe3c   :  { %v2649_v17 = vadd.f32 %v2648_v37, %v2536_v32 }
 0xe3e   :  { %2691 = vrot.lane.b32.xlu1 %v2649_v17, %s7494_s22  ;;  %v2677_v38 = vadd.f32 %v2667_v56, %v2649_v17 }
 0xea0   :  { %v2684_v15 = vpop.permute.xlu1 %2683 }
 0xea1   :  { %v9735_v29 = vmax.f32 %v9732_v31, %v2684_v15  ;;  %v11489_v15 = vld [vmem:[#allocation207_spill] sm:$0xff] }
 0xea3   :  { %v2738_v20 = vsub.f32 %v9732_v31, %v9735_v29  ;;  %2708 = vrot.lane.b32.xlu0 %v9735_v29, %s7494_s22 }
 0xea4   :  { %v2686_v16 = vpop.permute.xlu1 %2685 }
 0xea5   :  { %v9744_v30 = vmax.f32 %v9737_v10, %v2686_v16 }
 0xea7   :  { %v2739_v51 = vsub.f32 %v9737_v10, %v9744_v30  ;;  %2710 = vrot.lane.b32.xlu1 %v9744_v30, %s7494_s22 }
 0xea8   :  { %v2688_v23 = vpop.permute.xlu1 %2687 }
 0xea9   :  { %v2700_v50 = vmax.f32 %v9746_v8, %v2688_v23  ;;  %v2745_v29 = vmul.f32 1.442695, %v2739_v51 }
 0xeab   :  { %v2740_v60 = vsub.f32 %v9746_v8, %v2700_v50  ;;  %2712 = vrot.lane.b32.xlu0 %v2700_v50, %s7494_s22 }
 0xeac   :  { %v2690_v26 = vpop.permute.xlu1 %2689 }
 0xead   :  { %v2701_v1 = vmax.f32 %v9753_v34, %v2690_v26  ;;  %v2747_v30 = vmul.f32 1.442695, %v2740_v60 }
 0xeaf   :  { %v2741_v59 = vsub.f32 %v9753_v34, %v2701_v1  ;;  %2714 = vrot.lane.b32.xlu1 %v2701_v1, %s7494_s22 }
 0xeb0   :  { %v2692_v46 = vpop.permute.xlu1 %2691 }
 0xeb1   :  { %v2702_v57 = vmax.f32 %v2677_v38, %v2692_v46  ;;  %v2749_v43 = vmul.f32 1.442695, %v2741_v59 }
 0xeb3   :  { %v2742_v62 = vsub.f32 %v2677_v38, %v2702_v57  ;;  %2758 = vrot.lane.b32.xlu1 %v2476_v9, %s7494_s22  ;;  %2716 = vrot.lane.b32.xlu0 %v2702_v57, %s7494_s22 }
 0xeb5   :  { %v2751_v23 = vmul.f32 1.442695, %v2742_v62 }
 0xeb7   :  { %2760 = vrot.lane.b32.xlu1 %v2477_v53, %s7494_s22 }
 0xebb   :  { %2762 = vrot.lane.b32.xlu1 %v2478_v45, %s7494_s22 }
 0xebf   :  { %2764 = vrot.lane.b32.xlu1 %v2479_v54, %s7494_s22 }
 0xec3   :  { %2766 = vrot.lane.b32.xlu1 %v2480_v58, %s7494_s22 }
 0xf15   :  { %v2709_v19 = vpop.permute.xlu0 %2708 }
 0xf16   :  { %v2723_v35 = vsub.f32 %v2625_v61, %v2709_v19 }
 0xf18   :  { %v2728_v55 = vmul.f32 1.442695, %v2723_v35 }
 0xf19   :  { %v2711_v4 = vpop.permute.xlu1 %2710 }
 0xf1a   :  { %7243 = vpow2.f32 %v2728_v55  ;;  %v2724_v27 = vsub.f32 %v2631_v5, %v2711_v4 }
 0xf1c   :  { %v2730_v44 = vmul.f32 1.442695, %v2724_v27 }
 0xf1d   :  { %v2713_v39 = vpop.permute.xlu0 %2712 }
 0xf1e   :  { %7245 = vpow2.f32 %v2730_v44  ;;  %v2725_v32 = vsub.f32 %v2637_v24, %v2713_v39 }
 0xf20   :  { %v2732_v21 = vmul.f32 1.442695, %v2725_v32 }
 0xf21   :  { %v2715_v7 = vpop.permute.xlu1 %2714 }
 0xf22   :  { %7247 = vpow2.f32 %v2732_v21  ;;  %v2726_v2 = vsub.f32 %v2643_v47, %v2715_v7  ;;  %v2743_v47 = vmul.f32 1.442695, %v2738_v20 }
 0xf24   :  { %v2734_v52 = vmul.f32 1.442695, %v2726_v2 }
 0xf25   :  { %v2717_v37 = vpop.permute.xlu0 %2716  ;;  %v2759_v16 = vpop.permute.xlu1 %2758 }
 0xf26   :  { %7249 = vpow2.f32 %v2734_v52  ;;  %v2727_v28 = vsub.f32 %v2649_v17, %v2717_v37  ;;  %v2540_v17 = vrot.slane %v9715_v40, %v11489_v15 }
 0xf27   :  { %v7244_v22 = vpop.eup %7243 }
 0xf28   :  { %v2736_v31 = vmul.f32 1.442695, %v2727_v28  ;;  %2783 = vrot.lane.b32.xlu0 %v7244_v22, %s7494_s22  ;;  %v9789_v10 = vadd.f32 %v9719_v33, %v2540_v17  ;;  %v9793_v20 = vadd.f32 %v9722_v36, %v2540_v17  ;;  %v9797_v60 = vadd.f32 %v9725_v12, %v2540_v17  ;;  %v2650_v12 = vpop.f32.mrf.mxu0  ;;  %v2951_v28 = vld [vmem:[%s11262_s10 + $0x178] sm:$0xff]  ;;  %v2950_v22 = vld [vmem:[%s11262_s10 + $0x170] sm:$0xff] }
 0xf29   :  { %v2761_v8 = vpop.permute.xlu1 %2760  ;;  %v9802_v57 = vadd.f32 %v9728_v42, %v2540_v17  ;;  %v9807_v58 = vadd.f32 %v2650_v12, %v2540_v17  ;;  %3034 = vmatprep.subr.mxu0 %v2951_v28  ;;  %v2945_v17 = vld [vmem:[%s11262_s10 + $0x148] sm:$0xff] }
 0xf2a   :  { %7251 = vpow2.f32 %v2736_v31  ;;  %v2949_v31 = vld [vmem:[%s11262_s10 + $0x168] sm:$0xff]  ;;  %3035 = vmatpush1.msra.mxu0 %v2950_v22 }
 0xf2b   :  { %v7246_v61 = vpop.eup %7245  ;;  %7253 = vpow2.f32 %v2743_v47  ;;  %3036 = vmatprep.subr.mxu0 %v2949_v31  ;;  %v2946_v47 = vld [vmem:[%s11262_s10 + $0x150] sm:$0xff] }
 0xf2c   :  { %2785 = vrot.lane.b32.xlu0 %v7246_v61, %s7494_s22  ;;  %7255 = vpow2.f32 %v2745_v29  ;;  %v2944_v29 = vld [vmem:[%s11262_s10 + $0x140] sm:$0xff] }
 0xf2d   :  { %7257 = vtanh.f32 %v9789_v10  ;;  %v2763_v34 = vpop.permute.xlu1 %2762 }
 0xf2e   :  { %7259 = vpow2.f32 %v2747_v30  ;;  %v2942_v30 = vld [vmem:[%s11262_s10 + $0x130] sm:$0xff] }
 0xf2f   :  { %v7248_v5 = vpop.eup %7247  ;;  %7261 = vpow2.f32 %v2749_v43  ;;  %v2941_v43 = vld [vmem:[%s11262_s10 + $0x128] sm:$0xff] }
 0xf30   :  { %2787 = vrot.lane.b32.xlu0 %v7248_v5, %s7494_s22  ;;  %7263 = vpow2.f32 %v2751_v23  ;;  %v2939_v23 = vld [vmem:[%s11262_s10 + $0x118] sm:$0xff] }
 0xf31   :  { %7265 = vtanh.f32 %v9793_v20  ;;  %v2765_v9 = vpop.permute.xlu1 %2764 }
 0xf32   :  { %7267 = vtanh.f32 %v9797_v60 }
 0xf33   :  { %v7250_v24 = vpop.eup %7249  ;;  %7269 = vtanh.f32 %v9802_v57 }
 0xf34   :  { %2789 = vrot.lane.b32.xlu0 %v7250_v24, %s7494_s22  ;;  %7271 = vtanh.f32 %v9807_v58  ;;  %v2948_v24 = vld [vmem:[%s11262_s10 + $0x160] sm:$0xff] }
 0xf35   :  { %v2767_v42 = vpop.permute.xlu1 %2766  ;;  %3037 = vmatpush1.msra.mxu0 %v2948_v24 }
 0xf37   :  { %v7252_v14 = vpop.eup %7251 }
 0xf38   :  { %2791 = vrot.lane.b32.xlu0 %v7252_v14, %s7494_s22  ;;  %v7254_v50 = vpop.eup %7253  ;;  %v2947_v14 = vld [vmem:[%s11262_s10 + $0x158] sm:$0xff] }
 0xf39   :  { %v2773_v40 = vmul.f32 %v7254_v50, %v2759_v16  ;;  %v7256_v56 = vpop.eup %7255  ;;  %3038 = vmatprep.subr.mxu0 %v2947_v14  ;;  %v2943_v16 = vld [vmem:[%s11262_s10 + $0x138] sm:$0xff] }
 0xf3a   :  { %v2774_v26 = vmul.f32 %v7256_v56, %v2761_v8  ;;  %v7258_v1 = vpop.eup %7257  ;;  %3039 = vmatpush1.msra.mxu0 %v2946_v47  ;;  %v2940_v8 = vld [vmem:[%s11262_s10 + $0x120] sm:$0xff] }
 0xf3b   :  { %v7260_v36 = vpop.eup %7259  ;;  %3040 = vmatprep.subr.mxu0 %v2945_v17 }
 0xf3c   :  { %v2775_v62 = vmul.f32 %v7260_v36, %v2763_v34  ;;  %v7262_v54 = vpop.eup %7261  ;;  %3041 = vmatpush1.msra.mxu0 %v2944_v29  ;;  %v2936_v34 = vld [vmem:[%s11262_s10 + $0x100] sm:$0xff]  ;;  %v2468_v29 = vld [vmem:[%s11490_s28 + $0x10] sm:$0xff] }
 0xf3d   :  { %v2776_v19 = vmul.f32 %v7262_v54, %v2765_v9  ;;  %v7264_v4 = vpop.eup %7263  ;;  %3042 = vmatprep.subr.mxu0 %v2943_v16  ;;  %v6278_v9 = vmul.f32 -1.442695, %v9797_v60  ;;  %v2466_v60 = vld [vmem:[%s11490_s28] sm:$0xff] }
 0xf3e   :  { %v2777_v27 = vmul.f32 %v7264_v4, %v2767_v42  ;;  %v7266_v44 = vpop.eup %7265  ;;  %3043 = vmatpush1.msra.mxu0 %v2942_v30 }
 0xf3f   :  { %v7268_v7 = vpop.eup %7267  ;;  %3044 = vmatprep.subr.mxu0 %v2941_v43 }
 0xf40   :  { %v7270_v52 = vpop.eup %7269  ;;  %3045 = vmatpush1.msra.mxu0 %v2940_v8 }
 0xf41   :  { %v7272_v61 = vpop.eup %7271  ;;  %3046 = vmatprep.subr.mxu0 %v2939_v23 }
 0xf9a   :  { %v2784_v51 = vpop.permute.xlu0 %2783 }
 0xf9b   :  { %v2798_v33 = vadd.f32 %v2784_v51, %v2773_v40  ;;  %v2833_v59 = vmul.f32 %v7258_v1, %v2784_v51  ;;  %v2937_v40 = vld [vmem:[%s11262_s10 + $0x108] sm:$0xff]  ;;  %v2935_v51 = vld [vmem:[%s11262_s10 + $0xf8] sm:$0xff] }
 0xf9c   :  { %v2931_v1 = vld [vmem:[%s11262_s10 + $0xd8] sm:$0xff] }
 0xf9d   :  { %2898 = vrot.lane.b32.xlu1 %v2798_v33, %s7494_s22  ;;  %v2934_v33 = vld [vmem:[%s11262_s10 + $0xf0] sm:$0xff] }
 0xf9e   :  { %v2786_v38 = vpop.permute.xlu0 %2785 }
 0xf9f   :  { %v2799_v46 = vadd.f32 %v2786_v38, %v2774_v26  ;;  %v2834_v32 = vmul.f32 %v7266_v44, %v2786_v38  ;;  %v2932_v26 = vld [vmem:[%s11262_s10 + $0xe0] sm:$0xff]  ;;  %v2930_v38 = vld [vmem:[%s11262_s10 + $0xd0] sm:$0xff] }
 0xfa1   :  { %2900 = vrot.lane.b32.xlu0 %v2799_v46, %s7494_s22  ;;  %2843 = vrot.lane.b32.xlu1 %v2833_v59, %s7494_s22  ;;  %v2929_v59 = vld [vmem:[%s11262_s10 + $0xc8] sm:$0xff]  ;;  %v6276_v46 = vmul.f32 -1.442695, %v9789_v10 }
 0xfa2   :  { %v2788_v53 = vpop.permute.xlu0 %2787 }
 0xfa3   :  { %v2800_v45 = vadd.f32 %v2788_v53, %v2775_v62  ;;  %v2835_v2 = vmul.f32 %v7268_v7, %v2788_v53  ;;  %7273 = vpow2.f32 %v6276_v46  ;;  %v6279_v62 = vmul.f32 -1.442695, %v9802_v57  ;;  %v2928_v57 = vld [vmem:[%s11262_s10 + $0xc0] sm:$0xff] }
 0xfa4   :  { %v6280_v53 = vmul.f32 -1.442695, %v9807_v58 }
 0xfa5   :  { %2808 = vrot.lane.b32.xlu0 %v7254_v50, %s7494_s22  ;;  %2902 = vrot.lane.b32.xlu1 %v2800_v45, %s7494_s22  ;;  %v2938_v50 = vld [vmem:[%s11262_s10 + $0x110] sm:$0xff] }
 0xfa6   :  { %v2790_v35 = vpop.permute.xlu0 %2789  ;;  %3047 = vmatpush1.msra.mxu0 %v2938_v50 }
 0xfa7   :  { %v2801_v55 = vadd.f32 %v2790_v35, %v2776_v19  ;;  %v2836_v37 = vmul.f32 %v7270_v52, %v2790_v35  ;;  %3048 = vmatprep.subr.mxu0 %v2937_v40  ;;  %v2469_v40 = vld [vmem:[%s11490_s28 + $0x18] sm:$0xff] }
 0xfa8   :  { %3049 = vmatpush1.msra.mxu0 %v2936_v34 }
 0xfa9   :  { %2904 = vrot.lane.b32.xlu0 %v2801_v55, %s7494_s22  ;;  %2810 = vrot.lane.b32.xlu1 %v7256_v56, %s7494_s22  ;;  %v2933_v56 = vld [vmem:[%s11262_s10 + $0xe8] sm:$0xff] }
 0xfaa   :  { %v2792_v39 = vpop.permute.xlu0 %2791  ;;  %3050 = vmatprep.subr.mxu0 %v2935_v51 }
 0xfab   :  { %v2802_v21 = vadd.f32 %v2792_v39, %v2777_v27  ;;  %v2837_v5 = vmul.f32 %v7272_v61, %v2792_v39  ;;  %3051 = vmatpush1.msra.mxu0 %v2934_v33 }
 0xfac   :  { %3052 = vmatprep.subr.mxu0 %v2933_v56 }
 0xfad   :  { %2845 = vrot.lane.b32.xlu0 %v2834_v32, %s7494_s22  ;;  %2906 = vrot.lane.b32.xlu1 %v2802_v21, %s7494_s22  ;;  %v2467_v32 = vld [vmem:[%s11490_s28 + $0x8] sm:$0xff] }
 0xfae   :  { %3053 = vmatpush1.msra.mxu0 %v2932_v26 }
 0xfaf   :  { %3054 = vmatprep.subr.mxu0 %v2931_v1 }
 0xfb0   :  { %3055 = vmatpush1.msra.mxu0 %v2930_v38  ;;  %v7274_v12 = vpop.eup %7273 }
 0xfb1   :  { %2812 = vrot.lane.b32.xlu0 %v7260_v36, %s7494_s22  ;;  %2847 = vrot.lane.b32.xlu1 %v2835_v2, %s7494_s22  ;;  %v6277_v36 = vmul.f32 -1.442695, %v9793_v20  ;;  %v2878_v45 = vadd.f32 1.0, %v7274_v12 }
 0xfb2   :  { %3056 = vmatprep.subr.mxu0 %v2929_v59  ;;  %v2470_v59 = vld [vmem:[%s11490_s28 + $0x20] sm:$0x1] }
 0xfb3   :  { %7275 = vpow2.f32 %v6277_v36  ;;  %3057 = vmatpush1.msra.mxu0 %v2928_v57 }
 0xfb4   :  { %7277 = vpow2.f32 %v6278_v9  ;;  %6886 = vmatprep.subr.mxu0 %v11480_v13 }
 0xfb5   :  { %2814 = vrot.lane.b32.xlu0 %v7262_v54, %s7494_s22  ;;  %2849 = vrot.lane.b32.xlu1 %v2836_v37, %s7494_s22  ;;  %7279 = vpow2.f32 %v6279_v62 }
 0xfb6   :  { %7281 = vpow2.f32 %v6280_v53 }
 0xfb9   :  { %2816 = vrot.lane.b32.xlu0 %v7264_v4, %s7494_s22  ;;  %2851 = vrot.lane.b32.xlu1 %v2837_v5, %s7494_s22 }
 0xfc0   :  { %v7276_v54 = vpop.eup %7275 }
 0xfc1   :  { %v2879_v10 = vadd.f32 1.0, %v7276_v54  ;;  %v7278_v20 = vpop.eup %7277 }
 0xfc2   :  { %v2880_v4 = vadd.f32 1.0, %v7278_v20  ;;  %v7280_v44 = vpop.eup %7279 }
 0xfc3   :  { %v7282_v7 = vpop.eup %7281  ;;  %v2881_v2 = vadd.f32 1.0, %v7280_v44 }
 0xfc4   :  { %v2882_v24 = vadd.f32 1.0, %v7282_v7 }
0x100f   :  { %v2899_v19 = vpop.permute.xlu1 %2898 }
0x1010   :  { %7283 = vrcp.f32 %v2899_v19 }
0x1011   :  { %7285 = vrcp.f32 %v2878_v45 }
0x1013   :  { %v2901_v42 = vpop.permute.xlu0 %2900  ;;  %v2844_v35 = vpop.permute.xlu1 %2843 }
0x1014   :  { %7287 = vrcp.f32 %v2901_v42 }
0x1015   :  { %7289 = vrcp.f32 %v2879_v10 }
0x1017   :  { %v2809_v58 = vpop.permute.xlu0 %2808  ;;  %v2903_v55 = vpop.permute.xlu1 %2902 }
0x1018   :  { %v2823_v27 = vmul.f32 %v2809_v58, %v2466_v60  ;;  %7291 = vrcp.f32 %v2903_v55 }
0x1019   :  { %7293 = vrcp.f32 %v2880_v4 }
0x101a   :  { %v2858_v52 = vadd.f32 %v2844_v35, %v2823_v27 }
0x101b   :  { %v2905_v39 = vpop.permute.xlu0 %2904  ;;  %v2811_v21 = vpop.permute.xlu1 %2810 }
0x101c   :  { %7295 = vrcp.f32 %v2905_v39  ;;  %v2824_v22 = vmul.f32 %v2811_v21, %v2467_v32 }
0x101d   :  { %v7284_v37 = vpop.eup %7283  ;;  %7297 = vrcp.f32 %v2881_v2 }
0x101e   :  { %v2914_v28 = vmul.f32 %v7284_v37, %v2858_v52  ;;  %v7286_v31 = vpop.eup %7285 }
0x101f   :  { %v2846_v61 = vpop.permute.xlu0 %2845  ;;  %v2907_v5 = vpop.permute.xlu1 %2906 }
0x1020   :  { %v2859_v14 = vadd.f32 %v2846_v61, %v2824_v22  ;;  %v2923_v47 = vmul.f32 %v7286_v31, %v2914_v28  ;;  %7299 = vrcp.f32 %v2907_v5  ;;  %v2952_v22 = vld [vmem:[%s11267_s15 + $0x6] sm:$0x3] }
0x1021   :  { %v7288_v17 = vpop.eup %7287  ;;  %7301 = vrcp.f32 %v2882_v24  ;;  %v3004_v5 = vrot.slane %v2952_v22, %v11488_v48 }
0x1022   :  { %v2916_v16 = vmul.f32 %v7288_v17, %v2859_v14  ;;  %2980 = vrot.lane.b32.xlu0 %v2923_v47, %s7492_s26  ;;  %v7290_v30 = vpop.eup %7289 }
0x1023   :  { %v2813_v43 = vpop.permute.xlu0 %2812  ;;  %v2848_v8 = vpop.permute.xlu1 %2847 }
0x1024   :  { %v2924_v23 = vmul.f32 %v7290_v30, %v2916_v16  ;;  %v2825_v50 = vmul.f32 %v2813_v43, %v2468_v29 }
0x1025   :  { %v7292_v51 = vpop.eup %7291 }
0x1026   :  { %v2860_v34 = vadd.f32 %v2848_v8, %v2825_v50  ;;  %2982 = vrot.lane.b32.xlu1 %v2924_v23, %s7492_s26  ;;  %v7294_v38 = vpop.eup %7293  ;;  %v3008_v23 = vrot.slane %v2952_v22, %v11489_v15 }
0x1027   :  { %v2815_v33 = vpop.permute.xlu0 %2814  ;;  %v2850_v56 = vpop.permute.xlu1 %2849 }
0x1028   :  { %v2918_v26 = vmul.f32 %v7292_v51, %v2860_v34  ;;  %v2826_v1 = vmul.f32 %v2815_v33, %v2469_v40 }
0x1029   :  { %v7296_v9 = vpop.eup %7295 }
0x102a   :  { %v2925_v46 = vmul.f32 %v7294_v38, %v2918_v26  ;;  %v2861_v36 = vadd.f32 %v2850_v56, %v2826_v1  ;;  %v7298_v45 = vpop.eup %7297 }
0x102b   :  { %v2817_v62 = vpop.permute.xlu0 %2816  ;;  %v2852_v54 = vpop.permute.xlu1 %2851 }
0x102c   :  { %v2920_v12 = vmul.f32 %v7296_v9, %v2861_v36  ;;  %v2827_v53 = vmul.f32 %v2817_v62, %v2470_v59  ;;  %2984 = vrot.lane.b32.xlu0 %v2925_v46, %s7492_s26 }
0x102d   :  { %v7300_v42 = vpop.eup %7299 }
0x102e   :  { %v2926_v19 = vmul.f32 %v7298_v45, %v2920_v12  ;;  %v2862_v10 = vadd.f32 %v2852_v54, %v2827_v53  ;;  %v7302_v20 = vpop.eup %7301 }
0x1030   :  { %v2922_v35 = vmul.f32 %v7300_v42, %v2862_v10  ;;  %2986 = vrot.lane.b32.xlu1 %v2926_v19, %s7492_s26 }
0x1032   :  { %v2927_v60 = vmul.f32 %v7302_v20, %v2922_v35 }
0x1034   :  { %2988 = vrot.lane.b32.xlu0 %v2927_v60, %s7492_s26 }
0x1094   :  { %v2981_v57 = vpop.permute.xlu0 %2980 }
0x1095   :  { %v2995_v58 = vsel %vm556_vm2, %v9638_v41, %v2981_v57 }
0x1096   :  { %6281 = vmatmul.mubr.msk.f32.vlgmr.msra.gmra.mxu0 %vm750_vm11, %v2995_v58 }
0x1097   :  { %3096 = vmatprep.mubr.f32.mxu0 %v11480_v13 }
0x1098   :  { %v2983_v55 = vpop.permute.xlu1 %2982 }
0x1099   :  { %v2996_v4 = vsel %vm556_vm2, %v9643_v0, %v2983_v55 }
0x109a   :  { %6282 = vmatmul.mubr.msk.f32.gmra.mxu0 %vm750_vm11, %v2996_v4 }
0x109b   :  { %3102 = vmatprep.mubr.f32.mxu0 %v11480_v13 }
0x109e   :  { %v2985_v27 = vpop.permute.xlu0 %2984 }
0x109f   :  { %v2997_v44 = vsel %vm556_vm2, %v9648_v3, %v2985_v27 }
0x10a0   :  { %6283 = vmatmul.mubr.msk.f32.gmra.mxu0 %vm750_vm11, %v2997_v44 }
0x10a1   :  { %3108 = vmatprep.mubr.f32.mxu0 %v11480_v13 }
0x10a2   :  { %v2987_v39 = vpop.permute.xlu1 %2986 }
0x10a3   :  { %v2998_v32 = vsel %vm556_vm2, %v9653_v11, %v2987_v39 }
0x10a4   :  { %6284 = vmatmul.mubr.msk.f32.gmra.mxu0 %vm750_vm11, %v2998_v32 }
0x10a5   :  { %3114 = vmatprep.mubr.f32.mxu0 %v11480_v13 }
0x10a6   :  { %v2989_v21 = vpop.permute.xlu0 %2988 }
0x10a7   :  { %v2999_v7 = vsel %vm556_vm2, %v9661_v49, %v2989_v21 }
0x10a8   :  { %6285 = vmatmul.mubr.msk.f32.gmra.mxu0 %vm750_vm11, %v2999_v7 }
0x10a9   :  { %6896 = vmatprep.mubr.msk.f32.mxu0 %vm7491_vm0, %v11480_v13 }
0x1156   :  { %v3092_v2 = vpop.f32.mrf.mxu0 }
0x1157   :  { %v9957_v30 = vadd.f32 %v3092_v2, %v3004_v5 }
0x1158   :  { %v3094_v52 = vpop.f32.mrf.mxu0 }
0x1159   :  { %v9982_v1 = vadd.f32 %v3094_v52, %v3008_v23 }
0x115a   :  { %v3098_v37 = vpop.f32.mrf.mxu0 }
0x115b   :  { %v9949_v29 = vadd.f32 %v3098_v37, %v3004_v5  ;;  %v3416_v59 = vsel %vm556_vm2, %v9982_v1, 0.0 }
0x115c   :  { %v3100_v28 = vpop.f32.mrf.mxu0 }
0x115d   :  { %v9978_v56 = vadd.f32 %v3100_v28, %v3008_v23 }
0x115f   :  { %v3419_v38 = vsel %vm556_vm2, %v9978_v56, 0.0 }
0x1160   :  { %v3104_v31 = vpop.f32.mrf.mxu0 }
0x1161   :  { %v9959_v43 = vadd.f32 %v3104_v31, %v3004_v5 }
0x1162   :  { %v3106_v61 = vpop.f32.mrf.mxu0 }
0x1163   :  { %v9974_v51 = vadd.f32 %v3106_v61, %v3008_v23 }
0x1164   :  { %v3110_v24 = vpop.f32.mrf.mxu0 }
0x1165   :  { %v9945_v14 = vadd.f32 %v3110_v24, %v3004_v5  ;;  %v3422_v26 = vsel %vm556_vm2, %v9974_v51, 0.0 }
0x1166   :  { %v3112_v47 = vpop.f32.mrf.mxu0 }
0x1167   :  { %3322 = vrot.lane.b32.xlu0 %v9945_v14, %s7493_s21  ;;  %v9972_v34 = vadd.f32 %v3112_v47, %v3008_v23 }
0x1168   :  { %v3116_v17 = vpop.f32.mrf.mxu0 }
0x1169   :  { %v9951_v16 = vadd.f32 %v3116_v17, %v3004_v5  ;;  %v3425_v33 = vsel %vm556_vm2, %v9972_v34, 0.0 }
0x116a   :  { %v3118_v8 = vpop.f32.mrf.mxu0 }
0x116b   :  { %3324 = vrot.lane.b32.xlu1 %v9951_v16, %s7493_s21  ;;  %3318 = vrot.lane.b32.xlu0 %v9949_v29, %s7493_s21  ;;  %v9968_v50 = vadd.f32 %v3118_v8, %v3008_v23 }
0x116d   :  { %v3428_v40 = vsel %vm873_vm12, %v9968_v50, 0.0 }
0x116f   :  { %3320 = vrot.lane.b32.xlu1 %v9959_v43, %s7493_s21  ;;  %3191 = vrot.lane.b32.xlu0 %v9957_v30, %s7492_s26 }
0x1173   :  { %3316 = vrot.lane.b32.xlu1 %v9957_v30, %s7493_s21 }
0x118e   :  { %3429 = vadd.xlane.f32.xlu0 %v3428_v40 }
0x1197   :  { %3426 = vadd.xlane.f32.xlu1 %v3425_v33 }
0x119b   :  { %3423 = vadd.xlane.f32.xlu1 %v3422_v26 }
0x119f   :  { %3420 = vadd.xlane.f32.xlu1 %v3419_v38 }
0x11a3   :  { %3417 = vadd.xlane.f32.xlu1 %v3416_v59 }
0x11d9   :  { %v3323_v46 = vpop.permute.xlu0 %3322 }
0x11da   :  { %v3340_v35 = vsel %vm556_vm2, %v3323_v46, 0.0 }
0x11dd   :  { %v3325_v36 = vpop.permute.xlu1 %3324  ;;  %v3319_v62 = vpop.permute.xlu0 %3318 }
0x11de   :  { %v3343_v9 = vsel %vm873_vm12, %v3325_v36, 0.0  ;;  %v3334_v10 = vsel %vm556_vm2, %v3319_v62, 0.0 }
0x11df   :  { %3344 = vadd.xlane.f32.xlu1 %v3343_v9 }
0x11e1   :  { %v3321_v12 = vpop.permute.xlu1 %3320  ;;  %v3192_v54 = vpop.permute.xlu0 %3191 }
0x11e2   :  { %v3206_v19 = vsel %vm556_vm2, %v3192_v54, 0.0  ;;  %v3337_v42 = vsel %vm556_vm2, %v3321_v12, 0.0 }
0x11e5   :  { %v3317_v53 = vpop.permute.xlu1 %3316 }
0x11e6   :  { %v3331_v45 = vsel %vm556_vm2, %v3317_v53, 0.0 }
0x11e7   :  { %3332 = vadd.xlane.f32.xlu0 %v3331_v45 }
0x11eb   :  { %3207 = vadd.xlane.f32.xlu0 %v3206_v19 }
0x11ef   :  { %3335 = vadd.xlane.f32.xlu0 %v3334_v10 }
0x11f3   :  { %3338 = vadd.xlane.f32.xlu0 %v3337_v42 }
0x11f7   :  { %3341 = vadd.xlane.f32.xlu0 %v3340_v35 }
0x1217   :  { %v3430_v57 = vpop.xlane.xlu0 %3429 }
0x1218   :  { %v3435_v27 = vmul.f32 0.03125, %v3430_v57 }
0x121a   :  { %v10003_v52 = vsub.f32 %v9968_v50, %v3435_v27 }
0x121c   :  { %v3445_v17 = vmul.f32 %v10003_v52, %v10003_v52 }
0x121e   :  { %v3458_v23 = vsel %vm873_vm12, %v3445_v17, 0.0 }
0x1220   :  { %v3427_v20 = vpop.xlane.xlu1 %3426 }
0x1221   :  { %v3434_v44 = vmul.f32 0.03125, %v3427_v20 }
0x1223   :  { %v10006_v37 = vsub.f32 %v9972_v34, %v3434_v44  ;;  %v3121_v44 = vsel %vm556_vm2, %v9957_v30, 0.0 }
0x1224   :  { %v3424_v60 = vpop.xlane.xlu1 %3423 }
0x1225   :  { %v3433_v58 = vmul.f32 0.03125, %v3424_v60  ;;  %v3444_v47 = vmul.f32 %v10006_v37, %v10006_v37 }
0x1227   :  { %v9995_v39 = vsub.f32 %v9974_v51, %v3433_v58  ;;  %v3455_v8 = vsel %vm556_vm2, %v3444_v47, 0.0 }
0x1228   :  { %v3421_v55 = vpop.xlane.xlu1 %3420 }
0x1229   :  { %v3432_v4 = vmul.f32 0.03125, %v3421_v55  ;;  %v3443_v31 = vmul.f32 %v9995_v39, %v9995_v39 }
0x122b   :  { %v9998_v32 = vsub.f32 %v9978_v56, %v3432_v4  ;;  %v3452_v24 = vsel %vm556_vm2, %v3443_v31, 0.0 }
0x122c   :  { %v3418_v21 = vpop.xlane.xlu1 %3417 }
0x122d   :  { %v3431_v7 = vmul.f32 0.03125, %v3418_v21  ;;  %v3442_v2 = vmul.f32 %v9998_v32, %v9998_v32 }
0x122f   :  { %v10009_v28 = vsub.f32 %v9982_v1, %v3431_v7  ;;  %v3449_v22 = vsel %vm556_vm2, %v3442_v2, 0.0 }
0x1230   :  { %3450 = vadd.xlane.f32.xlu0 %v3449_v22 }
0x1231   :  { %v3441_v61 = vmul.f32 %v10009_v28, %v10009_v28 }
0x1233   :  { %v3446_v5 = vsel %vm556_vm2, %v3441_v61, 0.0 }
0x1234   :  { %3447 = vadd.xlane.f32.xlu1 %v3446_v5  ;;  %3453 = vadd.xlane.f32.xlu0 %v3452_v24 }
0x1238   :  { %3456 = vadd.xlane.f32.xlu1 %v3455_v8  ;;  %3459 = vadd.xlane.f32.xlu0 %v3458_v23 }
0x1268   :  { %v3345_v36 = vpop.xlane.xlu1 %3344 }
0x1269   :  { %v3350_v12 = vmul.f32 0.03125, %v3345_v36 }
0x126b   :  { %v10040_v10 = vsub.f32 %v9951_v16, %v3350_v12 }
0x126d   :  { %v3360_v57 = vmul.f32 %v10040_v10, %v10040_v10 }
0x1270   :  { %v3333_v40 = vpop.xlane.xlu0 %3332 }
0x1271   :  { %v3346_v33 = vmul.f32 0.03125, %v3333_v40 }
0x1273   :  { %v10025_v26 = vsub.f32 %v9957_v30, %v3346_v33 }
0x1274   :  { %v3208_v38 = vpop.xlane.xlu0 %3207 }
0x1275   :  { %v3356_v59 = vmul.f32 %v10025_v26, %v10025_v26  ;;  %v3221_v46 = vmul.f32 0.03125, %v3208_v38 }
0x1277   :  { %v10030_v9 = vsub.f32 %v9957_v30, %v3221_v46  ;;  %3366 = vrot.lane.b32.xlu0 %v3356_v59, %s7493_s21 }
0x1278   :  { %v3336_v62 = vpop.xlane.xlu0 %3335 }
0x1279   :  { %v3231_v53 = vmul.f32 %v10030_v9, %v10030_v9  ;;  %v3347_v45 = vmul.f32 0.03125, %v3336_v62 }
0x127b   :  { %v10036_v54 = vsub.f32 %v9949_v29, %v3347_v45  ;;  %3241 = vrot.lane.b32.xlu0 %v3231_v53, %s7492_s26 }
0x127c   :  { %v3339_v19 = vpop.xlane.xlu0 %3338 }
0x127d   :  { %v3357_v42 = vmul.f32 %v10036_v54, %v10036_v54  ;;  %v3348_v35 = vmul.f32 0.03125, %v3339_v19 }
0x127f   :  { %v10045_v20 = vsub.f32 %v9959_v43, %v3348_v35  ;;  %3368 = vrot.lane.b32.xlu1 %v3357_v42, %s7493_s21 }
0x1280   :  { %v3342_v60 = vpop.xlane.xlu0 %3341 }
0x1281   :  { %v3358_v58 = vmul.f32 %v10045_v20, %v10045_v20  ;;  %v3349_v55 = vmul.f32 0.03125, %v3342_v60 }
0x1283   :  { %v10053_v4 = vsub.f32 %v9945_v14, %v3349_v55  ;;  %3374 = vrot.lane.b32.xlu1 %v3360_v57, %s7493_s21  ;;  %3370 = vrot.lane.b32.xlu0 %v3358_v58, %s7493_s21 }
0x1285   :  { %v3359_v27 = vmul.f32 %v10053_v4, %v10053_v4 }
0x1287   :  { %3372 = vrot.lane.b32.xlu0 %v3359_v27, %s7493_s21 }
0x12a7   :  { %3122 = vadd.xlane.f32.xlu1 %v3121_v44 }
0x12b9   :  { %v3451_v21 = vpop.xlane.xlu0 %3450 }
0x12ba   :  { %v3462_v7 = vmul.f32 0.03125, %v3451_v21 }
0x12bc   :  { %v3467_v2 = vadd.f32 1e-05, %v3462_v7 }
0x12bd   :  { %v3448_v22 = vpop.xlane.xlu1 %3447  ;;  %v3454_v31 = vpop.xlane.xlu0 %3453 }
0x12be   :  { %7303 = vrsqrt.f32 %v3467_v2  ;;  %v3461_v61 = vmul.f32 0.03125, %v3448_v22  ;;  %v3463_v5 = vmul.f32 0.03125, %v3454_v31 }
0x12c0   :  { %v3466_v24 = vadd.f32 1e-05, %v3461_v61  ;;  %v3468_v47 = vadd.f32 1e-05, %v3463_v5 }
0x12c1   :  { %v3457_v17 = vpop.xlane.xlu1 %3456  ;;  %v3460_v8 = vpop.xlane.xlu0 %3459 }
0x12c2   :  { %7305 = vrsqrt.f32 %v3466_v24  ;;  %v3464_v23 = vmul.f32 0.03125, %v3457_v17  ;;  %v3465_v40 = vmul.f32 0.03125, %v3460_v8 }
0x12c3   :  { %7307 = vrsqrt.f32 %v3468_v47 }
0x12c4   :  { %v3469_v33 = vadd.f32 1e-05, %v3464_v23  ;;  %v3470_v38 = vadd.f32 1e-05, %v3465_v40 }
0x12c6   :  { %7309 = vrsqrt.f32 %v3469_v33 }
0x12c7   :  { %7311 = vrsqrt.f32 %v3470_v38 }
0x12cb   :  { %v7304_v59 = vpop.eup %7303 }
0x12cc   :  { %v3477_v46 = vmul.f32 %v7304_v59, %v9998_v32 }
0x12ce   :  { %3488 = vrot.lane.b32.xlu1 %v3477_v46, %s7492_s26 }
0x12cf   :  { %v7306_v36 = vpop.eup %7305 }
0x12d0   :  { %v7308_v62 = vpop.eup %7307  ;;  %v3476_v12 = vmul.f32 %v7306_v36, %v10009_v28 }
0x12d1   :  { %v3478_v53 = vmul.f32 %v7308_v62, %v9995_v39 }
0x12d2   :  { %3486 = vrot.lane.b32.xlu0 %v3476_v12, %s7492_s26 }
0x12d3   :  { %v7310_v45 = vpop.eup %7309  ;;  %3490 = vrot.lane.b32.xlu1 %v3478_v53, %s7492_s26 }
0x12d4   :  { %v7312_v19 = vpop.eup %7311  ;;  %v3479_v42 = vmul.f32 %v7310_v45, %v10006_v37 }
0x12d5   :  { %v3480_v35 = vmul.f32 %v7312_v19, %v10003_v52 }
0x12d6   :  { %3492 = vrot.lane.b32.xlu0 %v3479_v42, %s7492_s26 }
0x12d7   :  { %3494 = vrot.lane.b32.xlu1 %v3480_v35, %s7492_s26 }
0x12e9   :  { %v3367_v32 = vpop.permute.xlu0 %3366 }
0x12ea   :  { %v3381_v39 = vsel %vm556_vm2, %v3367_v32, 0.0 }
0x12ed   :  { %v3242_v60 = vpop.permute.xlu0 %3241 }
0x12ee   :  { %v3256_v28 = vsel %vm556_vm2, %v3242_v60, 0.0 }
0x12f1   :  { %v3369_v57 = vpop.permute.xlu1 %3368 }
0x12f2   :  { %v3384_v55 = vsel %vm556_vm2, %v3369_v57, 0.0 }
0x12f5   :  { %3257 = vadd.xlane.f32.xlu0 %v3256_v28  ;;  %v3371_v58 = vpop.permute.xlu0 %3370  ;;  %v3375_v44 = vpop.permute.xlu1 %3374 }
0x12f6   :  { %v3387_v37 = vsel %vm556_vm2, %v3371_v58, 0.0  ;;  %v3393_v57 = vsel %vm873_vm12, %v3375_v44, 0.0 }
0x12f9   :  { %v3373_v52 = vpop.permute.xlu0 %3372 }
0x12fa   :  { %v3390_v27 = vsel %vm556_vm2, %v3373_v52, 0.0 }
0x12fb   :  { %3382 = vadd.xlane.f32.xlu1 %v3381_v39 }
0x12ff   :  { %3385 = vadd.xlane.f32.xlu1 %v3384_v55 }
0x1303   :  { %3388 = vadd.xlane.f32.xlu1 %v3387_v37 }
0x1307   :  { %3391 = vadd.xlane.f32.xlu1 %v3390_v27 }
0x130b   :  { %3619 = vrot.lane.b32.xlu0 %v9968_v50, %s7493_s21 }
0x130f   :  { %3617 = vrot.lane.b32.xlu0 %v9972_v34, %s7493_s21 }
0x1313   :  { %3615 = vrot.lane.b32.xlu0 %v9974_v51, %s7493_s21 }
0x1317   :  { %3611 = vrot.lane.b32.xlu0 %v9982_v1, %s7493_s21 }
0x131b   :  { %3195 = vrot.lane.b32.xlu0 %v9959_v43, %s7492_s26 }
0x131f   :  { %3514 = vrot.lane.b32.xlu0 %v9951_v16, %s7494_s22 }
0x1323   :  { %3512 = vrot.lane.b32.xlu0 %v9945_v14, %s7494_s22 }
0x1327   :  { %3199 = vrot.lane.b32.xlu0 %v9951_v16, %s7492_s26 }
0x1330   :  { %v3123_v21 = vpop.xlane.xlu1 %3122 }
0x1331   :  { %v3136_v7 = vmul.f32 0.03125, %v3123_v21 }
0x1333   :  { %v10094_v2 = vsub.f32 %v9957_v30, %v3136_v7 }
0x1335   :  { %v3146_v22 = vmul.f32 %v10094_v2, %v10094_v2 }
0x1337   :  { %v3151_v31 = vsel %vm556_vm2, %v3146_v22, 0.0 }
0x1338   :  { %3152 = vadd.xlane.f32.xlu1 %v3151_v31 }
0x1340   :  { %v10105_v61 = vpop.permute.xlu1 %3488 }
0x1344   :  { %v3487_v5 = vpop.permute.xlu0 %3486 }
0x1345   :  { %v10107_v24 = vpop.permute.xlu1 %3490 }
0x1348   :  { %v10109_v47 = vpop.permute.xlu0 %3492 }
0x1349   :  { %3613 = vrot.lane.b32.xlu1 %v9978_v56, %s7493_s21  ;;  %v10111_v8 = vpop.permute.xlu1 %3494 }
0x134d   :  { %3193 = vrot.lane.b32.xlu1 %v9949_v29, %s7492_s26 }
0x1351   :  { %3197 = vrot.lane.b32.xlu1 %v9945_v14, %s7492_s26 }
0x137e   :  { %v3258_v17 = vpop.xlane.xlu0 %3257 }
0x137f   :  { %v3271_v60 = vmul.f32 0.03125, %v3258_v17 }
0x1381   :  { %v3276_v58 = vadd.f32 1e-05, %v3271_v60 }
0x1382   :  { %v3620_v23 = vpop.permute.xlu0 %3619 }
0x1383   :  { %v3638_v40 = vsel %vm873_vm12, %v3620_v23, 0.0 }
0x1384   :  { %v3383_v33 = vpop.xlane.xlu1 %3382  ;;  %3639 = vadd.xlane.f32.xlu1 %v3638_v40 }
0x1385   :  { %v3396_v38 = vmul.f32 0.03125, %v3383_v33 }
0x1386   :  { %v3618_v59 = vpop.permute.xlu0 %3617 }
0x1387   :  { %v3401_v46 = vadd.f32 1e-05, %v3396_v38  ;;  %v3635_v36 = vsel %vm556_vm2, %v3618_v59, 0.0 }
0x1388   :  { %3636 = vadd.xlane.f32.xlu0 %v3635_v36  ;;  %v3386_v35 = vpop.xlane.xlu1 %3385 }
0x1389   :  { %7313 = vrsqrt.f32 %v3401_v46  ;;  %v3397_v36 = vmul.f32 0.03125, %v3386_v35 }
0x138a   :  { %v3616_v62 = vpop.permute.xlu0 %3615  ;;  %7315 = vrsqrt.f32 %v3276_v58 }
0x138b   :  { %v3632_v12 = vsel %vm556_vm2, %v3616_v62, 0.0  ;;  %v3402_v62 = vadd.f32 1e-05, %v3397_v36 }
0x138c   :  { %3633 = vadd.xlane.f32.xlu0 %v3632_v12  ;;  %v3389_v32 = vpop.xlane.xlu1 %3388 }
0x138d   :  { %7317 = vrsqrt.f32 %v3402_v62 }
0x138e   :  { %v3612_v39 = vpop.permute.xlu0 %3611 }
0x138f   :  { %v3626_v46 = vsel %vm556_vm2, %v3612_v39, 0.0 }
0x1390   :  { %v3392_v28 = vpop.xlane.xlu1 %3391 }
0x1391   :  { %v3399_v58 = vmul.f32 0.03125, %v3392_v28 }
0x1395   :  { %3510 = vrot.lane.b32.xlu1 %v9959_v43, %s7494_s22 }
0x1396   :  { %v7314_v53 = vpop.eup %7313 }
0x1397   :  { %v3411_v45 = vmul.f32 %v7314_v53, %v10025_v26  ;;  %v3196_v26 = vpop.permute.xlu0 %3195  ;;  %v3398_v53 = vmul.f32 0.03125, %v3389_v32 }
0x1398   :  { %v3212_v22 = vsel %vm556_vm2, %v3196_v26, 0.0 }
0x1399   :  { %v3501_v19 = vmul.f32 %v3487_v5, %v3411_v45  ;;  %v7316_v5 = vpop.eup %7315  ;;  %v3403_v60 = vadd.f32 1e-05, %v3398_v53 }
0x139a   :  { %v3286_v23 = vmul.f32 %v7316_v5, %v10030_v9  ;;  %v7318_v35 = vpop.eup %7317 }
0x139b   :  { %v3931_v42 = vmul.f32 %v9032_v6, %v3501_v19  ;;  %v3515_v7 = vpop.permute.xlu0 %3514  ;;  %v3736_v38 = vmul.f32 %v9028_v25, %v3501_v19  ;;  %7319 = vrsqrt.f32 %v3403_v60 }
0x139c   :  { %v3533_v40 = vsel %vm873_vm12, %v3515_v7, 0.0 }
0x139d   :  { %3946 = vrot.lane.b32.xlu1 %v3931_v42, %s7493_s21 }
0x139f   :  { %v3513_v44 = vpop.permute.xlu0 %3512 }
0x13a0   :  { %v3530_v9 = vsel %vm556_vm2, %v3513_v44, 0.0 }
0x13a2   :  { %3508 = vrot.lane.b32.xlu0 %v9949_v29, %s7494_s22 }
0x13a3   :  { %v3200_v33 = vpop.permute.xlu0 %3199 }
0x13a4   :  { %v3218_v59 = vsel %vm873_vm12, %v3200_v33, 0.0 }
0x13c1   :  { %v10124_v55 = vpop.xlane.xlu1 %3152  ;;  %3394 = vadd.xlane.f32.xlu0 %v3393_v57 }
0x13c5   :  { %v3614_v37 = vpop.permute.xlu1 %3613 }
0x13c6   :  { %v3629_v52 = vsel %vm556_vm2, %v3614_v37, 0.0  ;;  %v3404_v37 = vadd.f32 1e-05, %v3399_v58 }
0x13c7   :  { %3630 = vadd.xlane.f32.xlu1 %v3629_v52  ;;  %v3412_v52 = vmul.f32 %v7318_v35, %v10036_v54 }
0x13c8   :  { %7321 = vrsqrt.f32 %v3404_v37 }
0x13c9   :  { %v3194_v27 = vpop.permute.xlu1 %3193 }
0x13ca   :  { %v3209_v21 = vsel %vm556_vm2, %v3194_v27, 0.0  ;;  %v3502_v27 = vmul.f32 %v10105_v61, %v3412_v52 }
0x13cb   :  { %3210 = vadd.xlane.f32.xlu1 %v3209_v21  ;;  %v7320_v21 = vpop.eup %7319 }
0x13cc   :  { %v3413_v28 = vmul.f32 %v7320_v21, %v10045_v20  ;;  %v3932_v54 = vmul.f32 %v9032_v6, %v3502_v27 }
0x13cd   :  { %v3198_v31 = vpop.permute.xlu1 %3197 }
0x13ce   :  { %v3215_v17 = vsel %vm556_vm2, %v3198_v31, 0.0  ;;  %v3737_v31 = vmul.f32 %v9028_v25, %v3502_v27  ;;  %v3503_v61 = vmul.f32 %v10107_v24, %v3413_v28 }
0x13cf   :  { %3213 = vadd.xlane.f32.xlu1 %v3212_v22 }
0x13d0   :  { %v3738_v20 = vmul.f32 %v9028_v25, %v3503_v61 }
0x13d3   :  { %3216 = vadd.xlane.f32.xlu1 %v3215_v17 }
0x13d5   :  { %v7322_v17 = vpop.eup %7321 }
0x13d7   :  { %3296 = vrot.lane.b32.xlu0 %v3286_v23, %s7492_s26  ;;  %3534 = vadd.xlane.f32.xlu1 %v3533_v40  ;;  %v3414_v23 = vmul.f32 %v7322_v17, %v10053_v4 }
0x13d9   :  { %v3504_v24 = vmul.f32 %v10109_v47, %v3414_v23 }
0x13db   :  { %3751 = vrot.lane.b32.xlu0 %v3736_v38, %s7493_s21  ;;  %3219 = vadd.xlane.f32.xlu1 %v3218_v59  ;;  %v3739_v40 = vmul.f32 %v9028_v25, %v3504_v24  ;;  %v3934_v33 = vmul.f32 %v9032_v6, %v3504_v24 }
0x13df   :  { %3506 = vrot.lane.b32.xlu0 %v9957_v30, %s7494_s22 }
0x13fe   :  { %3627 = vadd.xlane.f32.xlu0 %v3626_v46 }
0x1402   :  { %3531 = vadd.xlane.f32.xlu0 %v3530_v9 }
0x140d   :  { %v3640_v12 = vpop.xlane.xlu1 %3639 }
0x140e   :  { %v3645_v32 = vmul.f32 0.03125, %v3640_v12 }
0x1410   :  { %v10147_v7 = vsub.f32 %v9968_v50, %v3645_v32 }
0x1411   :  { %v3511_v45 = vpop.permute.xlu1 %3510  ;;  %v10140_v19 = vpop.xlane.xlu0 %3636 }
0x1412   :  { %v3527_v42 = vsel %vm556_vm2, %v3511_v45, 0.0  ;;  %v3655_v44 = vmul.f32 %v10147_v7, %v10147_v7 }
0x1413   :  { %3528 = vadd.xlane.f32.xlu0 %v3527_v42 }
0x1415   :  { %v3634_v57 = vpop.xlane.xlu0 %3633  ;;  %v10174_v59 = vpop.permute.xlu1 %3946 }
0x1416   :  { %v3643_v22 = vmul.f32 0.03125, %v3634_v57 }
0x1418   :  { %v10155_v5 = vsub.f32 %v9974_v51, %v3643_v22  ;;  %v3933_v51 = vmul.f32 %v9032_v6, %v3503_v61  ;;  %v3644_v22 = vmul.f32 0.03125, %v10140_v19 }
0x1419   :  { %v3509_v39 = vpop.permute.xlu0 %3508 }
0x141a   :  { %v3524_v26 = vsel %vm556_vm2, %v3509_v39, 0.0  ;;  %v3653_v50 = vmul.f32 %v10155_v5, %v10155_v5 }
0x141b   :  { %3525 = vadd.xlane.f32.xlu1 %v3524_v26 }
0x1429   :  { %3753 = vrot.lane.b32.xlu0 %v3737_v31, %s7493_s21 }
0x142c   :  { %3669 = vrot.lane.b32.xlu1 %v3655_v44, %s7493_s21 }
0x142d   :  { %3948 = vrot.lane.b32.xlu0 %v3932_v54, %s7493_s21 }
0x1430   :  { %3665 = vrot.lane.b32.xlu1 %v3653_v50, %s7493_s21 }
0x1431   :  { %3755 = vrot.lane.b32.xlu0 %v3738_v20, %s7493_s21 }
0x1435   :  { %3950 = vrot.lane.b32.xlu0 %v3933_v51, %s7493_s21 }
0x1439   :  { %3757 = vrot.lane.b32.xlu0 %v3739_v40, %s7493_s21 }
0x143d   :  { %3952 = vrot.lane.b32.xlu0 %v3934_v33, %s7493_s21 }
0x144a   :  { %v3395_v38 = vpop.xlane.xlu0 %3394 }
0x144b   :  { %v3400_v4 = vmul.f32 0.03125, %v3395_v38 }
0x144d   :  { %v3405_v46 = vadd.f32 1e-05, %v3400_v4 }
0x144e   :  { %v10200_v27 = vpop.permute.xlu0 %3296 }
0x144f   :  { %7323 = vrsqrt.f32 %v3405_v46 }
0x1450   :  { %v3631_v9 = vpop.xlane.xlu1 %3630 }
0x1451   :  { %v3642_v36 = vmul.f32 0.03125, %v3631_v9 }
0x1453   :  { %v10177_v47 = vsub.f32 %v9978_v56, %v3642_v36 }
0x1454   :  { %v3211_v62 = vpop.xlane.xlu1 %3210 }
0x1455   :  { %v3652_v12 = vmul.f32 %v10177_v47, %v10177_v47  ;;  %v3222_v53 = vmul.f32 0.03125, %v3211_v62 }
0x1457   :  { %v10182_v45 = vsub.f32 %v9949_v29, %v3222_v53  ;;  %3663 = vrot.lane.b32.xlu1 %v3652_v12, %s7493_s21 }
0x1458   :  { %v3214_v42 = vpop.xlane.xlu1 %3213 }
0x1459   :  { %v3232_v60 = vmul.f32 %v10182_v45, %v10182_v45  ;;  %v3223_v44 = vmul.f32 0.03125, %v3214_v42 }
0x145b   :  { %3243 = vrot.lane.b32.xlu1 %v3232_v60, %s7492_s26  ;;  %v10216_v17 = vsub.f32 %v9959_v43, %v3223_v44 }
0x145c   :  { %v7324_v57 = vpop.eup %7323  ;;  %v3217_v58 = vpop.xlane.xlu1 %3216 }
0x145d   :  { %v3224_v56 = vmul.f32 0.03125, %v3217_v58  ;;  %v3415_v39 = vmul.f32 %v7324_v57, %v10040_v10  ;;  %v10202_v10 = vpop.permute.xlu0 %3751  ;;  %v3233_v23 = vmul.f32 %v10216_v17, %v10216_v17 }
0x145f   :  { %v10190_v26 = vsub.f32 %v9945_v14, %v3224_v56  ;;  %v3505_v37 = vmul.f32 %v10111_v8, %v3415_v39 }
0x1460   :  { %v3535_v54 = vpop.xlane.xlu1 %3534 }
0x1461   :  { %v3234_v35 = vmul.f32 %v10190_v26, %v10190_v26  ;;  %v3740_v52 = vmul.f32 %v9028_v25, %v3505_v37  ;;  %v3935_v32 = vmul.f32 %v9032_v6, %v3505_v37  ;;  %v3507_v21 = vpop.permute.xlu0 %3506  ;;  %v10207_v25 = vsub.f32 %v9972_v34, %v3644_v22 }
0x1462   :  { %v3521_v8 = vsel %vm556_vm2, %v3507_v21, 0.0  ;;  %v3540_v50 = vmul.f32 0.03125, %v3535_v54  ;;  %v3127_v54 = vsel %vm556_vm2, %v9959_v43, 0.0 }
0x1463   :  { %3247 = vrot.lane.b32.xlu1 %v3234_v35, %s7492_s26  ;;  %3759 = vrot.lane.b32.xlu0 %v3740_v52, %s7493_s21  ;;  %v3654_v6 = vmul.f32 %v10207_v25, %v10207_v25  ;;  %v3166_v35 = vmul.f32 0.03125, %v10124_v55 }
0x1464   :  { %v3220_v20 = vpop.xlane.xlu1 %3219  ;;  %v10224_v51 = vsub.f32 %v9951_v16, %v3540_v50 }
0x1465   :  { %v3225_v33 = vmul.f32 0.03125, %v3220_v20  ;;  %v3171_v52 = vadd.f32 1e-05, %v3166_v35 }
0x1466   :  { %v3550_v40 = vmul.f32 %v10224_v51, %v10224_v51 }
0x1467   :  { %3954 = vrot.lane.b32.xlu0 %v3935_v32, %s7493_s21  ;;  %v10237_v9 = vsub.f32 %v9951_v16, %v3225_v33  ;;  %7325 = vrsqrt.f32 %v3171_v52 }
0x1469   :  { %v3235_v12 = vmul.f32 %v10237_v9, %v10237_v9 }
0x1486   :  { %3522 = vadd.xlane.f32.xlu0 %v3521_v8 }
0x1487   :  { %v3628_v31 = vpop.xlane.xlu0 %3627 }
0x1488   :  { %v3641_v28 = vmul.f32 0.03125, %v3628_v31 }
0x148a   :  { %v10212_v61 = vsub.f32 %v9982_v1, %v3641_v28  ;;  %v7326_v28 = vpop.eup %7325 }
0x148b   :  { %v3532_v34 = vpop.xlane.xlu0 %3531  ;;  %v3181_v44 = vmul.f32 %v7326_v28, %v10094_v2  ;;  %v3130_v2 = vsel %vm556_vm2, %v9945_v14, 0.0 }
0x148c   :  { %v3651_v19 = vmul.f32 %v10212_v61, %v10212_v61  ;;  %v3539_v1 = vmul.f32 0.03125, %v3532_v34 }
0x148d   :  { %v3311_v50 = vmul.f32 %v10200_v27, %v3181_v44  ;;  %v3133_v27 = vsel %vm873_vm12, %v9951_v16, 0.0 }
0x148e   :  { %v10232_v38 = vsub.f32 %v9945_v14, %v3539_v1 }
0x1490   :  { %v3549_v36 = vmul.f32 %v10232_v38, %v10232_v38 }
0x149c   :  { %3667 = vrot.lane.b32.xlu0 %v3654_v6, %s7493_s21  ;;  %v3529_v62 = vpop.xlane.xlu0 %3528  ;;  %v3124_v6 = vsel %vm556_vm2, %v9949_v29, 0.0 }
0x149d   :  { %v3538_v53 = vmul.f32 0.03125, %v3529_v62 }
0x149f   :  { %v10246_v60 = vsub.f32 %v9959_v43, %v3538_v53 }
0x14a0   :  { %3661 = vrot.lane.b32.xlu0 %v3651_v19, %s7493_s21  ;;  %v3754_v42 = vpop.permute.xlu0 %3753 }
0x14a1   :  { %v3548_v57 = vmul.f32 %v10246_v60, %v10246_v60 }
0x14a4   :  { %v10226_v24 = vpop.xlane.xlu1 %3525  ;;  %3245 = vrot.lane.b32.xlu0 %v3233_v23, %s7492_s26  ;;  %v3949_v58 = vpop.permute.xlu0 %3948 }
0x14a8   :  { %v3670_v4 = vpop.permute.xlu1 %3669  ;;  %3564 = vrot.lane.b32.xlu0 %v3550_v40, %s7494_s22  ;;  %v3756_v56 = vpop.permute.xlu0 %3755 }
0x14a9   :  { %v3688_v46 = vsel %vm873_vm12, %v3670_v4, 0.0 }
0x14aa   :  { %3689 = vadd.xlane.f32.xlu1 %v3688_v46  ;;  %v3537_v46 = vmul.f32 0.03125, %v10226_v24 }
0x14ac   :  { %3562 = vrot.lane.b32.xlu0 %v3549_v36, %s7494_s22  ;;  %v3951_v39 = vpop.permute.xlu0 %3950  ;;  %v3666_v8 = vpop.permute.xlu1 %3665 }
0x14ad   :  { %v3682_v20 = vsel %vm556_vm2, %v3666_v8, 0.0 }
0x14b0   :  { %3249 = vrot.lane.b32.xlu0 %v3235_v12, %s7492_s26  ;;  %v3758_v37 = vpop.permute.xlu0 %3757  ;;  %v10298_v12 = vsub.f32 %v9949_v29, %v3537_v46 }
0x14b4   :  { %v3953_v32 = vpop.permute.xlu0 %3952 }
0x14bb   :  { %3560 = vrot.lane.b32.xlu1 %v3548_v57, %s7494_s22 }
0x14c9   :  { %v3664_v31 = vpop.permute.xlu1 %3663 }
0x14ca   :  { %v3679_v55 = vsel %vm556_vm2, %v3664_v31, 0.0 }
0x14cd   :  { %v3244_v24 = vpop.permute.xlu1 %3243 }
0x14d5   :  { %v3760_v21 = vpop.permute.xlu0 %3759 }
0x14d6   :  { %6862 = vmatpush3.xpose.msk.msra.mxu1 %vm556_vm2, %v3760_v21 }
0x14d7   :  { %6863 = vmatprep.subr.mxu1 %v11480_v13 }
0x14d9   :  { %v3955_v22 = vpop.permute.xlu0 %3954 }
0x14da   :  { %6864 = vmatpush3.xpose.msk.msra.mxu1 %vm556_vm2, %v3758_v37  ;;  %6887 = vmatpush3.xpose.msk.msra.mxu0 %vm556_vm2, %v3955_v22  ;;  %v3259_v37 = vsel %vm556_vm2, %v3244_v24, 0.0 }
0x14db   :  { %6865 = vmatprep.subr.mxu1 %v11480_v13  ;;  %6888 = vmatprep.subr.mxu0 %v11480_v13 }
0x14de   :  { %6866 = vmatpush3.xpose.msk.msra.mxu1 %vm556_vm2, %v3756_v56  ;;  %6889 = vmatpush3.xpose.msk.msra.mxu0 %vm556_vm2, %v3953_v32 }
0x14df   :  { %3680 = vadd.xlane.f32.xlu1 %v3679_v55  ;;  %6867 = vmatprep.subr.mxu1 %v11480_v13 }
0x14e0   :  { %6890 = vmatprep.subr.mxu0 %v11480_v13 }
0x14e2   :  { %6868 = vmatpush3.xpose.msk.msra.mxu1 %vm556_vm2, %v3754_v42  ;;  %6891 = vmatpush3.xpose.msk.msra.mxu0 %vm556_vm2, %v3951_v39  ;;  %v3547_v42 = vmul.f32 %v10298_v12, %v10298_v12  ;;  %v3248_v39 = vpop.permute.xlu1 %3247 }
0x14e3   :  { %3125 = vadd.xlane.f32.xlu1 %v3124_v6  ;;  %6869 = vmatprep.subr.mxu1 %v11480_v13  ;;  %v3265_v52 = vsel %vm556_vm2, %v3248_v39, 0.0 }
0x14e4   :  { %6892 = vmatprep.subr.mxu0 %v11480_v13 }
0x14e6   :  { %6870 = vmatpush3.xpose.msk.msra.mxu1 %vm556_vm2, %v10202_v10  ;;  %6893 = vmatpush3.xpose.msk.msra.mxu0 %vm556_vm2, %v3949_v58 }
0x14e7   :  { %3128 = vadd.xlane.f32.xlu1 %v3127_v54  ;;  %6894 = vmatprep.subr.mxu0 %v11480_v13 }
0x14e8   :  { %6911 = vmatprep.subr.mxu1 %v11480_v13 }
0x14e9   :  { %6872 = vmatmul.mubr.msk.f32.vlgmr.msra.gmra.mxu1 %vm556_vm2, %v3311_v50 }
0x14ea   :  { %6895 = vmatpush3.xpose.msk.msra.mxu0 %vm556_vm2, %v10174_v59  ;;  %6874 = vmatprep.mubr.msk.f32.mxu1 %vm7491_vm0, %v11480_v13 }
0x14eb   :  { %3131 = vadd.xlane.f32.xlu1 %v3130_v2  ;;  %6936 = vmatprep.subr.mxu0 %v11480_v13 }
0x14ed   :  { %6897 = vmatmul.mubr.msk.f32.vlgmr.msra.gmra.mxu0 %vm556_vm2, %v3311_v50 }
0x14ee   :  { %6899 = vmatprep.mubr.msk.f32.mxu0 %vm7491_vm0, %v11480_v13 }
0x14ef   :  { %3134 = vadd.xlane.f32.xlu1 %v3133_v27 }
0x150f   :  { %v3523_v10 = vpop.xlane.xlu0 %3522 }
0x1510   :  { %v3536_v53 = vmul.f32 0.03125, %v3523_v10 }
0x1512   :  { %v10303_v57 = vsub.f32 %v9957_v30, %v3536_v53 }
0x1513   :  { %v3668_v59 = vpop.permute.xlu0 %3667 }
0x1514   :  { %v3685_v19 = vsel %vm556_vm2, %v3668_v59, 0.0  ;;  %v3546_v58 = vmul.f32 %v10303_v57, %v10303_v57 }
0x1515   :  { %3686 = vadd.xlane.f32.xlu0 %v3685_v19 }
0x1517   :  { %v3662_v34 = vpop.permute.xlu0 %3661 }
0x1518   :  { %v3676_v56 = vsel %vm556_vm2, %v3662_v34, 0.0 }
0x1519   :  { %3683 = vadd.xlane.f32.xlu0 %v3682_v20 }
0x151b   :  { %v3246_v23 = vpop.permute.xlu0 %3245 }
0x151c   :  { %v3262_v1 = vsel %vm556_vm2, %v3246_v23, 0.0 }
0x151d   :  { %3263 = vadd.xlane.f32.xlu1 %v3262_v1 }
0x151f   :  { %v3565_v40 = vpop.permute.xlu0 %3564 }
0x1520   :  { %v3583_v33 = vsel %vm873_vm12, %v3565_v40, 0.0 }
0x1521   :  { %3584 = vadd.xlane.f32.xlu1 %v3583_v33 }
0x1523   :  { %v3563_v4 = vpop.permute.xlu0 %3562 }
0x1524   :  { %v3580_v30 = vsel %vm556_vm2, %v3563_v4, 0.0 }
0x1527   :  { %v3250_v36 = vpop.permute.xlu0 %3249 }
0x1528   :  { %v3268_v62 = vsel %vm873_vm12, %v3250_v36, 0.0 }
0x1529   :  { %3269 = vadd.xlane.f32.xlu1 %v3268_v62 }
0x152f   :  { %3558 = vrot.lane.b32.xlu0 %v3547_v42, %s7494_s22 }
0x1533   :  { %3556 = vrot.lane.b32.xlu0 %v3546_v58, %s7494_s22  ;;  %v3690_v35 = vpop.xlane.xlu1 %3689 }
0x1534   :  { %v3695_v22 = vmul.f32 0.03125, %v3690_v35 }
0x1536   :  { %v3700_v55 = vadd.f32 1e-05, %v3695_v22 }
0x1537   :  { %v3561_v32 = vpop.permute.xlu1 %3560 }
0x1538   :  { %v3577_v21 = vsel %vm556_vm2, %v3561_v32, 0.0  ;;  %7327 = vrsqrt.f32 %v3700_v55 }
0x1545   :  { %v7328_v33 = vpop.eup %7327 }
0x1546   :  { %v3710_v4 = vmul.f32 %v7328_v33, %v10147_v7 }
0x1552   :  { %3677 = vadd.xlane.f32.xlu0 %v3676_v56 }
0x1556   :  { %3260 = vadd.xlane.f32.xlu0 %v3259_v37 }
0x155a   :  { %3266 = vadd.xlane.f32.xlu0 %v3265_v52 }
0x155e   :  { %3581 = vadd.xlane.f32.xlu0 %v3580_v30 }
0x1562   :  { %3578 = vadd.xlane.f32.xlu0 %v3577_v21 }
0x1568   :  { %v3681_v6 = vpop.xlane.xlu1 %3680 }
0x1569   :  { %v3692_v54 = vmul.f32 0.03125, %v3681_v6 }
0x156b   :  { %v3697_v19 = vadd.f32 1e-05, %v3692_v54 }
0x156c   :  { %v3126_v24 = vpop.xlane.xlu1 %3125 }
0x156d   :  { %v3137_v37 = vmul.f32 0.03125, %v3126_v24 }
0x156f   :  { %v10329_v30 = vsub.f32 %v9949_v29, %v3137_v37 }
0x1570   :  { %v3129_v56 = vpop.xlane.xlu1 %3128 }
0x1571   :  { %v3147_v55 = vmul.f32 %v10329_v30, %v10329_v30 }
0x1574   :  { %v3132_v7 = vpop.xlane.xlu1 %3131 }
0x1575   :  { %v3139_v33 = vmul.f32 0.03125, %v3132_v7 }
0x1578   :  { %v3135_v35 = vpop.xlane.xlu1 %3134 }
0x1579   :  { %v3140_v32 = vmul.f32 0.03125, %v3135_v35 }
0x159e   :  { %v3687_v8 = vpop.xlane.xlu0 %3686 }
0x159f   :  { %v3694_v27 = vmul.f32 0.03125, %v3687_v8  ;;  %v10334_v8 = vsub.f32 %v9951_v16, %v3140_v32 }
0x15a1   :  { %v3699_v23 = vadd.f32 1e-05, %v3694_v27  ;;  %v3150_v54 = vmul.f32 %v10334_v8, %v10334_v8 }
0x15a2   :  { %v3684_v31 = vpop.xlane.xlu0 %3683 }
0x15a3   :  { %v3693_v28 = vmul.f32 0.03125, %v3684_v31 }
0x15a5   :  { %v3698_v50 = vadd.f32 1e-05, %v3693_v28 }
0x15a6   :  { %v3559_v44 = vpop.permute.xlu0 %3558 }
0x15a7   :  { %v3574_v2 = vsel %vm556_vm2, %v3559_v44, 0.0  ;;  %7329 = vrsqrt.f32 %v3698_v50  ;;  %v3154_v44 = vsel %vm556_vm2, %v3147_v55, 0.0  ;;  %v3163_v50 = vsel %vm873_vm12, %v3150_v54, 0.0 }
0x15a8   :  { %3575 = vadd.xlane.f32.xlu1 %v3574_v2  ;;  %7331 = vrsqrt.f32 %v3697_v19 }
0x15a9   :  { %v10315_v10 = vpop.f32.mrf.mxu1  ;;  %7333 = vrsqrt.f32 %v3699_v23  ;;  %v3138_v23 = vmul.f32 0.03125, %v3129_v56 }
0x15aa   :  { %v3557_v59 = vpop.permute.xlu0 %3556 }
0x15ab   :  { %v3571_v34 = vsel %vm556_vm2, %v3557_v59, 0.0  ;;  %v6873_v20 = vpop.f32.mrf.mxu1 }
0x15ac   :  { %3572 = vadd.xlane.f32.xlu0 %v3571_v34 }
0x15ad   :  { %v10318_v1 = vpop.f32.mrf.mxu0 }
0x15ae   :  { %v4056_v31 = vsel %vm1631_vm13, %v10318_v1, -inf }
0x15af   :  { %v6898_v40 = vpop.f32.mrf.mxu0 }
0x15b0   :  { %v10351_v40 = vsub.f32 %v9959_v43, %v3138_v23 }
0x15b4   :  { %v7330_v46 = vpop.eup %7329 }
0x15b5   :  { %v3708_v36 = vmul.f32 %v7330_v46, %v10155_v5  ;;  %v7332_v62 = vpop.eup %7331 }
0x15b6   :  { %v7334_v53 = vpop.eup %7333  ;;  %v3707_v42 = vmul.f32 %v7332_v62, %v10177_v47  ;;  %v3876_v47 = vsel %vm1631_vm13, %v10315_v10, -inf }
0x15b7   :  { %v3709_v58 = vmul.f32 %v7334_v53, %v10207_v25  ;;  %v3264_v25 = vpop.xlane.xlu1 %3263 }
0x15b8   :  { %v3273_v22 = vmul.f32 0.03125, %v3264_v25 }
0x15b9   :  { %3724 = vrot.lane.b32.xlu1 %v3710_v4, %s7492_s26  ;;  %v10354_v4 = vsub.f32 %v9945_v14, %v3139_v33 }
0x15ba   :  { %v3278_v28 = vadd.f32 1e-05, %v3273_v22 }
0x15bb   :  { %v3585_v46 = vpop.xlane.xlu1 %3584 }
0x15bc   :  { %v3590_v14 = vmul.f32 0.03125, %v3585_v46 }
0x15bd   :  { %3720 = vrot.lane.b32.xlu1 %v3708_v36, %s7492_s26  ;;  %v3149_v36 = vmul.f32 %v10354_v4, %v10354_v4 }
0x15be   :  { %v3595_v7 = vadd.f32 1e-05, %v3590_v14 }
0x15bf   :  { %v3270_v62 = vpop.xlane.xlu1 %3269  ;;  %v3160_v43 = vsel %vm556_vm2, %v3149_v36, 0.0 }
0x15c1   :  { %3718 = vrot.lane.b32.xlu1 %v3707_v42, %s7492_s26  ;;  %v3275_v42 = vmul.f32 0.03125, %v3270_v62 }
0x15c2   :  { %3722 = vrot.lane.b32.xlu0 %v3709_v58, %s7492_s26 }
0x15c3   :  { %v3280_v24 = vadd.f32 1e-05, %v3275_v42 }
0x15db   :  { %v3678_v39 = vpop.xlane.xlu0 %3677 }
0x15dc   :  { %v3691_v52 = vmul.f32 0.03125, %v3678_v39 }
0x15de   :  { %v3696_v21 = vadd.f32 1e-05, %v3691_v52 }
0x15df   :  { %v3261_v5 = vpop.xlane.xlu0 %3260 }
0x15e0   :  { %7335 = vrsqrt.f32 %v3696_v21 }
0x15e1   :  { %3877 = vmax.xlane.f32.xlu0 %v3876_v47  ;;  %7337 = vrsqrt.f32 %v3278_v28 }
0x15e3   :  { %v3267_v29 = vpop.xlane.xlu0 %3266 }
0x15e4   :  { %v3274_v6 = vmul.f32 0.03125, %v3267_v29 }
0x15e5   :  { %4057 = vmax.xlane.f32.xlu1 %v4056_v31 }
0x15e6   :  { %v3279_v16 = vadd.f32 1e-05, %v3274_v6 }
0x15e7   :  { %v3582_v53 = vpop.xlane.xlu0 %3581 }
0x15e8   :  { %7339 = vrsqrt.f32 %v3279_v16  ;;  %v3589_v39 = vmul.f32 0.03125, %v3582_v53 }
0x15e9   :  { %3155 = vadd.xlane.f32.xlu1 %v3154_v44 }
0x15ea   :  { %v3594_v35 = vadd.f32 1e-05, %v3589_v39 }
0x15eb   :  { %v3579_v56 = vpop.xlane.xlu0 %3578 }
0x15ec   :  { %v3588_v37 = vmul.f32 0.03125, %v3579_v56 }
0x15ed   :  { %3164 = vadd.xlane.f32.xlu1 %v3163_v50  ;;  %v7336_v2 = vpop.eup %7335 }
0x15ee   :  { %v3706_v27 = vmul.f32 %v7336_v2, %v10212_v61  ;;  %v7338_v59 = vpop.eup %7337  ;;  %v3148_v61 = vmul.f32 %v10351_v40, %v10351_v40  ;;  %v3593_v52 = vadd.f32 1e-05, %v3588_v37 }
0x15ef   :  { %v3288_v19 = vmul.f32 %v7338_v59, %v10216_v17 }
0x15f0   :  { %v3157_v17 = vsel %vm556_vm2, %v3148_v61, 0.0 }
0x15f5   :  { %v7340_v34 = vpop.eup %7339 }
0x15f6   :  { %v3289_v20 = vmul.f32 %v7340_v34, %v10190_v26  ;;  %v3272_v26 = vmul.f32 0.03125, %v3261_v5 }
0x15f7   :  { %3716 = vrot.lane.b32.xlu0 %v3706_v27, %s7492_s26 }
0x15f8   :  { %v3277_v58 = vadd.f32 1e-05, %v3272_v26 }
0x15fa   :  { %7341 = vrsqrt.f32 %v3277_v58 }
0x15fb   :  { %7343 = vrsqrt.f32 %v3280_v24 }
0x15fc   :  { %7345 = vrsqrt.f32 %v3595_v7 }
0x15fd   :  { %7347 = vrsqrt.f32 %v3594_v35 }
0x15fe   :  { %3300 = vrot.lane.b32.xlu1 %v3288_v19, %s7492_s26  ;;  %7349 = vrsqrt.f32 %v3593_v52 }
0x1602   :  { %3302 = vrot.lane.b32.xlu1 %v3289_v20, %s7492_s26 }
0x1607   :  { %v7342_v5 = vpop.eup %7341 }
0x1608   :  { %v3287_v32 = vmul.f32 %v7342_v5, %v10182_v45  ;;  %v7344_v47 = vpop.eup %7343 }
0x1609   :  { %v7346_v25 = vpop.eup %7345  ;;  %v3290_v31 = vmul.f32 %v7344_v47, %v10237_v9 }
0x160a   :  { %v3605_v29 = vmul.f32 %v7346_v25, %v10224_v51  ;;  %v7348_v28 = vpop.eup %7347 }
0x160b   :  { %v7350_v16 = vpop.eup %7349  ;;  %v3604_v2 = vmul.f32 %v7348_v28, %v10232_v38 }
0x160c   :  { %v3603_v19 = vmul.f32 %v7350_v16, %v10246_v60 }
0x1616   :  { %3158 = vadd.xlane.f32.xlu0 %v3157_v17 }
0x161a   :  { %3161 = vadd.xlane.f32.xlu0 %v3160_v43 }
0x1630   :  { %3298 = vrot.lane.b32.xlu0 %v3287_v32, %s7492_s26 }
0x1631   :  { %v3576_v21 = vpop.xlane.xlu1 %3575 }
0x1632   :  { %v3587_v22 = vmul.f32 0.03125, %v3576_v21 }
0x1634   :  { %v3592_v55 = vadd.f32 1e-05, %v3587_v22  ;;  %3304 = vrot.lane.b32.xlu0 %v3290_v31, %s7492_s26 }
0x1635   :  { %v3573_v6 = vpop.xlane.xlu0 %3572  ;;  %v3725_v44 = vpop.permute.xlu1 %3724 }
0x1636   :  { %7351 = vrsqrt.f32 %v3592_v55  ;;  %v3735_v54 = vmul.f32 %v3725_v44, %v3605_v29 }
0x1638   :  { %v3745_v45 = vmul.f32 %v9273_v63, %v3735_v54  ;;  %v3940_v50 = vmul.f32 %v9271_v18, %v3735_v54 }
0x1639   :  { %v3723_v27 = vpop.permute.xlu0 %3722  ;;  %v3721_v59 = vpop.permute.xlu1 %3720 }
0x163a   :  { %v3734_v9 = vmul.f32 %v3723_v27, %v3604_v2  ;;  %4124 = vrot.lane.b32.xlu1 %v3940_v50, %s7494_s22  ;;  %4250 = vrot.lane.b32.xlu0 %v3745_v45, %s7494_s22  ;;  %v3733_v20 = vmul.f32 %v3721_v59, %v3603_v19 }
0x163c   :  { %v3744_v51 = vmul.f32 %v9273_v63, %v3734_v9  ;;  %v3939_v34 = vmul.f32 %v9271_v18, %v3734_v9  ;;  %v3743_v38 = vmul.f32 %v9273_v63, %v3733_v20  ;;  %v3938_v23 = vmul.f32 %v9271_v18, %v3733_v20 }
0x163d   :  { %v3719_v61 = vpop.permute.xlu1 %3718 }
0x163e   :  { %4122 = vrot.lane.b32.xlu1 %v3939_v34, %s7494_s22  ;;  %4248 = vrot.lane.b32.xlu0 %v3744_v51, %s7494_s22 }
0x1642   :  { %4120 = vrot.lane.b32.xlu1 %v3938_v23, %s7494_s22  ;;  %4246 = vrot.lane.b32.xlu0 %v3743_v38, %s7494_s22 }
0x1643   :  { %v7352_v60 = vpop.eup %7351 }
0x1644   :  { %v3602_v33 = vmul.f32 %v7352_v60, %v10298_v12  ;;  %v3586_v12 = vmul.f32 0.03125, %v3573_v6 }
0x1646   :  { %v3732_v46 = vmul.f32 %v3719_v61, %v3602_v33  ;;  %v3591_v14 = vadd.f32 1e-05, %v3586_v12 }
0x1648   :  { %v3742_v17 = vmul.f32 %v9273_v63, %v3732_v46  ;;  %v3937_v36 = vmul.f32 %v9271_v18, %v3732_v46 }
0x164a   :  { %4118 = vrot.lane.b32.xlu1 %v3937_v36, %s7494_s22  ;;  %4244 = vrot.lane.b32.xlu0 %v3742_v17, %s7494_s22 }
0x166a   :  { %v3878_v26 = vpop.xlane.xlu0 %3877 }
0x166b   :  { %v3891_v62 = vsub.f32 %v10315_v10, %v3878_v26 }
0x166d   :  { %v3896_v53 = vmul.f32 1.442695, %v3891_v62 }
0x166e   :  { %v4058_v43 = vpop.xlane.xlu1 %4057  ;;  %v3717_v37 = vpop.permute.xlu0 %3716 }
0x166f   :  { %7353 = vpow2.f32 %v3896_v53  ;;  %v4071_v42 = vsub.f32 %v10318_v1, %v4058_v43 }
0x1671   :  { %v4076_v58 = vmul.f32 1.442695, %v4071_v42 }
0x1672   :  { %v3156_v35 = vpop.xlane.xlu1 %3155 }
0x1673   :  { %7355 = vpow2.f32 %v4076_v58  ;;  %v3167_v5 = vmul.f32 0.03125, %v3156_v35 }
0x1674   :  { %7357 = vrsqrt.f32 %v3591_v14 }
0x1675   :  { %v3172_v25 = vadd.f32 1e-05, %v3167_v5 }
0x1676   :  { %v3165_v21 = vpop.xlane.xlu1 %3164 }
0x1677   :  { %7359 = vrsqrt.f32 %v3172_v25  ;;  %v3170_v55 = vmul.f32 0.03125, %v3165_v21 }
0x1679   :  { %v3175_v54 = vadd.f32 1e-05, %v3170_v55 }
0x167a   :  { %v3301_v29 = vpop.permute.xlu1 %3300 }
0x167c   :  { %v10388_v24 = vpop.eup %7353 }
0x167d   :  { %v3906_v56 = vsel %vm1631_vm13, %v10388_v24, 0.0 }
0x167e   :  { %3907 = vadd.xlane.f32.xlu0 %v3906_v56  ;;  %v3303_v45 = vpop.permute.xlu1 %3302 }
0x1680   :  { %v10392_v7 = vpop.eup %7355 }
0x1681   :  { %v4086_v10 = vsel %vm1631_vm13, %v10392_v7, 0.0  ;;  %v7358_v39 = vpop.eup %7357 }
0x1682   :  { %4087 = vadd.xlane.f32.xlu1 %v4086_v10  ;;  %v3601_v1 = vmul.f32 %v7358_v39, %v10303_v57 }
0x1684   :  { %v3731_v52 = vmul.f32 %v3717_v37, %v3601_v1  ;;  %v7360_v57 = vpop.eup %7359 }
0x1686   :  { %v3936_v32 = vmul.f32 %v9271_v18, %v3731_v52  ;;  %v3741_v47 = vmul.f32 %v9273_v63, %v3731_v52  ;;  %v3182_v63 = vmul.f32 %v7360_v57, %v10329_v30 }
0x1693   :  { %4116 = vrot.lane.b32.xlu1 %v3936_v32, %s7494_s22 }
0x1694   :  { %4242 = vrot.lane.b32.xlu0 %v3741_v47, %s7494_s22 }
0x169f   :  { %v3159_v22 = vpop.xlane.xlu0 %3158 }
0x16a0   :  { %v3168_v31 = vmul.f32 0.03125, %v3159_v22 }
0x16a2   :  { %v3173_v28 = vadd.f32 1e-05, %v3168_v31 }
0x16a3   :  { %v3162_v6 = vpop.xlane.xlu0 %3161 }
0x16a4   :  { %7361 = vrsqrt.f32 %v3173_v28  ;;  %v3169_v44 = vmul.f32 0.03125, %v3162_v6 }
0x16a6   :  { %v3174_v18 = vadd.f32 1e-05, %v3169_v44 }
0x16a7   :  { %v3299_v16 = vpop.permute.xlu0 %3298 }
0x16a8   :  { %7363 = vrsqrt.f32 %v3174_v18  ;;  %v3312_v50 = vmul.f32 %v3299_v16, %v3182_v63 }
0x16a9   :  { %7365 = vrsqrt.f32 %v3175_v54 }
0x16aa   :  { %6875 = vmatmul.mubr.msk.f32.gmra.mxu1 %vm556_vm2, %v3312_v50  ;;  %6900 = vmatmul.mubr.msk.f32.gmra.mxu0 %vm556_vm2, %v3312_v50 }
0x16ab   :  { %v3305_v2 = vpop.permute.xlu0 %3304  ;;  %6877 = vmatprep.mubr.msk.f32.mxu1 %vm7491_vm0, %v11480_v13  ;;  %6902 = vmatprep.mubr.msk.f32.mxu0 %vm7491_vm0, %v11480_v13 }
0x16ac   :  { %v4125_v27 = vpop.permute.xlu1 %4124 }
0x16ad   :  { %6912 = vmatpush3.msk.msra.mxu1 %vm1915_vm15, %v4125_v27 }
0x16ae   :  { %6913 = vmatprep.subr.mxu1 %v11480_v13 }
0x16af   :  { %v4251_v30 = vpop.permute.xlu0 %4250 }
0x16b0   :  { %6937 = vmatpush3.msk.msra.mxu0 %vm1915_vm15, %v4251_v30  ;;  %v4123_v59 = vpop.permute.xlu1 %4122 }
0x16b1   :  { %v7362_v9 = vpop.eup %7361  ;;  %6914 = vmatpush3.msra.mxu1 %v4123_v59  ;;  %6938 = vmatprep.subr.mxu0 %v11480_v13 }
0x16b2   :  { %6915 = vmatprep.subr.mxu1 %v11480_v13  ;;  %v3183_v19 = vmul.f32 %v7362_v9, %v10351_v40 }
0x16b3   :  { %v4249_v51 = vpop.permute.xlu0 %4248 }
0x16b4   :  { %6939 = vmatpush3.msra.mxu0 %v4249_v51  ;;  %v4121_v34 = vpop.permute.xlu1 %4120  ;;  %v3313_v20 = vmul.f32 %v3301_v29, %v3183_v19 }
0x16b5   :  { %v7364_v38 = vpop.eup %7363  ;;  %6916 = vmatpush3.msra.mxu1 %v4121_v34  ;;  %6940 = vmatprep.subr.mxu0 %v11480_v13 }
0x16b6   :  { %6878 = vmatmul.mubr.msk.f32.gmra.mxu1 %vm556_vm2, %v3313_v20  ;;  %6903 = vmatmul.mubr.msk.f32.gmra.mxu0 %vm556_vm2, %v3313_v20  ;;  %v3184_v23 = vmul.f32 %v7364_v38, %v10354_v4  ;;  %v7366_v60 = vpop.eup %7365 }
0x16b7   :  { %v4247_v33 = vpop.permute.xlu0 %4246  ;;  %6880 = vmatprep.mubr.msk.f32.mxu1 %vm7491_vm0, %v11480_v13  ;;  %6905 = vmatprep.mubr.msk.f32.mxu0 %vm7491_vm0, %v11480_v13  ;;  %v3185_v61 = vmul.f32 %v7366_v60, %v10334_v8 }
0x16b8   :  { %6941 = vmatpush3.msra.mxu0 %v4247_v33  ;;  %v3314_v40 = vmul.f32 %v3303_v45, %v3184_v23  ;;  %6917 = vmatprep.subr.mxu1 %v11480_v13 }
0x16b9   :  { %6942 = vmatprep.subr.mxu0 %v11480_v13  ;;  %v3315_v4 = vmul.f32 %v3305_v2, %v3185_v61 }
0x16ba   :  { %6881 = vmatmul.mubr.msk.f32.gmra.mxu1 %vm556_vm2, %v3314_v40  ;;  %6906 = vmatmul.mubr.msk.f32.gmra.mxu0 %vm556_vm2, %v3314_v40 }
0x16bb   :  { %6883 = vmatprep.mubr.msk.f32.mxu1 %vm7491_vm0, %v11480_v13  ;;  %6908 = vmatprep.mubr.msk.f32.mxu0 %vm7491_vm0, %v11480_v13 }
0x16bc   :  { %v4245_v46 = vpop.permute.xlu0 %4244  ;;  %v4119_v17 = vpop.permute.xlu1 %4118 }
0x16bd   :  { %6918 = vmatpush3.msra.mxu1 %v4119_v17  ;;  %6943 = vmatpush3.msra.mxu0 %v4245_v46 }
0x16be   :  { %6884 = vmatmul.mubr.msk.f32.gmra.mxu1 %vm556_vm2, %v3315_v4  ;;  %6909 = vmatmul.mubr.msk.f32.gmra.mxu0 %vm556_vm2, %v3315_v4 }
0x16bf   :  { %6944 = vmatprep.subr.mxu0 %v11480_v13  ;;  %6919 = vmatprep.subr.mxu1 %v11480_v13 }
0x16c0   :  { %6946 = vmatprep.mubr.msk.f32.mxu0 %vm7491_vm0, %v11480_v13  ;;  %6921 = vmatprep.mubr.msk.f32.mxu1 %vm7491_vm0, %v11480_v13 }
0x1707   :  { %v3908_v8 = vpop.xlane.xlu0 %3907 }
0x1708   :  { %7367 = vrcp.f32 %v3908_v8 }
0x170b   :  { %v4243_v36 = vpop.permute.xlu0 %4242  ;;  %v4088_v26 = vpop.xlane.xlu1 %4087 }
0x170c   :  { %7369 = vrcp.f32 %v4088_v26  ;;  %6945 = vmatpush3.msra.mxu0 %v4243_v36 }
0x170d   :  { %6984 = vmatprep.subr.mxu0 %v11480_v13 }
0x170f   :  { %v4117_v62 = vpop.permute.xlu1 %4116 }
0x1710   :  { %6920 = vmatpush3.msra.mxu1 %v4117_v62 }
0x1711   :  { %6961 = vmatprep.subr.mxu1 %v11480_v13 }
0x1715   :  { %v7368_v53 = vpop.eup %7367 }
0x1716   :  { %v3922_v43 = vmul.f32 %v7368_v53, %v10388_v24 }
0x1718   :  { %6947 = vmatmul.mubr.msk.f32.vlgmr.msra.gmra.mxu0 %vm1631_vm13, %v3922_v43 }
0x1719   :  { %v7370_v42 = vpop.eup %7369  ;;  %6949 = vmatprep.mubr.msk.f32.mxu0 %vm7491_vm0, %v11480_v13 }
0x171a   :  { %v4102_v58 = vmul.f32 %v7370_v42, %v10392_v7 }
0x171c   :  { %6922 = vmatmul.mubr.msk.f32.vlgmr.msra.gmra.mxu1 %vm1631_vm13, %v4102_v58  ;;  %v2956_v58 = vld [vmem:[%s11263_s11 + $0x38] sm:$0xff] }
0x171d   :  { %6924 = vmatprep.mubr.msk.f32.mxu1 %vm7491_vm0, %v11480_v13  ;;  %6962 = vmatpush3.msra.mxu1 %v2956_v58 }
0x171e   :  { %6963 = vmatprep.subr.mxu1 %v11480_v13 }
0x176a   :  { %v10449_v12 = vpop.f32.mrf.mxu1  ;;  %v4037_v14 = vpop.f32.mrf.mxu0 }
0x176b   :  { %v4059_v56 = vsel %vm1631_vm13, %v4037_v14, -inf  ;;  %v3879_v46 = vsel %vm1631_vm13, %v10449_v12, -inf }
0x176c   :  { %4060 = vmax.xlane.f32.xlu1 %v4059_v56  ;;  %v6876_v24 = vpop.f32.mrf.mxu1  ;;  %v6901_v10 = vpop.f32.mrf.mxu0  ;;  %v2954_v56 = vld [vmem:[%s11263_s11 + $0x28] sm:$0xff] }
0x176d   :  { %v2953_v24 = vld [vmem:[%s11263_s11 + $0x20] sm:$0xff] }
0x1776   :  { %v10452_v39 = vpop.f32.mrf.mxu1  ;;  %v4042_v37 = vpop.f32.mrf.mxu0 }
0x1777   :  { %v4062_v1 = vsel %vm1631_vm13, %v4042_v37, -inf  ;;  %v3882_v43 = vsel %vm1631_vm13, %v10452_v39, -inf }
0x1778   :  { %4063 = vmax.xlane.f32.xlu0 %v4062_v1  ;;  %v6879_v7 = vpop.f32.mrf.mxu1  ;;  %v6904_v35 = vpop.f32.mrf.mxu0 }
0x177a   :  { %v10455_v52 = vpop.f32.mrf.mxu1  ;;  %v4047_v5 = vpop.f32.mrf.mxu0 }
0x177b   :  { %v4065_v32 = vsel %vm1631_vm13, %v4047_v5, -inf  ;;  %v3885_v17 = vsel %vm1631_vm13, %v10455_v52, -inf }
0x177c   :  { %4066 = vmax.xlane.f32.xlu0 %v4065_v32  ;;  %v6882_v47 = vpop.f32.mrf.mxu1  ;;  %v6907_v25 = vpop.f32.mrf.mxu0 }
0x177e   :  { %v10458_v21 = vpop.f32.mrf.mxu1  ;;  %v4052_v22 = vpop.f32.mrf.mxu0 }
0x177f   :  { %v4068_v31 = vsel %vm1644_vm14, %v4052_v22, -inf  ;;  %v3888_v42 = vsel %vm1644_vm14, %v10458_v21, -inf }
0x1780   :  { %4069 = vmax.xlane.f32.xlu1 %v4068_v31  ;;  %v6885_v55 = vpop.f32.mrf.mxu1  ;;  %v6910_v29 = vpop.f32.mrf.mxu0 }
0x17d8   :  { %v4339_v28 = vpop.f32.mrf.mxu0 }
0x17da   :  { %v6948_v57 = vpop.f32.mrf.mxu0 }
0x17dc   :  { %v4213_v6 = vpop.f32.mrf.mxu1 }
0x17dd   :  { %v4340_v44 = vadd.f32 %v4339_v28, %v4213_v6 }
0x17de   :  { %v6923_v54 = vpop.f32.mrf.mxu1 }
0x17df   :  { %v10462_v18 = vadd.f32 %v4340_v44, %v9638_v41 }
0x17e1   :  { %v4368_v63 = vsel %vm556_vm2, %v10462_v18, 0.0 }
0x17e2   :  { %4369 = vadd.xlane.f32.xlu0 %v4368_v63 }
0x17f5   :  { %v4061_v16 = vpop.xlane.xlu1 %4060 }
0x17f6   :  { %v4072_v45 = vsub.f32 %v4037_v14, %v4061_v16  ;;  %v2955_v14 = vld [vmem:[%s11263_s11 + $0x30] sm:$0xff] }
0x17f7   :  { %6964 = vmatpush3.msra.mxu1 %v2955_v14  ;;  %v2962_v14 = vld [vmem:[%s11264_s12 + $0xa0] sm:$0xff] }
0x17f8   :  { %v4078_v50 = vmul.f32 1.442695, %v4072_v45  ;;  %6965 = vmatprep.subr.mxu1 %v11480_v13 }
0x17f9   :  { %6966 = vmatpush3.msra.mxu1 %v2954_v56  ;;  %v2961_v56 = vld [vmem:[%s11264_s12 + $0x98] sm:$0xff] }
0x17fa   :  { %7371 = vpow2.f32 %v4078_v50  ;;  %6967 = vmatprep.subr.mxu1 %v11480_v13 }
0x17fb   :  { %6968 = vmatpush3.msra.mxu1 %v2953_v24  ;;  %v2960_v24 = vld [vmem:[%s11264_s12 + $0x90] sm:$0xff] }
0x1801   :  { %v4064_v2 = vpop.xlane.xlu0 %4063 }
0x1802   :  { %v4073_v27 = vsub.f32 %v4042_v37, %v4064_v2 }
0x1804   :  { %v4080_v30 = vmul.f32 1.442695, %v4073_v27 }
0x1805   :  { %v4067_v59 = vpop.xlane.xlu0 %4066 }
0x1806   :  { %7373 = vpow2.f32 %v4080_v30  ;;  %v4074_v9 = vsub.f32 %v4047_v5, %v4067_v59 }
0x1807   :  { %v7372_v19 = vpop.eup %7371 }
0x1808   :  { %v4082_v51 = vmul.f32 1.442695, %v4074_v9  ;;  %v4089_v34 = vsel %vm1631_vm13, %v7372_v19, 0.0 }
0x1809   :  { %4090 = vadd.xlane.f32.xlu1 %v4089_v34  ;;  %v4070_v41 = vpop.xlane.xlu1 %4069 }
0x180a   :  { %7375 = vpow2.f32 %v4082_v51  ;;  %v4075_v20 = vsub.f32 %v4052_v22, %v4070_v41 }
0x180c   :  { %v4084_v38 = vmul.f32 1.442695, %v4075_v20 }
0x180e   :  { %7377 = vpow2.f32 %v4084_v38 }
0x1813   :  { %v7374_v23 = vpop.eup %7373 }
0x1814   :  { %v4092_v60 = vsel %vm1631_vm13, %v7374_v23, 0.0 }
0x1815   :  { %4093 = vadd.xlane.f32.xlu0 %v4092_v60  ;;  %v2973_v60 = vld [vmem:[%s11264_s12 + $0xf8] sm:$0xff] }
0x1816   :  { %6985 = vmatpush3.msra.mxu0 %v2973_v60 }
0x1817   :  { %v7376_v33 = vpop.eup %7375  ;;  %6986 = vmatprep.subr.mxu0 %v11480_v13 }
0x1818   :  { %v4095_v40 = vsel %vm1631_vm13, %v7376_v33, 0.0 }
0x1819   :  { %4096 = vadd.xlane.f32.xlu1 %v4095_v40 }
0x181b   :  { %v7378_v61 = vpop.eup %7377 }
0x181c   :  { %v4098_v4 = vsel %vm1644_vm14, %v7378_v61, 0.0 }
0x181d   :  { %4099 = vadd.xlane.f32.xlu0 %v4098_v4 }
0x1821   :  { %3880 = vmax.xlane.f32.xlu0 %v3879_v46  ;;  %v2970_v46 = vld [vmem:[%s11264_s12 + $0xe0] sm:$0xff] }
0x1825   :  { %3886 = vmax.xlane.f32.xlu0 %v3885_v17  ;;  %v2969_v17 = vld [vmem:[%s11264_s12 + $0xd8] sm:$0xff] }
0x186b   :  { %v4370_v8 = vpop.xlane.xlu0 %4369 }
0x186c   :  { %v4383_v36 = vmul.f32 0.03125, %v4370_v8  ;;  %v2968_v8 = vld [vmem:[%s11264_s12 + $0xd0] sm:$0xff] }
0x186e   :  { %v10475_v26 = vsub.f32 %v10462_v18, %v4383_v36  ;;  %v2967_v36 = vld [vmem:[%s11264_s12 + $0xc8] sm:$0xff] }
0x1870   :  { %v4393_v62 = vmul.f32 %v10475_v26, %v10475_v26 }
0x1872   :  { %v4398_v53 = vsel %vm556_vm2, %v4393_v62, 0.0  ;;  %v2965_v62 = vld [vmem:[%s11264_s12 + $0xb8] sm:$0xff] }
0x1873   :  { %4399 = vadd.xlane.f32.xlu1 %v4398_v53  ;;  %v2964_v53 = vld [vmem:[%s11264_s12 + $0xb0] sm:$0xff] }
0x1877   :  { %3883 = vmax.xlane.f32.xlu1 %v3882_v43 }
0x187b   :  { %3889 = vmax.xlane.f32.xlu1 %v3888_v42  ;;  %v2963_v42 = vld [vmem:[%s11264_s12 + $0xa8] sm:$0xff] }
0x1892   :  { %v4091_v10 = vpop.xlane.xlu1 %4090 }
0x1893   :  { %7379 = vrcp.f32 %v4091_v10  ;;  %v2959_v10 = vld [vmem:[%s11264_s12 + $0x88] sm:$0xff] }
0x189e   :  { %v4094_v37 = vpop.xlane.xlu0 %4093 }
0x189f   :  { %7381 = vrcp.f32 %v4094_v37  ;;  %v2958_v37 = vld [vmem:[%s11264_s12 + $0x80] sm:$0xff] }
0x18a0   :  { %v7380_v1 = vpop.eup %7379 }
0x18a1   :  { %v4104_v7 = vmul.f32 %v7380_v1, %v7372_v19 }
0x18a2   :  { %v4097_v35 = vpop.xlane.xlu1 %4096 }
0x18a3   :  { %7383 = vrcp.f32 %v4097_v35  ;;  %6925 = vmatmul.mubr.msk.f32.gmra.mxu1 %vm1631_vm13, %v4104_v7 }
0x18a4   :  { %6927 = vmatprep.mubr.msk.f32.mxu1 %vm7491_vm0, %v11480_v13 }
0x18a6   :  { %v4100_v5 = vpop.xlane.xlu0 %4099 }
0x18a7   :  { %7385 = vrcp.f32 %v4100_v5 }
0x18aa   :  { %v3881_v32 = vpop.xlane.xlu0 %3880 }
0x18ab   :  { %v3892_v47 = vsub.f32 %v10449_v12, %v3881_v32 }
0x18ac   :  { %v7382_v25 = vpop.eup %7381 }
0x18ad   :  { %v3898_v22 = vmul.f32 1.442695, %v3892_v47  ;;  %v4106_v31 = vmul.f32 %v7382_v25, %v7374_v23 }
0x18ae   :  { %v3887_v55 = vpop.xlane.xlu0 %3886 }
0x18af   :  { %7387 = vpow2.f32 %v3898_v22  ;;  %v3894_v29 = vsub.f32 %v10455_v52, %v3887_v55  ;;  %6928 = vmatmul.mubr.msk.f32.gmra.mxu1 %vm1631_vm13, %v4106_v31 }
0x18b0   :  { %v7384_v28 = vpop.eup %7383  ;;  %6930 = vmatprep.mubr.msk.f32.mxu1 %vm7491_vm0, %v11480_v13 }
0x18b1   :  { %v3902_v57 = vmul.f32 1.442695, %v3894_v29  ;;  %v4108_v6 = vmul.f32 %v7384_v28, %v7376_v33  ;;  %v2972_v33 = vld [vmem:[%s11264_s12 + $0xf0] sm:$0xff] }
0x18b2   :  { %6987 = vmatpush3.msra.mxu0 %v2972_v33 }
0x18b3   :  { %7389 = vpow2.f32 %v3902_v57  ;;  %6931 = vmatmul.mubr.msk.f32.gmra.mxu1 %vm1631_vm13, %v4108_v6  ;;  %6988 = vmatprep.subr.mxu0 %v11480_v13 }
0x18b4   :  { %v7386_v44 = vpop.eup %7385  ;;  %6933 = vmatprep.mubr.msk.f32.mxu1 %vm7491_vm0, %v11480_v13 }
0x18b5   :  { %v4110_v12 = vmul.f32 %v7386_v44, %v7378_v61  ;;  %v2971_v61 = vld [vmem:[%s11264_s12 + $0xe8] sm:$0xff] }
0x18b6   :  { %6989 = vmatpush3.msra.mxu0 %v2971_v61 }
0x18b7   :  { %6934 = vmatmul.mubr.msk.f32.gmra.mxu1 %vm1631_vm13, %v4110_v12  ;;  %6990 = vmatprep.subr.mxu0 %v11480_v13  ;;  %v10615_v12 = vld [vmem:[%s11267_s15 + $0x8] ss:$0 sm:$0xff] }
0x18b8   :  { %6969 = vmatprep.mubr.msk.f32.mxu1 %vm7491_vm0, %v11480_v13  ;;  %6991 = vmatpush3.msra.mxu0 %v2970_v46 }
0x18b9   :  { %6992 = vmatprep.subr.mxu0 %v11480_v13 }
0x18ba   :  { %6993 = vmatpush3.msra.mxu0 %v2969_v17 }
0x18bb   :  { %6994 = vmatprep.subr.mxu0 %v11480_v13 }
0x18bc   :  { %v7388_v52 = vpop.eup %7387  ;;  %6995 = vmatpush3.msra.mxu0 %v2968_v8 }
0x18bd   :  { %v3909_v54 = vsel %vm1631_vm13, %v7388_v52, 0.0  ;;  %6996 = vmatprep.subr.mxu0 %v11480_v13 }
0x18be   :  { %3910 = vadd.xlane.f32.xlu0 %v3909_v54  ;;  %6997 = vmatpush3.msra.mxu0 %v2967_v36 }
0x18bf   :  { %6998 = vmatprep.subr.mxu0 %v11480_v13 }
0x18c0   :  { %v10514_v63 = vpop.eup %7389 }
0x18c1   :  { %v3915_v16 = vsel %vm1631_vm13, %v10514_v63, 0.0 }
0x18c2   :  { %3916 = vadd.xlane.f32.xlu0 %v3915_v16 }
0x18fc   :  { %v4400_v45 = vpop.xlane.xlu1 %4399 }
0x18fd   :  { %v4413_v50 = vmul.f32 0.03125, %v4400_v45 }
0x18ff   :  { %v4418_v2 = vadd.f32 1e-05, %v4413_v50 }
0x1900   :  { %v3884_v27 = vpop.xlane.xlu1 %3883 }
0x1901   :  { %7391 = vrsqrt.f32 %v4418_v2  ;;  %v3893_v30 = vsub.f32 %v10452_v39, %v3884_v27 }
0x1903   :  { %v3900_v59 = vmul.f32 1.442695, %v3893_v30 }
0x1904   :  { %v3890_v9 = vpop.xlane.xlu1 %3889 }
0x1905   :  { %7393 = vpow2.f32 %v3900_v59  ;;  %v3895_v19 = vsub.f32 %v10458_v21, %v3890_v9 }
0x1907   :  { %v3904_v51 = vmul.f32 1.442695, %v3895_v19 }
0x1909   :  { %7395 = vpow2.f32 %v3904_v51 }
0x190e   :  { %v7392_v34 = vpop.eup %7391 }
0x190f   :  { %v4428_v41 = vmul.f32 %v7392_v34, %v10475_v26  ;;  %v2966_v26 = vld [vmem:[%s11264_s12 + $0xc0] sm:$0xff] }
0x1910   :  { %6999 = vmatpush3.msra.mxu0 %v2966_v26 }
0x1911   :  { %6970 = vmatmul.mubr.msk.f32.vlgmr.msra.gmra.mxu1 %vm556_vm2, %v4428_v41  ;;  %7000 = vmatprep.subr.mxu0 %v11480_v13 }
0x1912   :  { %v10522_v20 = vpop.eup %7393  ;;  %6972 = vmatprep.mubr.msk.f32.mxu1 %vm7491_vm0, %v11480_v13  ;;  %7001 = vmatpush3.msra.mxu0 %v2965_v62 }
0x1913   :  { %v3912_v39 = vsel %vm1631_vm13, %v10522_v20, 0.0  ;;  %7002 = vmatprep.subr.mxu0 %v11480_v13 }
0x1914   :  { %3913 = vadd.xlane.f32.xlu1 %v3912_v39  ;;  %7003 = vmatpush3.msra.mxu0 %v2964_v53 }
0x1915   :  { %7004 = vmatprep.subr.mxu0 %v11480_v13 }
0x1916   :  { %v10528_v38 = vpop.eup %7395  ;;  %7005 = vmatpush3.msra.mxu0 %v2963_v42 }
0x1917   :  { %v3918_v21 = vsel %vm1644_vm14, %v10528_v38, 0.0  ;;  %7006 = vmatprep.subr.mxu0 %v11480_v13 }
0x1918   :  { %3919 = vadd.xlane.f32.xlu1 %v3918_v21  ;;  %7007 = vmatpush3.msra.mxu0 %v2962_v14 }
0x1919   :  { %7008 = vmatprep.subr.mxu0 %v11480_v13 }
0x191a   :  { %7009 = vmatpush3.msra.mxu0 %v2961_v56 }
0x191b   :  { %7010 = vmatprep.subr.mxu0 %v11480_v13 }
0x191c   :  { %7011 = vmatpush3.msra.mxu0 %v2960_v24 }
0x191d   :  { %7012 = vmatprep.subr.mxu0 %v11480_v13 }
0x191e   :  { %7013 = vmatpush3.msra.mxu0 %v2959_v10 }
0x191f   :  { %7014 = vmatprep.subr.mxu0 %v11480_v13 }
0x1920   :  { %7015 = vmatpush3.msra.mxu0 %v2958_v37 }
0x1947   :  { %v3911_v23 = vpop.xlane.xlu0 %3910 }
0x1948   :  { %7397 = vrcp.f32 %v3911_v23 }
0x194b   :  { %v3917_v25 = vpop.xlane.xlu0 %3916 }
0x1955   :  { %v7398_v40 = vpop.eup %7397 }
0x1956   :  { %v3924_v4 = vmul.f32 %v7398_v40, %v7388_v52 }
0x1958   :  { %6950 = vmatmul.mubr.msk.f32.gmra.mxu0 %vm1631_vm13, %v3924_v4 }
0x1959   :  { %6952 = vmatprep.mubr.msk.f32.mxu0 %vm7491_vm0, %v11480_v13 }
0x1963   :  { %v10573_v43 = vpop.f32.mrf.mxu1 }
0x1965   :  { %v6926_v58 = vpop.f32.mrf.mxu1 }
0x196f   :  { %v4223_v1 = vpop.f32.mrf.mxu1 }
0x1971   :  { %v6929_v7 = vpop.f32.mrf.mxu1 }
0x1973   :  { %v4228_v35 = vpop.f32.mrf.mxu1 }
0x1975   :  { %v6932_v5 = vpop.f32.mrf.mxu1 }
0x1977   :  { %v4233_v32 = vpop.f32.mrf.mxu1 }
0x1979   :  { %v6935_v47 = vpop.f32.mrf.mxu1 }
0x199d   :  { %v3914_v22 = vpop.xlane.xlu1 %3913 }
0x199e   :  { %7399 = vrcp.f32 %v3914_v22 }
0x199f   :  { %7401 = vrcp.f32 %v3917_v25 }
0x19a1   :  { %v3920_v31 = vpop.xlane.xlu1 %3919 }
0x19a2   :  { %7403 = vrcp.f32 %v3920_v31 }
0x19ab   :  { %v7400_v55 = vpop.eup %7399 }
0x19ac   :  { %v3926_v29 = vmul.f32 %v7400_v55, %v10522_v20  ;;  %v7402_v28 = vpop.eup %7401 }
0x19ad   :  { %v3928_v57 = vmul.f32 %v7402_v28, %v10514_v63  ;;  %v4725_v28 = vld [vmem:[%s11265_s13 + $0x170] sm:$0xff] }
0x19ae   :  { %6953 = vmatmul.mubr.msk.f32.gmra.mxu0 %vm1631_vm13, %v3926_v29  ;;  %v4726_v29 = vld [vmem:[%s11265_s13 + $0x178] sm:$0xff] }
0x19af   :  { %6955 = vmatprep.mubr.msk.f32.mxu0 %vm7491_vm0, %v11480_v13  ;;  %v7404_v6 = vpop.eup %7403  ;;  %4787 = vmatprep.subr.mxu1 %v4726_v29 }
0x19b0   :  { %v3930_v44 = vmul.f32 %v7404_v6, %v10528_v38  ;;  %4788 = vmatpush1.msra.mxu1 %v4725_v28  ;;  %v4724_v6 = vld [vmem:[%s11265_s13 + $0x168] sm:$0xff] }
0x19b1   :  { %4789 = vmatprep.subr.mxu1 %v4724_v6 }
0x19b2   :  { %6956 = vmatmul.mubr.msk.f32.gmra.mxu0 %vm1631_vm13, %v3928_v57 }
0x19b3   :  { %6958 = vmatprep.mubr.msk.f32.mxu0 %vm7491_vm0, %v11480_v13 }
0x19b6   :  { %6959 = vmatmul.mubr.msk.f32.gmra.mxu0 %vm1631_vm13, %v3930_v44  ;;  %v10678_v44 = vld [vmem:[%s11267_s15 + $0x9] ss:$0 sm:$0xff] }
0x19b7   :  { %7016 = vmatprep.mubr.msk.f32.mxu0 %vm7491_vm0, %v11480_v13 }
0x19d1   :  { %v4520_v52 = vpop.f32.mrf.mxu1 }
0x19d2   :  { %v4521_v54 = vadd.f32 %v10615_v12, %v4520_v52  ;;  %v4723_v52 = vld [vmem:[%s11265_s13 + $0x160] sm:$0xff] }
0x19d3   :  { %v6971_v63 = vpop.f32.mrf.mxu1  ;;  %4790 = vmatpush1.msra.mxu1 %v4723_v52 }
0x19d4   :  { %v4549_v16 = vmul.f32 0.044715, %v4521_v54  ;;  %v4544_v59 = vmul.f32 0.5, %v4521_v54  ;;  %v4720_v63 = vld [vmem:[%s11265_s13 + $0x148] sm:$0xff] }
0x19d6   :  { %v4554_v45 = vmul.f32 %v4549_v16, %v4521_v54  ;;  %v4719_v16 = vld [vmem:[%s11265_s13 + $0x140] sm:$0xff] }
0x19d8   :  { %v4559_v50 = vmul.f32 %v4554_v45, %v4521_v54 }
0x19da   :  { %v4564_v2 = vadd.f32 %v4559_v50, %v4521_v54  ;;  %v4721_v54 = vld [vmem:[%s11265_s13 + $0x150] sm:$0xff]  ;;  %v4718_v50 = vld [vmem:[%s11265_s13 + $0x138] sm:$0xff] }
0x19dc   :  { %v4569_v27 = vmul.f32 0.7978846, %v4564_v2  ;;  %v4717_v2 = vld [vmem:[%s11265_s13 + $0x130] sm:$0xff] }
0x19de   :  { %7405 = vtanh.f32 %v4569_v27  ;;  %v4716_v27 = vld [vmem:[%s11265_s13 + $0x128] sm:$0xff] }
0x19eb   :  { %v7406_v30 = vpop.eup %7405 }
0x19ec   :  { %v4579_v9 = vadd.f32 1.0, %v7406_v30  ;;  %v4715_v30 = vld [vmem:[%s11265_s13 + $0x120] sm:$0xff] }
0x19ee   :  { %v4584_v19 = vmul.f32 %v4579_v9, %v4544_v59  ;;  %v4714_v59 = vld [vmem:[%s11265_s13 + $0x118] sm:$0xff]  ;;  %v4713_v9 = vld [vmem:[%s11265_s13 + $0x110] sm:$0xff] }
0x19f0   :  { %7017 = vmatmul.mubr.f32.vlgmr.msra.gmra.mxu0 %v4584_v19  ;;  %v4712_v19 = vld [vmem:[%s11265_s13 + $0x108] sm:$0xff] }
0x19f1   :  { %7019 = vmatprep.mubr.msk.f32.mxu0 %vm7491_vm0, %v11480_v13 }
0x1a18   :  { %v4344_v51 = vpop.f32.mrf.mxu0 }
0x1a19   :  { %v4345_v34 = vadd.f32 %v4344_v51, %v10573_v43  ;;  %v4711_v51 = vld [vmem:[%s11265_s13 + $0x100] sm:$0xff] }
0x1a1a   :  { %v6951_v41 = vpop.f32.mrf.mxu0 }
0x1a1b   :  { %v10622_v20 = vadd.f32 %v4345_v34, %v9643_v0  ;;  %v4710_v34 = vld [vmem:[%s11265_s13 + $0xf8] sm:$0xff]  ;;  %v4709_v41 = vld [vmem:[%s11265_s13 + $0xf0] sm:$0xff] }
0x1a1d   :  { %v4371_v39 = vsel %vm556_vm2, %v10622_v20, 0.0 }
0x1a1e   :  { %4372 = vadd.xlane.f32.xlu0 %v4371_v39  ;;  %v4708_v39 = vld [vmem:[%s11265_s13 + $0xe8] sm:$0xff] }
0x1a6e   :  { %v4349_v38 = vpop.f32.mrf.mxu0 }
0x1a6f   :  { %v4350_v21 = vadd.f32 %v4349_v38, %v4223_v1  ;;  %v4707_v38 = vld [vmem:[%s11265_s13 + $0xe0] sm:$0xff] }
0x1a70   :  { %v6954_v23 = vpop.f32.mrf.mxu0 }
0x1a71   :  { %v10627_v60 = vadd.f32 %v4350_v21, %v9648_v3  ;;  %v4706_v21 = vld [vmem:[%s11265_s13 + $0xd8] sm:$0xff]  ;;  %v4705_v23 = vld [vmem:[%s11265_s13 + $0xd0] sm:$0xff] }
0x1a72   :  { %v4354_v33 = vpop.f32.mrf.mxu0 }
0x1a73   :  { %v4355_v40 = vadd.f32 %v4354_v33, %v4228_v35  ;;  %v4374_v61 = vsel %vm556_vm2, %v10627_v60, 0.0  ;;  %v4704_v33 = vld [vmem:[%s11265_s13 + $0xc8] sm:$0xff] }
0x1a74   :  { %4375 = vadd.xlane.f32.xlu1 %v4374_v61  ;;  %v6957_v4 = vpop.f32.mrf.mxu0  ;;  %v4696_v61 = vld [vmem:[%s11259_s7] sm:$0xff] }
0x1a75   :  { %v10632_v0 = vadd.f32 %v4355_v40, %v9653_v11  ;;  %v4703_v40 = vld [vmem:[%s11265_s13 + $0xc0] sm:$0xff] }
0x1a76   :  { %v4359_v46 = vpop.f32.mrf.mxu0 }
0x1a77   :  { %v4360_v17 = vadd.f32 %v4359_v46, %v4233_v32  ;;  %v4377_v8 = vsel %vm556_vm2, %v10632_v0, 0.0 }
0x1a78   :  { %4378 = vadd.xlane.f32.xlu0 %v4377_v8  ;;  %v6960_v36 = vpop.f32.mrf.mxu0 }
0x1a79   :  { %v10637_v3 = vadd.f32 %v4360_v17, %v9661_v49 }
0x1a7b   :  { %v4380_v26 = vsel %vm873_vm12, %v10637_v3, 0.0 }
0x1a7c   :  { %4381 = vadd.xlane.f32.xlu1 %v4380_v26 }
0x1aa7   :  { %v4373_v62 = vpop.xlane.xlu0 %4372 }
0x1aa8   :  { %v4384_v53 = vmul.f32 0.03125, %v4373_v62 }
0x1aaa   :  { %v10642_v43 = vsub.f32 %v10622_v20, %v4384_v53 }
0x1aac   :  { %v4394_v11 = vmul.f32 %v10642_v43, %v10642_v43 }
0x1aae   :  { %v4401_v42 = vsel %vm556_vm2, %v4394_v11, 0.0 }
0x1aaf   :  { %4402 = vadd.xlane.f32.xlu0 %v4401_v42 }
0x1ab0   :  { %v4655_v58 = vpop.f32.mrf.mxu0 }
0x1ab1   :  { %v4679_v57 = vadd.f32 %v4655_v58, %v10462_v18  ;;  %v4722_v18 = vld [vmem:[%s11265_s13 + $0x158] sm:$0xff] }
0x1ab2   :  { %v7018_v14 = vpop.f32.mrf.mxu0  ;;  %4791 = vmatprep.subr.mxu1 %v4722_v18 }
0x1ab3   :  { %v4690_v45 = vadd.f32 %v10678_v44, %v4679_v57  ;;  %4792 = vmatpush1.msra.mxu1 %v4721_v54 }
0x1ab4   :  { %4793 = vmatprep.subr.mxu1 %v4720_v63 }
0x1ab5   :  { %4794 = vmatpush1.msra.mxu1 %v4719_v16 }
0x1ab6   :  { %4795 = vmatprep.subr.mxu1 %v4718_v50 }
0x1ab7   :  { %4796 = vmatpush1.msra.mxu1 %v4717_v2 }
0x1ab8   :  { %4797 = vmatprep.subr.mxu1 %v4716_v27 }
0x1ab9   :  { %4798 = vmatpush1.msra.mxu1 %v4715_v30 }
0x1aba   :  { %4799 = vmatprep.subr.mxu1 %v4714_v59 }
0x1abb   :  { %4800 = vmatpush1.msra.mxu1 %v4713_v9  ;;  %v10779_v9 = vld [vmem:[%s11267_s15 + $0xa] sm:$0x3] }
0x1abc   :  { %4801 = vmatprep.subr.mxu1 %v4712_v19 }
0x1abd   :  { %4802 = vmatpush1.msra.mxu1 %v4711_v51 }
0x1abe   :  { %4803 = vmatprep.subr.mxu1 %v4710_v34 }
0x1abf   :  { %4804 = vmatpush1.msra.mxu1 %v4709_v41 }
0x1ac0   :  { %4805 = vmatprep.subr.mxu1 %v4708_v39 }
0x1ac1   :  { %4806 = vmatpush1.msra.mxu1 %v4707_v38  ;;  %v4757_v38 = vrot.slane %v10779_v9, %v11488_v48 }
0x1ac2   :  { %4807 = vmatprep.subr.mxu1 %v4706_v21 }
0x1ac3   :  { %4808 = vmatpush1.msra.mxu1 %v4705_v23 }
0x1ac4   :  { %4809 = vmatprep.subr.mxu1 %v4704_v33 }
0x1ac5   :  { %4810 = vmatpush1.msra.mxu1 %v4703_v40 }
0x1ac6   :  { %7031 = vmatprep.subr.mxu1 %v11480_v13 }
0x1afd   :  { %v4376_v56 = vpop.xlane.xlu1 %4375 }
0x1afe   :  { %v4385_v49 = vmul.f32 0.03125, %v4376_v56 }
0x1b00   :  { %v10648_v24 = vsub.f32 %v10627_v60, %v4385_v49 }
0x1b01   :  { %v4379_v10 = vpop.xlane.xlu0 %4378 }
0x1b02   :  { %v4386_v37 = vmul.f32 0.03125, %v4379_v10  ;;  %v4395_v1 = vmul.f32 %v10648_v24, %v10648_v24 }
0x1b04   :  { %v10653_v7 = vsub.f32 %v10632_v0, %v4386_v37  ;;  %v4404_v35 = vsel %vm556_vm2, %v4395_v1, 0.0 }
0x1b05   :  { %4405 = vadd.xlane.f32.xlu1 %v4404_v35  ;;  %v4382_v5 = vpop.xlane.xlu1 %4381 }
0x1b06   :  { %v4387_v32 = vmul.f32 0.03125, %v4382_v5  ;;  %v4396_v47 = vmul.f32 %v10653_v7, %v10653_v7 }
0x1b08   :  { %v10659_v25 = vsub.f32 %v10637_v3, %v4387_v32  ;;  %v4407_v22 = vsel %vm556_vm2, %v4396_v47, 0.0 }
0x1b09   :  { %4408 = vadd.xlane.f32.xlu0 %v4407_v22 }
0x1b0a   :  { %v4397_v31 = vmul.f32 %v10659_v25, %v10659_v25 }
0x1b0c   :  { %v4410_v55 = vsel %vm873_vm12, %v4397_v31, 0.0 }
0x1b0d   :  { %4411 = vadd.xlane.f32.xlu1 %v4410_v55 }
0x1b1e   :  { %4867 = vrot.lane.b32.xlu1 %v4696_v61, %s7494_s22 }
0x1b1f   :  { %4733 = vrot.lane.b32.xlu0 %v4690_v45, %s7494_s22 }
0x1b38   :  { %v4403_v4 = vpop.xlane.xlu0 %4402 }
0x1b39   :  { %v4414_v46 = vmul.f32 0.03125, %v4403_v4 }
0x1b3b   :  { %v4419_v17 = vadd.f32 1e-05, %v4414_v46 }
0x1b3d   :  { %7407 = vrsqrt.f32 %v4419_v17 }
0x1b4a   :  { %v7408_v8 = vpop.eup %7407 }
0x1b4b   :  { %v4429_v36 = vmul.f32 %v7408_v8, %v10642_v43 }
0x1b4d   :  { %6973 = vmatmul.mubr.msk.f32.gmra.mxu1 %vm556_vm2, %v4429_v36 }
0x1b4e   :  { %6975 = vmatprep.mubr.msk.f32.mxu1 %vm7491_vm0, %v11480_v13 }
0x1b8e   :  { %v4406_v26 = vpop.xlane.xlu1 %4405 }
0x1b8f   :  { %v4415_v62 = vmul.f32 0.03125, %v4406_v26 }
0x1b91   :  { %v4420_v53 = vadd.f32 1e-05, %v4415_v62 }
0x1b92   :  { %v4409_v11 = vpop.xlane.xlu0 %4408 }
0x1b93   :  { %7409 = vrsqrt.f32 %v4420_v53  ;;  %v4416_v42 = vmul.f32 0.03125, %v4409_v11 }
0x1b95   :  { %v4421_v58 = vadd.f32 1e-05, %v4416_v42 }
0x1b96   :  { %v4412_v14 = vpop.xlane.xlu1 %4411  ;;  %v4734_v32 = vpop.permute.xlu0 %4733 }
0x1b97   :  { %7411 = vrsqrt.f32 %v4421_v58  ;;  %v4417_v56 = vmul.f32 0.03125, %v4412_v14 }
0x1b99   :  { %v4422_v49 = vadd.f32 1e-05, %v4417_v56 }
0x1b9b   :  { %7413 = vrsqrt.f32 %v4422_v49 }
0x1ba0   :  { %v7410_v10 = vpop.eup %7409 }
0x1ba1   :  { %v4430_v43 = vmul.f32 %v7410_v10, %v10648_v24  ;;  %v4697_v24 = vld [vmem:[%s11260_s8] sm:$0xff] }
0x1ba2   :  { %v4748_v47 = vsel %vm2526_vm1, %v4697_v24, %v4734_v32  ;;  %v4868_v24 = vpop.permute.xlu1 %4867 }
0x1ba3   :  { %6976 = vmatmul.mubr.msk.f32.gmra.mxu1 %vm556_vm2, %v4430_v43 }
0x1ba4   :  { %v7412_v37 = vpop.eup %7411  ;;  %6978 = vmatprep.mubr.msk.f32.mxu1 %vm7491_vm0, %v11480_v13 }
0x1ba5   :  { %v4431_v1 = vmul.f32 %v7412_v37, %v10653_v7 }
0x1ba7   :  { %6979 = vmatmul.mubr.msk.f32.gmra.mxu1 %vm556_vm2, %v4431_v1 }
0x1ba8   :  { %v7414_v35 = vpop.eup %7413  ;;  %6981 = vmatprep.mubr.msk.f32.mxu1 %vm7491_vm0, %v11480_v13 }
0x1ba9   :  { %v4432_v5 = vmul.f32 %v7414_v35, %v10659_v25 }
0x1bab   :  { %6982 = vmatmul.mubr.msk.f32.gmra.mxu1 %vm556_vm2, %v4432_v5  ;;  %vm5004_vm2 = vcmask 516096  }
0x1bac   :  { %4843 = vmatprep.mubr.f32.mxu1 %v11480_v13 }
0x1baf   :  { %6325 = vmatmul.mubr.msk.f32.vlgmr.msra.gmra.mxu1 %vm750_vm11, %v4748_v47 }
0x1bb0   :  { %4849 = vmatprep.mubr.f32.mxu1 %v11480_v13 }
0x1c0d   :  { %v4525_v7 = vpop.f32.mrf.mxu1 }
0x1c0e   :  { %v4526_v22 = vadd.f32 %v10615_v12, %v4525_v7 }
0x1c0f   :  { %v6974_v31 = vpop.f32.mrf.mxu1 }
0x1c10   :  { %v4550_v25 = vmul.f32 0.044715, %v4526_v22  ;;  %v4545_v52 = vmul.f32 0.5, %v4526_v22 }
0x1c12   :  { %v4555_v55 = vmul.f32 %v4550_v25, %v4526_v22 }
0x1c14   :  { %v4560_v29 = vmul.f32 %v4555_v55, %v4526_v22 }
0x1c16   :  { %v4565_v28 = vadd.f32 %v4560_v29, %v4526_v22 }
0x1c18   :  { %v4570_v57 = vmul.f32 0.7978846, %v4565_v28 }
0x1c1a   :  { %7415 = vtanh.f32 %v4570_v57 }
0x1c27   :  { %v7416_v6 = vpop.eup %7415 }
0x1c28   :  { %v4580_v18 = vadd.f32 1.0, %v7416_v6 }
0x1c2a   :  { %v4585_v54 = vmul.f32 %v4580_v18, %v4545_v52 }
0x1c2c   :  { %7020 = vmatmul.mubr.f32.gmra.mxu0 %v4585_v54 }
0x1c2d   :  { %7022 = vmatprep.mubr.msk.f32.mxu0 %vm7491_vm0, %v11480_v13 }
0x1c63   :  { %v4530_v63 = vpop.f32.mrf.mxu1 }
0x1c64   :  { %v4531_v16 = vadd.f32 %v10615_v12, %v4530_v63 }
0x1c65   :  { %v6977_v45 = vpop.f32.mrf.mxu1 }
0x1c66   :  { %v4551_v50 = vmul.f32 0.044715, %v4531_v16  ;;  %v4546_v42 = vmul.f32 0.5, %v4531_v16 }
0x1c67   :  { %v4535_v2 = vpop.f32.mrf.mxu1 }
0x1c68   :  { %v4556_v27 = vmul.f32 %v4551_v50, %v4531_v16  ;;  %v4536_v30 = vadd.f32 %v10615_v12, %v4535_v2 }
0x1c69   :  { %v6980_v59 = vpop.f32.mrf.mxu1 }
0x1c6a   :  { %v4552_v19 = vmul.f32 0.044715, %v4536_v30  ;;  %v4561_v51 = vmul.f32 %v4556_v27, %v4531_v16  ;;  %v4547_v49 = vmul.f32 0.5, %v4536_v30 }
0x1c6b   :  { %v4540_v34 = vpop.f32.mrf.mxu1 }
0x1c6c   :  { %v4557_v41 = vmul.f32 %v4552_v19, %v4536_v30  ;;  %v4541_v39 = vadd.f32 %v10615_v12, %v4540_v34  ;;  %v4566_v21 = vadd.f32 %v4561_v51, %v4531_v16  ;;  %v4702_v12 = vld [vmem:[%s11261_s9] sm:$0xff] }
0x1c6d   :  { %v6983_v23 = vpop.f32.mrf.mxu1 }
0x1c6e   :  { %v4553_v33 = vmul.f32 0.044715, %v4541_v39  ;;  %v4571_v40 = vmul.f32 0.7978846, %v4566_v21  ;;  %v4562_v61 = vmul.f32 %v4557_v41, %v4536_v30  ;;  %v4548_v1 = vmul.f32 0.5, %v4541_v39 }
0x1c6f   :  { %v4845_v4 = vpop.f32.mrf.mxu1 }
0x1c70   :  { %v4558_v46 = vmul.f32 %v4553_v33, %v4541_v39  ;;  %v4846_v17 = vadd.f32 %v4845_v4, %v4757_v38  ;;  %7417 = vtanh.f32 %v4571_v40  ;;  %v4567_v8 = vadd.f32 %v4562_v61, %v4536_v30  ;;  %v4925_v38 = vld [vmem:[%s11266_s14 + $0x20] sm:$0xff]  ;;  %v4924_v4 = vld [vmem:[%s11266_s14 + $0x18] sm:$0xff] }
0x1c71   :  { %v4761_v30 = vrot.slane %v10779_v9, %v11489_v15  ;;  %v4847_v19 = vpop.f32.mrf.mxu1  ;;  %v4926_v9 = vld [vmem:[%s11266_s14 + $0x28] sm:$0xff] }
0x1c72   :  { %4872 = vrot.lane.b32.xlu1 %v4846_v17, %s7494_s22  ;;  %v4572_v36 = vmul.f32 0.7978846, %v4567_v8  ;;  %v4563_v26 = vmul.f32 %v4558_v46, %v4541_v39  ;;  %v4870_v32 = vadd.f32 %v4868_v24, %v4846_v17  ;;  %v4698_v46 = vld [vmem:[%s11260_s8 + $0x8] sm:$0xff] }
0x1c73   :  { %v4848_v51 = vadd.f32 %v4847_v19, %v4761_v30 }
0x1c74   :  { %v4568_v62 = vadd.f32 %v4563_v26, %v4541_v39  ;;  %7419 = vtanh.f32 %v4572_v36  ;;  %v4922_v26 = vld [vmem:[%s11266_s14 + $0x8] sm:$0xff] }
0x1c76   :  { %4887 = vrot.lane.b32.xlu1 %v4702_v12, %s7494_s22  ;;  %v4573_v53 = vmul.f32 0.7978846, %v4568_v62  ;;  %v4921_v12 = vld [vmem:[%s11266_s14] sm:$0xff] }
0x1c78   :  { %7421 = vtanh.f32 %v4573_v53 }
0x1c7d   :  { %v7418_v11 = vpop.eup %7417 }
0x1c7e   :  { %v4581_v58 = vadd.f32 1.0, %v7418_v11  ;;  %v6330_v11 = vmul.f32 -1.442695, %v4848_v51 }
0x1c80   :  { %v4586_v14 = vmul.f32 %v4581_v58, %v4546_v42 }
0x1c81   :  { %v7420_v56 = vpop.eup %7419 }
0x1c82   :  { %7023 = vmatmul.mubr.f32.gmra.mxu0 %v4586_v14  ;;  %v4582_v10 = vadd.f32 1.0, %v7420_v56  ;;  %v4699_v56 = vld [vmem:[%s11260_s8 + $0x10] sm:$0xff] }
0x1c83   :  { %7025 = vmatprep.mubr.msk.f32.mxu0 %vm7491_vm0, %v11480_v13 }
0x1c84   :  { %v4587_v37 = vmul.f32 %v4582_v10, %v4547_v49 }
0x1c85   :  { %v7422_v43 = vpop.eup %7421 }
0x1c86   :  { %v4583_v35 = vadd.f32 1.0, %v7422_v43  ;;  %7026 = vmatmul.mubr.f32.gmra.mxu0 %v4587_v37  ;;  %v4695_v43 = vld [vmem:[%s11258_s6] sm:$0xff] }
0x1c87   :  { %7028 = vmatprep.mubr.msk.f32.mxu0 %vm7491_vm0, %v11480_v13 }
0x1c88   :  { %v4588_v5 = vmul.f32 %v4583_v35, %v4548_v1 }
0x1c8a   :  { %7029 = vmatmul.mubr.f32.gmra.mxu0 %v4588_v5  ;;  %v4701_v5 = vld [vmem:[%s11260_s8 + $0x20] sm:$0x1] }
0x1ce4   :  { %v4873_v47 = vpop.permute.xlu1 %4872 }
0x1ce5   :  { %v4875_v7 = vmax.f32 %v4870_v32, %v4873_v47 }
0x1ce7   :  { %v4883_v22 = vsub.f32 %v4870_v32, %v4875_v7  ;;  %4877 = vrot.lane.b32.xlu0 %v4875_v7, %s7494_s22 }
0x1ce8   :  { %v4888_v41 = vpop.permute.xlu1 %4887 }
0x1ce9   :  { %v4884_v59 = vmul.f32 1.442695, %v4883_v22 }
0x1cec   :  { %v4660_v31 = vpop.f32.mrf.mxu0 }
0x1ced   :  { %v4680_v16 = vadd.f32 %v4660_v31, %v10622_v20  ;;  %v4928_v20 = vld [vmem:[%s11266_s14 + $0x38] sm:$0xff] }
0x1cee   :  { %v7021_v25 = vpop.f32.mrf.mxu0  ;;  %7032 = vmatpush3.msra.mxu1 %v4928_v20 }
0x1cef   :  { %v4691_v50 = vadd.f32 %v10678_v44, %v4680_v16  ;;  %7033 = vmatprep.subr.mxu1 %v11480_v13  ;;  %v4929_v16 = vld [vmem:[%s11267_s15 + $0xc] sm:$0x1] }
0x1d42   :  { %v4665_v55 = vpop.f32.mrf.mxu0 }
0x1d43   :  { %v4681_v33 = vadd.f32 %v4665_v55, %v10627_v60  ;;  %v4923_v60 = vld [vmem:[%s11266_s14 + $0x10] sm:$0xff] }
0x1d44   :  { %v7024_v29 = vpop.f32.mrf.mxu0 }
0x1d45   :  { %v4692_v8 = vadd.f32 %v10678_v44, %v4681_v33 }
0x1d46   :  { %v4670_v28 = vpop.f32.mrf.mxu0 }
0x1d47   :  { %v4682_v2 = vadd.f32 %v4670_v28, %v10632_v0  ;;  %v4927_v0 = vld [vmem:[%s11266_s14 + $0x30] sm:$0xff] }
0x1d48   :  { %v7027_v57 = vpop.f32.mrf.mxu0  ;;  %7034 = vmatpush3.msra.mxu1 %v4927_v0 }
0x1d49   :  { %v4693_v27 = vadd.f32 %v10678_v44, %v4682_v2  ;;  %7035 = vmatprep.subr.mxu1 %v11480_v13 }
0x1d4a   :  { %v4675_v6 = vpop.f32.mrf.mxu0  ;;  %7036 = vmatpush3.msra.mxu1 %v4926_v9 }
0x1d4b   :  { %7037 = vmatprep.subr.mxu1 %v11480_v13  ;;  %v4683_v62 = vadd.f32 %v4675_v6, %v10637_v3 }
0x1d4c   :  { %v7030_v52 = vpop.f32.mrf.mxu0  ;;  %7038 = vmatpush3.msra.mxu1 %v4925_v38 }
0x1d4d   :  { %7039 = vmatprep.subr.mxu1 %v11480_v13  ;;  %v4694_v53 = vadd.f32 %v10678_v44, %v4683_v62  ;;  %v4700_v44 = vld [vmem:[%s11260_s8 + $0x18] sm:$0xff] }
0x1d4e   :  { %7040 = vmatpush3.msra.mxu1 %v4924_v4 }
0x1d4f   :  { %7041 = vmatprep.subr.mxu1 %v11480_v13 }
0x1d50   :  { %7042 = vmatpush3.msra.mxu1 %v4923_v60 }
0x1d51   :  { %7043 = vmatprep.subr.mxu1 %v11480_v13 }
0x1d52   :  { %7044 = vmatpush3.msra.mxu1 %v4922_v26 }
0x1d53   :  { %7045 = vmatprep.subr.mxu1 %v11480_v13 }
0x1d54   :  { %7046 = vmatpush3.msra.mxu1 %v4921_v12 }
0x1d59   :  { %v4878_v18 = vpop.permute.xlu0 %4877 }
0x1d5a   :  { %v4880_v54 = vsub.f32 %v4846_v17, %v4878_v18 }
0x1d5c   :  { %v4881_v63 = vmul.f32 1.442695, %v4880_v54 }
0x1d5e   :  { %7423 = vpow2.f32 %v4881_v63 }
0x1d5f   :  { %7425 = vpow2.f32 %v4884_v59 }
0x1d60   :  { %7427 = vtanh.f32 %v4848_v51 }
0x1d61   :  { %7429 = vpow2.f32 %v6330_v11 }
0x1d6b   :  { %v7424_v45 = vpop.eup %7423 }
0x1d6c   :  { %4892 = vrot.lane.b32.xlu0 %v7424_v45, %s7494_s22  ;;  %v7426_v34 = vpop.eup %7425 }
0x1d6d   :  { %v4890_v39 = vmul.f32 %v7426_v34, %v4888_v41  ;;  %v7428_v21 = vpop.eup %7427 }
0x1d6e   :  { %v7430_v42 = vpop.eup %7429 }
0x1d6f   :  { %v4911_v58 = vadd.f32 1.0, %v7430_v42 }
0x1d70   :  { %4735 = vrot.lane.b32.xlu0 %v4691_v50, %s7494_s22 }
0x1d74   :  { %4739 = vrot.lane.b32.xlu0 %v4693_v27, %s7494_s22 }
0x1dde   :  { %v4893_v23 = vpop.permute.xlu0 %4892 }
0x1ddf   :  { %v4895_v40 = vadd.f32 %v4893_v23, %v4890_v39  ;;  %v4902_v61 = vmul.f32 %v7428_v21, %v4893_v23 }
0x1de1   :  { %4904 = vrot.lane.b32.xlu0 %v4902_v61, %s7494_s22  ;;  %4915 = vrot.lane.b32.xlu1 %v4895_v40, %s7494_s22 }
0x1de2   :  { %v4736_v17 = vpop.permute.xlu0 %4735 }
0x1de3   :  { %v4749_v36 = vsel %vm2526_vm1, %v4698_v46, %v4736_v17 }
0x1de4   :  { %6326 = vmatmul.mubr.msk.f32.gmra.mxu1 %vm750_vm11, %v4749_v36 }
0x1de5   :  { %4737 = vrot.lane.b32.xlu1 %v4692_v8, %s7494_s22  ;;  %4853 = vmatprep.mubr.f32.mxu1 %v11480_v13 }
0x1de6   :  { %v4740_v10 = vpop.permute.xlu0 %4739 }
0x1de7   :  { %v4751_v1 = vsel %vm2526_vm1, %v4700_v44, %v4740_v10 }
0x1de9   :  { %4897 = vrot.lane.b32.xlu1 %v7426_v34, %s7494_s22 }
0x1ded   :  { %4741 = vrot.lane.b32.xlu1 %v4694_v53, %s7494_s22 }
0x1e53   :  { %v4916_v14 = vpop.permute.xlu1 %4915  ;;  %v4905_v24 = vpop.permute.xlu0 %4904 }
0x1e54   :  { %7431 = vrcp.f32 %v4916_v14 }
0x1e55   :  { %7433 = vrcp.f32 %v4911_v58 }
0x1e57   :  { %v4738_v3 = vpop.permute.xlu1 %4737 }
0x1e58   :  { %v4750_v49 = vsel %vm2526_vm1, %v4699_v56, %v4738_v3 }
0x1e59   :  { %6327 = vmatmul.mubr.msk.f32.gmra.mxu1 %vm750_vm11, %v4750_v49 }
0x1e5a   :  { %4857 = vmatprep.mubr.f32.mxu1 %v11480_v13 }
0x1e5b   :  { %v4898_v37 = vpop.permute.xlu1 %4897 }
0x1e5c   :  { %v4900_v35 = vmul.f32 %v4898_v37, %v4695_v43 }
0x1e5d   :  { %6328 = vmatmul.mubr.msk.f32.gmra.mxu1 %vm750_vm11, %v4751_v1 }
0x1e5e   :  { %4861 = vmatprep.mubr.f32.mxu1 %v11480_v13  ;;  %v4907_v47 = vadd.f32 %v4905_v24, %v4900_v35 }
0x1e5f   :  { %v4742_v32 = vpop.permute.xlu1 %4741 }
0x1e60   :  { %v4752_v7 = vsel %vm2526_vm1, %v4701_v5, %v4742_v32 }
0x1e61   :  { %v7432_v22 = vpop.eup %7431  ;;  %6329 = vmatmul.mubr.msk.f32.gmra.mxu1 %vm750_vm11, %v4752_v7 }
0x1e62   :  { %v4919_v31 = vmul.f32 %v7432_v22, %v4907_v47  ;;  %7047 = vmatprep.mubr.msk.f32.mxu1 %vm7491_vm0, %v11480_v13  ;;  %v7434_v25 = vpop.eup %7433 }
0x1e64   :  { %v4920_v55 = vmul.f32 %v7434_v25, %v4919_v31 }
0x1e66   :  { %7048 = vmatmul.mubr.msk.f32.vlgmr.msra.gmra.mxu1 %vm2526_vm1, %v4920_v55 }
0x1ea4   :  { %v4851_v29 = vpop.f32.mrf.mxu1 }
0x1ea6   :  { %v4852_v28 = vpop.f32.mrf.mxu1 }
0x1f19   :  { %v4855_v57 = vpop.f32.mrf.mxu1 }
0x1f1b   :  { %v4856_v6 = vpop.f32.mrf.mxu1 }
0x1f1d   :  { %v4859_v52 = vpop.f32.mrf.mxu1 }
0x1f1f   :  { %v4860_v18 = vpop.f32.mrf.mxu1 }
0x1f21   :  { %v4863_v54 = vpop.f32.mrf.mxu1 }
0x1f23   :  { %v4864_v63 = vpop.f32.mrf.mxu1 }
0x1f26   :  { %v4999_v45 = vpop.f32.mrf.mxu1 }
0x1f27   :  { %v5000_v50 = vadd.f32 %v4999_v45, %v4929_v16 }
0x1f28   :  { %v7049_v2 = vpop.f32.mrf.mxu1 }
0x1f29   :  { %v5003_v27 = vadd.f32 %v5000_v50, %v4920_v55 }
0x1f2b   :  { %v5005_v30 = vsel %vm5004_vm2, %v5003_v27, 0.0 }
0x1f2c   :  { %5006 = vadd.xlane.f32.xlu0 %v5005_v30 }
0x1fb5   :  { %v5007_v59 = vpop.xlane.xlu0 %5006 }
0x1fb6   :  { %v5009_v19 = vmul.f32 0.015625, %v5007_v59 }
0x1fb8   :  { %v5010_v51 = vsub.f32 %v5003_v27, %v5009_v19 }
0x1fba   :  { %v5011_v20 = vmul.f32 %v5010_v51, %v5010_v51 }
0x1fbc   :  { %v5012_v0 = vsel %vm5004_vm2, %v5011_v20, 0.0 }
0x1fbd   :  { %5013 = vadd.xlane.f32.xlu1 %v5012_v0 }
0x2046   :  { %v5014_v9 = vpop.xlane.xlu1 %5013 }
0x2047   :  { %v5015_v34 = vmul.f32 0.015625, %v5014_v9 }
0x2049   :  { %v5016_v41 = vadd.f32 1e-05, %v5015_v34 }
0x204b   :  { %7435 = vrsqrt.f32 %v5016_v41 }
0x2058   :  { %v7436_v39 = vpop.eup %7435 }
0x2059   :  { %v10877_v38 = vmul.f32 %v7436_v39, %v5010_v51 }
0x205a   :  { %7484 = dma.done.wait [#allocation4], 8192 }
0x205b   :  { %7485 = vsyncadd [#allocation4], 4294959104  ;;  %v11491_v21 = vld [vmem:[#allocation69_spill] sm:$0xff]  ;;  %v11492_v23 = vld [vmem:[#allocation71_spill] sm:$0xff] }
0x205c   :  { %5151 = vmatprep.subr.mxu0 %v11491_v21  ;;  %5222 = vmatprep.subr.mxu1 %v11492_v23 }
0x205d   :  { %7486 = dma.done.wait [#allocation4 + $0x1], 16384 }
0x205e   :  { %7487 = vsyncadd [#allocation4 + $0x1], 4294950912  ;;  %v11493_v33 = vld [vmem:[#allocation68_spill] sm:$0xff]  ;;  %v11494_v40 = vld [vmem:[#allocation70_spill] sm:$0xff]  ;;  %5199 = vmatprep.mubr.f32.mxu0 %v11480_v13  ;;  %5270 = vmatprep.mubr.f32.mxu1 %v11480_v13  ;;  %s7495_s5 = smov [#allocation5]   ;;  %vm6172_vm4 = vcmask 73728  }
0x205f   :  { %5152 = vmatpush1.msra.mxu0 %v11493_v33  ;;  %5223 = vmatpush1.msra.mxu1 %v11494_v40  ;;  %v11495_v61 = vld [vmem:[#allocation61_spill] sm:$0xff]  ;;  %v11496_v4 = vld [vmem:[#allocation63_spill] sm:$0xff]  ;;  %v11497_v46 = vld [vmem:[#allocation60_spill] sm:$0xff]  ;;  %s6180_s30 = sshll.u32 %s7495_s5, 4  ;;  %s6181_s30 = int_to_ptr.vmem [resolvable:$true] %s6180_s30 }
0x2060   :  { %5153 = vmatprep.subr.mxu0 %v11495_v61  ;;  %5224 = vmatprep.subr.mxu1 %v11496_v4  ;;  %v11498_v60 = vld [vmem:[#allocation62_spill] sm:$0xff]  ;;  %v11499_v17 = vld [vmem:[#allocation53_spill] sm:$0xff]  ;;  %v11500_v8 = vld [vmem:[#allocation55_spill] sm:$0xff]  ;;  %s7464_s10 = scalar_lea.vmem %s6181_s30, 16  ;;  %s7468_s0 = scalar_lea.vmem %s6181_s30, 32 }
0x2061   :  { %5154 = vmatpush1.msra.mxu0 %v11497_v46  ;;  %5225 = vmatpush1.msra.mxu1 %v11498_v60  ;;  %v11501_v36 = vld [vmem:[#allocation52_spill] sm:$0xff]  ;;  %v11502_v26 = vld [vmem:[#allocation54_spill] sm:$0xff]  ;;  %v11503_v12 = vld [vmem:[#allocation45_spill] sm:$0xff]  ;;  %p7465_p0 = scmp.ne.s32.totalorder %s6181_s30, %s7464_s10  ;;  %p7469_p1 = scmp.lt.s32.totalorder %s6181_s30, %s6181_s30 }
0x2062   :  { %5155 = vmatprep.subr.mxu0 %v11499_v17  ;;  %5226 = vmatprep.subr.mxu1 %v11500_v8  ;;  %v11504_v62 = vld [vmem:[#allocation47_spill] sm:$0xff]  ;;  %v11505_v53 = vld [vmem:[#allocation44_spill] sm:$0xff]  ;;  %v11506_v11 = vld [vmem:[#allocation46_spill] sm:$0xff]  ;;  %p7470_p2 = scmp.lt.s32.totalorder %s7468_s0, %s7464_s10 }
0x2063   :  { %5156 = vmatpush1.msra.mxu0 %v11501_v36  ;;  %5227 = vmatpush1.msra.mxu1 %v11502_v26  ;;  %v11507_v42 = vld [vmem:[#allocation37_spill] sm:$0xff]  ;;  %v11508_v58 = vld [vmem:[#allocation39_spill] sm:$0xff]  ;;  %v11509_v14 = vld [vmem:[#allocation36_spill] sm:$0xff] }
0x2064   :  { %5157 = vmatprep.subr.mxu0 %v11503_v12  ;;  %5228 = vmatprep.subr.mxu1 %v11504_v62  ;;  %v11510_v56 = vld [vmem:[#allocation38_spill] sm:$0xff]  ;;  %v11511_v3 = vld [vmem:[#allocation29_spill] sm:$0xff]  ;;  %v11512_v49 = vld [vmem:[#allocation31_spill] sm:$0xff]  ;;  %p7471_p3 = por %p7470_p2, %p7469_p1 }
0x2065   :  { %5158 = vmatpush1.msra.mxu0 %v11505_v53  ;;  %5229 = vmatpush1.msra.mxu1 %v11506_v11  ;;  %v11513_v44 = vld [vmem:[#allocation28_spill] sm:$0xff]  ;;  %v11514_v10 = vld [vmem:[#allocation30_spill] sm:$0xff]  ;;  %v11515_v43 = vld [vmem:[#allocation21_spill] sm:$0xff] }
0x2066   :  { %5159 = vmatprep.subr.mxu0 %v11507_v42  ;;  %5230 = vmatprep.subr.mxu1 %v11508_v58  ;;  %v11516_v37 = vld [vmem:[#allocation23_spill] sm:$0xff]  ;;  %v11517_v1 = vld [vmem:[#allocation20_spill] sm:$0xff]  ;;  %v11518_v35 = vld [vmem:[#allocation22_spill] sm:$0xff]  ;;  %p7472_p4 = pnand %p7471_p3, %p7465_p0 }
0x2067   :  { %5160 = vmatpush1.msra.mxu0 %v11509_v14  ;;  %5231 = vmatpush1.msra.mxu1 %v11510_v56  ;;  %v11519_v5 = vld [vmem:[#allocation13_spill] sm:$0xff]  ;;  %v11520_v24 = vld [vmem:[#allocation15_spill] sm:$0xff]  ;;  %v11521_v32 = vld [vmem:[#allocation12_spill] sm:$0xff] }
0x2068   :  { %5161 = vmatprep.subr.mxu0 %v11511_v3  ;;  %5232 = vmatprep.subr.mxu1 %v11512_v49  ;;  %v11522_v47 = vld [vmem:[#allocation14_spill] sm:$0xff]  ;;  %v11523_v7 = vld [vmem:[#allocation73_spill] sm:$0xff]  ;;  %v11524_v22 = vld [vmem:[#allocation75_spill] sm:$0xff] }
0x2069   :  { %5162 = vmatpush1.msra.mxu0 %v11513_v44  ;;  %5233 = vmatpush1.msra.mxu1 %v11514_v10  ;;  %v11525_v31 = vld [vmem:[#allocation72_spill] sm:$0xff]  ;;  %v11526_v25 = vld [vmem:[#allocation74_spill] sm:$0xff]  ;;  %v11527_v55 = vld [vmem:[#allocation65_spill] sm:$0xff] }
0x206a   :  { %5163 = vmatprep.subr.mxu0 %v11515_v43  ;;  %5234 = vmatprep.subr.mxu1 %v11516_v37  ;;  %v11528_v29 = vld [vmem:[#allocation67_spill] sm:$0xff]  ;;  %v11529_v28 = vld [vmem:[#allocation64_spill] sm:$0xff]  ;;  %v11530_v57 = vld [vmem:[#allocation66_spill] sm:$0xff] }
0x206b   :  { %5164 = vmatpush1.msra.mxu0 %v11517_v1  ;;  %5235 = vmatpush1.msra.mxu1 %v11518_v35  ;;  %v11531_v6 = vld [vmem:[#allocation57_spill] sm:$0xff]  ;;  %v11532_v52 = vld [vmem:[#allocation59_spill] sm:$0xff]  ;;  %v11533_v18 = vld [vmem:[#allocation56_spill] sm:$0xff] }
0x206c   :  { %5165 = vmatprep.subr.mxu0 %v11519_v5  ;;  %5236 = vmatprep.subr.mxu1 %v11520_v24  ;;  %v11534_v54 = vld [vmem:[#allocation58_spill] sm:$0xff]  ;;  %v11535_v63 = vld [vmem:[#allocation49_spill] sm:$0xff]  ;;  %v11536_v16 = vld [vmem:[#allocation51_spill] sm:$0xff] }
0x206d   :  { %5166 = vmatpush1.msra.mxu0 %v11521_v32  ;;  %5237 = vmatpush1.msra.mxu1 %v11522_v47  ;;  %v11537_v45 = vld [vmem:[#allocation48_spill] sm:$0xff]  ;;  %v11538_v50 = vld [vmem:[#allocation50_spill] sm:$0xff]  ;;  %v11539_v2 = vld [vmem:[#allocation41_spill] sm:$0xff] }
0x206e   :  { %6332 = vmatmul.mubr.msk.f32.vlgmr.msra.gmra.mxu0 %vm2526_vm1, %v10877_v38  ;;  %6333 = vmatmul.mubr.msk.f32.vlgmr.msra.gmra.mxu1 %vm2526_vm1, %v10877_v38  ;;  %v11540_v27 = vld [vmem:[#allocation43_spill] sm:$0xff]  ;;  %v11541_v30 = vld [vmem:[#allocation40_spill] sm:$0xff]  ;;  %v11542_v59 = vld [vmem:[#allocation42_spill] sm:$0xff] }
0x206f   :  { %5293 = vmatprep.subr.mxu0 %v11523_v7  ;;  %5364 = vmatprep.subr.mxu1 %v11524_v22  ;;  %v11543_v19 = vld [vmem:[#allocation33_spill] sm:$0xff]  ;;  %v11544_v51 = vld [vmem:[#allocation35_spill] sm:$0xff]  ;;  %v11545_v20 = vld [vmem:[#allocation32_spill] sm:$0xff] }
0x2070   :  { %5294 = vmatpush1.msra.mxu0 %v11525_v31  ;;  %5365 = vmatpush1.msra.mxu1 %v11526_v25  ;;  %v11546_v0 = vld [vmem:[#allocation34_spill] sm:$0xff]  ;;  %v11547_v9 = vld [vmem:[#allocation25_spill] sm:$0xff]  ;;  %v11548_v34 = vld [vmem:[#allocation27_spill] sm:$0xff] }
0x2071   :  { %5295 = vmatprep.subr.mxu0 %v11527_v55  ;;  %5366 = vmatprep.subr.mxu1 %v11528_v29  ;;  %v11549_v41 = vld [vmem:[#allocation24_spill] sm:$0xff]  ;;  %v11550_v39 = vld [vmem:[#allocation26_spill] sm:$0xff]  ;;  %v11551_v21 = vld [vmem:[#allocation17_spill] sm:$0xff] }
0x2072   :  { %5296 = vmatpush1.msra.mxu0 %v11529_v28  ;;  %5367 = vmatpush1.msra.mxu1 %v11530_v57  ;;  %v11552_v23 = vld [vmem:[#allocation19_spill] sm:$0xff]  ;;  %v11553_v33 = vld [vmem:[#allocation16_spill] sm:$0xff]  ;;  %v11554_v40 = vld [vmem:[#allocation18_spill] sm:$0xff] }
0x2073   :  { %5297 = vmatprep.subr.mxu0 %v11531_v6  ;;  %5368 = vmatprep.subr.mxu1 %v11532_v52  ;;  %v11555_v61 = vld [vmem:[#allocation107_spill] sm:$0xff]  ;;  %v11559_v17 = vld [vmem:[#allocation106_spill] sm:$0xff]  ;;  %v11563_v12 = vld [vmem:[#allocation105_spill] sm:$0xff] }
0x2074   :  { %5298 = vmatpush1.msra.mxu0 %v11533_v18  ;;  %5369 = vmatpush1.msra.mxu1 %v11534_v54  ;;  %v11556_v4 = vld [vmem:[#allocation139_spill] sm:$0xff]  ;;  %v11560_v8 = vld [vmem:[#allocation138_spill] sm:$0xff]  ;;  %v11564_v62 = vld [vmem:[#allocation137_spill] sm:$0xff] }
0x2075   :  { %5299 = vmatprep.subr.mxu0 %v11535_v63  ;;  %5370 = vmatprep.subr.mxu1 %v11536_v16  ;;  %v11557_v46 = vld [vmem:[#allocation91_spill] sm:$0xff]  ;;  %v11561_v36 = vld [vmem:[#allocation90_spill] sm:$0xff]  ;;  %v11565_v53 = vld [vmem:[#allocation89_spill] sm:$0xff] }
0x2076   :  { %5300 = vmatpush1.msra.mxu0 %v11537_v45  ;;  %5371 = vmatpush1.msra.mxu1 %v11538_v50  ;;  %v11558_v60 = vld [vmem:[#allocation123_spill] sm:$0xff]  ;;  %v11562_v26 = vld [vmem:[#allocation122_spill] sm:$0xff]  ;;  %v11566_v11 = vld [vmem:[#allocation121_spill] sm:$0xff] }
0x2077   :  { %5301 = vmatprep.subr.mxu0 %v11539_v2  ;;  %5372 = vmatprep.subr.mxu1 %v11540_v27  ;;  %v11567_v42 = vld [vmem:[#allocation104_spill] sm:$0xff]  ;;  %v11571_v3 = vld [vmem:[#allocation103_spill] sm:$0xff]  ;;  %v11575_v43 = vld [vmem:[#allocation102_spill] sm:$0xff] }
0x2078   :  { %5302 = vmatpush1.msra.mxu0 %v11541_v30  ;;  %5373 = vmatpush1.msra.mxu1 %v11542_v59  ;;  %v11568_v58 = vld [vmem:[#allocation136_spill] sm:$0xff]  ;;  %v11572_v49 = vld [vmem:[#allocation135_spill] sm:$0xff]  ;;  %v11576_v37 = vld [vmem:[#allocation134_spill] sm:$0xff] }
0x2079   :  { %5303 = vmatprep.subr.mxu0 %v11543_v19  ;;  %5374 = vmatprep.subr.mxu1 %v11544_v51  ;;  %v11569_v14 = vld [vmem:[#allocation88_spill] sm:$0xff]  ;;  %v11573_v44 = vld [vmem:[#allocation87_spill] sm:$0xff]  ;;  %v11577_v1 = vld [vmem:[#allocation86_spill] sm:$0xff] }
0x207a   :  { %5304 = vmatpush1.msra.mxu0 %v11545_v20  ;;  %5375 = vmatpush1.msra.mxu1 %v11546_v0  ;;  %v11570_v56 = vld [vmem:[#allocation120_spill] sm:$0xff]  ;;  %v11574_v10 = vld [vmem:[#allocation119_spill] sm:$0xff]  ;;  %v11578_v35 = vld [vmem:[#allocation118_spill] sm:$0xff] }
0x207b   :  { %5305 = vmatprep.subr.mxu0 %v11547_v9  ;;  %5376 = vmatprep.subr.mxu1 %v11548_v34  ;;  %v11579_v5 = vld [vmem:[#allocation101_spill] sm:$0xff]  ;;  %v11583_v7 = vld [vmem:[#allocation100_spill] sm:$0xff]  ;;  %v11587_v55 = vld [vmem:[#allocation99_spill] sm:$0xff] }
0x207c   :  { %5306 = vmatpush1.msra.mxu0 %v11549_v41  ;;  %5377 = vmatpush1.msra.mxu1 %v11550_v39  ;;  %v11580_v24 = vld [vmem:[#allocation133_spill] sm:$0xff]  ;;  %v11584_v22 = vld [vmem:[#allocation132_spill] sm:$0xff]  ;;  %v11588_v29 = vld [vmem:[#allocation131_spill] sm:$0xff] }
0x207d   :  { %5307 = vmatprep.subr.mxu0 %v11551_v21  ;;  %5378 = vmatprep.subr.mxu1 %v11552_v23  ;;  %v11581_v32 = vld [vmem:[#allocation85_spill] sm:$0xff]  ;;  %v11585_v31 = vld [vmem:[#allocation84_spill] sm:$0xff]  ;;  %v11589_v28 = vld [vmem:[#allocation83_spill] sm:$0xff] }
0x207e   :  { %5308 = vmatpush1.msra.mxu0 %v11553_v33  ;;  %5341 = vmatprep.mubr.f32.mxu0 %v11480_v13  ;;  %v11582_v47 = vld [vmem:[#allocation117_spill] sm:$0xff]  ;;  %v11586_v25 = vld [vmem:[#allocation116_spill] sm:$0xff]  ;;  %v11590_v57 = vld [vmem:[#allocation115_spill] sm:$0xff] }
0x207f   :  { %5379 = vmatpush1.msra.mxu1 %v11554_v40  ;;  %5412 = vmatprep.mubr.f32.mxu1 %v11480_v13  ;;  %v11591_v6 = vld [vmem:[#allocation98_spill] sm:$0xff]  ;;  %v11595_v63 = vld [vmem:[#allocation97_spill] sm:$0xff]  ;;  %v11599_v2 = vld [vmem:[#allocation96_spill] sm:$0xff] }
0x2080   :  { %6334 = vmatmul.mubr.msk.f32.vlgmr.msra.gmra.mxu0 %vm2526_vm1, %v10877_v38  ;;  %6335 = vmatmul.mubr.msk.f32.vlgmr.msra.gmra.mxu1 %vm2526_vm1, %v10877_v38  ;;  %v11592_v52 = vld [vmem:[#allocation130_spill] sm:$0xff]  ;;  %v11596_v16 = vld [vmem:[#allocation129_spill] sm:$0xff]  ;;  %v11600_v27 = vld [vmem:[#allocation128_spill] sm:$0xff] }
0x2081   :  { %6501 = vmatprep.subr.mxu0 %v11555_v61  ;;  %6536 = vmatprep.subr.mxu1 %v11556_v4  ;;  %v11593_v18 = vld [vmem:[#allocation82_spill] sm:$0xff]  ;;  %v11597_v45 = vld [vmem:[#allocation81_spill] sm:$0xff]  ;;  %v11601_v30 = vld [vmem:[#allocation80_spill] sm:$0xff] }
0x2082   :  { %6502 = vmatpush3.msra.mxu0 %v11557_v46  ;;  %6537 = vmatpush3.msra.mxu1 %v11558_v60  ;;  %v11594_v54 = vld [vmem:[#allocation114_spill] sm:$0xff]  ;;  %v11598_v50 = vld [vmem:[#allocation113_spill] sm:$0xff]  ;;  %v11602_v59 = vld [vmem:[#allocation112_spill] sm:$0xff] }
0x2083   :  { %6503 = vmatprep.subr.mxu0 %v11559_v17  ;;  %6538 = vmatprep.subr.mxu1 %v11560_v8  ;;  %v11603_v19 = vld [vmem:[#allocation95_spill] sm:$0xff]  ;;  %v11607_v9 = vld [vmem:[#allocation94_spill] sm:$0xff]  ;;  %v11611_v21 = vld [vmem:[#allocation93_spill] sm:$0xff] }
0x2084   :  { %6504 = vmatpush3.msra.mxu0 %v11561_v36  ;;  %6539 = vmatpush3.msra.mxu1 %v11562_v26  ;;  %v11604_v51 = vld [vmem:[#allocation127_spill] sm:$0xff]  ;;  %v11608_v34 = vld [vmem:[#allocation126_spill] sm:$0xff]  ;;  %v11612_v23 = vld [vmem:[#allocation125_spill] sm:$0xff] }
0x2085   :  { %6505 = vmatprep.subr.mxu0 %v11563_v12  ;;  %6540 = vmatprep.subr.mxu1 %v11564_v62  ;;  %v11605_v20 = vld [vmem:[#allocation79_spill] sm:$0xff]  ;;  %v11609_v41 = vld [vmem:[#allocation78_spill] sm:$0xff]  ;;  %v11613_v33 = vld [vmem:[#allocation77_spill] sm:$0xff] }
0x2086   :  { %6506 = vmatpush3.msra.mxu0 %v11565_v53  ;;  %6541 = vmatpush3.msra.mxu1 %v11566_v11  ;;  %v11606_v0 = vld [vmem:[#allocation111_spill] sm:$0xff]  ;;  %v11610_v39 = vld [vmem:[#allocation110_spill] sm:$0xff]  ;;  %v11614_v40 = vld [vmem:[#allocation109_spill] sm:$0xff] }
0x2087   :  { %6507 = vmatprep.subr.mxu0 %v11567_v42  ;;  %6542 = vmatprep.subr.mxu1 %v11568_v58  ;;  %v11615_v61 = vld [vmem:[#allocation92_spill] sm:$0xff]  ;;  %v11619_v17 = vld [vmem:[#allocation171_spill] sm:$0xff]  ;;  %v5090_v12 = vld [vmem:[%s11267_s15 + $0xd] sm:$0xff] }
0x2088   :  { %6508 = vmatpush3.msra.mxu0 %v11569_v14  ;;  %6543 = vmatpush3.msra.mxu1 %v11570_v56  ;;  %v11616_v4 = vld [vmem:[#allocation124_spill] sm:$0xff]  ;;  %v11620_v8 = vld [vmem:[#allocation203_spill] sm:$0xff]  ;;  %v5095_v53 = vrot.slane %v5090_v12, %v11488_v48  ;;  %v5099_v42 = vrot.slane %v5090_v12, %v11489_v15 }
0x2089   :  { %6509 = vmatprep.subr.mxu0 %v11571_v3  ;;  %6544 = vmatprep.subr.mxu1 %v11572_v49  ;;  %v11617_v46 = vld [vmem:[#allocation76_spill] sm:$0xff] }
0x208a   :  { %6510 = vmatpush3.msra.mxu0 %v11573_v44  ;;  %6545 = vmatpush3.msra.mxu1 %v11574_v10  ;;  %v11618_v60 = vld [vmem:[#allocation108_spill] sm:$0xff] }
0x208b   :  { %6511 = vmatprep.subr.mxu0 %v11575_v43  ;;  %6546 = vmatprep.subr.mxu1 %v11576_v37  ;;  %v11621_v36 = vld [vmem:[#allocation204_spill] sm:$0xff] }
0x208c   :  { %6512 = vmatpush3.msra.mxu0 %v11577_v1  ;;  %6547 = vmatpush3.msra.mxu1 %v11578_v35  ;;  %v5102_v26 = vsub.s32 2, %v11621_v36  ;;  %v5106_v62 = vsub.s32 3, %v11621_v36 }
0x208d   :  { %6513 = vmatprep.subr.mxu0 %v11579_v5  ;;  %6548 = vmatprep.subr.mxu1 %v11580_v24 }
0x208e   :  { %6514 = vmatpush3.msra.mxu0 %v11581_v32  ;;  %6549 = vmatpush3.msra.mxu1 %v11582_v47  ;;  %v5103_v11 = vrot.slane %v5090_v12, %v5102_v26  ;;  %v5107_v58 = vrot.slane %v5090_v12, %v5106_v62 }
0x208f   :  { %6515 = vmatprep.subr.mxu0 %v11583_v7  ;;  %6550 = vmatprep.subr.mxu1 %v11584_v22 }
0x2090   :  { %6516 = vmatpush3.msra.mxu0 %v11585_v31  ;;  %6551 = vmatpush3.msra.mxu1 %v11586_v25 }
0x2091   :  { %6517 = vmatprep.subr.mxu0 %v11587_v55  ;;  %6552 = vmatprep.subr.mxu1 %v11588_v29 }
0x2092   :  { %6518 = vmatpush3.msra.mxu0 %v11589_v28  ;;  %6553 = vmatpush3.msra.mxu1 %v11590_v57 }
0x2093   :  { %6519 = vmatprep.subr.mxu0 %v11591_v6  ;;  %6554 = vmatprep.subr.mxu1 %v11592_v52 }
0x2094   :  { %6520 = vmatpush3.msra.mxu0 %v11593_v18  ;;  %6555 = vmatpush3.msra.mxu1 %v11594_v54  ;;  %v5110_v18 = vsub.s32 4, %v11621_v36  ;;  %v5114_v54 = vsub.s32 5, %v11621_v36 }
0x2095   :  { %6521 = vmatprep.subr.mxu0 %v11595_v63  ;;  %6556 = vmatprep.subr.mxu1 %v11596_v16  ;;  %v5122_v63 = vsub.s32 7, %v11621_v36 }
0x2096   :  { %6522 = vmatpush3.msra.mxu0 %v11597_v45  ;;  %6557 = vmatpush3.msra.mxu1 %v11598_v50  ;;  %v5118_v50 = vsub.s32 6, %v11621_v36 }
0x2097   :  { %6523 = vmatprep.subr.mxu0 %v11599_v2  ;;  %6558 = vmatprep.subr.mxu1 %v11600_v27  ;;  %v5111_v2 = vrot.slane %v5090_v12, %v5110_v18  ;;  %v5115_v27 = vrot.slane %v5090_v12, %v5114_v54  ;;  %v11632_v18 = vld [vmem:[#allocation168_spill] sm:$0xff] }
0x2098   :  { %6524 = vmatpush3.msra.mxu0 %v11601_v30  ;;  %6559 = vmatpush3.msra.mxu1 %v11602_v59  ;;  %v5123_v30 = vrot.slane %v5090_v12, %v5122_v63  ;;  %v11633_v54 = vld [vmem:[#allocation200_spill] sm:$0xff] }
0x2099   :  { %6525 = vmatprep.subr.mxu0 %v11603_v19  ;;  %6560 = vmatprep.subr.mxu1 %v11604_v51  ;;  %v5119_v19 = vrot.slane %v5090_v12, %v5118_v50  ;;  %v11634_v63 = vld [vmem:[#allocation152_spill] sm:$0xff]  ;;  %v11636_v50 = vld [vmem:[#allocation167_spill] sm:$0xff] }
0x209a   :  { %6526 = vmatpush3.msra.mxu0 %v11605_v20  ;;  %6561 = vmatpush3.msra.mxu1 %v11606_v0 }
0x209b   :  { %6527 = vmatprep.subr.mxu0 %v11607_v9  ;;  %6562 = vmatprep.subr.mxu1 %v11608_v34 }
0x209c   :  { %6528 = vmatpush3.msra.mxu0 %v11609_v41  ;;  %6563 = vmatpush3.msra.mxu1 %v11610_v39 }
0x209d   :  { %6529 = vmatprep.subr.mxu0 %v11611_v21  ;;  %6564 = vmatprep.subr.mxu1 %v11612_v23 }
0x209e   :  { %6530 = vmatpush3.msra.mxu0 %v11613_v33  ;;  %6565 = vmatpush3.msra.mxu1 %v11614_v40 }
0x209f   :  { %6531 = vmatprep.subr.mxu0 %v11615_v61  ;;  %6566 = vmatprep.subr.mxu1 %v11616_v4 }
0x20a0   :  { %6532 = vmatpush3.msra.mxu0 %v11617_v46  ;;  %6567 = vmatpush3.msra.mxu1 %v11618_v60 }
0x20a1   :  { %6571 = vmatprep.subr.mxu0 %v11619_v17  ;;  %6606 = vmatprep.subr.mxu1 %v11620_v8 }
0x212e   :  { %v5201_v14 = vpop.f32.mrf.mxu0  ;;  %v5272_v56 = vpop.f32.mrf.mxu1 }
0x212f   :  { %v5202_v3 = vadd.f32 %v5201_v14, %v5095_v53  ;;  %v11028_v49 = vadd.f32 %v5272_v56, %v5103_v11 }
0x2130   :  { %v5203_v44 = vpop.f32.mrf.mxu0  ;;  %v5274_v10 = vpop.f32.mrf.mxu1 }
0x2131   :  { %v5427_v43 = vmul.f32 0.044715, %v5202_v3  ;;  %v5429_v37 = vmul.f32 0.044715, %v11028_v49  ;;  %v5204_v1 = vadd.f32 %v5203_v44, %v5099_v42  ;;  %v5275_v35 = vadd.f32 %v5274_v10, %v5107_v58 }
0x2132   :  { %v5419_v26 = vmul.f32 0.5, %v5202_v3 }
0x2133   :  { %v5435_v5 = vmul.f32 %v5427_v43, %v5202_v3  ;;  %v5437_v24 = vmul.f32 %v5429_v37, %v11028_v49  ;;  %v5428_v48 = vmul.f32 0.044715, %v5204_v1  ;;  %v5430_v32 = vmul.f32 0.044715, %v5275_v35 }
0x2134   :  { %v5420_v36 = vmul.f32 0.5, %v5204_v1  ;;  %v5422_v44 = vmul.f32 0.5, %v5275_v35 }
0x2135   :  { %v5443_v47 = vmul.f32 %v5435_v5, %v5202_v3  ;;  %v5445_v15 = vmul.f32 %v5437_v24, %v11028_v49  ;;  %v5436_v7 = vmul.f32 %v5428_v48, %v5204_v1  ;;  %v5438_v22 = vmul.f32 %v5430_v32, %v5275_v35 }
0x2137   :  { %v5451_v31 = vadd.f32 %v5443_v47, %v5202_v3  ;;  %v5453_v25 = vadd.f32 %v5445_v15, %v11028_v49  ;;  %v5444_v55 = vmul.f32 %v5436_v7, %v5204_v1  ;;  %v5446_v29 = vmul.f32 %v5438_v22, %v5275_v35  ;;  %v11623_v7 = vld [vmem:[#allocation187_spill] sm:$0xff] }
0x2139   :  { %v5452_v28 = vadd.f32 %v5444_v55, %v5204_v1  ;;  %v5454_v57 = vadd.f32 %v5446_v29, %v5275_v35  ;;  %v5459_v6 = vmul.f32 0.7978846, %v5451_v31  ;;  %v5461_v52 = vmul.f32 0.7978846, %v5453_v25  ;;  %v11622_v35 = vld [vmem:[#allocation155_spill] sm:$0xff]  ;;  %v11625_v31 = vld [vmem:[#allocation202_spill] sm:$0xff] }
0x213a   :  { %v5421_v1 = vmul.f32 0.5, %v11028_v49  ;;  %v11624_v49 = vld [vmem:[#allocation170_spill] sm:$0xff] }
0x213b   :  { %v5460_v16 = vmul.f32 0.7978846, %v5452_v28  ;;  %v5462_v45 = vmul.f32 0.7978846, %v5454_v57  ;;  %7442 = vtanh.f32 %v5459_v6  ;;  %v11626_v25 = vld [vmem:[#allocation154_spill] sm:$0xff]  ;;  %v11628_v28 = vld [vmem:[#allocation169_spill] sm:$0xff] }
0x213c   :  { %7444 = vtanh.f32 %v5461_v52  ;;  %v11627_v29 = vld [vmem:[#allocation186_spill] sm:$0xff]  ;;  %v11629_v57 = vld [vmem:[#allocation201_spill] sm:$0xff] }
0x213d   :  { %7446 = vtanh.f32 %v5460_v16  ;;  %v11630_v6 = vld [vmem:[#allocation153_spill] sm:$0xff] }
0x213e   :  { %7448 = vtanh.f32 %v5462_v45  ;;  %v11631_v52 = vld [vmem:[#allocation185_spill] sm:$0xff]  ;;  %v11635_v45 = vld [vmem:[#allocation184_spill] sm:$0xff] }
0x2140   :  { %v5343_v59 = vpop.f32.mrf.mxu0  ;;  %v5414_v51 = vpop.f32.mrf.mxu1 }
0x2141   :  { %v11038_v9 = vadd.f32 %v5343_v59, %v5111_v2  ;;  %v11044_v39 = vadd.f32 %v5414_v51, %v5119_v19  ;;  %v11639_v59 = vld [vmem:[#allocation183_spill] sm:$0xff]  ;;  %v11640_v19 = vld [vmem:[#allocation166_spill] sm:$0xff] }
0x2142   :  { %v5345_v20 = vpop.f32.mrf.mxu0  ;;  %v5416_v0 = vpop.f32.mrf.mxu1  ;;  %v11641_v51 = vld [vmem:[#allocation198_spill] sm:$0xff] }
0x2143   :  { %v11040_v34 = vadd.f32 %v5345_v20, %v5115_v27  ;;  %v11042_v41 = vadd.f32 %v5416_v0, %v5123_v30  ;;  %v5431_v33 = vmul.f32 0.044715, %v11038_v9  ;;  %v5433_v46 = vmul.f32 0.044715, %v11044_v39  ;;  %v11637_v27 = vld [vmem:[#allocation199_spill] sm:$0xff]  ;;  %v11642_v20 = vld [vmem:[#allocation150_spill] sm:$0xff] }
0x2144   :  { %v11638_v30 = vld [vmem:[#allocation151_spill] sm:$0xff] }
0x2145   :  { %v5432_v21 = vmul.f32 0.044715, %v11040_v34  ;;  %v5434_v23 = vmul.f32 0.044715, %v11042_v41  ;;  %v5439_v11 = vmul.f32 %v5431_v33, %v11038_v9  ;;  %v5441_v56 = vmul.f32 %v5433_v46, %v11044_v39 }
0x2147   :  { %v5440_v40 = vmul.f32 %v5432_v21, %v11040_v34  ;;  %v5442_v61 = vmul.f32 %v5434_v23, %v11042_v41  ;;  %v5447_v32 = vmul.f32 %v5439_v11, %v11038_v9  ;;  %v5449_v15 = vmul.f32 %v5441_v56, %v11044_v39  ;;  %v11643_v21 = vld [vmem:[#allocation182_spill] sm:$0xff]  ;;  %v11644_v23 = vld [vmem:[#allocation165_spill] sm:$0xff]  ;;  %v11652_v11 = vld [vmem:[#allocation163_spill] sm:$0xff] }
0x2148   :  { %v7443_v4 = vpop.eup %7442  ;;  %v11657_v56 = vld [vmem:[#allocation194_spill] sm:$0xff] }
0x2149   :  { %v7445_v60 = vpop.eup %7444  ;;  %v5448_v17 = vmul.f32 %v5440_v40, %v11040_v34  ;;  %v5475_v12 = vadd.f32 1.0, %v7443_v4  ;;  %v5450_v62 = vmul.f32 %v5442_v61, %v11042_v41  ;;  %v5455_v22 = vadd.f32 %v5447_v32, %v11038_v9  ;;  %v11645_v40 = vld [vmem:[#allocation197_spill] sm:$0xff]  ;;  %v11666_v32 = vld [vmem:[#allocation144_spill] sm:$0xff] }
0x214a   :  { %v7447_v8 = vpop.eup %7446  ;;  %v5477_v58 = vadd.f32 1.0, %v7445_v60  ;;  %v5457_v55 = vadd.f32 %v5449_v15, %v11044_v39  ;;  %v11646_v61 = vld [vmem:[#allocation149_spill] sm:$0xff]  ;;  %v5424_v4 = vmul.f32 0.5, %v11040_v34  ;;  %v11667_v15 = vld [vmem:[#allocation176_spill] sm:$0xff] }
0x214b   :  { %v7449_v53 = vpop.eup %7448  ;;  %v5476_v42 = vadd.f32 1.0, %v7447_v8  ;;  %v5456_v14 = vadd.f32 %v5448_v17, %v11040_v34  ;;  %v5458_v43 = vadd.f32 %v5450_v62, %v11042_v41  ;;  %v5483_v24 = vmul.f32 %v5475_v12, %v5419_v26  ;;  %v11647_v60 = vld [vmem:[#allocation181_spill] sm:$0xff]  ;;  %v11648_v17 = vld [vmem:[#allocation164_spill] sm:$0xff]  ;;  %v11653_v34 = vld [vmem:[#allocation195_spill] sm:$0xff] }
0x214c   :  { %v5478_v10 = vadd.f32 1.0, %v7449_v53  ;;  %v5485_v47 = vmul.f32 %v5477_v58, %v5421_v1  ;;  %v5463_v16 = vmul.f32 0.7978846, %v5455_v22  ;;  %v5465_v2 = vmul.f32 0.7978846, %v5457_v55  ;;  %v11649_v26 = vld [vmem:[#allocation196_spill] sm:$0xff] }
0x214d   :  { %v5484_v37 = vmul.f32 %v5476_v42, %v5420_v36  ;;  %v5464_v3 = vmul.f32 0.7978846, %v5456_v14  ;;  %v5466_v48 = vmul.f32 0.7978846, %v5458_v43  ;;  %v5426_v8 = vmul.f32 0.5, %v11042_v41  ;;  %v11650_v12 = vld [vmem:[#allocation148_spill] sm:$0xff] }
0x214e   :  { %v5486_v5 = vmul.f32 %v5478_v10, %v5422_v44  ;;  %v11651_v53 = vld [vmem:[#allocation180_spill] sm:$0xff]  ;;  %v11654_v58 = vld [vmem:[#allocation147_spill] sm:$0xff]  ;;  %v11656_v41 = vld [vmem:[#allocation162_spill] sm:$0xff] }
0x214f   :  { %5684 = vmatprep.mubr.f32.mxu0 %v5484_v37  ;;  %7450 = vtanh.f32 %v5464_v3  ;;  %v11655_v14 = vld [vmem:[#allocation179_spill] sm:$0xff]  ;;  %v11658_v44 = vld [vmem:[#allocation146_spill] sm:$0xff]  ;;  %v11660_v43 = vld [vmem:[#allocation161_spill] sm:$0xff] }
0x2150   :  { %5754 = vmatprep.mubr.f32.mxu1 %v5486_v5  ;;  %5685 = vmatmul.mubr.f32.vlgmr.msra.gmra.mxu0 %v5483_v24  ;;  %7452 = vtanh.f32 %v5466_v48  ;;  %v11659_v10 = vld [vmem:[#allocation178_spill] sm:$0xff]  ;;  %v11661_v37 = vld [vmem:[#allocation193_spill] sm:$0xff]  ;;  %v11664_v5 = vld [vmem:[#allocation160_spill] sm:$0xff] }
0x2151   :  { %5755 = vmatmul.mubr.f32.vlgmr.msra.gmra.mxu1 %v5485_v47  ;;  %6572 = vmatpush3.msra.mxu0 %v11622_v35  ;;  %7454 = vtanh.f32 %v5463_v16  ;;  %v11662_v1 = vld [vmem:[#allocation145_spill] sm:$0xff]  ;;  %v11665_v48 = vld [vmem:[#allocation192_spill] sm:$0xff]  ;;  %v11668_v35 = vld [vmem:[#allocation159_spill] sm:$0xff] }
0x2152   :  { %6607 = vmatpush3.msra.mxu1 %v11623_v7  ;;  %6573 = vmatprep.subr.mxu0 %v11624_v49  ;;  %7456 = vtanh.f32 %v5465_v2  ;;  %v11663_v3 = vld [vmem:[#allocation177_spill] sm:$0xff]  ;;  %v11669_v7 = vld [vmem:[#allocation191_spill] sm:$0xff]  ;;  %v11673_v55 = vld [vmem:[#allocation190_spill] sm:$0xff] }
0x2153   :  { %6608 = vmatprep.subr.mxu1 %v11625_v31  ;;  %6574 = vmatpush3.msra.mxu0 %v11626_v25  ;;  %v11670_v49 = vld [vmem:[#allocation143_spill] sm:$0xff]  ;;  %v11672_v31 = vld [vmem:[#allocation158_spill] sm:$0xff]  ;;  %v11679_v16 = vld [vmem:[#allocation173_spill] sm:$0xff] }
0x2154   :  { %6609 = vmatpush3.msra.mxu1 %v11627_v29  ;;  %6575 = vmatprep.subr.mxu0 %v11628_v28  ;;  %v11671_v22 = vld [vmem:[#allocation175_spill] sm:$0xff]  ;;  %v11674_v29 = vld [vmem:[#allocation142_spill] sm:$0xff]  ;;  %v11681_v2 = vld [vmem:[#allocation188_spill] sm:$0xff] }
0x2155   :  { %6610 = vmatprep.subr.mxu1 %v11629_v57  ;;  %6576 = vmatpush3.msra.mxu0 %v11630_v6  ;;  %v11675_v57 = vld [vmem:[#allocation174_spill] sm:$0xff]  ;;  %v11676_v6 = vld [vmem:[#allocation157_spill] sm:$0xff] }
0x2156   :  { %6611 = vmatpush3.msra.mxu1 %v11631_v52  ;;  %6577 = vmatprep.subr.mxu0 %v11632_v18  ;;  %v5423_v52 = vmul.f32 0.5, %v11038_v9  ;;  %v11677_v18 = vld [vmem:[#allocation189_spill] sm:$0xff] }
0x2157   :  { %6612 = vmatprep.subr.mxu1 %v11633_v54  ;;  %6578 = vmatpush3.msra.mxu0 %v11634_v63  ;;  %v11678_v54 = vld [vmem:[#allocation141_spill] sm:$0xff]  ;;  %v5425_v63 = vmul.f32 0.5, %v11044_v39 }
0x2158   :  { %6613 = vmatpush3.msra.mxu1 %v11635_v45  ;;  %6579 = vmatprep.subr.mxu0 %v11636_v50  ;;  %v11680_v45 = vld [vmem:[#allocation156_spill] sm:$0xff] }
0x2159   :  { %6614 = vmatprep.subr.mxu1 %v11637_v27  ;;  %6580 = vmatpush3.msra.mxu0 %v11638_v30  ;;  %v11682_v27 = vld [vmem:[#allocation140_spill] sm:$0xff] }
0x215a   :  { %6615 = vmatpush3.msra.mxu1 %v11639_v59  ;;  %6581 = vmatprep.subr.mxu0 %v11640_v19  ;;  %v11683_v59 = vld [vmem:[#allocation172_spill] sm:$0xff] }
0x215b   :  { %6616 = vmatprep.subr.mxu1 %v11641_v51  ;;  %6582 = vmatpush3.msra.mxu0 %v11642_v20  ;;  %v5619_v20 = vld [vmem:[%s11267_s15 + $0x15] sm:$0x1] }
0x215c   :  { %v7451_v0 = vpop.eup %7450  ;;  %6617 = vmatpush3.msra.mxu1 %v11643_v21  ;;  %6583 = vmatprep.subr.mxu0 %v11644_v23 }
0x215d   :  { %v7453_v33 = vpop.eup %7452  ;;  %6618 = vmatprep.subr.mxu1 %v11645_v40  ;;  %6584 = vmatpush3.msra.mxu0 %v11646_v61  ;;  %v5480_v46 = vadd.f32 1.0, %v7451_v0 }
0x215e   :  { %6619 = vmatpush3.msra.mxu1 %v11647_v60  ;;  %6585 = vmatprep.subr.mxu0 %v11648_v17  ;;  %v5482_v36 = vadd.f32 1.0, %v7453_v33  ;;  %v7455_v24 = vpop.eup %7454 }
0x215f   :  { %6620 = vmatprep.subr.mxu1 %v11649_v26  ;;  %6586 = vmatpush3.msra.mxu0 %v11650_v12  ;;  %v5488_v62 = vmul.f32 %v5480_v46, %v5424_v4  ;;  %v7457_v47 = vpop.eup %7456  ;;  %v5479_v25 = vadd.f32 1.0, %v7455_v24 }
0x2160   :  { %6621 = vmatpush3.msra.mxu1 %v11651_v53  ;;  %6587 = vmatprep.subr.mxu0 %v11652_v11  ;;  %v5490_v42 = vmul.f32 %v5482_v36, %v5426_v8  ;;  %v5481_v28 = vadd.f32 1.0, %v7457_v47  ;;  %v6007_v47 = vld [vmem:[%s11266_s14 + $0xa8] sm:$0xff] }
0x2161   :  { %5824 = vmatprep.mubr.f32.mxu0 %v5488_v62  ;;  %6622 = vmatprep.subr.mxu1 %v11653_v34  ;;  %v5487_v50 = vmul.f32 %v5479_v25, %v5423_v52 }
0x2162   :  { %5894 = vmatprep.mubr.f32.mxu1 %v5490_v42  ;;  %6588 = vmatpush3.msra.mxu0 %v11654_v58  ;;  %v5489_v30 = vmul.f32 %v5481_v28, %v5425_v63  ;;  %v5921_v58 = vld [vmem:[%s11266_s14 + $0x78] sm:$0xff]  ;;  %v6096_v63 = vld [vmem:[%s11266_s14 + $0xf0] sm:$0xff] }
0x2163   :  { %6623 = vmatpush3.msra.mxu1 %v11655_v14  ;;  %6589 = vmatprep.subr.mxu0 %v11656_v41  ;;  %v5920_v14 = vld [vmem:[%s11266_s14 + $0x70] sm:$0xff]  ;;  %v5918_v41 = vld [vmem:[%s11266_s14 + $0x60] sm:$0xff] }
0x2164   :  { %6624 = vmatprep.subr.mxu1 %v11657_v56  ;;  %6590 = vmatpush3.msra.mxu0 %v11658_v44  ;;  %v5917_v56 = vld [vmem:[%s11266_s14 + $0x58] sm:$0xff]  ;;  %v5916_v44 = vld [vmem:[%s11266_s14 + $0x50] sm:$0xff] }
0x2165   :  { %6625 = vmatpush3.msra.mxu1 %v11659_v10  ;;  %6591 = vmatprep.subr.mxu0 %v11660_v43  ;;  %v5915_v10 = vld [vmem:[%s11266_s14 + $0x48] sm:$0xff]  ;;  %v5914_v43 = vld [vmem:[%s11266_s14 + $0x40] sm:$0xff] }
0x2166   :  { %6626 = vmatprep.subr.mxu1 %v11661_v37  ;;  %6592 = vmatpush3.msra.mxu0 %v11662_v1 }
0x2167   :  { %6627 = vmatpush3.msra.mxu1 %v11663_v3  ;;  %6593 = vmatprep.subr.mxu0 %v11664_v5 }
0x2168   :  { %6628 = vmatprep.subr.mxu1 %v11665_v48  ;;  %6594 = vmatpush3.msra.mxu0 %v11666_v32  ;;  %v6009_v48 = vld [vmem:[%s11266_s14 + $0xb8] sm:$0xff]  ;;  %v6008_v32 = vld [vmem:[%s11266_s14 + $0xb0] sm:$0xff] }
0x2169   :  { %6629 = vmatpush3.msra.mxu1 %v11667_v15  ;;  %6595 = vmatprep.subr.mxu0 %v11668_v35  ;;  %v6006_v15 = vld [vmem:[%s11266_s14 + $0xa0] sm:$0xff]  ;;  %v6005_v35 = vld [vmem:[%s11266_s14 + $0x98] sm:$0xff] }
0x216a   :  { %6630 = vmatprep.subr.mxu1 %v11669_v7  ;;  %6596 = vmatpush3.msra.mxu0 %v11670_v49  ;;  %v6004_v7 = vld [vmem:[%s11266_s14 + $0x90] sm:$0xff]  ;;  %v6003_v49 = vld [vmem:[%s11266_s14 + $0x88] sm:$0xff] }
0x216b   :  { %6631 = vmatpush3.msra.mxu1 %v11671_v22  ;;  %6597 = vmatprep.subr.mxu0 %v11672_v31  ;;  %v6002_v22 = vld [vmem:[%s11266_s14 + $0x80] sm:$0xff]  ;;  %v5922_v31 = vld [vmem:[%s11267_s15 + $0x16] sm:$0x1] }
0x216c   :  { %6632 = vmatprep.subr.mxu1 %v11673_v55  ;;  %6598 = vmatpush3.msra.mxu0 %v11674_v29 }
0x216d   :  { %6633 = vmatpush3.msra.mxu1 %v11675_v57  ;;  %6599 = vmatprep.subr.mxu0 %v11676_v6 }
0x216e   :  { %6634 = vmatprep.subr.mxu1 %v11677_v18  ;;  %6600 = vmatpush3.msra.mxu0 %v11678_v54  ;;  %v6097_v54 = vld [vmem:[%s11266_s14 + $0xf8] sm:$0xff] }
0x216f   :  { %6635 = vmatpush3.msra.mxu1 %v11679_v16  ;;  %6601 = vmatprep.subr.mxu0 %v11680_v45  ;;  %v6095_v16 = vld [vmem:[%s11266_s14 + $0xe8] sm:$0xff]  ;;  %v6094_v45 = vld [vmem:[%s11266_s14 + $0xe0] sm:$0xff] }
0x2170   :  { %6636 = vmatprep.subr.mxu1 %v11681_v2  ;;  %6602 = vmatpush3.msra.mxu0 %v11682_v27  ;;  %v6092_v2 = vld [vmem:[%s11266_s14 + $0xd0] sm:$0xff]  ;;  %v6091_v27 = vld [vmem:[%s11266_s14 + $0xc8] sm:$0xff] }
0x2171   :  { %6637 = vmatpush3.msra.mxu1 %v11683_v59  ;;  %5825 = vmatmul.mubr.f32.vlgmr.msra.gmra.mxu0 %v5487_v50  ;;  %v6093_v50 = vld [vmem:[%s11266_s14 + $0xd8] sm:$0xff]  ;;  %v6010_v59 = vld [vmem:[%s11267_s15 + $0x17] sm:$0x1] }
0x2172   :  { %5895 = vmatmul.mubr.f32.vlgmr.msra.gmra.mxu1 %v5489_v30  ;;  %7050 = vmatprep.subr.mxu0 %v11480_v13  ;;  %v6090_v30 = vld [vmem:[%s11266_s14 + $0xc0] sm:$0xff] }
0x2173   :  { %7066 = vmatprep.mubr.msk.f32.mxu0 %vm7491_vm0, %v11480_v13  ;;  %7069 = vmatprep.subr.mxu1 %v11480_v13 }
0x2174   :  { %7085 = vmatprep.mubr.msk.f32.mxu1 %vm7491_vm0, %v11480_v13  ;;  %7051 = vmatpush3.msra.mxu0 %v5921_v58 }
0x2175   :  { %7052 = vmatprep.subr.mxu0 %v11480_v13  ;;  %7070 = vmatpush3.msra.mxu1 %v6009_v48 }
0x2176   :  { %7053 = vmatpush3.msra.mxu0 %v5920_v14  ;;  %7071 = vmatprep.subr.mxu1 %v11480_v13 }
0x2177   :  { %7054 = vmatprep.subr.mxu0 %v11480_v13  ;;  %7072 = vmatpush3.msra.mxu1 %v6008_v32 }
0x2178   :  { %7073 = vmatprep.subr.mxu1 %v11480_v13 }
0x2179   :  { %7074 = vmatpush3.msra.mxu1 %v6007_v47 }
0x217a   :  { %7075 = vmatprep.subr.mxu1 %v11480_v13 }
0x217b   :  { %7076 = vmatpush3.msra.mxu1 %v6006_v15 }
0x217c   :  { %7077 = vmatprep.subr.mxu1 %v11480_v13 }
0x217d   :  { %7078 = vmatpush3.msra.mxu1 %v6005_v35 }
0x217e   :  { %7079 = vmatprep.subr.mxu1 %v11480_v13 }
0x217f   :  { %7080 = vmatpush3.msra.mxu1 %v6004_v7 }
0x2180   :  { %7081 = vmatprep.subr.mxu1 %v11480_v13 }
0x2181   :  { %7082 = vmatpush3.msra.mxu1 %v6003_v49 }
0x2182   :  { %7083 = vmatprep.subr.mxu1 %v11480_v13 }
0x2183   :  { %7084 = vmatpush3.msra.mxu1 %v6002_v22 }
0x2210   :  { %v6533_v9 = vpop.f32.mrf.mxu0 }
0x2211   :  { %v6568_v19 = vpop.f32.mrf.mxu1 }
0x2212   :  { %v6534_v39 = vpop.f32.mrf.mxu0 }
0x2213   :  { %v6535_v51 = vadd.f32 %v6534_v39, %v6533_v9  ;;  %v6569_v0 = vpop.f32.mrf.mxu1 }
0x2214   :  { %v6570_v33 = vadd.f32 %v6569_v0, %v6568_v19 }
0x2215   :  { %v5687_v21 = vadd.f32 %v6535_v51, %v5619_v20 }
0x2217   :  { %v5757_v4 = vadd.f32 %v6570_v33, %v5687_v21 }
0x2231   :  { %v6603_v23 = vpop.f32.mrf.mxu0 }
0x2232   :  { %v6638_v40 = vpop.f32.mrf.mxu1 }
0x2233   :  { %v6604_v61 = vpop.f32.mrf.mxu0 }
0x2234   :  { %v6605_v46 = vadd.f32 %v6604_v61, %v6603_v23  ;;  %v6639_v60 = vpop.f32.mrf.mxu1 }
0x2235   :  { %v6640_v8 = vadd.f32 %v6639_v60, %v6638_v40 }
0x2236   :  { %v5827_v17 = vadd.f32 %v6605_v46, %v5757_v4 }
0x2238   :  { %v5897_v36 = vadd.f32 %v6640_v8, %v5827_v17 }
0x223a   :  { %v5900_v26 = vadd.f32 %v5897_v36, %v10877_v38  ;;  %v5919_v38 = vld [vmem:[%s11266_s14 + $0x68] sm:$0xff] }
0x223b   :  { %7055 = vmatpush3.msra.mxu0 %v5919_v38 }
0x223c   :  { %v5901_v12 = vsel %vm5004_vm2, %v5900_v26, 0.0  ;;  %7056 = vmatprep.subr.mxu0 %v11480_v13 }
0x223d   :  { %5902 = vadd.xlane.f32.xlu0 %v5901_v12  ;;  %7057 = vmatpush3.msra.mxu0 %v5918_v41 }
0x223e   :  { %7058 = vmatprep.subr.mxu0 %v11480_v13 }
0x223f   :  { %7059 = vmatpush3.msra.mxu0 %v5917_v56 }
0x2240   :  { %7060 = vmatprep.subr.mxu0 %v11480_v13 }
0x2241   :  { %7061 = vmatpush3.msra.mxu0 %v5916_v44 }
0x2242   :  { %7062 = vmatprep.subr.mxu0 %v11480_v13 }
0x2243   :  { %7063 = vmatpush3.msra.mxu0 %v5915_v10 }
0x2244   :  { %7064 = vmatprep.subr.mxu0 %v11480_v13 }
0x2245   :  { %7065 = vmatpush3.msra.mxu0 %v5914_v43 }
0x2246   :  { %7088 = vmatprep.subr.mxu0 %v11480_v13 }
0x22c6   :  { %v5903_v62 = vpop.xlane.xlu0 %5902 }
0x22c7   :  { %v5904_v53 = vmul.f32 0.015625, %v5903_v62 }
0x22c9   :  { %v5905_v11 = vsub.f32 %v5900_v26, %v5904_v53 }
0x22cb   :  { %v5906_v42 = vmul.f32 %v5905_v11, %v5905_v11 }
0x22cd   :  { %v5907_v34 = vsel %vm5004_vm2, %v5906_v42, 0.0 }
0x22ce   :  { %5908 = vadd.xlane.f32.xlu0 %v5907_v34 }
0x2357   :  { %v5909_v37 = vpop.xlane.xlu0 %5908 }
0x2358   :  { %v5910_v1 = vmul.f32 0.015625, %v5909_v37 }
0x235a   :  { %v5911_v3 = vadd.f32 1e-05, %v5910_v1 }
0x235c   :  { %7458 = vrsqrt.f32 %v5911_v3 }
0x2369   :  { %v7459_v5 = vpop.eup %7458 }
0x236a   :  { %v5913_v24 = vmul.f32 %v7459_v5, %v5905_v11 }
0x236c   :  { %7067 = vmatmul.mubr.msk.f32.vlgmr.msra.gmra.mxu0 %vm2526_vm1, %v5913_v24 }
0x236d   :  { %7104 = vmatprep.mubr.msk.f32.mxu0 %vm7491_vm0, %v11480_v13  ;;  %7089 = vmatpush3.msra.mxu0 %v6097_v54 }
0x236e   :  { %7090 = vmatprep.subr.mxu0 %v11480_v13 }
0x236f   :  { %7091 = vmatpush3.msra.mxu0 %v6096_v63 }
0x2370   :  { %7092 = vmatprep.subr.mxu0 %v11480_v13 }
0x2371   :  { %7093 = vmatpush3.msra.mxu0 %v6095_v16 }
0x2372   :  { %7094 = vmatprep.subr.mxu0 %v11480_v13 }
0x2373   :  { %7095 = vmatpush3.msra.mxu0 %v6094_v45 }
0x2374   :  { %7096 = vmatprep.subr.mxu0 %v11480_v13 }
0x2375   :  { %7097 = vmatpush3.msra.mxu0 %v6093_v50 }
0x2376   :  { %7098 = vmatprep.subr.mxu0 %v11480_v13 }
0x2377   :  { %7099 = vmatpush3.msra.mxu0 %v6092_v2 }
0x2378   :  { %7100 = vmatprep.subr.mxu0 %v11480_v13 }
0x2379   :  { %7101 = vmatpush3.msra.mxu0 %v6091_v27 }
0x237a   :  { %7102 = vmatprep.subr.mxu0 %v11480_v13  ;;  %v6098_v13 = vld [vmem:[%s11267_s15 + $0x18] sm:$0x1] }
0x237b   :  { %7103 = vmatpush3.msra.mxu0 %v6090_v30 }
0x242c   :  { %v5992_v25 = vpop.f32.mrf.mxu0 }
0x242d   :  { %v5993_v55 = vadd.f32 %v5992_v25, %v5922_v31 }
0x242e   :  { %v7068_v29 = vpop.f32.mrf.mxu0 }
0x242f   :  { %v5997_v28 = vmin.f32 %v5993_v55, 0.0  ;;  %vm5996_vm0 = vcmp.gt.f32.partialorder %v5993_v55, 0.0 }
0x2431   :  { %v5998_v57 = vmul.f32 1.442695, %v5997_v28 }
0x2433   :  { %7460 = vpow2.f32 %v5998_v57 }
0x2440   :  { %v7461_v6 = vpop.eup %7460 }
0x2441   :  { %v6337_v52 = vadd.f32 -1.0, %v7461_v6 }
0x2443   :  { %v6001_v18 = vsel %vm5996_vm0, %v5993_v55, %v6337_v52 }
0x2444   :  { %7086 = vmatmul.mubr.msk.f32.vlgmr.msra.gmra.mxu1 %vm2526_vm1, %v6001_v18 }
0x2504   :  { %v6080_v9 = vpop.f32.mrf.mxu1 }
0x2505   :  { %v6081_v39 = vadd.f32 %v6080_v9, %v6010_v59 }
0x2506   :  { %v7087_v19 = vpop.f32.mrf.mxu1 }
0x2507   :  { %v6085_v51 = vmin.f32 %v6081_v39, 0.0  ;;  %vm6084_vm3 = vcmp.gt.f32.partialorder %v6081_v39, 0.0 }
0x2509   :  { %v6086_v20 = vmul.f32 1.442695, %v6085_v51 }
0x250b   :  { %7462 = vpow2.f32 %v6086_v20 }
0x2518   :  { %v7463_v0 = vpop.eup %7462 }
0x2519   :  { %v6339_v21 = vadd.f32 -1.0, %v7463_v0 }
0x251b   :  { %v6089_v23 = vsel %vm6084_vm3, %v6081_v39, %v6339_v21 }
0x251c   :  { %7105 = vmatmul.mubr.msk.f32.vlgmr.msra.gmra.mxu0 %vm2526_vm1, %v6089_v23 }
0x25dc   :  { %v6168_v33 = vpop.f32.mrf.mxu0 }
0x25dd   :  { %v6169_v40 = vadd.f32 %v6168_v33, %v6098_v13 }
0x25de   :  { %v7106_v61 = vpop.f32.mrf.mxu0 }
0x25df   :  { %6173 = vst.msk [vmem:[#allocation5] sm:$0x1] %vm6172_vm4, %v6169_v40 }
0x25e0   :  { %7475 = shalt.err (!%p7472_p4)
}
0x25e1   :  { %6183 = dma.vmem_to_hbm [thread:$0]  %s6181_s30, 16, %s11270_s18, [#allocation6]  }
0x25e2   :  { %7488 = dma.done.wait [#allocation6], 16  }
0x25e3   :  { %7489 = vsyncadd [#allocation6], 4294967280 }
0x25e4   :  { %6187 = vsyncpa [#allocation6], 1 }
0x25e5   :  { %6188 = vsyncmov [#allocation4] }
0x25e8   :  { %s6189_s15 = vpop.sfrf %6188 }
0x25e9   :  { %p6341_p5 = scmp.ne.s32.totalorder %s6189_s15, 0 }
0x25eb   :  { %6193 = shalt.err (%p6341_p5)  }
0x25ec   :  { %6195 = vsyncmov [#allocation4 + $0x1] }
0x25ef   :  { %s6196_s20 = vpop.sfrf %6195 }
0x25f0   :  { %p6342_p6 = scmp.ne.s32.totalorder %s6196_s20, 0 }
0x25f2   :  { %6200 = shalt.err (%p6342_p6)  }

</bundles_post_ra>
